<compile_context>
chip_gen: v6e
topology: v6e:2x2x1
jax: 0.10.0
libtpu: 0.0.40
codegen_flags: <defaults>
</compile_context>

<pallas_src>
import functools

import jax
import jax.numpy as jnp
from jax import lax
from jax.experimental import pallas as pl
from jax.experimental.pallas import tpu as pltpu


# ----------------------------- in-kernel helpers ----------------------------

def _topk_onehot(dist, k):
    """(k*N, N) one-hot selection matrix of the k nearest neighbors.

    dist[i, j] = -||x_i - x_j||^2 (larger == closer, the torch `knn` formula).
    k iterative masked-argmax passes over a single distance buffer; ties break
    toward the lowest column index.  The k selections are max-reduced later,
    so ordering does not matter.
    """
    n = dist.shape[0]
    colf = lax.broadcasted_iota(jnp.int32, (n, n), 1).astype(jnp.float32)
    d = dist
    onehots = []
    for _ in range(k):
        m = jnp.max(d, axis=-1, keepdims=True)                    # (N, 1)
        cand = jnp.where(d == m, colf, jnp.float32(n))             # (N, N)
        idx = jnp.min(cand, axis=-1, keepdims=True)                # (N, 1)
        picked = colf == idx                                       # (N, N) bool
        onehots.append(picked.astype(jnp.float32))
        d = jnp.where(picked, jnp.float32(-jnp.inf), d)            # mask pick
    return jnp.concatenate(onehots, axis=0)                        # (k*N, N)


def _edge_layer(xs, w_nbr_ref, w_ctr_ref, *, k, bblk, n):
    """One DGCNN block over a stack of `bblk` point clouds.

    xs: (bblk*n, C) f32 features (channel-last so every conv is an MXU matmul).
    The two weight matmuls run once on the whole stack (M = bblk*n); the knn
    graph, selection gather and epilogue stay per point cloud.
    """
    wdt = w_nbr_ref.dtype
    xw = xs.astype(wdt)
    xw_nbr = jnp.dot(xw, w_nbr_ref[...], preferred_element_type=jnp.float32)
    xw_ctr = jnp.dot(xw, w_ctr_ref[...], preferred_element_type=jnp.float32)

    outs = []
    for b in range(bblk):
        lo, hi = b * n, (b + 1) * n       # multiples of n (>= 8): aligned rows
        x_b = xs[lo:hi]                                            # (n, C) f32

        # Negative squared pairwise distance, f32 for knn precision.
        inner = lax.dot_general(x_b, x_b, (((1,), (1,)), ((), ())),
                                preferred_element_type=jnp.float32)  # (n, n)
        sq = jnp.sum(x_b * x_b, axis=-1, keepdims=True)              # (n, 1)
        dist = 2.0 * inner - sq - sq.T

        sel = _topk_onehot(dist, k)                                  # (k*n, n)

        # Gather-as-matmul: one MXU push with M = k*n.
        y = jnp.dot(sel, xw_nbr[lo:hi], preferred_element_type=jnp.float32)

        # ReLU monotonicity: max_p relu(y_p + ctr) == relu(max_p y_p + ctr).
        acc = y[0:n]
        for p in range(1, k):
            acc = jnp.maximum(acc, y[p * n:(p + 1) * n])
        outs.append(jnp.maximum(acc + xw_ctr[lo:hi], 0.0))          # (n, Cout)
    return outs[0] if bblk == 1 else jnp.concatenate(outs, axis=0)


# ----------------------------- fused kernel ---------------------------------

def _dgcnn_fused_kernel(x_ref,
                        w1n_ref, w1c_ref, w2n_ref, w2c_ref,
                        w3n_ref, w3c_ref, w4n_ref, w4c_ref,
                        w5a_ref, w5b_ref, w5c_ref, w5d_ref,
                        o_ref, *, k, bblk, n, act):
    # Stack the bblk point clouds along the sublane (row) axis.
    x0 = jnp.concatenate([x_ref[b] for b in range(bblk)],
                         axis=0).astype(jnp.float32)                # (bblk*n, 3)

    x1 = _edge_layer(x0, w1n_ref, w1c_ref, k=k, bblk=bblk, n=n)     # (., 64)
    x2 = _edge_layer(x1, w2n_ref, w2c_ref, k=k, bblk=bblk, n=n)     # (., 64)
    x3 = _edge_layer(x2, w3n_ref, w3c_ref, k=k, bblk=bblk, n=n)     # (., 128)
    x4 = _edge_layer(x3, w4n_ref, w4c_ref, k=k, bblk=bblk, n=n)     # (., 256)

    # conv5 without materialising the 512-wide concat or the full w5 value:
    # cat(x1..x4) @ W5 == sum_i xi @ W5_row_block_i (each block its own ref).
    wdt = w5a_ref.dtype
    y = jnp.dot(x1.astype(wdt), w5a_ref[...], preferred_element_type=jnp.float32)
    y = y + jnp.dot(x2.astype(wdt), w5b_ref[...], preferred_element_type=jnp.float32)
    y = y + jnp.dot(x3.astype(wdt), w5c_ref[...], preferred_element_type=jnp.float32)
    y = y + jnp.dot(x4.astype(wdt), w5d_ref[...], preferred_element_type=jnp.float32)

    if act == "tanh":
        y = jnp.tanh(y)
    else:
        y = jnp.maximum(y, 0.0)

    for b in range(bblk):
        o_ref[b] = y[b * n:(b + 1) * n].astype(o_ref.dtype)         # lane-dense


# ----------------------------- wrapper ---------------------------------------

_WEIGHT_ORDER = ("w1n", "w1c", "w2n", "w2c", "w3n", "w3c", "w4n", "w4c",
                 "w5a", "w5b", "w5c", "w5d")


def _pick_batch_block(batch, n, *, target_rows=128, min_grid_steps=2):
    """Largest divisor of `batch` whose stacked rows stay <= target_rows while
    keeping >= min_grid_steps grid steps (one per v7x TensorCore)."""
    best = 1
    for cand in range(1, batch + 1):
        if batch % cand != 0:
            continue
        if cand * n > target_rows:
            continue
        if (batch // cand) < min(min_grid_steps, batch):
            continue
        best = cand
    return best


def dgcnn_forward(x_bcn, params, if_relu_atlast=False, k=4):
    """x_bcn: (B, C, N) like the PyTorch module. Returns (B, emb_dims, N)."""
    B, C, N = x_bcn.shape
    x = jnp.transpose(x_bcn, (0, 2, 1)).astype(jnp.float32)         # (B, N, C)

    emb = params["w5a"].shape[1]
    bblk = _pick_batch_block(B, N)
    weights = tuple(params[name] for name in _WEIGHT_ORDER)
    w_specs = [pl.BlockSpec(w.shape, lambda b: (0, 0)) for w in weights]

    out = pl.pallas_call(
        functools.partial(_dgcnn_fused_kernel, k=k, bblk=bblk, n=N,
                          act="relu" if if_relu_atlast else "tanh"),
        out_shape=jax.ShapeDtypeStruct((B, N, emb), jnp.float32),
        grid=(B // bblk,),
        in_specs=[pl.BlockSpec((bblk, N, C), lambda b: (b, 0, 0))] + w_specs,
        out_specs=pl.BlockSpec((bblk, N, emb), lambda b: (b, 0, 0)),
        compiler_params=pltpu.CompilerParams(
            dimension_semantics=("parallel",)),   # batch axis -> both v7x TCs
    )(x, *weights)
    # At N=16 the (N, emb) in-kernel layout is the lane-dense one; transpose in
    # the wrapper (negligible here; large-N path would emit (B, emb, N) directly).
    return jnp.transpose(out, (0, 2, 1))                            # (B, emb, N)


# ----------------------------- params -----------------------------------------

def xavier_normal_conv(key, out_ch, in_ch, gain=1.0):
    """torch.nn.init.xavier_normal_ on a (out_ch, in_ch, 1, 1) conv weight,
    returned as (in_ch, out_ch) for channel-last matmul."""
    std = gain * (2.0 / (in_ch + out_ch)) ** 0.5
    w = std * jax.random.normal(key, (out_ch, in_ch), jnp.float32)
    return w.T


def make_params(key, emb_dims=512, dtype=jnp.bfloat16):
    k1, k2, k3, k4, k5 = jax.random.split(key, 5)
    w1 = xavier_normal_conv(k1, 64, 6)            # conv1: Conv2d(6, 64, 1)
    w2 = xavier_normal_conv(k2, 64, 128)          # conv2: Conv2d(128, 64, 1)
    w3 = xavier_normal_conv(k3, 128, 128)         # conv3: Conv2d(128, 128, 1)
    w4 = xavier_normal_conv(k4, 256, 256)         # conv4: Conv2d(256, 256, 1)
    w5 = xavier_normal_conv(k5, emb_dims, 512)    # conv5: Conv2d(512, emb, 1)
    # Pre-split every edge-conv weight into neighbor/center halves and w5 into
    # its four 8-aligned row blocks, stored in bf16 (halves HBM weight traffic;
    # matmul accumulation stays f32 inside the kernel).
    return {
        "w1n": w1[:3].astype(dtype),    "w1c": w1[3:].astype(dtype),
        "w2n": w2[:64].astype(dtype),   "w2c": w2[64:].astype(dtype),
        "w3n": w3[:64].astype(dtype),   "w3c": w3[64:].astype(dtype),
        "w4n": w4[:128].astype(dtype),  "w4c": w4[128:].astype(dtype),
        "w5a": w5[0:64].astype(dtype),  "w5b": w5[64:128].astype(dtype),
        "w5c": w5[128:256].astype(dtype), "w5d": w5[256:512].astype(dtype),
    }


# ----------------------------- main -------------------------------------------

if __name__ == "__main__":
    emb_dims = 512
    key = jax.random.PRNGKey(0)
    kx, kp = jax.random.split(key)
    params = make_params(kp, emb_dims)

    # Small input consistent with the module: (batch=8, dims=3, points=16).
    # B=8, N=16 -> batch block of 4 (stacked M=64) with 2 grid steps.
    x = jax.random.normal(kx, (8, 3, 16), jnp.float32)

    fwd = jax.jit(functools.partial(dgcnn_forward, params=params,
                                    if_relu_atlast=False))
    out = jax.block_until_ready(fwd(x))

    assert out.shape == (8, emb_dims, 16), out.shape
    assert bool(jnp.all(jnp.isfinite(out)))
    assert bool(jnp.all(jnp.abs(out) <= 1.0))     # tanh head is bounded
    print("KERNEL_OK")
</pallas_src>

<mosaic_0001>
module attributes {stable_mosaic.version = 11 : i64} {
  func.func @_dgcnn_fused_kernel(%arg0: i32, %arg1: memref<4x16x3xf32, #tpu.memory_space<vmem>>, %arg2: memref<3x64xbf16, #tpu.memory_space<vmem>>, %arg3: memref<3x64xbf16, #tpu.memory_space<vmem>>, %arg4: memref<64x64xbf16, #tpu.memory_space<vmem>>, %arg5: memref<64x64xbf16, #tpu.memory_space<vmem>>, %arg6: memref<64x128xbf16, #tpu.memory_space<vmem>>, %arg7: memref<64x128xbf16, #tpu.memory_space<vmem>>, %arg8: memref<128x256xbf16, #tpu.memory_space<vmem>>, %arg9: memref<128x256xbf16, #tpu.memory_space<vmem>>, %arg10: memref<64x512xbf16, #tpu.memory_space<vmem>>, %arg11: memref<64x512xbf16, #tpu.memory_space<vmem>>, %arg12: memref<128x512xbf16, #tpu.memory_space<vmem>>, %arg13: memref<256x512xbf16, #tpu.memory_space<vmem>>, %arg14: memref<4x16x512xf32, #tpu.memory_space<vmem>>) attributes {dimension_semantics = [#tpu.dimension_semantics<parallel>], iteration_bounds = array<i64: 2>, scalar_prefetch = 0 : i64, scratch_operands = 0 : i64, tpu.core_type = #tpu.core_type<tc>, window_params = [{transform_indices = @transform_0, window_bounds = array<i64: 4, 16, 3>}, {pipeline_mode = #tpu.pipeline_mode<synchronous>, transform_indices = @transform_1, window_bounds = array<i64: 3, 64>}, {pipeline_mode = #tpu.pipeline_mode<synchronous>, transform_indices = @transform_2, window_bounds = array<i64: 3, 64>}, {pipeline_mode = #tpu.pipeline_mode<synchronous>, transform_indices = @transform_3, window_bounds = array<i64: 64, 64>}, {pipeline_mode = #tpu.pipeline_mode<synchronous>, transform_indices = @transform_4, window_bounds = array<i64: 64, 64>}, {pipeline_mode = #tpu.pipeline_mode<synchronous>, transform_indices = @transform_5, window_bounds = array<i64: 64, 128>}, {pipeline_mode = #tpu.pipeline_mode<synchronous>, transform_indices = @transform_6, window_bounds = array<i64: 64, 128>}, {pipeline_mode = #tpu.pipeline_mode<synchronous>, transform_indices = @transform_7, window_bounds = array<i64: 128, 256>}, {pipeline_mode = #tpu.pipeline_mode<synchronous>, transform_indices = @transform_8, window_bounds = array<i64: 128, 256>}, {pipeline_mode = #tpu.pipeline_mode<synchronous>, transform_indices = @transform_9, window_bounds = array<i64: 64, 512>}, {pipeline_mode = #tpu.pipeline_mode<synchronous>, transform_indices = @transform_10, window_bounds = array<i64: 64, 512>}, {pipeline_mode = #tpu.pipeline_mode<synchronous>, transform_indices = @transform_11, window_bounds = array<i64: 128, 512>}, {pipeline_mode = #tpu.pipeline_mode<synchronous>, transform_indices = @transform_12, window_bounds = array<i64: 256, 512>}, {transform_indices = @transform_13, window_bounds = array<i64: 4, 16, 512>}]} {
    %c0 = arith.constant 0 : index
    %c0_0 = arith.constant 0 : index
    %c0_1 = arith.constant 0 : index
    %0 = vector.load %arg1[%c0, %c0_0, %c0_1] : memref<4x16x3xf32, #tpu.memory_space<vmem>>, vector<1x16x3xf32>
    %1 = vector.shape_cast %0 : vector<1x16x3xf32> to vector<16x3xf32>
    %c1 = arith.constant 1 : index
    %c0_2 = arith.constant 0 : index
    %c0_3 = arith.constant 0 : index
    %2 = vector.load %arg1[%c1, %c0_2, %c0_3] : memref<4x16x3xf32, #tpu.memory_space<vmem>>, vector<1x16x3xf32>
    %3 = vector.shape_cast %2 : vector<1x16x3xf32> to vector<16x3xf32>
    %c2 = arith.constant 2 : index
    %c0_4 = arith.constant 0 : index
    %c0_5 = arith.constant 0 : index
    %4 = vector.load %arg1[%c2, %c0_4, %c0_5] : memref<4x16x3xf32, #tpu.memory_space<vmem>>, vector<1x16x3xf32>
    %5 = vector.shape_cast %4 : vector<1x16x3xf32> to vector<16x3xf32>
    %c3 = arith.constant 3 : index
    %c0_6 = arith.constant 0 : index
    %c0_7 = arith.constant 0 : index
    %6 = vector.load %arg1[%c3, %c0_6, %c0_7] : memref<4x16x3xf32, #tpu.memory_space<vmem>>, vector<1x16x3xf32>
    %7 = vector.shape_cast %6 : vector<1x16x3xf32> to vector<16x3xf32>
    %8 = tpu.concatenate %1, %3, %5, %7 in 0 : vector<16x3xf32>, vector<16x3xf32>, vector<16x3xf32>, vector<16x3xf32> -> vector<64x3xf32>
    %9 = arith.truncf %8 : vector<64x3xf32> to vector<64x3xbf16>
    %c0_8 = arith.constant 0 : index
    %c0_9 = arith.constant 0 : index
    %10 = vector.load %arg2[%c0_8, %c0_9] : memref<3x64xbf16, #tpu.memory_space<vmem>>, vector<3x64xbf16>
    %cst = arith.constant dense<0.000000e+00> : vector<64x64xf32>
    %11 = tpu.matmul %9, %10, %cst {dimension_numbers = #tpu.dot_dimension_numbers<[1], [0], [0], [1], [0, 0, 1, 1], [], []>} : vector<64x3xbf16>, vector<3x64xbf16>, vector<64x64xf32> -> vector<64x64xf32>
    %c0_10 = arith.constant 0 : index
    %c0_11 = arith.constant 0 : index
    %12 = vector.load %arg3[%c0_10, %c0_11] : memref<3x64xbf16, #tpu.memory_space<vmem>>, vector<3x64xbf16>
    %cst_12 = arith.constant dense<0.000000e+00> : vector<64x64xf32>
    %13 = tpu.matmul %9, %12, %cst_12 {dimension_numbers = #tpu.dot_dimension_numbers<[1], [0], [0], [1], [0, 0, 1, 1], [], []>} : vector<64x3xbf16>, vector<3x64xbf16>, vector<64x64xf32> -> vector<64x64xf32>
    %14 = vector.extract_strided_slice %8 {offsets = [0, 0], sizes = [16, 3], strides = [1, 1]} : vector<64x3xf32> to vector<16x3xf32>
    %cst_13 = arith.constant dense<0.000000e+00> : vector<16x16xf32>
    %15 = tpu.matmul %14, %14, %cst_13 {dimension_numbers = #tpu.dot_dimension_numbers<[1], [1], [0], [0], [0, 0, 1, 0], [], []>} : vector<16x3xf32>, vector<16x3xf32>, vector<16x16xf32> -> vector<16x16xf32>
    %16 = arith.mulf %14, %14 : vector<16x3xf32>
    %cst_14 = arith.constant dense<0.000000e+00> : vector<16xf32>
    %17 = vector.multi_reduction <add>, %16, %cst_14 [1] : vector<16x3xf32> to vector<16xf32>
    %18 = vector.shape_cast %17 : vector<16xf32> to vector<16x1xf32>
    %cst_15 = arith.constant 2.000000e+00 : f32
    %19 = vector.broadcast %cst_15 : f32 to vector<16x16xf32>
    %20 = arith.mulf %19, %15 : vector<16x16xf32>
    %21 = vector.broadcast %18 : vector<16x1xf32> to vector<16x16xf32>
    %22 = arith.subf %20, %21 : vector<16x16xf32>
    %23 = tpu.transpose %18, [1, 0] : vector<16x1xf32> -> vector<1x16xf32>
    %24 = vector.broadcast %23 : vector<1x16xf32> to vector<16x16xf32>
    %25 = arith.subf %22, %24 : vector<16x16xf32>
    %26 = tpu.iota {dimensions = array<i32: 1>} : vector<16x16xi32>
    %27 = arith.sitofp %26 : vector<16x16xi32> to vector<16x16xf32>
    %cst_16 = arith.constant dense<0xFF800000> : vector<16xf32>
    %28 = vector.multi_reduction <maximumf>, %25, %cst_16 [1] : vector<16x16xf32> to vector<16xf32>
    %29 = vector.shape_cast %28 : vector<16xf32> to vector<16x1xf32>
    %30 = vector.broadcast %29 : vector<16x1xf32> to vector<16x16xf32>
    %31 = arith.cmpf oeq, %25, %30 : vector<16x16xf32>
    %cst_17 = arith.constant 1.600000e+01 : f32
    %32 = vector.broadcast %cst_17 : f32 to vector<16x16xf32>
    %33 = arith.select %31, %27, %32 : vector<16x16xi1>, vector<16x16xf32>
    %cst_18 = arith.constant dense<0x7F800000> : vector<16xf32>
    %34 = vector.multi_reduction <minimumf>, %33, %cst_18 [1] : vector<16x16xf32> to vector<16xf32>
    %35 = vector.shape_cast %34 : vector<16xf32> to vector<16x1xf32>
    %36 = vector.broadcast %35 : vector<16x1xf32> to vector<16x16xf32>
    %37 = arith.cmpf oeq, %27, %36 : vector<16x16xf32>
    %38 = arith.extui %37 : vector<16x16xi1> to vector<16x16xi32>
    %39 = arith.sitofp %38 : vector<16x16xi32> to vector<16x16xf32>
    %cst_19 = arith.constant 0xFF800000 : f32
    %40 = vector.broadcast %cst_19 : f32 to vector<16x16xf32>
    %41 = arith.select %37, %40, %25 : vector<16x16xi1>, vector<16x16xf32>
    %cst_20 = arith.constant dense<0xFF800000> : vector<16xf32>
    %42 = vector.multi_reduction <maximumf>, %41, %cst_20 [1] : vector<16x16xf32> to vector<16xf32>
    %43 = vector.shape_cast %42 : vector<16xf32> to vector<16x1xf32>
    %44 = vector.broadcast %43 : vector<16x1xf32> to vector<16x16xf32>
    %45 = arith.cmpf oeq, %41, %44 : vector<16x16xf32>
    %cst_21 = arith.constant 1.600000e+01 : f32
    %46 = vector.broadcast %cst_21 : f32 to vector<16x16xf32>
    %47 = arith.select %45, %27, %46 : vector<16x16xi1>, vector<16x16xf32>
    %cst_22 = arith.constant dense<0x7F800000> : vector<16xf32>
    %48 = vector.multi_reduction <minimumf>, %47, %cst_22 [1] : vector<16x16xf32> to vector<16xf32>
    %49 = vector.shape_cast %48 : vector<16xf32> to vector<16x1xf32>
    %50 = vector.broadcast %49 : vector<16x1xf32> to vector<16x16xf32>
    %51 = arith.cmpf oeq, %27, %50 : vector<16x16xf32>
    %52 = arith.extui %51 : vector<16x16xi1> to vector<16x16xi32>
    %53 = arith.sitofp %52 : vector<16x16xi32> to vector<16x16xf32>
    %cst_23 = arith.constant 0xFF800000 : f32
    %54 = vector.broadcast %cst_23 : f32 to vector<16x16xf32>
    %55 = arith.select %51, %54, %41 : vector<16x16xi1>, vector<16x16xf32>
    %cst_24 = arith.constant dense<0xFF800000> : vector<16xf32>
    %56 = vector.multi_reduction <maximumf>, %55, %cst_24 [1] : vector<16x16xf32> to vector<16xf32>
    %57 = vector.shape_cast %56 : vector<16xf32> to vector<16x1xf32>
    %58 = vector.broadcast %57 : vector<16x1xf32> to vector<16x16xf32>
    %59 = arith.cmpf oeq, %55, %58 : vector<16x16xf32>
    %cst_25 = arith.constant 1.600000e+01 : f32
    %60 = vector.broadcast %cst_25 : f32 to vector<16x16xf32>
    %61 = arith.select %59, %27, %60 : vector<16x16xi1>, vector<16x16xf32>
    %cst_26 = arith.constant dense<0x7F800000> : vector<16xf32>
    %62 = vector.multi_reduction <minimumf>, %61, %cst_26 [1] : vector<16x16xf32> to vector<16xf32>
    %63 = vector.shape_cast %62 : vector<16xf32> to vector<16x1xf32>
    %64 = vector.broadcast %63 : vector<16x1xf32> to vector<16x16xf32>
    %65 = arith.cmpf oeq, %27, %64 : vector<16x16xf32>
    %66 = arith.extui %65 : vector<16x16xi1> to vector<16x16xi32>
    %67 = arith.sitofp %66 : vector<16x16xi32> to vector<16x16xf32>
    %cst_27 = arith.constant 0xFF800000 : f32
    %68 = vector.broadcast %cst_27 : f32 to vector<16x16xf32>
    %69 = arith.select %65, %68, %55 : vector<16x16xi1>, vector<16x16xf32>
    %cst_28 = arith.constant dense<0xFF800000> : vector<16xf32>
    %70 = vector.multi_reduction <maximumf>, %69, %cst_28 [1] : vector<16x16xf32> to vector<16xf32>
    %71 = vector.shape_cast %70 : vector<16xf32> to vector<16x1xf32>
    %72 = vector.broadcast %71 : vector<16x1xf32> to vector<16x16xf32>
    %73 = arith.cmpf oeq, %69, %72 : vector<16x16xf32>
    %cst_29 = arith.constant 1.600000e+01 : f32
    %74 = vector.broadcast %cst_29 : f32 to vector<16x16xf32>
    %75 = arith.select %73, %27, %74 : vector<16x16xi1>, vector<16x16xf32>
    %cst_30 = arith.constant dense<0x7F800000> : vector<16xf32>
    %76 = vector.multi_reduction <minimumf>, %75, %cst_30 [1] : vector<16x16xf32> to vector<16xf32>
    %77 = vector.shape_cast %76 : vector<16xf32> to vector<16x1xf32>
    %78 = vector.broadcast %77 : vector<16x1xf32> to vector<16x16xf32>
    %79 = arith.cmpf oeq, %27, %78 : vector<16x16xf32>
    %80 = arith.extui %79 : vector<16x16xi1> to vector<16x16xi32>
    %81 = arith.sitofp %80 : vector<16x16xi32> to vector<16x16xf32>
    %82 = tpu.concatenate %39, %53, %67, %81 in 0 : vector<16x16xf32>, vector<16x16xf32>, vector<16x16xf32>, vector<16x16xf32> -> vector<64x16xf32>
    %83 = vector.extract_strided_slice %11 {offsets = [0, 0], sizes = [16, 64], strides = [1, 1]} : vector<64x64xf32> to vector<16x64xf32>
    %cst_31 = arith.constant dense<0.000000e+00> : vector<64x64xf32>
    %84 = tpu.matmul %82, %83, %cst_31 {dimension_numbers = #tpu.dot_dimension_numbers<[1], [0], [0], [1], [0, 0, 1, 1], [], []>} : vector<64x16xf32>, vector<16x64xf32>, vector<64x64xf32> -> vector<64x64xf32>
    %85 = vector.extract_strided_slice %84 {offsets = [0, 0], sizes = [16, 64], strides = [1, 1]} : vector<64x64xf32> to vector<16x64xf32>
    %86 = vector.extract_strided_slice %84 {offsets = [16, 0], sizes = [16, 64], strides = [1, 1]} : vector<64x64xf32> to vector<16x64xf32>
    %87 = arith.maximumf %85, %86 : vector<16x64xf32>
    %88 = vector.extract_strided_slice %84 {offsets = [32, 0], sizes = [16, 64], strides = [1, 1]} : vector<64x64xf32> to vector<16x64xf32>
    %89 = arith.maximumf %87, %88 : vector<16x64xf32>
    %90 = vector.extract_strided_slice %84 {offsets = [48, 0], sizes = [16, 64], strides = [1, 1]} : vector<64x64xf32> to vector<16x64xf32>
    %91 = arith.maximumf %89, %90 : vector<16x64xf32>
    %92 = vector.extract_strided_slice %13 {offsets = [0, 0], sizes = [16, 64], strides = [1, 1]} : vector<64x64xf32> to vector<16x64xf32>
    %93 = arith.addf %91, %92 : vector<16x64xf32>
    %cst_32 = arith.constant 0.000000e+00 : f32
    %94 = vector.broadcast %cst_32 : f32 to vector<16x64xf32>
    %95 = arith.maximumf %93, %94 : vector<16x64xf32>
    %96 = vector.extract_strided_slice %8 {offsets = [16, 0], sizes = [16, 3], strides = [1, 1]} : vector<64x3xf32> to vector<16x3xf32>
    %cst_33 = arith.constant dense<0.000000e+00> : vector<16x16xf32>
    %97 = tpu.matmul %96, %96, %cst_33 {dimension_numbers = #tpu.dot_dimension_numbers<[1], [1], [0], [0], [0, 0, 1, 0], [], []>} : vector<16x3xf32>, vector<16x3xf32>, vector<16x16xf32> -> vector<16x16xf32>
    %98 = arith.mulf %96, %96 : vector<16x3xf32>
    %cst_34 = arith.constant dense<0.000000e+00> : vector<16xf32>
    %99 = vector.multi_reduction <add>, %98, %cst_34 [1] : vector<16x3xf32> to vector<16xf32>
    %100 = vector.shape_cast %99 : vector<16xf32> to vector<16x1xf32>
    %cst_35 = arith.constant 2.000000e+00 : f32
    %101 = vector.broadcast %cst_35 : f32 to vector<16x16xf32>
    %102 = arith.mulf %101, %97 : vector<16x16xf32>
    %103 = vector.broadcast %100 : vector<16x1xf32> to vector<16x16xf32>
    %104 = arith.subf %102, %103 : vector<16x16xf32>
    %105 = tpu.transpose %100, [1, 0] : vector<16x1xf32> -> vector<1x16xf32>
    %106 = vector.broadcast %105 : vector<1x16xf32> to vector<16x16xf32>
    %107 = arith.subf %104, %106 : vector<16x16xf32>
    %108 = tpu.iota {dimensions = array<i32: 1>} : vector<16x16xi32>
    %109 = arith.sitofp %108 : vector<16x16xi32> to vector<16x16xf32>
    %cst_36 = arith.constant dense<0xFF800000> : vector<16xf32>
    %110 = vector.multi_reduction <maximumf>, %107, %cst_36 [1] : vector<16x16xf32> to vector<16xf32>
    %111 = vector.shape_cast %110 : vector<16xf32> to vector<16x1xf32>
    %112 = vector.broadcast %111 : vector<16x1xf32> to vector<16x16xf32>
    %113 = arith.cmpf oeq, %107, %112 : vector<16x16xf32>
    %cst_37 = arith.constant 1.600000e+01 : f32
    %114 = vector.broadcast %cst_37 : f32 to vector<16x16xf32>
    %115 = arith.select %113, %109, %114 : vector<16x16xi1>, vector<16x16xf32>
    %cst_38 = arith.constant dense<0x7F800000> : vector<16xf32>
    %116 = vector.multi_reduction <minimumf>, %115, %cst_38 [1] : vector<16x16xf32> to vector<16xf32>
    %117 = vector.shape_cast %116 : vector<16xf32> to vector<16x1xf32>
    %118 = vector.broadcast %117 : vector<16x1xf32> to vector<16x16xf32>
    %119 = arith.cmpf oeq, %109, %118 : vector<16x16xf32>
    %120 = arith.extui %119 : vector<16x16xi1> to vector<16x16xi32>
    %121 = arith.sitofp %120 : vector<16x16xi32> to vector<16x16xf32>
    %cst_39 = arith.constant 0xFF800000 : f32
    %122 = vector.broadcast %cst_39 : f32 to vector<16x16xf32>
    %123 = arith.select %119, %122, %107 : vector<16x16xi1>, vector<16x16xf32>
    %cst_40 = arith.constant dense<0xFF800000> : vector<16xf32>
    %124 = vector.multi_reduction <maximumf>, %123, %cst_40 [1] : vector<16x16xf32> to vector<16xf32>
    %125 = vector.shape_cast %124 : vector<16xf32> to vector<16x1xf32>
    %126 = vector.broadcast %125 : vector<16x1xf32> to vector<16x16xf32>
    %127 = arith.cmpf oeq, %123, %126 : vector<16x16xf32>
    %cst_41 = arith.constant 1.600000e+01 : f32
    %128 = vector.broadcast %cst_41 : f32 to vector<16x16xf32>
    %129 = arith.select %127, %109, %128 : vector<16x16xi1>, vector<16x16xf32>
    %cst_42 = arith.constant dense<0x7F800000> : vector<16xf32>
    %130 = vector.multi_reduction <minimumf>, %129, %cst_42 [1] : vector<16x16xf32> to vector<16xf32>
    %131 = vector.shape_cast %130 : vector<16xf32> to vector<16x1xf32>
    %132 = vector.broadcast %131 : vector<16x1xf32> to vector<16x16xf32>
    %133 = arith.cmpf oeq, %109, %132 : vector<16x16xf32>
    %134 = arith.extui %133 : vector<16x16xi1> to vector<16x16xi32>
    %135 = arith.sitofp %134 : vector<16x16xi32> to vector<16x16xf32>
    %cst_43 = arith.constant 0xFF800000 : f32
    %136 = vector.broadcast %cst_43 : f32 to vector<16x16xf32>
    %137 = arith.select %133, %136, %123 : vector<16x16xi1>, vector<16x16xf32>
    %cst_44 = arith.constant dense<0xFF800000> : vector<16xf32>
    %138 = vector.multi_reduction <maximumf>, %137, %cst_44 [1] : vector<16x16xf32> to vector<16xf32>
    %139 = vector.shape_cast %138 : vector<16xf32> to vector<16x1xf32>
    %140 = vector.broadcast %139 : vector<16x1xf32> to vector<16x16xf32>
    %141 = arith.cmpf oeq, %137, %140 : vector<16x16xf32>
    %cst_45 = arith.constant 1.600000e+01 : f32
    %142 = vector.broadcast %cst_45 : f32 to vector<16x16xf32>
    %143 = arith.select %141, %109, %142 : vector<16x16xi1>, vector<16x16xf32>
    %cst_46 = arith.constant dense<0x7F800000> : vector<16xf32>
    %144 = vector.multi_reduction <minimumf>, %143, %cst_46 [1] : vector<16x16xf32> to vector<16xf32>
    %145 = vector.shape_cast %144 : vector<16xf32> to vector<16x1xf32>
    %146 = vector.broadcast %145 : vector<16x1xf32> to vector<16x16xf32>
    %147 = arith.cmpf oeq, %109, %146 : vector<16x16xf32>
    %148 = arith.extui %147 : vector<16x16xi1> to vector<16x16xi32>
    %149 = arith.sitofp %148 : vector<16x16xi32> to vector<16x16xf32>
    %cst_47 = arith.constant 0xFF800000 : f32
    %150 = vector.broadcast %cst_47 : f32 to vector<16x16xf32>
    %151 = arith.select %147, %150, %137 : vector<16x16xi1>, vector<16x16xf32>
    %cst_48 = arith.constant dense<0xFF800000> : vector<16xf32>
    %152 = vector.multi_reduction <maximumf>, %151, %cst_48 [1] : vector<16x16xf32> to vector<16xf32>
    %153 = vector.shape_cast %152 : vector<16xf32> to vector<16x1xf32>
    %154 = vector.broadcast %153 : vector<16x1xf32> to vector<16x16xf32>
    %155 = arith.cmpf oeq, %151, %154 : vector<16x16xf32>
    %cst_49 = arith.constant 1.600000e+01 : f32
    %156 = vector.broadcast %cst_49 : f32 to vector<16x16xf32>
    %157 = arith.select %155, %109, %156 : vector<16x16xi1>, vector<16x16xf32>
    %cst_50 = arith.constant dense<0x7F800000> : vector<16xf32>
    %158 = vector.multi_reduction <minimumf>, %157, %cst_50 [1] : vector<16x16xf32> to vector<16xf32>
    %159 = vector.shape_cast %158 : vector<16xf32> to vector<16x1xf32>
    %160 = vector.broadcast %159 : vector<16x1xf32> to vector<16x16xf32>
    %161 = arith.cmpf oeq, %109, %160 : vector<16x16xf32>
    %162 = arith.extui %161 : vector<16x16xi1> to vector<16x16xi32>
    %163 = arith.sitofp %162 : vector<16x16xi32> to vector<16x16xf32>
    %164 = tpu.concatenate %121, %135, %149, %163 in 0 : vector<16x16xf32>, vector<16x16xf32>, vector<16x16xf32>, vector<16x16xf32> -> vector<64x16xf32>
    %165 = vector.extract_strided_slice %11 {offsets = [16, 0], sizes = [16, 64], strides = [1, 1]} : vector<64x64xf32> to vector<16x64xf32>
    %cst_51 = arith.constant dense<0.000000e+00> : vector<64x64xf32>
    %166 = tpu.matmul %164, %165, %cst_51 {dimension_numbers = #tpu.dot_dimension_numbers<[1], [0], [0], [1], [0, 0, 1, 1], [], []>} : vector<64x16xf32>, vector<16x64xf32>, vector<64x64xf32> -> vector<64x64xf32>
    %167 = vector.extract_strided_slice %166 {offsets = [0, 0], sizes = [16, 64], strides = [1, 1]} : vector<64x64xf32> to vector<16x64xf32>
    %168 = vector.extract_strided_slice %166 {offsets = [16, 0], sizes = [16, 64], strides = [1, 1]} : vector<64x64xf32> to vector<16x64xf32>
    %169 = arith.maximumf %167, %168 : vector<16x64xf32>
    %170 = vector.extract_strided_slice %166 {offsets = [32, 0], sizes = [16, 64], strides = [1, 1]} : vector<64x64xf32> to vector<16x64xf32>
    %171 = arith.maximumf %169, %170 : vector<16x64xf32>
    %172 = vector.extract_strided_slice %166 {offsets = [48, 0], sizes = [16, 64], strides = [1, 1]} : vector<64x64xf32> to vector<16x64xf32>
    %173 = arith.maximumf %171, %172 : vector<16x64xf32>
    %174 = vector.extract_strided_slice %13 {offsets = [16, 0], sizes = [16, 64], strides = [1, 1]} : vector<64x64xf32> to vector<16x64xf32>
    %175 = arith.addf %173, %174 : vector<16x64xf32>
    %cst_52 = arith.constant 0.000000e+00 : f32
    %176 = vector.broadcast %cst_52 : f32 to vector<16x64xf32>
    %177 = arith.maximumf %175, %176 : vector<16x64xf32>
    %178 = vector.extract_strided_slice %8 {offsets = [32, 0], sizes = [16, 3], strides = [1, 1]} : vector<64x3xf32> to vector<16x3xf32>
    %cst_53 = arith.constant dense<0.000000e+00> : vector<16x16xf32>
    %179 = tpu.matmul %178, %178, %cst_53 {dimension_numbers = #tpu.dot_dimension_numbers<[1], [1], [0], [0], [0, 0, 1, 0], [], []>} : vector<16x3xf32>, vector<16x3xf32>, vector<16x16xf32> -> vector<16x16xf32>
    %180 = arith.mulf %178, %178 : vector<16x3xf32>
    %cst_54 = arith.constant dense<0.000000e+00> : vector<16xf32>
    %181 = vector.multi_reduction <add>, %180, %cst_54 [1] : vector<16x3xf32> to vector<16xf32>
    %182 = vector.shape_cast %181 : vector<16xf32> to vector<16x1xf32>
    %cst_55 = arith.constant 2.000000e+00 : f32
    %183 = vector.broadcast %cst_55 : f32 to vector<16x16xf32>
    %184 = arith.mulf %183, %179 : vector<16x16xf32>
    %185 = vector.broadcast %182 : vector<16x1xf32> to vector<16x16xf32>
    %186 = arith.subf %184, %185 : vector<16x16xf32>
    %187 = tpu.transpose %182, [1, 0] : vector<16x1xf32> -> vector<1x16xf32>
    %188 = vector.broadcast %187 : vector<1x16xf32> to vector<16x16xf32>
    %189 = arith.subf %186, %188 : vector<16x16xf32>
    %190 = tpu.iota {dimensions = array<i32: 1>} : vector<16x16xi32>
    %191 = arith.sitofp %190 : vector<16x16xi32> to vector<16x16xf32>
    %cst_56 = arith.constant dense<0xFF800000> : vector<16xf32>
    %192 = vector.multi_reduction <maximumf>, %189, %cst_56 [1] : vector<16x16xf32> to vector<16xf32>
    %193 = vector.shape_cast %192 : vector<16xf32> to vector<16x1xf32>
    %194 = vector.broadcast %193 : vector<16x1xf32> to vector<16x16xf32>
    %195 = arith.cmpf oeq, %189, %194 : vector<16x16xf32>
    %cst_57 = arith.constant 1.600000e+01 : f32
    %196 = vector.broadcast %cst_57 : f32 to vector<16x16xf32>
    %197 = arith.select %195, %191, %196 : vector<16x16xi1>, vector<16x16xf32>
    %cst_58 = arith.constant dense<0x7F800000> : vector<16xf32>
    %198 = vector.multi_reduction <minimumf>, %197, %cst_58 [1] : vector<16x16xf32> to vector<16xf32>
    %199 = vector.shape_cast %198 : vector<16xf32> to vector<16x1xf32>
    %200 = vector.broadcast %199 : vector<16x1xf32> to vector<16x16xf32>
    %201 = arith.cmpf oeq, %191, %200 : vector<16x16xf32>
    %202 = arith.extui %201 : vector<16x16xi1> to vector<16x16xi32>
    %203 = arith.sitofp %202 : vector<16x16xi32> to vector<16x16xf32>
    %cst_59 = arith.constant 0xFF800000 : f32
    %204 = vector.broadcast %cst_59 : f32 to vector<16x16xf32>
    %205 = arith.select %201, %204, %189 : vector<16x16xi1>, vector<16x16xf32>
    %cst_60 = arith.constant dense<0xFF800000> : vector<16xf32>
    %206 = vector.multi_reduction <maximumf>, %205, %cst_60 [1] : vector<16x16xf32> to vector<16xf32>
    %207 = vector.shape_cast %206 : vector<16xf32> to vector<16x1xf32>
    %208 = vector.broadcast %207 : vector<16x1xf32> to vector<16x16xf32>
    %209 = arith.cmpf oeq, %205, %208 : vector<16x16xf32>
    %cst_61 = arith.constant 1.600000e+01 : f32
    %210 = vector.broadcast %cst_61 : f32 to vector<16x16xf32>
    %211 = arith.select %209, %191, %210 : vector<16x16xi1>, vector<16x16xf32>
    %cst_62 = arith.constant dense<0x7F800000> : vector<16xf32>
    %212 = vector.multi_reduction <minimumf>, %211, %cst_62 [1] : vector<16x16xf32> to vector<16xf32>
    %213 = vector.shape_cast %212 : vector<16xf32> to vector<16x1xf32>
    %214 = vector.broadcast %213 : vector<16x1xf32> to vector<16x16xf32>
    %215 = arith.cmpf oeq, %191, %214 : vector<16x16xf32>
    %216 = arith.extui %215 : vector<16x16xi1> to vector<16x16xi32>
    %217 = arith.sitofp %216 : vector<16x16xi32> to vector<16x16xf32>
    %cst_63 = arith.constant 0xFF800000 : f32
    %218 = vector.broadcast %cst_63 : f32 to vector<16x16xf32>
    %219 = arith.select %215, %218, %205 : vector<16x16xi1>, vector<16x16xf32>
    %cst_64 = arith.constant dense<0xFF800000> : vector<16xf32>
    %220 = vector.multi_reduction <maximumf>, %219, %cst_64 [1] : vector<16x16xf32> to vector<16xf32>
    %221 = vector.shape_cast %220 : vector<16xf32> to vector<16x1xf32>
    %222 = vector.broadcast %221 : vector<16x1xf32> to vector<16x16xf32>
    %223 = arith.cmpf oeq, %219, %222 : vector<16x16xf32>
    %cst_65 = arith.constant 1.600000e+01 : f32
    %224 = vector.broadcast %cst_65 : f32 to vector<16x16xf32>
    %225 = arith.select %223, %191, %224 : vector<16x16xi1>, vector<16x16xf32>
    %cst_66 = arith.constant dense<0x7F800000> : vector<16xf32>
    %226 = vector.multi_reduction <minimumf>, %225, %cst_66 [1] : vector<16x16xf32> to vector<16xf32>
    %227 = vector.shape_cast %226 : vector<16xf32> to vector<16x1xf32>
    %228 = vector.broadcast %227 : vector<16x1xf32> to vector<16x16xf32>
    %229 = arith.cmpf oeq, %191, %228 : vector<16x16xf32>
    %230 = arith.extui %229 : vector<16x16xi1> to vector<16x16xi32>
    %231 = arith.sitofp %230 : vector<16x16xi32> to vector<16x16xf32>
    %cst_67 = arith.constant 0xFF800000 : f32
    %232 = vector.broadcast %cst_67 : f32 to vector<16x16xf32>
    %233 = arith.select %229, %232, %219 : vector<16x16xi1>, vector<16x16xf32>
    %cst_68 = arith.constant dense<0xFF800000> : vector<16xf32>
    %234 = vector.multi_reduction <maximumf>, %233, %cst_68 [1] : vector<16x16xf32> to vector<16xf32>
    %235 = vector.shape_cast %234 : vector<16xf32> to vector<16x1xf32>
    %236 = vector.broadcast %235 : vector<16x1xf32> to vector<16x16xf32>
    %237 = arith.cmpf oeq, %233, %236 : vector<16x16xf32>
    %cst_69 = arith.constant 1.600000e+01 : f32
    %238 = vector.broadcast %cst_69 : f32 to vector<16x16xf32>
    %239 = arith.select %237, %191, %238 : vector<16x16xi1>, vector<16x16xf32>
    %cst_70 = arith.constant dense<0x7F800000> : vector<16xf32>
    %240 = vector.multi_reduction <minimumf>, %239, %cst_70 [1] : vector<16x16xf32> to vector<16xf32>
    %241 = vector.shape_cast %240 : vector<16xf32> to vector<16x1xf32>
    %242 = vector.broadcast %241 : vector<16x1xf32> to vector<16x16xf32>
    %243 = arith.cmpf oeq, %191, %242 : vector<16x16xf32>
    %244 = arith.extui %243 : vector<16x16xi1> to vector<16x16xi32>
    %245 = arith.sitofp %244 : vector<16x16xi32> to vector<16x16xf32>
    %246 = tpu.concatenate %203, %217, %231, %245 in 0 : vector<16x16xf32>, vector<16x16xf32>, vector<16x16xf32>, vector<16x16xf32> -> vector<64x16xf32>
    %247 = vector.extract_strided_slice %11 {offsets = [32, 0], sizes = [16, 64], strides = [1, 1]} : vector<64x64xf32> to vector<16x64xf32>
    %cst_71 = arith.constant dense<0.000000e+00> : vector<64x64xf32>
    %248 = tpu.matmul %246, %247, %cst_71 {dimension_numbers = #tpu.dot_dimension_numbers<[1], [0], [0], [1], [0, 0, 1, 1], [], []>} : vector<64x16xf32>, vector<16x64xf32>, vector<64x64xf32> -> vector<64x64xf32>
    %249 = vector.extract_strided_slice %248 {offsets = [0, 0], sizes = [16, 64], strides = [1, 1]} : vector<64x64xf32> to vector<16x64xf32>
    %250 = vector.extract_strided_slice %248 {offsets = [16, 0], sizes = [16, 64], strides = [1, 1]} : vector<64x64xf32> to vector<16x64xf32>
    %251 = arith.maximumf %249, %250 : vector<16x64xf32>
    %252 = vector.extract_strided_slice %248 {offsets = [32, 0], sizes = [16, 64], strides = [1, 1]} : vector<64x64xf32> to vector<16x64xf32>
    %253 = arith.maximumf %251, %252 : vector<16x64xf32>
    %254 = vector.extract_strided_slice %248 {offsets = [48, 0], sizes = [16, 64], strides = [1, 1]} : vector<64x64xf32> to vector<16x64xf32>
    %255 = arith.maximumf %253, %254 : vector<16x64xf32>
    %256 = vector.extract_strided_slice %13 {offsets = [32, 0], sizes = [16, 64], strides = [1, 1]} : vector<64x64xf32> to vector<16x64xf32>
    %257 = arith.addf %255, %256 : vector<16x64xf32>
    %cst_72 = arith.constant 0.000000e+00 : f32
    %258 = vector.broadcast %cst_72 : f32 to vector<16x64xf32>
    %259 = arith.maximumf %257, %258 : vector<16x64xf32>
    %260 = vector.extract_strided_slice %8 {offsets = [48, 0], sizes = [16, 3], strides = [1, 1]} : vector<64x3xf32> to vector<16x3xf32>
    %cst_73 = arith.constant dense<0.000000e+00> : vector<16x16xf32>
    %261 = tpu.matmul %260, %260, %cst_73 {dimension_numbers = #tpu.dot_dimension_numbers<[1], [1], [0], [0], [0, 0, 1, 0], [], []>} : vector<16x3xf32>, vector<16x3xf32>, vector<16x16xf32> -> vector<16x16xf32>
    %262 = arith.mulf %260, %260 : vector<16x3xf32>
    %cst_74 = arith.constant dense<0.000000e+00> : vector<16xf32>
    %263 = vector.multi_reduction <add>, %262, %cst_74 [1] : vector<16x3xf32> to vector<16xf32>
    %264 = vector.shape_cast %263 : vector<16xf32> to vector<16x1xf32>
    %cst_75 = arith.constant 2.000000e+00 : f32
    %265 = vector.broadcast %cst_75 : f32 to vector<16x16xf32>
    %266 = arith.mulf %265, %261 : vector<16x16xf32>
    %267 = vector.broadcast %264 : vector<16x1xf32> to vector<16x16xf32>
    %268 = arith.subf %266, %267 : vector<16x16xf32>
    %269 = tpu.transpose %264, [1, 0] : vector<16x1xf32> -> vector<1x16xf32>
    %270 = vector.broadcast %269 : vector<1x16xf32> to vector<16x16xf32>
    %271 = arith.subf %268, %270 : vector<16x16xf32>
    %272 = tpu.iota {dimensions = array<i32: 1>} : vector<16x16xi32>
    %273 = arith.sitofp %272 : vector<16x16xi32> to vector<16x16xf32>
    %cst_76 = arith.constant dense<0xFF800000> : vector<16xf32>
    %274 = vector.multi_reduction <maximumf>, %271, %cst_76 [1] : vector<16x16xf32> to vector<16xf32>
    %275 = vector.shape_cast %274 : vector<16xf32> to vector<16x1xf32>
    %276 = vector.broadcast %275 : vector<16x1xf32> to vector<16x16xf32>
    %277 = arith.cmpf oeq, %271, %276 : vector<16x16xf32>
    %cst_77 = arith.constant 1.600000e+01 : f32
    %278 = vector.broadcast %cst_77 : f32 to vector<16x16xf32>
    %279 = arith.select %277, %273, %278 : vector<16x16xi1>, vector<16x16xf32>
    %cst_78 = arith.constant dense<0x7F800000> : vector<16xf32>
    %280 = vector.multi_reduction <minimumf>, %279, %cst_78 [1] : vector<16x16xf32> to vector<16xf32>
    %281 = vector.shape_cast %280 : vector<16xf32> to vector<16x1xf32>
    %282 = vector.broadcast %281 : vector<16x1xf32> to vector<16x16xf32>
    %283 = arith.cmpf oeq, %273, %282 : vector<16x16xf32>
    %284 = arith.extui %283 : vector<16x16xi1> to vector<16x16xi32>
    %285 = arith.sitofp %284 : vector<16x16xi32> to vector<16x16xf32>
    %cst_79 = arith.constant 0xFF800000 : f32
    %286 = vector.broadcast %cst_79 : f32 to vector<16x16xf32>
    %287 = arith.select %283, %286, %271 : vector<16x16xi1>, vector<16x16xf32>
    %cst_80 = arith.constant dense<0xFF800000> : vector<16xf32>
    %288 = vector.multi_reduction <maximumf>, %287, %cst_80 [1] : vector<16x16xf32> to vector<16xf32>
    %289 = vector.shape_cast %288 : vector<16xf32> to vector<16x1xf32>
    %290 = vector.broadcast %289 : vector<16x1xf32> to vector<16x16xf32>
    %291 = arith.cmpf oeq, %287, %290 : vector<16x16xf32>
    %cst_81 = arith.constant 1.600000e+01 : f32
    %292 = vector.broadcast %cst_81 : f32 to vector<16x16xf32>
    %293 = arith.select %291, %273, %292 : vector<16x16xi1>, vector<16x16xf32>
    %cst_82 = arith.constant dense<0x7F800000> : vector<16xf32>
    %294 = vector.multi_reduction <minimumf>, %293, %cst_82 [1] : vector<16x16xf32> to vector<16xf32>
    %295 = vector.shape_cast %294 : vector<16xf32> to vector<16x1xf32>
    %296 = vector.broadcast %295 : vector<16x1xf32> to vector<16x16xf32>
    %297 = arith.cmpf oeq, %273, %296 : vector<16x16xf32>
    %298 = arith.extui %297 : vector<16x16xi1> to vector<16x16xi32>
    %299 = arith.sitofp %298 : vector<16x16xi32> to vector<16x16xf32>
    %cst_83 = arith.constant 0xFF800000 : f32
    %300 = vector.broadcast %cst_83 : f32 to vector<16x16xf32>
    %301 = arith.select %297, %300, %287 : vector<16x16xi1>, vector<16x16xf32>
    %cst_84 = arith.constant dense<0xFF800000> : vector<16xf32>
    %302 = vector.multi_reduction <maximumf>, %301, %cst_84 [1] : vector<16x16xf32> to vector<16xf32>
    %303 = vector.shape_cast %302 : vector<16xf32> to vector<16x1xf32>
    %304 = vector.broadcast %303 : vector<16x1xf32> to vector<16x16xf32>
    %305 = arith.cmpf oeq, %301, %304 : vector<16x16xf32>
    %cst_85 = arith.constant 1.600000e+01 : f32
    %306 = vector.broadcast %cst_85 : f32 to vector<16x16xf32>
    %307 = arith.select %305, %273, %306 : vector<16x16xi1>, vector<16x16xf32>
    %cst_86 = arith.constant dense<0x7F800000> : vector<16xf32>
    %308 = vector.multi_reduction <minimumf>, %307, %cst_86 [1] : vector<16x16xf32> to vector<16xf32>
    %309 = vector.shape_cast %308 : vector<16xf32> to vector<16x1xf32>
    %310 = vector.broadcast %309 : vector<16x1xf32> to vector<16x16xf32>
    %311 = arith.cmpf oeq, %273, %310 : vector<16x16xf32>
    %312 = arith.extui %311 : vector<16x16xi1> to vector<16x16xi32>
    %313 = arith.sitofp %312 : vector<16x16xi32> to vector<16x16xf32>
    %cst_87 = arith.constant 0xFF800000 : f32
    %314 = vector.broadcast %cst_87 : f32 to vector<16x16xf32>
    %315 = arith.select %311, %314, %301 : vector<16x16xi1>, vector<16x16xf32>
    %cst_88 = arith.constant dense<0xFF800000> : vector<16xf32>
    %316 = vector.multi_reduction <maximumf>, %315, %cst_88 [1] : vector<16x16xf32> to vector<16xf32>
    %317 = vector.shape_cast %316 : vector<16xf32> to vector<16x1xf32>
    %318 = vector.broadcast %317 : vector<16x1xf32> to vector<16x16xf32>
    %319 = arith.cmpf oeq, %315, %318 : vector<16x16xf32>
    %cst_89 = arith.constant 1.600000e+01 : f32
    %320 = vector.broadcast %cst_89 : f32 to vector<16x16xf32>
    %321 = arith.select %319, %273, %320 : vector<16x16xi1>, vector<16x16xf32>
    %cst_90 = arith.constant dense<0x7F800000> : vector<16xf32>
    %322 = vector.multi_reduction <minimumf>, %321, %cst_90 [1] : vector<16x16xf32> to vector<16xf32>
    %323 = vector.shape_cast %322 : vector<16xf32> to vector<16x1xf32>
    %324 = vector.broadcast %323 : vector<16x1xf32> to vector<16x16xf32>
    %325 = arith.cmpf oeq, %273, %324 : vector<16x16xf32>
    %326 = arith.extui %325 : vector<16x16xi1> to vector<16x16xi32>
    %327 = arith.sitofp %326 : vector<16x16xi32> to vector<16x16xf32>
    %328 = tpu.concatenate %285, %299, %313, %327 in 0 : vector<16x16xf32>, vector<16x16xf32>, vector<16x16xf32>, vector<16x16xf32> -> vector<64x16xf32>
    %329 = vector.extract_strided_slice %11 {offsets = [48, 0], sizes = [16, 64], strides = [1, 1]} : vector<64x64xf32> to vector<16x64xf32>
    %cst_91 = arith.constant dense<0.000000e+00> : vector<64x64xf32>
    %330 = tpu.matmul %328, %329, %cst_91 {dimension_numbers = #tpu.dot_dimension_numbers<[1], [0], [0], [1], [0, 0, 1, 1], [], []>} : vector<64x16xf32>, vector<16x64xf32>, vector<64x64xf32> -> vector<64x64xf32>
    %331 = vector.extract_strided_slice %330 {offsets = [0, 0], sizes = [16, 64], strides = [1, 1]} : vector<64x64xf32> to vector<16x64xf32>
    %332 = vector.extract_strided_slice %330 {offsets = [16, 0], sizes = [16, 64], strides = [1, 1]} : vector<64x64xf32> to vector<16x64xf32>
    %333 = arith.maximumf %331, %332 : vector<16x64xf32>
    %334 = vector.extract_strided_slice %330 {offsets = [32, 0], sizes = [16, 64], strides = [1, 1]} : vector<64x64xf32> to vector<16x64xf32>
    %335 = arith.maximumf %333, %334 : vector<16x64xf32>
    %336 = vector.extract_strided_slice %330 {offsets = [48, 0], sizes = [16, 64], strides = [1, 1]} : vector<64x64xf32> to vector<16x64xf32>
    %337 = arith.maximumf %335, %336 : vector<16x64xf32>
    %338 = vector.extract_strided_slice %13 {offsets = [48, 0], sizes = [16, 64], strides = [1, 1]} : vector<64x64xf32> to vector<16x64xf32>
    %339 = arith.addf %337, %338 : vector<16x64xf32>
    %cst_92 = arith.constant 0.000000e+00 : f32
    %340 = vector.broadcast %cst_92 : f32 to vector<16x64xf32>
    %341 = arith.maximumf %339, %340 : vector<16x64xf32>
    %342 = tpu.concatenate %95, %177, %259, %341 in 0 : vector<16x64xf32>, vector<16x64xf32>, vector<16x64xf32>, vector<16x64xf32> -> vector<64x64xf32>
    %343 = arith.truncf %342 : vector<64x64xf32> to vector<64x64xbf16>
    %c0_93 = arith.constant 0 : index
    %c0_94 = arith.constant 0 : index
    %344 = vector.load %arg4[%c0_93, %c0_94] : memref<64x64xbf16, #tpu.memory_space<vmem>>, vector<64x64xbf16>
    %cst_95 = arith.constant dense<0.000000e+00> : vector<64x64xf32>
    %345 = tpu.matmul %343, %344, %cst_95 {dimension_numbers = #tpu.dot_dimension_numbers<[1], [0], [0], [1], [0, 0, 1, 1], [], []>} : vector<64x64xbf16>, vector<64x64xbf16>, vector<64x64xf32> -> vector<64x64xf32>
    %c0_96 = arith.constant 0 : index
    %c0_97 = arith.constant 0 : index
    %346 = vector.load %arg5[%c0_96, %c0_97] : memref<64x64xbf16, #tpu.memory_space<vmem>>, vector<64x64xbf16>
    %cst_98 = arith.constant dense<0.000000e+00> : vector<64x64xf32>
    %347 = tpu.matmul %343, %346, %cst_98 {dimension_numbers = #tpu.dot_dimension_numbers<[1], [0], [0], [1], [0, 0, 1, 1], [], []>} : vector<64x64xbf16>, vector<64x64xbf16>, vector<64x64xf32> -> vector<64x64xf32>
    %348 = vector.extract_strided_slice %342 {offsets = [0, 0], sizes = [16, 64], strides = [1, 1]} : vector<64x64xf32> to vector<16x64xf32>
    %cst_99 = arith.constant dense<0.000000e+00> : vector<16x16xf32>
    %349 = tpu.matmul %348, %348, %cst_99 {dimension_numbers = #tpu.dot_dimension_numbers<[1], [1], [0], [0], [0, 0, 1, 0], [], []>} : vector<16x64xf32>, vector<16x64xf32>, vector<16x16xf32> -> vector<16x16xf32>
    %350 = arith.mulf %348, %348 : vector<16x64xf32>
    %cst_100 = arith.constant dense<0.000000e+00> : vector<16xf32>
    %351 = vector.multi_reduction <add>, %350, %cst_100 [1] : vector<16x64xf32> to vector<16xf32>
    %352 = vector.shape_cast %351 : vector<16xf32> to vector<16x1xf32>
    %cst_101 = arith.constant 2.000000e+00 : f32
    %353 = vector.broadcast %cst_101 : f32 to vector<16x16xf32>
    %354 = arith.mulf %353, %349 : vector<16x16xf32>
    %355 = vector.broadcast %352 : vector<16x1xf32> to vector<16x16xf32>
    %356 = arith.subf %354, %355 : vector<16x16xf32>
    %357 = tpu.transpose %352, [1, 0] : vector<16x1xf32> -> vector<1x16xf32>
    %358 = vector.broadcast %357 : vector<1x16xf32> to vector<16x16xf32>
    %359 = arith.subf %356, %358 : vector<16x16xf32>
    %360 = tpu.iota {dimensions = array<i32: 1>} : vector<16x16xi32>
    %361 = arith.sitofp %360 : vector<16x16xi32> to vector<16x16xf32>
    %cst_102 = arith.constant dense<0xFF800000> : vector<16xf32>
    %362 = vector.multi_reduction <maximumf>, %359, %cst_102 [1] : vector<16x16xf32> to vector<16xf32>
    %363 = vector.shape_cast %362 : vector<16xf32> to vector<16x1xf32>
    %364 = vector.broadcast %363 : vector<16x1xf32> to vector<16x16xf32>
    %365 = arith.cmpf oeq, %359, %364 : vector<16x16xf32>
    %cst_103 = arith.constant 1.600000e+01 : f32
    %366 = vector.broadcast %cst_103 : f32 to vector<16x16xf32>
    %367 = arith.select %365, %361, %366 : vector<16x16xi1>, vector<16x16xf32>
    %cst_104 = arith.constant dense<0x7F800000> : vector<16xf32>
    %368 = vector.multi_reduction <minimumf>, %367, %cst_104 [1] : vector<16x16xf32> to vector<16xf32>
    %369 = vector.shape_cast %368 : vector<16xf32> to vector<16x1xf32>
    %370 = vector.broadcast %369 : vector<16x1xf32> to vector<16x16xf32>
    %371 = arith.cmpf oeq, %361, %370 : vector<16x16xf32>
    %372 = arith.extui %371 : vector<16x16xi1> to vector<16x16xi32>
    %373 = arith.sitofp %372 : vector<16x16xi32> to vector<16x16xf32>
    %cst_105 = arith.constant 0xFF800000 : f32
    %374 = vector.broadcast %cst_105 : f32 to vector<16x16xf32>
    %375 = arith.select %371, %374, %359 : vector<16x16xi1>, vector<16x16xf32>
    %cst_106 = arith.constant dense<0xFF800000> : vector<16xf32>
    %376 = vector.multi_reduction <maximumf>, %375, %cst_106 [1] : vector<16x16xf32> to vector<16xf32>
    %377 = vector.shape_cast %376 : vector<16xf32> to vector<16x1xf32>
    %378 = vector.broadcast %377 : vector<16x1xf32> to vector<16x16xf32>
    %379 = arith.cmpf oeq, %375, %378 : vector<16x16xf32>
    %cst_107 = arith.constant 1.600000e+01 : f32
    %380 = vector.broadcast %cst_107 : f32 to vector<16x16xf32>
    %381 = arith.select %379, %361, %380 : vector<16x16xi1>, vector<16x16xf32>
    %cst_108 = arith.constant dense<0x7F800000> : vector<16xf32>
    %382 = vector.multi_reduction <minimumf>, %381, %cst_108 [1] : vector<16x16xf32> to vector<16xf32>
    %383 = vector.shape_cast %382 : vector<16xf32> to vector<16x1xf32>
    %384 = vector.broadcast %383 : vector<16x1xf32> to vector<16x16xf32>
    %385 = arith.cmpf oeq, %361, %384 : vector<16x16xf32>
    %386 = arith.extui %385 : vector<16x16xi1> to vector<16x16xi32>
    %387 = arith.sitofp %386 : vector<16x16xi32> to vector<16x16xf32>
    %cst_109 = arith.constant 0xFF800000 : f32
    %388 = vector.broadcast %cst_109 : f32 to vector<16x16xf32>
    %389 = arith.select %385, %388, %375 : vector<16x16xi1>, vector<16x16xf32>
    %cst_110 = arith.constant dense<0xFF800000> : vector<16xf32>
    %390 = vector.multi_reduction <maximumf>, %389, %cst_110 [1] : vector<16x16xf32> to vector<16xf32>
    %391 = vector.shape_cast %390 : vector<16xf32> to vector<16x1xf32>
    %392 = vector.broadcast %391 : vector<16x1xf32> to vector<16x16xf32>
    %393 = arith.cmpf oeq, %389, %392 : vector<16x16xf32>
    %cst_111 = arith.constant 1.600000e+01 : f32
    %394 = vector.broadcast %cst_111 : f32 to vector<16x16xf32>
    %395 = arith.select %393, %361, %394 : vector<16x16xi1>, vector<16x16xf32>
    %cst_112 = arith.constant dense<0x7F800000> : vector<16xf32>
    %396 = vector.multi_reduction <minimumf>, %395, %cst_112 [1] : vector<16x16xf32> to vector<16xf32>
    %397 = vector.shape_cast %396 : vector<16xf32> to vector<16x1xf32>
    %398 = vector.broadcast %397 : vector<16x1xf32> to vector<16x16xf32>
    %399 = arith.cmpf oeq, %361, %398 : vector<16x16xf32>
    %400 = arith.extui %399 : vector<16x16xi1> to vector<16x16xi32>
    %401 = arith.sitofp %400 : vector<16x16xi32> to vector<16x16xf32>
    %cst_113 = arith.constant 0xFF800000 : f32
    %402 = vector.broadcast %cst_113 : f32 to vector<16x16xf32>
    %403 = arith.select %399, %402, %389 : vector<16x16xi1>, vector<16x16xf32>
    %cst_114 = arith.constant dense<0xFF800000> : vector<16xf32>
    %404 = vector.multi_reduction <maximumf>, %403, %cst_114 [1] : vector<16x16xf32> to vector<16xf32>
    %405 = vector.shape_cast %404 : vector<16xf32> to vector<16x1xf32>
    %406 = vector.broadcast %405 : vector<16x1xf32> to vector<16x16xf32>
    %407 = arith.cmpf oeq, %403, %406 : vector<16x16xf32>
    %cst_115 = arith.constant 1.600000e+01 : f32
    %408 = vector.broadcast %cst_115 : f32 to vector<16x16xf32>
    %409 = arith.select %407, %361, %408 : vector<16x16xi1>, vector<16x16xf32>
    %cst_116 = arith.constant dense<0x7F800000> : vector<16xf32>
    %410 = vector.multi_reduction <minimumf>, %409, %cst_116 [1] : vector<16x16xf32> to vector<16xf32>
    %411 = vector.shape_cast %410 : vector<16xf32> to vector<16x1xf32>
    %412 = vector.broadcast %411 : vector<16x1xf32> to vector<16x16xf32>
    %413 = arith.cmpf oeq, %361, %412 : vector<16x16xf32>
    %414 = arith.extui %413 : vector<16x16xi1> to vector<16x16xi32>
    %415 = arith.sitofp %414 : vector<16x16xi32> to vector<16x16xf32>
    %416 = tpu.concatenate %373, %387, %401, %415 in 0 : vector<16x16xf32>, vector<16x16xf32>, vector<16x16xf32>, vector<16x16xf32> -> vector<64x16xf32>
    %417 = vector.extract_strided_slice %345 {offsets = [0, 0], sizes = [16, 64], strides = [1, 1]} : vector<64x64xf32> to vector<16x64xf32>
    %cst_117 = arith.constant dense<0.000000e+00> : vector<64x64xf32>
    %418 = tpu.matmul %416, %417, %cst_117 {dimension_numbers = #tpu.dot_dimension_numbers<[1], [0], [0], [1], [0, 0, 1, 1], [], []>} : vector<64x16xf32>, vector<16x64xf32>, vector<64x64xf32> -> vector<64x64xf32>
    %419 = vector.extract_strided_slice %418 {offsets = [0, 0], sizes = [16, 64], strides = [1, 1]} : vector<64x64xf32> to vector<16x64xf32>
    %420 = vector.extract_strided_slice %418 {offsets = [16, 0], sizes = [16, 64], strides = [1, 1]} : vector<64x64xf32> to vector<16x64xf32>
    %421 = arith.maximumf %419, %420 : vector<16x64xf32>
    %422 = vector.extract_strided_slice %418 {offsets = [32, 0], sizes = [16, 64], strides = [1, 1]} : vector<64x64xf32> to vector<16x64xf32>
    %423 = arith.maximumf %421, %422 : vector<16x64xf32>
    %424 = vector.extract_strided_slice %418 {offsets = [48, 0], sizes = [16, 64], strides = [1, 1]} : vector<64x64xf32> to vector<16x64xf32>
    %425 = arith.maximumf %423, %424 : vector<16x64xf32>
    %426 = vector.extract_strided_slice %347 {offsets = [0, 0], sizes = [16, 64], strides = [1, 1]} : vector<64x64xf32> to vector<16x64xf32>
    %427 = arith.addf %425, %426 : vector<16x64xf32>
    %cst_118 = arith.constant 0.000000e+00 : f32
    %428 = vector.broadcast %cst_118 : f32 to vector<16x64xf32>
    %429 = arith.maximumf %427, %428 : vector<16x64xf32>
    %430 = vector.extract_strided_slice %342 {offsets = [16, 0], sizes = [16, 64], strides = [1, 1]} : vector<64x64xf32> to vector<16x64xf32>
    %cst_119 = arith.constant dense<0.000000e+00> : vector<16x16xf32>
    %431 = tpu.matmul %430, %430, %cst_119 {dimension_numbers = #tpu.dot_dimension_numbers<[1], [1], [0], [0], [0, 0, 1, 0], [], []>} : vector<16x64xf32>, vector<16x64xf32>, vector<16x16xf32> -> vector<16x16xf32>
    %432 = arith.mulf %430, %430 : vector<16x64xf32>
    %cst_120 = arith.constant dense<0.000000e+00> : vector<16xf32>
    %433 = vector.multi_reduction <add>, %432, %cst_120 [1] : vector<16x64xf32> to vector<16xf32>
    %434 = vector.shape_cast %433 : vector<16xf32> to vector<16x1xf32>
    %cst_121 = arith.constant 2.000000e+00 : f32
    %435 = vector.broadcast %cst_121 : f32 to vector<16x16xf32>
    %436 = arith.mulf %435, %431 : vector<16x16xf32>
    %437 = vector.broadcast %434 : vector<16x1xf32> to vector<16x16xf32>
    %438 = arith.subf %436, %437 : vector<16x16xf32>
    %439 = tpu.transpose %434, [1, 0] : vector<16x1xf32> -> vector<1x16xf32>
    %440 = vector.broadcast %439 : vector<1x16xf32> to vector<16x16xf32>
    %441 = arith.subf %438, %440 : vector<16x16xf32>
    %442 = tpu.iota {dimensions = array<i32: 1>} : vector<16x16xi32>
    %443 = arith.sitofp %442 : vector<16x16xi32> to vector<16x16xf32>
    %cst_122 = arith.constant dense<0xFF800000> : vector<16xf32>
    %444 = vector.multi_reduction <maximumf>, %441, %cst_122 [1] : vector<16x16xf32> to vector<16xf32>
    %445 = vector.shape_cast %444 : vector<16xf32> to vector<16x1xf32>
    %446 = vector.broadcast %445 : vector<16x1xf32> to vector<16x16xf32>
    %447 = arith.cmpf oeq, %441, %446 : vector<16x16xf32>
    %cst_123 = arith.constant 1.600000e+01 : f32
    %448 = vector.broadcast %cst_123 : f32 to vector<16x16xf32>
    %449 = arith.select %447, %443, %448 : vector<16x16xi1>, vector<16x16xf32>
    %cst_124 = arith.constant dense<0x7F800000> : vector<16xf32>
    %450 = vector.multi_reduction <minimumf>, %449, %cst_124 [1] : vector<16x16xf32> to vector<16xf32>
    %451 = vector.shape_cast %450 : vector<16xf32> to vector<16x1xf32>
    %452 = vector.broadcast %451 : vector<16x1xf32> to vector<16x16xf32>
    %453 = arith.cmpf oeq, %443, %452 : vector<16x16xf32>
    %454 = arith.extui %453 : vector<16x16xi1> to vector<16x16xi32>
    %455 = arith.sitofp %454 : vector<16x16xi32> to vector<16x16xf32>
    %cst_125 = arith.constant 0xFF800000 : f32
    %456 = vector.broadcast %cst_125 : f32 to vector<16x16xf32>
    %457 = arith.select %453, %456, %441 : vector<16x16xi1>, vector<16x16xf32>
    %cst_126 = arith.constant dense<0xFF800000> : vector<16xf32>
    %458 = vector.multi_reduction <maximumf>, %457, %cst_126 [1] : vector<16x16xf32> to vector<16xf32>
    %459 = vector.shape_cast %458 : vector<16xf32> to vector<16x1xf32>
    %460 = vector.broadcast %459 : vector<16x1xf32> to vector<16x16xf32>
    %461 = arith.cmpf oeq, %457, %460 : vector<16x16xf32>
    %cst_127 = arith.constant 1.600000e+01 : f32
    %462 = vector.broadcast %cst_127 : f32 to vector<16x16xf32>
    %463 = arith.select %461, %443, %462 : vector<16x16xi1>, vector<16x16xf32>
    %cst_128 = arith.constant dense<0x7F800000> : vector<16xf32>
    %464 = vector.multi_reduction <minimumf>, %463, %cst_128 [1] : vector<16x16xf32> to vector<16xf32>
    %465 = vector.shape_cast %464 : vector<16xf32> to vector<16x1xf32>
    %466 = vector.broadcast %465 : vector<16x1xf32> to vector<16x16xf32>
    %467 = arith.cmpf oeq, %443, %466 : vector<16x16xf32>
    %468 = arith.extui %467 : vector<16x16xi1> to vector<16x16xi32>
    %469 = arith.sitofp %468 : vector<16x16xi32> to vector<16x16xf32>
    %cst_129 = arith.constant 0xFF800000 : f32
    %470 = vector.broadcast %cst_129 : f32 to vector<16x16xf32>
    %471 = arith.select %467, %470, %457 : vector<16x16xi1>, vector<16x16xf32>
    %cst_130 = arith.constant dense<0xFF800000> : vector<16xf32>
    %472 = vector.multi_reduction <maximumf>, %471, %cst_130 [1] : vector<16x16xf32> to vector<16xf32>
    %473 = vector.shape_cast %472 : vector<16xf32> to vector<16x1xf32>
    %474 = vector.broadcast %473 : vector<16x1xf32> to vector<16x16xf32>
    %475 = arith.cmpf oeq, %471, %474 : vector<16x16xf32>
    %cst_131 = arith.constant 1.600000e+01 : f32
    %476 = vector.broadcast %cst_131 : f32 to vector<16x16xf32>
    %477 = arith.select %475, %443, %476 : vector<16x16xi1>, vector<16x16xf32>
    %cst_132 = arith.constant dense<0x7F800000> : vector<16xf32>
    %478 = vector.multi_reduction <minimumf>, %477, %cst_132 [1] : vector<16x16xf32> to vector<16xf32>
    %479 = vector.shape_cast %478 : vector<16xf32> to vector<16x1xf32>
    %480 = vector.broadcast %479 : vector<16x1xf32> to vector<16x16xf32>
    %481 = arith.cmpf oeq, %443, %480 : vector<16x16xf32>
    %482 = arith.extui %481 : vector<16x16xi1> to vector<16x16xi32>
    %483 = arith.sitofp %482 : vector<16x16xi32> to vector<16x16xf32>
    %cst_133 = arith.constant 0xFF800000 : f32
    %484 = vector.broadcast %cst_133 : f32 to vector<16x16xf32>
    %485 = arith.select %481, %484, %471 : vector<16x16xi1>, vector<16x16xf32>
    %cst_134 = arith.constant dense<0xFF800000> : vector<16xf32>
    %486 = vector.multi_reduction <maximumf>, %485, %cst_134 [1] : vector<16x16xf32> to vector<16xf32>
    %487 = vector.shape_cast %486 : vector<16xf32> to vector<16x1xf32>
    %488 = vector.broadcast %487 : vector<16x1xf32> to vector<16x16xf32>
    %489 = arith.cmpf oeq, %485, %488 : vector<16x16xf32>
    %cst_135 = arith.constant 1.600000e+01 : f32
    %490 = vector.broadcast %cst_135 : f32 to vector<16x16xf32>
    %491 = arith.select %489, %443, %490 : vector<16x16xi1>, vector<16x16xf32>
    %cst_136 = arith.constant dense<0x7F800000> : vector<16xf32>
    %492 = vector.multi_reduction <minimumf>, %491, %cst_136 [1] : vector<16x16xf32> to vector<16xf32>
    %493 = vector.shape_cast %492 : vector<16xf32> to vector<16x1xf32>
    %494 = vector.broadcast %493 : vector<16x1xf32> to vector<16x16xf32>
    %495 = arith.cmpf oeq, %443, %494 : vector<16x16xf32>
    %496 = arith.extui %495 : vector<16x16xi1> to vector<16x16xi32>
    %497 = arith.sitofp %496 : vector<16x16xi32> to vector<16x16xf32>
    %498 = tpu.concatenate %455, %469, %483, %497 in 0 : vector<16x16xf32>, vector<16x16xf32>, vector<16x16xf32>, vector<16x16xf32> -> vector<64x16xf32>
    %499 = vector.extract_strided_slice %345 {offsets = [16, 0], sizes = [16, 64], strides = [1, 1]} : vector<64x64xf32> to vector<16x64xf32>
    %cst_137 = arith.constant dense<0.000000e+00> : vector<64x64xf32>
    %500 = tpu.matmul %498, %499, %cst_137 {dimension_numbers = #tpu.dot_dimension_numbers<[1], [0], [0], [1], [0, 0, 1, 1], [], []>} : vector<64x16xf32>, vector<16x64xf32>, vector<64x64xf32> -> vector<64x64xf32>
    %501 = vector.extract_strided_slice %500 {offsets = [0, 0], sizes = [16, 64], strides = [1, 1]} : vector<64x64xf32> to vector<16x64xf32>
    %502 = vector.extract_strided_slice %500 {offsets = [16, 0], sizes = [16, 64], strides = [1, 1]} : vector<64x64xf32> to vector<16x64xf32>
    %503 = arith.maximumf %501, %502 : vector<16x64xf32>
    %504 = vector.extract_strided_slice %500 {offsets = [32, 0], sizes = [16, 64], strides = [1, 1]} : vector<64x64xf32> to vector<16x64xf32>
    %505 = arith.maximumf %503, %504 : vector<16x64xf32>
    %506 = vector.extract_strided_slice %500 {offsets = [48, 0], sizes = [16, 64], strides = [1, 1]} : vector<64x64xf32> to vector<16x64xf32>
    %507 = arith.maximumf %505, %506 : vector<16x64xf32>
    %508 = vector.extract_strided_slice %347 {offsets = [16, 0], sizes = [16, 64], strides = [1, 1]} : vector<64x64xf32> to vector<16x64xf32>
    %509 = arith.addf %507, %508 : vector<16x64xf32>
    %cst_138 = arith.constant 0.000000e+00 : f32
    %510 = vector.broadcast %cst_138 : f32 to vector<16x64xf32>
    %511 = arith.maximumf %509, %510 : vector<16x64xf32>
    %512 = vector.extract_strided_slice %342 {offsets = [32, 0], sizes = [16, 64], strides = [1, 1]} : vector<64x64xf32> to vector<16x64xf32>
    %cst_139 = arith.constant dense<0.000000e+00> : vector<16x16xf32>
    %513 = tpu.matmul %512, %512, %cst_139 {dimension_numbers = #tpu.dot_dimension_numbers<[1], [1], [0], [0], [0, 0, 1, 0], [], []>} : vector<16x64xf32>, vector<16x64xf32>, vector<16x16xf32> -> vector<16x16xf32>
    %514 = arith.mulf %512, %512 : vector<16x64xf32>
    %cst_140 = arith.constant dense<0.000000e+00> : vector<16xf32>
    %515 = vector.multi_reduction <add>, %514, %cst_140 [1] : vector<16x64xf32> to vector<16xf32>
    %516 = vector.shape_cast %515 : vector<16xf32> to vector<16x1xf32>
    %cst_141 = arith.constant 2.000000e+00 : f32
    %517 = vector.broadcast %cst_141 : f32 to vector<16x16xf32>
    %518 = arith.mulf %517, %513 : vector<16x16xf32>
    %519 = vector.broadcast %516 : vector<16x1xf32> to vector<16x16xf32>
    %520 = arith.subf %518, %519 : vector<16x16xf32>
    %521 = tpu.transpose %516, [1, 0] : vector<16x1xf32> -> vector<1x16xf32>
    %522 = vector.broadcast %521 : vector<1x16xf32> to vector<16x16xf32>
    %523 = arith.subf %520, %522 : vector<16x16xf32>
    %524 = tpu.iota {dimensions = array<i32: 1>} : vector<16x16xi32>
    %525 = arith.sitofp %524 : vector<16x16xi32> to vector<16x16xf32>
    %cst_142 = arith.constant dense<0xFF800000> : vector<16xf32>
    %526 = vector.multi_reduction <maximumf>, %523, %cst_142 [1] : vector<16x16xf32> to vector<16xf32>
    %527 = vector.shape_cast %526 : vector<16xf32> to vector<16x1xf32>
    %528 = vector.broadcast %527 : vector<16x1xf32> to vector<16x16xf32>
    %529 = arith.cmpf oeq, %523, %528 : vector<16x16xf32>
    %cst_143 = arith.constant 1.600000e+01 : f32
    %530 = vector.broadcast %cst_143 : f32 to vector<16x16xf32>
    %531 = arith.select %529, %525, %530 : vector<16x16xi1>, vector<16x16xf32>
    %cst_144 = arith.constant dense<0x7F800000> : vector<16xf32>
    %532 = vector.multi_reduction <minimumf>, %531, %cst_144 [1] : vector<16x16xf32> to vector<16xf32>
    %533 = vector.shape_cast %532 : vector<16xf32> to vector<16x1xf32>
    %534 = vector.broadcast %533 : vector<16x1xf32> to vector<16x16xf32>
    %535 = arith.cmpf oeq, %525, %534 : vector<16x16xf32>
    %536 = arith.extui %535 : vector<16x16xi1> to vector<16x16xi32>
    %537 = arith.sitofp %536 : vector<16x16xi32> to vector<16x16xf32>
    %cst_145 = arith.constant 0xFF800000 : f32
    %538 = vector.broadcast %cst_145 : f32 to vector<16x16xf32>
    %539 = arith.select %535, %538, %523 : vector<16x16xi1>, vector<16x16xf32>
    %cst_146 = arith.constant dense<0xFF800000> : vector<16xf32>
    %540 = vector.multi_reduction <maximumf>, %539, %cst_146 [1] : vector<16x16xf32> to vector<16xf32>
    %541 = vector.shape_cast %540 : vector<16xf32> to vector<16x1xf32>
    %542 = vector.broadcast %541 : vector<16x1xf32> to vector<16x16xf32>
    %543 = arith.cmpf oeq, %539, %542 : vector<16x16xf32>
    %cst_147 = arith.constant 1.600000e+01 : f32
    %544 = vector.broadcast %cst_147 : f32 to vector<16x16xf32>
    %545 = arith.select %543, %525, %544 : vector<16x16xi1>, vector<16x16xf32>
    %cst_148 = arith.constant dense<0x7F800000> : vector<16xf32>
    %546 = vector.multi_reduction <minimumf>, %545, %cst_148 [1] : vector<16x16xf32> to vector<16xf32>
    %547 = vector.shape_cast %546 : vector<16xf32> to vector<16x1xf32>
    %548 = vector.broadcast %547 : vector<16x1xf32> to vector<16x16xf32>
    %549 = arith.cmpf oeq, %525, %548 : vector<16x16xf32>
    %550 = arith.extui %549 : vector<16x16xi1> to vector<16x16xi32>
    %551 = arith.sitofp %550 : vector<16x16xi32> to vector<16x16xf32>
    %cst_149 = arith.constant 0xFF800000 : f32
    %552 = vector.broadcast %cst_149 : f32 to vector<16x16xf32>
    %553 = arith.select %549, %552, %539 : vector<16x16xi1>, vector<16x16xf32>
    %cst_150 = arith.constant dense<0xFF800000> : vector<16xf32>
    %554 = vector.multi_reduction <maximumf>, %553, %cst_150 [1] : vector<16x16xf32> to vector<16xf32>
    %555 = vector.shape_cast %554 : vector<16xf32> to vector<16x1xf32>
    %556 = vector.broadcast %555 : vector<16x1xf32> to vector<16x16xf32>
    %557 = arith.cmpf oeq, %553, %556 : vector<16x16xf32>
    %cst_151 = arith.constant 1.600000e+01 : f32
    %558 = vector.broadcast %cst_151 : f32 to vector<16x16xf32>
    %559 = arith.select %557, %525, %558 : vector<16x16xi1>, vector<16x16xf32>
    %cst_152 = arith.constant dense<0x7F800000> : vector<16xf32>
    %560 = vector.multi_reduction <minimumf>, %559, %cst_152 [1] : vector<16x16xf32> to vector<16xf32>
    %561 = vector.shape_cast %560 : vector<16xf32> to vector<16x1xf32>
    %562 = vector.broadcast %561 : vector<16x1xf32> to vector<16x16xf32>
    %563 = arith.cmpf oeq, %525, %562 : vector<16x16xf32>
    %564 = arith.extui %563 : vector<16x16xi1> to vector<16x16xi32>
    %565 = arith.sitofp %564 : vector<16x16xi32> to vector<16x16xf32>
    %cst_153 = arith.constant 0xFF800000 : f32
    %566 = vector.broadcast %cst_153 : f32 to vector<16x16xf32>
    %567 = arith.select %563, %566, %553 : vector<16x16xi1>, vector<16x16xf32>
    %cst_154 = arith.constant dense<0xFF800000> : vector<16xf32>
    %568 = vector.multi_reduction <maximumf>, %567, %cst_154 [1] : vector<16x16xf32> to vector<16xf32>
    %569 = vector.shape_cast %568 : vector<16xf32> to vector<16x1xf32>
    %570 = vector.broadcast %569 : vector<16x1xf32> to vector<16x16xf32>
    %571 = arith.cmpf oeq, %567, %570 : vector<16x16xf32>
    %cst_155 = arith.constant 1.600000e+01 : f32
    %572 = vector.broadcast %cst_155 : f32 to vector<16x16xf32>
    %573 = arith.select %571, %525, %572 : vector<16x16xi1>, vector<16x16xf32>
    %cst_156 = arith.constant dense<0x7F800000> : vector<16xf32>
    %574 = vector.multi_reduction <minimumf>, %573, %cst_156 [1] : vector<16x16xf32> to vector<16xf32>
    %575 = vector.shape_cast %574 : vector<16xf32> to vector<16x1xf32>
    %576 = vector.broadcast %575 : vector<16x1xf32> to vector<16x16xf32>
    %577 = arith.cmpf oeq, %525, %576 : vector<16x16xf32>
    %578 = arith.extui %577 : vector<16x16xi1> to vector<16x16xi32>
    %579 = arith.sitofp %578 : vector<16x16xi32> to vector<16x16xf32>
    %580 = tpu.concatenate %537, %551, %565, %579 in 0 : vector<16x16xf32>, vector<16x16xf32>, vector<16x16xf32>, vector<16x16xf32> -> vector<64x16xf32>
    %581 = vector.extract_strided_slice %345 {offsets = [32, 0], sizes = [16, 64], strides = [1, 1]} : vector<64x64xf32> to vector<16x64xf32>
    %cst_157 = arith.constant dense<0.000000e+00> : vector<64x64xf32>
    %582 = tpu.matmul %580, %581, %cst_157 {dimension_numbers = #tpu.dot_dimension_numbers<[1], [0], [0], [1], [0, 0, 1, 1], [], []>} : vector<64x16xf32>, vector<16x64xf32>, vector<64x64xf32> -> vector<64x64xf32>
    %583 = vector.extract_strided_slice %582 {offsets = [0, 0], sizes = [16, 64], strides = [1, 1]} : vector<64x64xf32> to vector<16x64xf32>
    %584 = vector.extract_strided_slice %582 {offsets = [16, 0], sizes = [16, 64], strides = [1, 1]} : vector<64x64xf32> to vector<16x64xf32>
    %585 = arith.maximumf %583, %584 : vector<16x64xf32>
    %586 = vector.extract_strided_slice %582 {offsets = [32, 0], sizes = [16, 64], strides = [1, 1]} : vector<64x64xf32> to vector<16x64xf32>
    %587 = arith.maximumf %585, %586 : vector<16x64xf32>
    %588 = vector.extract_strided_slice %582 {offsets = [48, 0], sizes = [16, 64], strides = [1, 1]} : vector<64x64xf32> to vector<16x64xf32>
    %589 = arith.maximumf %587, %588 : vector<16x64xf32>
    %590 = vector.extract_strided_slice %347 {offsets = [32, 0], sizes = [16, 64], strides = [1, 1]} : vector<64x64xf32> to vector<16x64xf32>
    %591 = arith.addf %589, %590 : vector<16x64xf32>
    %cst_158 = arith.constant 0.000000e+00 : f32
    %592 = vector.broadcast %cst_158 : f32 to vector<16x64xf32>
    %593 = arith.maximumf %591, %592 : vector<16x64xf32>
    %594 = vector.extract_strided_slice %342 {offsets = [48, 0], sizes = [16, 64], strides = [1, 1]} : vector<64x64xf32> to vector<16x64xf32>
    %cst_159 = arith.constant dense<0.000000e+00> : vector<16x16xf32>
    %595 = tpu.matmul %594, %594, %cst_159 {dimension_numbers = #tpu.dot_dimension_numbers<[1], [1], [0], [0], [0, 0, 1, 0], [], []>} : vector<16x64xf32>, vector<16x64xf32>, vector<16x16xf32> -> vector<16x16xf32>
    %596 = arith.mulf %594, %594 : vector<16x64xf32>
    %cst_160 = arith.constant dense<0.000000e+00> : vector<16xf32>
    %597 = vector.multi_reduction <add>, %596, %cst_160 [1] : vector<16x64xf32> to vector<16xf32>
    %598 = vector.shape_cast %597 : vector<16xf32> to vector<16x1xf32>
    %cst_161 = arith.constant 2.000000e+00 : f32
    %599 = vector.broadcast %cst_161 : f32 to vector<16x16xf32>
    %600 = arith.mulf %599, %595 : vector<16x16xf32>
    %601 = vector.broadcast %598 : vector<16x1xf32> to vector<16x16xf32>
    %602 = arith.subf %600, %601 : vector<16x16xf32>
    %603 = tpu.transpose %598, [1, 0] : vector<16x1xf32> -> vector<1x16xf32>
    %604 = vector.broadcast %603 : vector<1x16xf32> to vector<16x16xf32>
    %605 = arith.subf %602, %604 : vector<16x16xf32>
    %606 = tpu.iota {dimensions = array<i32: 1>} : vector<16x16xi32>
    %607 = arith.sitofp %606 : vector<16x16xi32> to vector<16x16xf32>
    %cst_162 = arith.constant dense<0xFF800000> : vector<16xf32>
    %608 = vector.multi_reduction <maximumf>, %605, %cst_162 [1] : vector<16x16xf32> to vector<16xf32>
    %609 = vector.shape_cast %608 : vector<16xf32> to vector<16x1xf32>
    %610 = vector.broadcast %609 : vector<16x1xf32> to vector<16x16xf32>
    %611 = arith.cmpf oeq, %605, %610 : vector<16x16xf32>
    %cst_163 = arith.constant 1.600000e+01 : f32
    %612 = vector.broadcast %cst_163 : f32 to vector<16x16xf32>
    %613 = arith.select %611, %607, %612 : vector<16x16xi1>, vector<16x16xf32>
    %cst_164 = arith.constant dense<0x7F800000> : vector<16xf32>
    %614 = vector.multi_reduction <minimumf>, %613, %cst_164 [1] : vector<16x16xf32> to vector<16xf32>
    %615 = vector.shape_cast %614 : vector<16xf32> to vector<16x1xf32>
    %616 = vector.broadcast %615 : vector<16x1xf32> to vector<16x16xf32>
    %617 = arith.cmpf oeq, %607, %616 : vector<16x16xf32>
    %618 = arith.extui %617 : vector<16x16xi1> to vector<16x16xi32>
    %619 = arith.sitofp %618 : vector<16x16xi32> to vector<16x16xf32>
    %cst_165 = arith.constant 0xFF800000 : f32
    %620 = vector.broadcast %cst_165 : f32 to vector<16x16xf32>
    %621 = arith.select %617, %620, %605 : vector<16x16xi1>, vector<16x16xf32>
    %cst_166 = arith.constant dense<0xFF800000> : vector<16xf32>
    %622 = vector.multi_reduction <maximumf>, %621, %cst_166 [1] : vector<16x16xf32> to vector<16xf32>
    %623 = vector.shape_cast %622 : vector<16xf32> to vector<16x1xf32>
    %624 = vector.broadcast %623 : vector<16x1xf32> to vector<16x16xf32>
    %625 = arith.cmpf oeq, %621, %624 : vector<16x16xf32>
    %cst_167 = arith.constant 1.600000e+01 : f32
    %626 = vector.broadcast %cst_167 : f32 to vector<16x16xf32>
    %627 = arith.select %625, %607, %626 : vector<16x16xi1>, vector<16x16xf32>
    %cst_168 = arith.constant dense<0x7F800000> : vector<16xf32>
    %628 = vector.multi_reduction <minimumf>, %627, %cst_168 [1] : vector<16x16xf32> to vector<16xf32>
    %629 = vector.shape_cast %628 : vector<16xf32> to vector<16x1xf32>
    %630 = vector.broadcast %629 : vector<16x1xf32> to vector<16x16xf32>
    %631 = arith.cmpf oeq, %607, %630 : vector<16x16xf32>
    %632 = arith.extui %631 : vector<16x16xi1> to vector<16x16xi32>
    %633 = arith.sitofp %632 : vector<16x16xi32> to vector<16x16xf32>
    %cst_169 = arith.constant 0xFF800000 : f32
    %634 = vector.broadcast %cst_169 : f32 to vector<16x16xf32>
    %635 = arith.select %631, %634, %621 : vector<16x16xi1>, vector<16x16xf32>
    %cst_170 = arith.constant dense<0xFF800000> : vector<16xf32>
    %636 = vector.multi_reduction <maximumf>, %635, %cst_170 [1] : vector<16x16xf32> to vector<16xf32>
    %637 = vector.shape_cast %636 : vector<16xf32> to vector<16x1xf32>
    %638 = vector.broadcast %637 : vector<16x1xf32> to vector<16x16xf32>
    %639 = arith.cmpf oeq, %635, %638 : vector<16x16xf32>
    %cst_171 = arith.constant 1.600000e+01 : f32
    %640 = vector.broadcast %cst_171 : f32 to vector<16x16xf32>
    %641 = arith.select %639, %607, %640 : vector<16x16xi1>, vector<16x16xf32>
    %cst_172 = arith.constant dense<0x7F800000> : vector<16xf32>
    %642 = vector.multi_reduction <minimumf>, %641, %cst_172 [1] : vector<16x16xf32> to vector<16xf32>
    %643 = vector.shape_cast %642 : vector<16xf32> to vector<16x1xf32>
    %644 = vector.broadcast %643 : vector<16x1xf32> to vector<16x16xf32>
    %645 = arith.cmpf oeq, %607, %644 : vector<16x16xf32>
    %646 = arith.extui %645 : vector<16x16xi1> to vector<16x16xi32>
    %647 = arith.sitofp %646 : vector<16x16xi32> to vector<16x16xf32>
    %cst_173 = arith.constant 0xFF800000 : f32
    %648 = vector.broadcast %cst_173 : f32 to vector<16x16xf32>
    %649 = arith.select %645, %648, %635 : vector<16x16xi1>, vector<16x16xf32>
    %cst_174 = arith.constant dense<0xFF800000> : vector<16xf32>
    %650 = vector.multi_reduction <maximumf>, %649, %cst_174 [1] : vector<16x16xf32> to vector<16xf32>
    %651 = vector.shape_cast %650 : vector<16xf32> to vector<16x1xf32>
    %652 = vector.broadcast %651 : vector<16x1xf32> to vector<16x16xf32>
    %653 = arith.cmpf oeq, %649, %652 : vector<16x16xf32>
    %cst_175 = arith.constant 1.600000e+01 : f32
    %654 = vector.broadcast %cst_175 : f32 to vector<16x16xf32>
    %655 = arith.select %653, %607, %654 : vector<16x16xi1>, vector<16x16xf32>
    %cst_176 = arith.constant dense<0x7F800000> : vector<16xf32>
    %656 = vector.multi_reduction <minimumf>, %655, %cst_176 [1] : vector<16x16xf32> to vector<16xf32>
    %657 = vector.shape_cast %656 : vector<16xf32> to vector<16x1xf32>
    %658 = vector.broadcast %657 : vector<16x1xf32> to vector<16x16xf32>
    %659 = arith.cmpf oeq, %607, %658 : vector<16x16xf32>
    %660 = arith.extui %659 : vector<16x16xi1> to vector<16x16xi32>
    %661 = arith.sitofp %660 : vector<16x16xi32> to vector<16x16xf32>
    %662 = tpu.concatenate %619, %633, %647, %661 in 0 : vector<16x16xf32>, vector<16x16xf32>, vector<16x16xf32>, vector<16x16xf32> -> vector<64x16xf32>
    %663 = vector.extract_strided_slice %345 {offsets = [48, 0], sizes = [16, 64], strides = [1, 1]} : vector<64x64xf32> to vector<16x64xf32>
    %cst_177 = arith.constant dense<0.000000e+00> : vector<64x64xf32>
    %664 = tpu.matmul %662, %663, %cst_177 {dimension_numbers = #tpu.dot_dimension_numbers<[1], [0], [0], [1], [0, 0, 1, 1], [], []>} : vector<64x16xf32>, vector<16x64xf32>, vector<64x64xf32> -> vector<64x64xf32>
    %665 = vector.extract_strided_slice %664 {offsets = [0, 0], sizes = [16, 64], strides = [1, 1]} : vector<64x64xf32> to vector<16x64xf32>
    %666 = vector.extract_strided_slice %664 {offsets = [16, 0], sizes = [16, 64], strides = [1, 1]} : vector<64x64xf32> to vector<16x64xf32>
    %667 = arith.maximumf %665, %666 : vector<16x64xf32>
    %668 = vector.extract_strided_slice %664 {offsets = [32, 0], sizes = [16, 64], strides = [1, 1]} : vector<64x64xf32> to vector<16x64xf32>
    %669 = arith.maximumf %667, %668 : vector<16x64xf32>
    %670 = vector.extract_strided_slice %664 {offsets = [48, 0], sizes = [16, 64], strides = [1, 1]} : vector<64x64xf32> to vector<16x64xf32>
    %671 = arith.maximumf %669, %670 : vector<16x64xf32>
    %672 = vector.extract_strided_slice %347 {offsets = [48, 0], sizes = [16, 64], strides = [1, 1]} : vector<64x64xf32> to vector<16x64xf32>
    %673 = arith.addf %671, %672 : vector<16x64xf32>
    %cst_178 = arith.constant 0.000000e+00 : f32
    %674 = vector.broadcast %cst_178 : f32 to vector<16x64xf32>
    %675 = arith.maximumf %673, %674 : vector<16x64xf32>
    %676 = tpu.concatenate %429, %511, %593, %675 in 0 : vector<16x64xf32>, vector<16x64xf32>, vector<16x64xf32>, vector<16x64xf32> -> vector<64x64xf32>
    %677 = arith.truncf %676 : vector<64x64xf32> to vector<64x64xbf16>
    %c0_179 = arith.constant 0 : index
    %c0_180 = arith.constant 0 : index
    %678 = vector.load %arg6[%c0_179, %c0_180] : memref<64x128xbf16, #tpu.memory_space<vmem>>, vector<64x128xbf16>
    %cst_181 = arith.constant dense<0.000000e+00> : vector<64x128xf32>
    %679 = tpu.matmul %677, %678, %cst_181 {dimension_numbers = #tpu.dot_dimension_numbers<[1], [0], [0], [1], [0, 0, 1, 1], [], []>} : vector<64x64xbf16>, vector<64x128xbf16>, vector<64x128xf32> -> vector<64x128xf32>
    %c0_182 = arith.constant 0 : index
    %c0_183 = arith.constant 0 : index
    %680 = vector.load %arg7[%c0_182, %c0_183] : memref<64x128xbf16, #tpu.memory_space<vmem>>, vector<64x128xbf16>
    %cst_184 = arith.constant dense<0.000000e+00> : vector<64x128xf32>
    %681 = tpu.matmul %677, %680, %cst_184 {dimension_numbers = #tpu.dot_dimension_numbers<[1], [0], [0], [1], [0, 0, 1, 1], [], []>} : vector<64x64xbf16>, vector<64x128xbf16>, vector<64x128xf32> -> vector<64x128xf32>
    %682 = vector.extract_strided_slice %676 {offsets = [0, 0], sizes = [16, 64], strides = [1, 1]} : vector<64x64xf32> to vector<16x64xf32>
    %cst_185 = arith.constant dense<0.000000e+00> : vector<16x16xf32>
    %683 = tpu.matmul %682, %682, %cst_185 {dimension_numbers = #tpu.dot_dimension_numbers<[1], [1], [0], [0], [0, 0, 1, 0], [], []>} : vector<16x64xf32>, vector<16x64xf32>, vector<16x16xf32> -> vector<16x16xf32>
    %684 = arith.mulf %682, %682 : vector<16x64xf32>
    %cst_186 = arith.constant dense<0.000000e+00> : vector<16xf32>
    %685 = vector.multi_reduction <add>, %684, %cst_186 [1] : vector<16x64xf32> to vector<16xf32>
    %686 = vector.shape_cast %685 : vector<16xf32> to vector<16x1xf32>
    %cst_187 = arith.constant 2.000000e+00 : f32
    %687 = vector.broadcast %cst_187 : f32 to vector<16x16xf32>
    %688 = arith.mulf %687, %683 : vector<16x16xf32>
    %689 = vector.broadcast %686 : vector<16x1xf32> to vector<16x16xf32>
    %690 = arith.subf %688, %689 : vector<16x16xf32>
    %691 = tpu.transpose %686, [1, 0] : vector<16x1xf32> -> vector<1x16xf32>
    %692 = vector.broadcast %691 : vector<1x16xf32> to vector<16x16xf32>
    %693 = arith.subf %690, %692 : vector<16x16xf32>
    %694 = tpu.iota {dimensions = array<i32: 1>} : vector<16x16xi32>
    %695 = arith.sitofp %694 : vector<16x16xi32> to vector<16x16xf32>
    %cst_188 = arith.constant dense<0xFF800000> : vector<16xf32>
    %696 = vector.multi_reduction <maximumf>, %693, %cst_188 [1] : vector<16x16xf32> to vector<16xf32>
    %697 = vector.shape_cast %696 : vector<16xf32> to vector<16x1xf32>
    %698 = vector.broadcast %697 : vector<16x1xf32> to vector<16x16xf32>
    %699 = arith.cmpf oeq, %693, %698 : vector<16x16xf32>
    %cst_189 = arith.constant 1.600000e+01 : f32
    %700 = vector.broadcast %cst_189 : f32 to vector<16x16xf32>
    %701 = arith.select %699, %695, %700 : vector<16x16xi1>, vector<16x16xf32>
    %cst_190 = arith.constant dense<0x7F800000> : vector<16xf32>
    %702 = vector.multi_reduction <minimumf>, %701, %cst_190 [1] : vector<16x16xf32> to vector<16xf32>
    %703 = vector.shape_cast %702 : vector<16xf32> to vector<16x1xf32>
    %704 = vector.broadcast %703 : vector<16x1xf32> to vector<16x16xf32>
    %705 = arith.cmpf oeq, %695, %704 : vector<16x16xf32>
    %706 = arith.extui %705 : vector<16x16xi1> to vector<16x16xi32>
    %707 = arith.sitofp %706 : vector<16x16xi32> to vector<16x16xf32>
    %cst_191 = arith.constant 0xFF800000 : f32
    %708 = vector.broadcast %cst_191 : f32 to vector<16x16xf32>
    %709 = arith.select %705, %708, %693 : vector<16x16xi1>, vector<16x16xf32>
    %cst_192 = arith.constant dense<0xFF800000> : vector<16xf32>
    %710 = vector.multi_reduction <maximumf>, %709, %cst_192 [1] : vector<16x16xf32> to vector<16xf32>
    %711 = vector.shape_cast %710 : vector<16xf32> to vector<16x1xf32>
    %712 = vector.broadcast %711 : vector<16x1xf32> to vector<16x16xf32>
    %713 = arith.cmpf oeq, %709, %712 : vector<16x16xf32>
    %cst_193 = arith.constant 1.600000e+01 : f32
    %714 = vector.broadcast %cst_193 : f32 to vector<16x16xf32>
    %715 = arith.select %713, %695, %714 : vector<16x16xi1>, vector<16x16xf32>
    %cst_194 = arith.constant dense<0x7F800000> : vector<16xf32>
    %716 = vector.multi_reduction <minimumf>, %715, %cst_194 [1] : vector<16x16xf32> to vector<16xf32>
    %717 = vector.shape_cast %716 : vector<16xf32> to vector<16x1xf32>
    %718 = vector.broadcast %717 : vector<16x1xf32> to vector<16x16xf32>
    %719 = arith.cmpf oeq, %695, %718 : vector<16x16xf32>
    %720 = arith.extui %719 : vector<16x16xi1> to vector<16x16xi32>
    %721 = arith.sitofp %720 : vector<16x16xi32> to vector<16x16xf32>
    %cst_195 = arith.constant 0xFF800000 : f32
    %722 = vector.broadcast %cst_195 : f32 to vector<16x16xf32>
    %723 = arith.select %719, %722, %709 : vector<16x16xi1>, vector<16x16xf32>
    %cst_196 = arith.constant dense<0xFF800000> : vector<16xf32>
    %724 = vector.multi_reduction <maximumf>, %723, %cst_196 [1] : vector<16x16xf32> to vector<16xf32>
    %725 = vector.shape_cast %724 : vector<16xf32> to vector<16x1xf32>
    %726 = vector.broadcast %725 : vector<16x1xf32> to vector<16x16xf32>
    %727 = arith.cmpf oeq, %723, %726 : vector<16x16xf32>
    %cst_197 = arith.constant 1.600000e+01 : f32
    %728 = vector.broadcast %cst_197 : f32 to vector<16x16xf32>
    %729 = arith.select %727, %695, %728 : vector<16x16xi1>, vector<16x16xf32>
    %cst_198 = arith.constant dense<0x7F800000> : vector<16xf32>
    %730 = vector.multi_reduction <minimumf>, %729, %cst_198 [1] : vector<16x16xf32> to vector<16xf32>
    %731 = vector.shape_cast %730 : vector<16xf32> to vector<16x1xf32>
    %732 = vector.broadcast %731 : vector<16x1xf32> to vector<16x16xf32>
    %733 = arith.cmpf oeq, %695, %732 : vector<16x16xf32>
    %734 = arith.extui %733 : vector<16x16xi1> to vector<16x16xi32>
    %735 = arith.sitofp %734 : vector<16x16xi32> to vector<16x16xf32>
    %cst_199 = arith.constant 0xFF800000 : f32
    %736 = vector.broadcast %cst_199 : f32 to vector<16x16xf32>
    %737 = arith.select %733, %736, %723 : vector<16x16xi1>, vector<16x16xf32>
    %cst_200 = arith.constant dense<0xFF800000> : vector<16xf32>
    %738 = vector.multi_reduction <maximumf>, %737, %cst_200 [1] : vector<16x16xf32> to vector<16xf32>
    %739 = vector.shape_cast %738 : vector<16xf32> to vector<16x1xf32>
    %740 = vector.broadcast %739 : vector<16x1xf32> to vector<16x16xf32>
    %741 = arith.cmpf oeq, %737, %740 : vector<16x16xf32>
    %cst_201 = arith.constant 1.600000e+01 : f32
    %742 = vector.broadcast %cst_201 : f32 to vector<16x16xf32>
    %743 = arith.select %741, %695, %742 : vector<16x16xi1>, vector<16x16xf32>
    %cst_202 = arith.constant dense<0x7F800000> : vector<16xf32>
    %744 = vector.multi_reduction <minimumf>, %743, %cst_202 [1] : vector<16x16xf32> to vector<16xf32>
    %745 = vector.shape_cast %744 : vector<16xf32> to vector<16x1xf32>
    %746 = vector.broadcast %745 : vector<16x1xf32> to vector<16x16xf32>
    %747 = arith.cmpf oeq, %695, %746 : vector<16x16xf32>
    %748 = arith.extui %747 : vector<16x16xi1> to vector<16x16xi32>
    %749 = arith.sitofp %748 : vector<16x16xi32> to vector<16x16xf32>
    %750 = tpu.concatenate %707, %721, %735, %749 in 0 : vector<16x16xf32>, vector<16x16xf32>, vector<16x16xf32>, vector<16x16xf32> -> vector<64x16xf32>
    %751 = vector.extract_strided_slice %679 {offsets = [0, 0], sizes = [16, 128], strides = [1, 1]} : vector<64x128xf32> to vector<16x128xf32>
    %cst_203 = arith.constant dense<0.000000e+00> : vector<64x128xf32>
    %752 = tpu.matmul %750, %751, %cst_203 {dimension_numbers = #tpu.dot_dimension_numbers<[1], [0], [0], [1], [0, 0, 1, 1], [], []>} : vector<64x16xf32>, vector<16x128xf32>, vector<64x128xf32> -> vector<64x128xf32>
    %753 = vector.extract_strided_slice %752 {offsets = [0, 0], sizes = [16, 128], strides = [1, 1]} : vector<64x128xf32> to vector<16x128xf32>
    %754 = vector.extract_strided_slice %752 {offsets = [16, 0], sizes = [16, 128], strides = [1, 1]} : vector<64x128xf32> to vector<16x128xf32>
    %755 = arith.maximumf %753, %754 : vector<16x128xf32>
    %756 = vector.extract_strided_slice %752 {offsets = [32, 0], sizes = [16, 128], strides = [1, 1]} : vector<64x128xf32> to vector<16x128xf32>
    %757 = arith.maximumf %755, %756 : vector<16x128xf32>
    %758 = vector.extract_strided_slice %752 {offsets = [48, 0], sizes = [16, 128], strides = [1, 1]} : vector<64x128xf32> to vector<16x128xf32>
    %759 = arith.maximumf %757, %758 : vector<16x128xf32>
    %760 = vector.extract_strided_slice %681 {offsets = [0, 0], sizes = [16, 128], strides = [1, 1]} : vector<64x128xf32> to vector<16x128xf32>
    %761 = arith.addf %759, %760 : vector<16x128xf32>
    %cst_204 = arith.constant 0.000000e+00 : f32
    %762 = vector.broadcast %cst_204 : f32 to vector<16x128xf32>
    %763 = arith.maximumf %761, %762 : vector<16x128xf32>
    %764 = vector.extract_strided_slice %676 {offsets = [16, 0], sizes = [16, 64], strides = [1, 1]} : vector<64x64xf32> to vector<16x64xf32>
    %cst_205 = arith.constant dense<0.000000e+00> : vector<16x16xf32>
    %765 = tpu.matmul %764, %764, %cst_205 {dimension_numbers = #tpu.dot_dimension_numbers<[1], [1], [0], [0], [0, 0, 1, 0], [], []>} : vector<16x64xf32>, vector<16x64xf32>, vector<16x16xf32> -> vector<16x16xf32>
    %766 = arith.mulf %764, %764 : vector<16x64xf32>
    %cst_206 = arith.constant dense<0.000000e+00> : vector<16xf32>
    %767 = vector.multi_reduction <add>, %766, %cst_206 [1] : vector<16x64xf32> to vector<16xf32>
    %768 = vector.shape_cast %767 : vector<16xf32> to vector<16x1xf32>
    %cst_207 = arith.constant 2.000000e+00 : f32
    %769 = vector.broadcast %cst_207 : f32 to vector<16x16xf32>
    %770 = arith.mulf %769, %765 : vector<16x16xf32>
    %771 = vector.broadcast %768 : vector<16x1xf32> to vector<16x16xf32>
    %772 = arith.subf %770, %771 : vector<16x16xf32>
    %773 = tpu.transpose %768, [1, 0] : vector<16x1xf32> -> vector<1x16xf32>
    %774 = vector.broadcast %773 : vector<1x16xf32> to vector<16x16xf32>
    %775 = arith.subf %772, %774 : vector<16x16xf32>
    %776 = tpu.iota {dimensions = array<i32: 1>} : vector<16x16xi32>
    %777 = arith.sitofp %776 : vector<16x16xi32> to vector<16x16xf32>
    %cst_208 = arith.constant dense<0xFF800000> : vector<16xf32>
    %778 = vector.multi_reduction <maximumf>, %775, %cst_208 [1] : vector<16x16xf32> to vector<16xf32>
    %779 = vector.shape_cast %778 : vector<16xf32> to vector<16x1xf32>
    %780 = vector.broadcast %779 : vector<16x1xf32> to vector<16x16xf32>
    %781 = arith.cmpf oeq, %775, %780 : vector<16x16xf32>
    %cst_209 = arith.constant 1.600000e+01 : f32
    %782 = vector.broadcast %cst_209 : f32 to vector<16x16xf32>
    %783 = arith.select %781, %777, %782 : vector<16x16xi1>, vector<16x16xf32>
    %cst_210 = arith.constant dense<0x7F800000> : vector<16xf32>
    %784 = vector.multi_reduction <minimumf>, %783, %cst_210 [1] : vector<16x16xf32> to vector<16xf32>
    %785 = vector.shape_cast %784 : vector<16xf32> to vector<16x1xf32>
    %786 = vector.broadcast %785 : vector<16x1xf32> to vector<16x16xf32>
    %787 = arith.cmpf oeq, %777, %786 : vector<16x16xf32>
    %788 = arith.extui %787 : vector<16x16xi1> to vector<16x16xi32>
    %789 = arith.sitofp %788 : vector<16x16xi32> to vector<16x16xf32>
    %cst_211 = arith.constant 0xFF800000 : f32
    %790 = vector.broadcast %cst_211 : f32 to vector<16x16xf32>
    %791 = arith.select %787, %790, %775 : vector<16x16xi1>, vector<16x16xf32>
    %cst_212 = arith.constant dense<0xFF800000> : vector<16xf32>
    %792 = vector.multi_reduction <maximumf>, %791, %cst_212 [1] : vector<16x16xf32> to vector<16xf32>
    %793 = vector.shape_cast %792 : vector<16xf32> to vector<16x1xf32>
    %794 = vector.broadcast %793 : vector<16x1xf32> to vector<16x16xf32>
    %795 = arith.cmpf oeq, %791, %794 : vector<16x16xf32>
    %cst_213 = arith.constant 1.600000e+01 : f32
    %796 = vector.broadcast %cst_213 : f32 to vector<16x16xf32>
    %797 = arith.select %795, %777, %796 : vector<16x16xi1>, vector<16x16xf32>
    %cst_214 = arith.constant dense<0x7F800000> : vector<16xf32>
    %798 = vector.multi_reduction <minimumf>, %797, %cst_214 [1] : vector<16x16xf32> to vector<16xf32>
    %799 = vector.shape_cast %798 : vector<16xf32> to vector<16x1xf32>
    %800 = vector.broadcast %799 : vector<16x1xf32> to vector<16x16xf32>
    %801 = arith.cmpf oeq, %777, %800 : vector<16x16xf32>
    %802 = arith.extui %801 : vector<16x16xi1> to vector<16x16xi32>
    %803 = arith.sitofp %802 : vector<16x16xi32> to vector<16x16xf32>
    %cst_215 = arith.constant 0xFF800000 : f32
    %804 = vector.broadcast %cst_215 : f32 to vector<16x16xf32>
    %805 = arith.select %801, %804, %791 : vector<16x16xi1>, vector<16x16xf32>
    %cst_216 = arith.constant dense<0xFF800000> : vector<16xf32>
    %806 = vector.multi_reduction <maximumf>, %805, %cst_216 [1] : vector<16x16xf32> to vector<16xf32>
    %807 = vector.shape_cast %806 : vector<16xf32> to vector<16x1xf32>
    %808 = vector.broadcast %807 : vector<16x1xf32> to vector<16x16xf32>
    %809 = arith.cmpf oeq, %805, %808 : vector<16x16xf32>
    %cst_217 = arith.constant 1.600000e+01 : f32
    %810 = vector.broadcast %cst_217 : f32 to vector<16x16xf32>
    %811 = arith.select %809, %777, %810 : vector<16x16xi1>, vector<16x16xf32>
    %cst_218 = arith.constant dense<0x7F800000> : vector<16xf32>
    %812 = vector.multi_reduction <minimumf>, %811, %cst_218 [1] : vector<16x16xf32> to vector<16xf32>
    %813 = vector.shape_cast %812 : vector<16xf32> to vector<16x1xf32>
    %814 = vector.broadcast %813 : vector<16x1xf32> to vector<16x16xf32>
    %815 = arith.cmpf oeq, %777, %814 : vector<16x16xf32>
    %816 = arith.extui %815 : vector<16x16xi1> to vector<16x16xi32>
    %817 = arith.sitofp %816 : vector<16x16xi32> to vector<16x16xf32>
    %cst_219 = arith.constant 0xFF800000 : f32
    %818 = vector.broadcast %cst_219 : f32 to vector<16x16xf32>
    %819 = arith.select %815, %818, %805 : vector<16x16xi1>, vector<16x16xf32>
    %cst_220 = arith.constant dense<0xFF800000> : vector<16xf32>
    %820 = vector.multi_reduction <maximumf>, %819, %cst_220 [1] : vector<16x16xf32> to vector<16xf32>
    %821 = vector.shape_cast %820 : vector<16xf32> to vector<16x1xf32>
    %822 = vector.broadcast %821 : vector<16x1xf32> to vector<16x16xf32>
    %823 = arith.cmpf oeq, %819, %822 : vector<16x16xf32>
    %cst_221 = arith.constant 1.600000e+01 : f32
    %824 = vector.broadcast %cst_221 : f32 to vector<16x16xf32>
    %825 = arith.select %823, %777, %824 : vector<16x16xi1>, vector<16x16xf32>
    %cst_222 = arith.constant dense<0x7F800000> : vector<16xf32>
    %826 = vector.multi_reduction <minimumf>, %825, %cst_222 [1] : vector<16x16xf32> to vector<16xf32>
    %827 = vector.shape_cast %826 : vector<16xf32> to vector<16x1xf32>
    %828 = vector.broadcast %827 : vector<16x1xf32> to vector<16x16xf32>
    %829 = arith.cmpf oeq, %777, %828 : vector<16x16xf32>
    %830 = arith.extui %829 : vector<16x16xi1> to vector<16x16xi32>
    %831 = arith.sitofp %830 : vector<16x16xi32> to vector<16x16xf32>
    %832 = tpu.concatenate %789, %803, %817, %831 in 0 : vector<16x16xf32>, vector<16x16xf32>, vector<16x16xf32>, vector<16x16xf32> -> vector<64x16xf32>
    %833 = vector.extract_strided_slice %679 {offsets = [16, 0], sizes = [16, 128], strides = [1, 1]} : vector<64x128xf32> to vector<16x128xf32>
    %cst_223 = arith.constant dense<0.000000e+00> : vector<64x128xf32>
    %834 = tpu.matmul %832, %833, %cst_223 {dimension_numbers = #tpu.dot_dimension_numbers<[1], [0], [0], [1], [0, 0, 1, 1], [], []>} : vector<64x16xf32>, vector<16x128xf32>, vector<64x128xf32> -> vector<64x128xf32>
    %835 = vector.extract_strided_slice %834 {offsets = [0, 0], sizes = [16, 128], strides = [1, 1]} : vector<64x128xf32> to vector<16x128xf32>
    %836 = vector.extract_strided_slice %834 {offsets = [16, 0], sizes = [16, 128], strides = [1, 1]} : vector<64x128xf32> to vector<16x128xf32>
    %837 = arith.maximumf %835, %836 : vector<16x128xf32>
    %838 = vector.extract_strided_slice %834 {offsets = [32, 0], sizes = [16, 128], strides = [1, 1]} : vector<64x128xf32> to vector<16x128xf32>
    %839 = arith.maximumf %837, %838 : vector<16x128xf32>
    %840 = vector.extract_strided_slice %834 {offsets = [48, 0], sizes = [16, 128], strides = [1, 1]} : vector<64x128xf32> to vector<16x128xf32>
    %841 = arith.maximumf %839, %840 : vector<16x128xf32>
    %842 = vector.extract_strided_slice %681 {offsets = [16, 0], sizes = [16, 128], strides = [1, 1]} : vector<64x128xf32> to vector<16x128xf32>
    %843 = arith.addf %841, %842 : vector<16x128xf32>
    %cst_224 = arith.constant 0.000000e+00 : f32
    %844 = vector.broadcast %cst_224 : f32 to vector<16x128xf32>
    %845 = arith.maximumf %843, %844 : vector<16x128xf32>
    %846 = vector.extract_strided_slice %676 {offsets = [32, 0], sizes = [16, 64], strides = [1, 1]} : vector<64x64xf32> to vector<16x64xf32>
    %cst_225 = arith.constant dense<0.000000e+00> : vector<16x16xf32>
    %847 = tpu.matmul %846, %846, %cst_225 {dimension_numbers = #tpu.dot_dimension_numbers<[1], [1], [0], [0], [0, 0, 1, 0], [], []>} : vector<16x64xf32>, vector<16x64xf32>, vector<16x16xf32> -> vector<16x16xf32>
    %848 = arith.mulf %846, %846 : vector<16x64xf32>
    %cst_226 = arith.constant dense<0.000000e+00> : vector<16xf32>
    %849 = vector.multi_reduction <add>, %848, %cst_226 [1] : vector<16x64xf32> to vector<16xf32>
    %850 = vector.shape_cast %849 : vector<16xf32> to vector<16x1xf32>
    %cst_227 = arith.constant 2.000000e+00 : f32
    %851 = vector.broadcast %cst_227 : f32 to vector<16x16xf32>
    %852 = arith.mulf %851, %847 : vector<16x16xf32>
    %853 = vector.broadcast %850 : vector<16x1xf32> to vector<16x16xf32>
    %854 = arith.subf %852, %853 : vector<16x16xf32>
    %855 = tpu.transpose %850, [1, 0] : vector<16x1xf32> -> vector<1x16xf32>
    %856 = vector.broadcast %855 : vector<1x16xf32> to vector<16x16xf32>
    %857 = arith.subf %854, %856 : vector<16x16xf32>
    %858 = tpu.iota {dimensions = array<i32: 1>} : vector<16x16xi32>
    %859 = arith.sitofp %858 : vector<16x16xi32> to vector<16x16xf32>
    %cst_228 = arith.constant dense<0xFF800000> : vector<16xf32>
    %860 = vector.multi_reduction <maximumf>, %857, %cst_228 [1] : vector<16x16xf32> to vector<16xf32>
    %861 = vector.shape_cast %860 : vector<16xf32> to vector<16x1xf32>
    %862 = vector.broadcast %861 : vector<16x1xf32> to vector<16x16xf32>
    %863 = arith.cmpf oeq, %857, %862 : vector<16x16xf32>
    %cst_229 = arith.constant 1.600000e+01 : f32
    %864 = vector.broadcast %cst_229 : f32 to vector<16x16xf32>
    %865 = arith.select %863, %859, %864 : vector<16x16xi1>, vector<16x16xf32>
    %cst_230 = arith.constant dense<0x7F800000> : vector<16xf32>
    %866 = vector.multi_reduction <minimumf>, %865, %cst_230 [1] : vector<16x16xf32> to vector<16xf32>
    %867 = vector.shape_cast %866 : vector<16xf32> to vector<16x1xf32>
    %868 = vector.broadcast %867 : vector<16x1xf32> to vector<16x16xf32>
    %869 = arith.cmpf oeq, %859, %868 : vector<16x16xf32>
    %870 = arith.extui %869 : vector<16x16xi1> to vector<16x16xi32>
    %871 = arith.sitofp %870 : vector<16x16xi32> to vector<16x16xf32>
    %cst_231 = arith.constant 0xFF800000 : f32
    %872 = vector.broadcast %cst_231 : f32 to vector<16x16xf32>
    %873 = arith.select %869, %872, %857 : vector<16x16xi1>, vector<16x16xf32>
    %cst_232 = arith.constant dense<0xFF800000> : vector<16xf32>
    %874 = vector.multi_reduction <maximumf>, %873, %cst_232 [1] : vector<16x16xf32> to vector<16xf32>
    %875 = vector.shape_cast %874 : vector<16xf32> to vector<16x1xf32>
    %876 = vector.broadcast %875 : vector<16x1xf32> to vector<16x16xf32>
    %877 = arith.cmpf oeq, %873, %876 : vector<16x16xf32>
    %cst_233 = arith.constant 1.600000e+01 : f32
    %878 = vector.broadcast %cst_233 : f32 to vector<16x16xf32>
    %879 = arith.select %877, %859, %878 : vector<16x16xi1>, vector<16x16xf32>
    %cst_234 = arith.constant dense<0x7F800000> : vector<16xf32>
    %880 = vector.multi_reduction <minimumf>, %879, %cst_234 [1] : vector<16x16xf32> to vector<16xf32>
    %881 = vector.shape_cast %880 : vector<16xf32> to vector<16x1xf32>
    %882 = vector.broadcast %881 : vector<16x1xf32> to vector<16x16xf32>
    %883 = arith.cmpf oeq, %859, %882 : vector<16x16xf32>
    %884 = arith.extui %883 : vector<16x16xi1> to vector<16x16xi32>
    %885 = arith.sitofp %884 : vector<16x16xi32> to vector<16x16xf32>
    %cst_235 = arith.constant 0xFF800000 : f32
    %886 = vector.broadcast %cst_235 : f32 to vector<16x16xf32>
    %887 = arith.select %883, %886, %873 : vector<16x16xi1>, vector<16x16xf32>
    %cst_236 = arith.constant dense<0xFF800000> : vector<16xf32>
    %888 = vector.multi_reduction <maximumf>, %887, %cst_236 [1] : vector<16x16xf32> to vector<16xf32>
    %889 = vector.shape_cast %888 : vector<16xf32> to vector<16x1xf32>
    %890 = vector.broadcast %889 : vector<16x1xf32> to vector<16x16xf32>
    %891 = arith.cmpf oeq, %887, %890 : vector<16x16xf32>
    %cst_237 = arith.constant 1.600000e+01 : f32
    %892 = vector.broadcast %cst_237 : f32 to vector<16x16xf32>
    %893 = arith.select %891, %859, %892 : vector<16x16xi1>, vector<16x16xf32>
    %cst_238 = arith.constant dense<0x7F800000> : vector<16xf32>
    %894 = vector.multi_reduction <minimumf>, %893, %cst_238 [1] : vector<16x16xf32> to vector<16xf32>
    %895 = vector.shape_cast %894 : vector<16xf32> to vector<16x1xf32>
    %896 = vector.broadcast %895 : vector<16x1xf32> to vector<16x16xf32>
    %897 = arith.cmpf oeq, %859, %896 : vector<16x16xf32>
    %898 = arith.extui %897 : vector<16x16xi1> to vector<16x16xi32>
    %899 = arith.sitofp %898 : vector<16x16xi32> to vector<16x16xf32>
    %cst_239 = arith.constant 0xFF800000 : f32
    %900 = vector.broadcast %cst_239 : f32 to vector<16x16xf32>
    %901 = arith.select %897, %900, %887 : vector<16x16xi1>, vector<16x16xf32>
    %cst_240 = arith.constant dense<0xFF800000> : vector<16xf32>
    %902 = vector.multi_reduction <maximumf>, %901, %cst_240 [1] : vector<16x16xf32> to vector<16xf32>
    %903 = vector.shape_cast %902 : vector<16xf32> to vector<16x1xf32>
    %904 = vector.broadcast %903 : vector<16x1xf32> to vector<16x16xf32>
    %905 = arith.cmpf oeq, %901, %904 : vector<16x16xf32>
    %cst_241 = arith.constant 1.600000e+01 : f32
    %906 = vector.broadcast %cst_241 : f32 to vector<16x16xf32>
    %907 = arith.select %905, %859, %906 : vector<16x16xi1>, vector<16x16xf32>
    %cst_242 = arith.constant dense<0x7F800000> : vector<16xf32>
    %908 = vector.multi_reduction <minimumf>, %907, %cst_242 [1] : vector<16x16xf32> to vector<16xf32>
    %909 = vector.shape_cast %908 : vector<16xf32> to vector<16x1xf32>
    %910 = vector.broadcast %909 : vector<16x1xf32> to vector<16x16xf32>
    %911 = arith.cmpf oeq, %859, %910 : vector<16x16xf32>
    %912 = arith.extui %911 : vector<16x16xi1> to vector<16x16xi32>
    %913 = arith.sitofp %912 : vector<16x16xi32> to vector<16x16xf32>
    %914 = tpu.concatenate %871, %885, %899, %913 in 0 : vector<16x16xf32>, vector<16x16xf32>, vector<16x16xf32>, vector<16x16xf32> -> vector<64x16xf32>
    %915 = vector.extract_strided_slice %679 {offsets = [32, 0], sizes = [16, 128], strides = [1, 1]} : vector<64x128xf32> to vector<16x128xf32>
    %cst_243 = arith.constant dense<0.000000e+00> : vector<64x128xf32>
    %916 = tpu.matmul %914, %915, %cst_243 {dimension_numbers = #tpu.dot_dimension_numbers<[1], [0], [0], [1], [0, 0, 1, 1], [], []>} : vector<64x16xf32>, vector<16x128xf32>, vector<64x128xf32> -> vector<64x128xf32>
    %917 = vector.extract_strided_slice %916 {offsets = [0, 0], sizes = [16, 128], strides = [1, 1]} : vector<64x128xf32> to vector<16x128xf32>
    %918 = vector.extract_strided_slice %916 {offsets = [16, 0], sizes = [16, 128], strides = [1, 1]} : vector<64x128xf32> to vector<16x128xf32>
    %919 = arith.maximumf %917, %918 : vector<16x128xf32>
    %920 = vector.extract_strided_slice %916 {offsets = [32, 0], sizes = [16, 128], strides = [1, 1]} : vector<64x128xf32> to vector<16x128xf32>
    %921 = arith.maximumf %919, %920 : vector<16x128xf32>
    %922 = vector.extract_strided_slice %916 {offsets = [48, 0], sizes = [16, 128], strides = [1, 1]} : vector<64x128xf32> to vector<16x128xf32>
    %923 = arith.maximumf %921, %922 : vector<16x128xf32>
    %924 = vector.extract_strided_slice %681 {offsets = [32, 0], sizes = [16, 128], strides = [1, 1]} : vector<64x128xf32> to vector<16x128xf32>
    %925 = arith.addf %923, %924 : vector<16x128xf32>
    %cst_244 = arith.constant 0.000000e+00 : f32
    %926 = vector.broadcast %cst_244 : f32 to vector<16x128xf32>
    %927 = arith.maximumf %925, %926 : vector<16x128xf32>
    %928 = vector.extract_strided_slice %676 {offsets = [48, 0], sizes = [16, 64], strides = [1, 1]} : vector<64x64xf32> to vector<16x64xf32>
    %cst_245 = arith.constant dense<0.000000e+00> : vector<16x16xf32>
    %929 = tpu.matmul %928, %928, %cst_245 {dimension_numbers = #tpu.dot_dimension_numbers<[1], [1], [0], [0], [0, 0, 1, 0], [], []>} : vector<16x64xf32>, vector<16x64xf32>, vector<16x16xf32> -> vector<16x16xf32>
    %930 = arith.mulf %928, %928 : vector<16x64xf32>
    %cst_246 = arith.constant dense<0.000000e+00> : vector<16xf32>
    %931 = vector.multi_reduction <add>, %930, %cst_246 [1] : vector<16x64xf32> to vector<16xf32>
    %932 = vector.shape_cast %931 : vector<16xf32> to vector<16x1xf32>
    %cst_247 = arith.constant 2.000000e+00 : f32
    %933 = vector.broadcast %cst_247 : f32 to vector<16x16xf32>
    %934 = arith.mulf %933, %929 : vector<16x16xf32>
    %935 = vector.broadcast %932 : vector<16x1xf32> to vector<16x16xf32>
    %936 = arith.subf %934, %935 : vector<16x16xf32>
    %937 = tpu.transpose %932, [1, 0] : vector<16x1xf32> -> vector<1x16xf32>
    %938 = vector.broadcast %937 : vector<1x16xf32> to vector<16x16xf32>
    %939 = arith.subf %936, %938 : vector<16x16xf32>
    %940 = tpu.iota {dimensions = array<i32: 1>} : vector<16x16xi32>
    %941 = arith.sitofp %940 : vector<16x16xi32> to vector<16x16xf32>
    %cst_248 = arith.constant dense<0xFF800000> : vector<16xf32>
    %942 = vector.multi_reduction <maximumf>, %939, %cst_248 [1] : vector<16x16xf32> to vector<16xf32>
    %943 = vector.shape_cast %942 : vector<16xf32> to vector<16x1xf32>
    %944 = vector.broadcast %943 : vector<16x1xf32> to vector<16x16xf32>
    %945 = arith.cmpf oeq, %939, %944 : vector<16x16xf32>
    %cst_249 = arith.constant 1.600000e+01 : f32
    %946 = vector.broadcast %cst_249 : f32 to vector<16x16xf32>
    %947 = arith.select %945, %941, %946 : vector<16x16xi1>, vector<16x16xf32>
    %cst_250 = arith.constant dense<0x7F800000> : vector<16xf32>
    %948 = vector.multi_reduction <minimumf>, %947, %cst_250 [1] : vector<16x16xf32> to vector<16xf32>
    %949 = vector.shape_cast %948 : vector<16xf32> to vector<16x1xf32>
    %950 = vector.broadcast %949 : vector<16x1xf32> to vector<16x16xf32>
    %951 = arith.cmpf oeq, %941, %950 : vector<16x16xf32>
    %952 = arith.extui %951 : vector<16x16xi1> to vector<16x16xi32>
    %953 = arith.sitofp %952 : vector<16x16xi32> to vector<16x16xf32>
    %cst_251 = arith.constant 0xFF800000 : f32
    %954 = vector.broadcast %cst_251 : f32 to vector<16x16xf32>
    %955 = arith.select %951, %954, %939 : vector<16x16xi1>, vector<16x16xf32>
    %cst_252 = arith.constant dense<0xFF800000> : vector<16xf32>
    %956 = vector.multi_reduction <maximumf>, %955, %cst_252 [1] : vector<16x16xf32> to vector<16xf32>
    %957 = vector.shape_cast %956 : vector<16xf32> to vector<16x1xf32>
    %958 = vector.broadcast %957 : vector<16x1xf32> to vector<16x16xf32>
    %959 = arith.cmpf oeq, %955, %958 : vector<16x16xf32>
    %cst_253 = arith.constant 1.600000e+01 : f32
    %960 = vector.broadcast %cst_253 : f32 to vector<16x16xf32>
    %961 = arith.select %959, %941, %960 : vector<16x16xi1>, vector<16x16xf32>
    %cst_254 = arith.constant dense<0x7F800000> : vector<16xf32>
    %962 = vector.multi_reduction <minimumf>, %961, %cst_254 [1] : vector<16x16xf32> to vector<16xf32>
    %963 = vector.shape_cast %962 : vector<16xf32> to vector<16x1xf32>
    %964 = vector.broadcast %963 : vector<16x1xf32> to vector<16x16xf32>
    %965 = arith.cmpf oeq, %941, %964 : vector<16x16xf32>
    %966 = arith.extui %965 : vector<16x16xi1> to vector<16x16xi32>
    %967 = arith.sitofp %966 : vector<16x16xi32> to vector<16x16xf32>
    %cst_255 = arith.constant 0xFF800000 : f32
    %968 = vector.broadcast %cst_255 : f32 to vector<16x16xf32>
    %969 = arith.select %965, %968, %955 : vector<16x16xi1>, vector<16x16xf32>
    %cst_256 = arith.constant dense<0xFF800000> : vector<16xf32>
    %970 = vector.multi_reduction <maximumf>, %969, %cst_256 [1] : vector<16x16xf32> to vector<16xf32>
    %971 = vector.shape_cast %970 : vector<16xf32> to vector<16x1xf32>
    %972 = vector.broadcast %971 : vector<16x1xf32> to vector<16x16xf32>
    %973 = arith.cmpf oeq, %969, %972 : vector<16x16xf32>
    %cst_257 = arith.constant 1.600000e+01 : f32
    %974 = vector.broadcast %cst_257 : f32 to vector<16x16xf32>
    %975 = arith.select %973, %941, %974 : vector<16x16xi1>, vector<16x16xf32>
    %cst_258 = arith.constant dense<0x7F800000> : vector<16xf32>
    %976 = vector.multi_reduction <minimumf>, %975, %cst_258 [1] : vector<16x16xf32> to vector<16xf32>
    %977 = vector.shape_cast %976 : vector<16xf32> to vector<16x1xf32>
    %978 = vector.broadcast %977 : vector<16x1xf32> to vector<16x16xf32>
    %979 = arith.cmpf oeq, %941, %978 : vector<16x16xf32>
    %980 = arith.extui %979 : vector<16x16xi1> to vector<16x16xi32>
    %981 = arith.sitofp %980 : vector<16x16xi32> to vector<16x16xf32>
    %cst_259 = arith.constant 0xFF800000 : f32
    %982 = vector.broadcast %cst_259 : f32 to vector<16x16xf32>
    %983 = arith.select %979, %982, %969 : vector<16x16xi1>, vector<16x16xf32>
    %cst_260 = arith.constant dense<0xFF800000> : vector<16xf32>
    %984 = vector.multi_reduction <maximumf>, %983, %cst_260 [1] : vector<16x16xf32> to vector<16xf32>
    %985 = vector.shape_cast %984 : vector<16xf32> to vector<16x1xf32>
    %986 = vector.broadcast %985 : vector<16x1xf32> to vector<16x16xf32>
    %987 = arith.cmpf oeq, %983, %986 : vector<16x16xf32>
    %cst_261 = arith.constant 1.600000e+01 : f32
    %988 = vector.broadcast %cst_261 : f32 to vector<16x16xf32>
    %989 = arith.select %987, %941, %988 : vector<16x16xi1>, vector<16x16xf32>
    %cst_262 = arith.constant dense<0x7F800000> : vector<16xf32>
    %990 = vector.multi_reduction <minimumf>, %989, %cst_262 [1] : vector<16x16xf32> to vector<16xf32>
    %991 = vector.shape_cast %990 : vector<16xf32> to vector<16x1xf32>
    %992 = vector.broadcast %991 : vector<16x1xf32> to vector<16x16xf32>
    %993 = arith.cmpf oeq, %941, %992 : vector<16x16xf32>
    %994 = arith.extui %993 : vector<16x16xi1> to vector<16x16xi32>
    %995 = arith.sitofp %994 : vector<16x16xi32> to vector<16x16xf32>
    %996 = tpu.concatenate %953, %967, %981, %995 in 0 : vector<16x16xf32>, vector<16x16xf32>, vector<16x16xf32>, vector<16x16xf32> -> vector<64x16xf32>
    %997 = vector.extract_strided_slice %679 {offsets = [48, 0], sizes = [16, 128], strides = [1, 1]} : vector<64x128xf32> to vector<16x128xf32>
    %cst_263 = arith.constant dense<0.000000e+00> : vector<64x128xf32>
    %998 = tpu.matmul %996, %997, %cst_263 {dimension_numbers = #tpu.dot_dimension_numbers<[1], [0], [0], [1], [0, 0, 1, 1], [], []>} : vector<64x16xf32>, vector<16x128xf32>, vector<64x128xf32> -> vector<64x128xf32>
    %999 = vector.extract_strided_slice %998 {offsets = [0, 0], sizes = [16, 128], strides = [1, 1]} : vector<64x128xf32> to vector<16x128xf32>
    %1000 = vector.extract_strided_slice %998 {offsets = [16, 0], sizes = [16, 128], strides = [1, 1]} : vector<64x128xf32> to vector<16x128xf32>
    %1001 = arith.maximumf %999, %1000 : vector<16x128xf32>
    %1002 = vector.extract_strided_slice %998 {offsets = [32, 0], sizes = [16, 128], strides = [1, 1]} : vector<64x128xf32> to vector<16x128xf32>
    %1003 = arith.maximumf %1001, %1002 : vector<16x128xf32>
    %1004 = vector.extract_strided_slice %998 {offsets = [48, 0], sizes = [16, 128], strides = [1, 1]} : vector<64x128xf32> to vector<16x128xf32>
    %1005 = arith.maximumf %1003, %1004 : vector<16x128xf32>
    %1006 = vector.extract_strided_slice %681 {offsets = [48, 0], sizes = [16, 128], strides = [1, 1]} : vector<64x128xf32> to vector<16x128xf32>
    %1007 = arith.addf %1005, %1006 : vector<16x128xf32>
    %cst_264 = arith.constant 0.000000e+00 : f32
    %1008 = vector.broadcast %cst_264 : f32 to vector<16x128xf32>
    %1009 = arith.maximumf %1007, %1008 : vector<16x128xf32>
    %1010 = tpu.concatenate %763, %845, %927, %1009 in 0 : vector<16x128xf32>, vector<16x128xf32>, vector<16x128xf32>, vector<16x128xf32> -> vector<64x128xf32>
    %1011 = arith.truncf %1010 : vector<64x128xf32> to vector<64x128xbf16>
    %c0_265 = arith.constant 0 : index
    %c0_266 = arith.constant 0 : index
    %1012 = vector.load %arg8[%c0_265, %c0_266] : memref<128x256xbf16, #tpu.memory_space<vmem>>, vector<128x256xbf16>
    %cst_267 = arith.constant dense<0.000000e+00> : vector<64x256xf32>
    %1013 = tpu.matmul %1011, %1012, %cst_267 {dimension_numbers = #tpu.dot_dimension_numbers<[1], [0], [0], [1], [0, 0, 1, 1], [], []>} : vector<64x128xbf16>, vector<128x256xbf16>, vector<64x256xf32> -> vector<64x256xf32>
    %c0_268 = arith.constant 0 : index
    %c0_269 = arith.constant 0 : index
    %1014 = vector.load %arg9[%c0_268, %c0_269] : memref<128x256xbf16, #tpu.memory_space<vmem>>, vector<128x256xbf16>
    %cst_270 = arith.constant dense<0.000000e+00> : vector<64x256xf32>
    %1015 = tpu.matmul %1011, %1014, %cst_270 {dimension_numbers = #tpu.dot_dimension_numbers<[1], [0], [0], [1], [0, 0, 1, 1], [], []>} : vector<64x128xbf16>, vector<128x256xbf16>, vector<64x256xf32> -> vector<64x256xf32>
    %1016 = vector.extract_strided_slice %1010 {offsets = [0, 0], sizes = [16, 128], strides = [1, 1]} : vector<64x128xf32> to vector<16x128xf32>
    %cst_271 = arith.constant dense<0.000000e+00> : vector<16x16xf32>
    %1017 = tpu.matmul %1016, %1016, %cst_271 {dimension_numbers = #tpu.dot_dimension_numbers<[1], [1], [0], [0], [0, 0, 1, 0], [], []>} : vector<16x128xf32>, vector<16x128xf32>, vector<16x16xf32> -> vector<16x16xf32>
    %1018 = arith.mulf %1016, %1016 : vector<16x128xf32>
    %cst_272 = arith.constant dense<0.000000e+00> : vector<16xf32>
    %1019 = vector.multi_reduction <add>, %1018, %cst_272 [1] : vector<16x128xf32> to vector<16xf32>
    %1020 = vector.shape_cast %1019 : vector<16xf32> to vector<16x1xf32>
    %cst_273 = arith.constant 2.000000e+00 : f32
    %1021 = vector.broadcast %cst_273 : f32 to vector<16x16xf32>
    %1022 = arith.mulf %1021, %1017 : vector<16x16xf32>
    %1023 = vector.broadcast %1020 : vector<16x1xf32> to vector<16x16xf32>
    %1024 = arith.subf %1022, %1023 : vector<16x16xf32>
    %1025 = tpu.transpose %1020, [1, 0] : vector<16x1xf32> -> vector<1x16xf32>
    %1026 = vector.broadcast %1025 : vector<1x16xf32> to vector<16x16xf32>
    %1027 = arith.subf %1024, %1026 : vector<16x16xf32>
    %1028 = tpu.iota {dimensions = array<i32: 1>} : vector<16x16xi32>
    %1029 = arith.sitofp %1028 : vector<16x16xi32> to vector<16x16xf32>
    %cst_274 = arith.constant dense<0xFF800000> : vector<16xf32>
    %1030 = vector.multi_reduction <maximumf>, %1027, %cst_274 [1] : vector<16x16xf32> to vector<16xf32>
    %1031 = vector.shape_cast %1030 : vector<16xf32> to vector<16x1xf32>
    %1032 = vector.broadcast %1031 : vector<16x1xf32> to vector<16x16xf32>
    %1033 = arith.cmpf oeq, %1027, %1032 : vector<16x16xf32>
    %cst_275 = arith.constant 1.600000e+01 : f32
    %1034 = vector.broadcast %cst_275 : f32 to vector<16x16xf32>
    %1035 = arith.select %1033, %1029, %1034 : vector<16x16xi1>, vector<16x16xf32>
    %cst_276 = arith.constant dense<0x7F800000> : vector<16xf32>
    %1036 = vector.multi_reduction <minimumf>, %1035, %cst_276 [1] : vector<16x16xf32> to vector<16xf32>
    %1037 = vector.shape_cast %1036 : vector<16xf32> to vector<16x1xf32>
    %1038 = vector.broadcast %1037 : vector<16x1xf32> to vector<16x16xf32>
    %1039 = arith.cmpf oeq, %1029, %1038 : vector<16x16xf32>
    %1040 = arith.extui %1039 : vector<16x16xi1> to vector<16x16xi32>
    %1041 = arith.sitofp %1040 : vector<16x16xi32> to vector<16x16xf32>
    %cst_277 = arith.constant 0xFF800000 : f32
    %1042 = vector.broadcast %cst_277 : f32 to vector<16x16xf32>
    %1043 = arith.select %1039, %1042, %1027 : vector<16x16xi1>, vector<16x16xf32>
    %cst_278 = arith.constant dense<0xFF800000> : vector<16xf32>
    %1044 = vector.multi_reduction <maximumf>, %1043, %cst_278 [1] : vector<16x16xf32> to vector<16xf32>
    %1045 = vector.shape_cast %1044 : vector<16xf32> to vector<16x1xf32>
    %1046 = vector.broadcast %1045 : vector<16x1xf32> to vector<16x16xf32>
    %1047 = arith.cmpf oeq, %1043, %1046 : vector<16x16xf32>
    %cst_279 = arith.constant 1.600000e+01 : f32
    %1048 = vector.broadcast %cst_279 : f32 to vector<16x16xf32>
    %1049 = arith.select %1047, %1029, %1048 : vector<16x16xi1>, vector<16x16xf32>
    %cst_280 = arith.constant dense<0x7F800000> : vector<16xf32>
    %1050 = vector.multi_reduction <minimumf>, %1049, %cst_280 [1] : vector<16x16xf32> to vector<16xf32>
    %1051 = vector.shape_cast %1050 : vector<16xf32> to vector<16x1xf32>
    %1052 = vector.broadcast %1051 : vector<16x1xf32> to vector<16x16xf32>
    %1053 = arith.cmpf oeq, %1029, %1052 : vector<16x16xf32>
    %1054 = arith.extui %1053 : vector<16x16xi1> to vector<16x16xi32>
    %1055 = arith.sitofp %1054 : vector<16x16xi32> to vector<16x16xf32>
    %cst_281 = arith.constant 0xFF800000 : f32
    %1056 = vector.broadcast %cst_281 : f32 to vector<16x16xf32>
    %1057 = arith.select %1053, %1056, %1043 : vector<16x16xi1>, vector<16x16xf32>
    %cst_282 = arith.constant dense<0xFF800000> : vector<16xf32>
    %1058 = vector.multi_reduction <maximumf>, %1057, %cst_282 [1] : vector<16x16xf32> to vector<16xf32>
    %1059 = vector.shape_cast %1058 : vector<16xf32> to vector<16x1xf32>
    %1060 = vector.broadcast %1059 : vector<16x1xf32> to vector<16x16xf32>
    %1061 = arith.cmpf oeq, %1057, %1060 : vector<16x16xf32>
    %cst_283 = arith.constant 1.600000e+01 : f32
    %1062 = vector.broadcast %cst_283 : f32 to vector<16x16xf32>
    %1063 = arith.select %1061, %1029, %1062 : vector<16x16xi1>, vector<16x16xf32>
    %cst_284 = arith.constant dense<0x7F800000> : vector<16xf32>
    %1064 = vector.multi_reduction <minimumf>, %1063, %cst_284 [1] : vector<16x16xf32> to vector<16xf32>
    %1065 = vector.shape_cast %1064 : vector<16xf32> to vector<16x1xf32>
    %1066 = vector.broadcast %1065 : vector<16x1xf32> to vector<16x16xf32>
    %1067 = arith.cmpf oeq, %1029, %1066 : vector<16x16xf32>
    %1068 = arith.extui %1067 : vector<16x16xi1> to vector<16x16xi32>
    %1069 = arith.sitofp %1068 : vector<16x16xi32> to vector<16x16xf32>
    %cst_285 = arith.constant 0xFF800000 : f32
    %1070 = vector.broadcast %cst_285 : f32 to vector<16x16xf32>
    %1071 = arith.select %1067, %1070, %1057 : vector<16x16xi1>, vector<16x16xf32>
    %cst_286 = arith.constant dense<0xFF800000> : vector<16xf32>
    %1072 = vector.multi_reduction <maximumf>, %1071, %cst_286 [1] : vector<16x16xf32> to vector<16xf32>
    %1073 = vector.shape_cast %1072 : vector<16xf32> to vector<16x1xf32>
    %1074 = vector.broadcast %1073 : vector<16x1xf32> to vector<16x16xf32>
    %1075 = arith.cmpf oeq, %1071, %1074 : vector<16x16xf32>
    %cst_287 = arith.constant 1.600000e+01 : f32
    %1076 = vector.broadcast %cst_287 : f32 to vector<16x16xf32>
    %1077 = arith.select %1075, %1029, %1076 : vector<16x16xi1>, vector<16x16xf32>
    %cst_288 = arith.constant dense<0x7F800000> : vector<16xf32>
    %1078 = vector.multi_reduction <minimumf>, %1077, %cst_288 [1] : vector<16x16xf32> to vector<16xf32>
    %1079 = vector.shape_cast %1078 : vector<16xf32> to vector<16x1xf32>
    %1080 = vector.broadcast %1079 : vector<16x1xf32> to vector<16x16xf32>
    %1081 = arith.cmpf oeq, %1029, %1080 : vector<16x16xf32>
    %1082 = arith.extui %1081 : vector<16x16xi1> to vector<16x16xi32>
    %1083 = arith.sitofp %1082 : vector<16x16xi32> to vector<16x16xf32>
    %1084 = tpu.concatenate %1041, %1055, %1069, %1083 in 0 : vector<16x16xf32>, vector<16x16xf32>, vector<16x16xf32>, vector<16x16xf32> -> vector<64x16xf32>
    %1085 = vector.extract_strided_slice %1013 {offsets = [0, 0], sizes = [16, 256], strides = [1, 1]} : vector<64x256xf32> to vector<16x256xf32>
    %cst_289 = arith.constant dense<0.000000e+00> : vector<64x256xf32>
    %1086 = tpu.matmul %1084, %1085, %cst_289 {dimension_numbers = #tpu.dot_dimension_numbers<[1], [0], [0], [1], [0, 0, 1, 1], [], []>} : vector<64x16xf32>, vector<16x256xf32>, vector<64x256xf32> -> vector<64x256xf32>
    %1087 = vector.extract_strided_slice %1086 {offsets = [0, 0], sizes = [16, 256], strides = [1, 1]} : vector<64x256xf32> to vector<16x256xf32>
    %1088 = vector.extract_strided_slice %1086 {offsets = [16, 0], sizes = [16, 256], strides = [1, 1]} : vector<64x256xf32> to vector<16x256xf32>
    %1089 = arith.maximumf %1087, %1088 : vector<16x256xf32>
    %1090 = vector.extract_strided_slice %1086 {offsets = [32, 0], sizes = [16, 256], strides = [1, 1]} : vector<64x256xf32> to vector<16x256xf32>
    %1091 = arith.maximumf %1089, %1090 : vector<16x256xf32>
    %1092 = vector.extract_strided_slice %1086 {offsets = [48, 0], sizes = [16, 256], strides = [1, 1]} : vector<64x256xf32> to vector<16x256xf32>
    %1093 = arith.maximumf %1091, %1092 : vector<16x256xf32>
    %1094 = vector.extract_strided_slice %1015 {offsets = [0, 0], sizes = [16, 256], strides = [1, 1]} : vector<64x256xf32> to vector<16x256xf32>
    %1095 = arith.addf %1093, %1094 : vector<16x256xf32>
    %cst_290 = arith.constant 0.000000e+00 : f32
    %1096 = vector.broadcast %cst_290 : f32 to vector<16x256xf32>
    %1097 = arith.maximumf %1095, %1096 : vector<16x256xf32>
    %1098 = vector.extract_strided_slice %1010 {offsets = [16, 0], sizes = [16, 128], strides = [1, 1]} : vector<64x128xf32> to vector<16x128xf32>
    %cst_291 = arith.constant dense<0.000000e+00> : vector<16x16xf32>
    %1099 = tpu.matmul %1098, %1098, %cst_291 {dimension_numbers = #tpu.dot_dimension_numbers<[1], [1], [0], [0], [0, 0, 1, 0], [], []>} : vector<16x128xf32>, vector<16x128xf32>, vector<16x16xf32> -> vector<16x16xf32>
    %1100 = arith.mulf %1098, %1098 : vector<16x128xf32>
    %cst_292 = arith.constant dense<0.000000e+00> : vector<16xf32>
    %1101 = vector.multi_reduction <add>, %1100, %cst_292 [1] : vector<16x128xf32> to vector<16xf32>
    %1102 = vector.shape_cast %1101 : vector<16xf32> to vector<16x1xf32>
    %cst_293 = arith.constant 2.000000e+00 : f32
    %1103 = vector.broadcast %cst_293 : f32 to vector<16x16xf32>
    %1104 = arith.mulf %1103, %1099 : vector<16x16xf32>
    %1105 = vector.broadcast %1102 : vector<16x1xf32> to vector<16x16xf32>
    %1106 = arith.subf %1104, %1105 : vector<16x16xf32>
    %1107 = tpu.transpose %1102, [1, 0] : vector<16x1xf32> -> vector<1x16xf32>
    %1108 = vector.broadcast %1107 : vector<1x16xf32> to vector<16x16xf32>
    %1109 = arith.subf %1106, %1108 : vector<16x16xf32>
    %1110 = tpu.iota {dimensions = array<i32: 1>} : vector<16x16xi32>
    %1111 = arith.sitofp %1110 : vector<16x16xi32> to vector<16x16xf32>
    %cst_294 = arith.constant dense<0xFF800000> : vector<16xf32>
    %1112 = vector.multi_reduction <maximumf>, %1109, %cst_294 [1] : vector<16x16xf32> to vector<16xf32>
    %1113 = vector.shape_cast %1112 : vector<16xf32> to vector<16x1xf32>
    %1114 = vector.broadcast %1113 : vector<16x1xf32> to vector<16x16xf32>
    %1115 = arith.cmpf oeq, %1109, %1114 : vector<16x16xf32>
    %cst_295 = arith.constant 1.600000e+01 : f32
    %1116 = vector.broadcast %cst_295 : f32 to vector<16x16xf32>
    %1117 = arith.select %1115, %1111, %1116 : vector<16x16xi1>, vector<16x16xf32>
    %cst_296 = arith.constant dense<0x7F800000> : vector<16xf32>
    %1118 = vector.multi_reduction <minimumf>, %1117, %cst_296 [1] : vector<16x16xf32> to vector<16xf32>
    %1119 = vector.shape_cast %1118 : vector<16xf32> to vector<16x1xf32>
    %1120 = vector.broadcast %1119 : vector<16x1xf32> to vector<16x16xf32>
    %1121 = arith.cmpf oeq, %1111, %1120 : vector<16x16xf32>
    %1122 = arith.extui %1121 : vector<16x16xi1> to vector<16x16xi32>
    %1123 = arith.sitofp %1122 : vector<16x16xi32> to vector<16x16xf32>
    %cst_297 = arith.constant 0xFF800000 : f32
    %1124 = vector.broadcast %cst_297 : f32 to vector<16x16xf32>
    %1125 = arith.select %1121, %1124, %1109 : vector<16x16xi1>, vector<16x16xf32>
    %cst_298 = arith.constant dense<0xFF800000> : vector<16xf32>
    %1126 = vector.multi_reduction <maximumf>, %1125, %cst_298 [1] : vector<16x16xf32> to vector<16xf32>
    %1127 = vector.shape_cast %1126 : vector<16xf32> to vector<16x1xf32>
    %1128 = vector.broadcast %1127 : vector<16x1xf32> to vector<16x16xf32>
    %1129 = arith.cmpf oeq, %1125, %1128 : vector<16x16xf32>
    %cst_299 = arith.constant 1.600000e+01 : f32
    %1130 = vector.broadcast %cst_299 : f32 to vector<16x16xf32>
    %1131 = arith.select %1129, %1111, %1130 : vector<16x16xi1>, vector<16x16xf32>
    %cst_300 = arith.constant dense<0x7F800000> : vector<16xf32>
    %1132 = vector.multi_reduction <minimumf>, %1131, %cst_300 [1] : vector<16x16xf32> to vector<16xf32>
    %1133 = vector.shape_cast %1132 : vector<16xf32> to vector<16x1xf32>
    %1134 = vector.broadcast %1133 : vector<16x1xf32> to vector<16x16xf32>
    %1135 = arith.cmpf oeq, %1111, %1134 : vector<16x16xf32>
    %1136 = arith.extui %1135 : vector<16x16xi1> to vector<16x16xi32>
    %1137 = arith.sitofp %1136 : vector<16x16xi32> to vector<16x16xf32>
    %cst_301 = arith.constant 0xFF800000 : f32
    %1138 = vector.broadcast %cst_301 : f32 to vector<16x16xf32>
    %1139 = arith.select %1135, %1138, %1125 : vector<16x16xi1>, vector<16x16xf32>
    %cst_302 = arith.constant dense<0xFF800000> : vector<16xf32>
    %1140 = vector.multi_reduction <maximumf>, %1139, %cst_302 [1] : vector<16x16xf32> to vector<16xf32>
    %1141 = vector.shape_cast %1140 : vector<16xf32> to vector<16x1xf32>
    %1142 = vector.broadcast %1141 : vector<16x1xf32> to vector<16x16xf32>
    %1143 = arith.cmpf oeq, %1139, %1142 : vector<16x16xf32>
    %cst_303 = arith.constant 1.600000e+01 : f32
    %1144 = vector.broadcast %cst_303 : f32 to vector<16x16xf32>
    %1145 = arith.select %1143, %1111, %1144 : vector<16x16xi1>, vector<16x16xf32>
    %cst_304 = arith.constant dense<0x7F800000> : vector<16xf32>
    %1146 = vector.multi_reduction <minimumf>, %1145, %cst_304 [1] : vector<16x16xf32> to vector<16xf32>
    %1147 = vector.shape_cast %1146 : vector<16xf32> to vector<16x1xf32>
    %1148 = vector.broadcast %1147 : vector<16x1xf32> to vector<16x16xf32>
    %1149 = arith.cmpf oeq, %1111, %1148 : vector<16x16xf32>
    %1150 = arith.extui %1149 : vector<16x16xi1> to vector<16x16xi32>
    %1151 = arith.sitofp %1150 : vector<16x16xi32> to vector<16x16xf32>
    %cst_305 = arith.constant 0xFF800000 : f32
    %1152 = vector.broadcast %cst_305 : f32 to vector<16x16xf32>
    %1153 = arith.select %1149, %1152, %1139 : vector<16x16xi1>, vector<16x16xf32>
    %cst_306 = arith.constant dense<0xFF800000> : vector<16xf32>
    %1154 = vector.multi_reduction <maximumf>, %1153, %cst_306 [1] : vector<16x16xf32> to vector<16xf32>
    %1155 = vector.shape_cast %1154 : vector<16xf32> to vector<16x1xf32>
    %1156 = vector.broadcast %1155 : vector<16x1xf32> to vector<16x16xf32>
    %1157 = arith.cmpf oeq, %1153, %1156 : vector<16x16xf32>
    %cst_307 = arith.constant 1.600000e+01 : f32
    %1158 = vector.broadcast %cst_307 : f32 to vector<16x16xf32>
    %1159 = arith.select %1157, %1111, %1158 : vector<16x16xi1>, vector<16x16xf32>
    %cst_308 = arith.constant dense<0x7F800000> : vector<16xf32>
    %1160 = vector.multi_reduction <minimumf>, %1159, %cst_308 [1] : vector<16x16xf32> to vector<16xf32>
    %1161 = vector.shape_cast %1160 : vector<16xf32> to vector<16x1xf32>
    %1162 = vector.broadcast %1161 : vector<16x1xf32> to vector<16x16xf32>
    %1163 = arith.cmpf oeq, %1111, %1162 : vector<16x16xf32>
    %1164 = arith.extui %1163 : vector<16x16xi1> to vector<16x16xi32>
    %1165 = arith.sitofp %1164 : vector<16x16xi32> to vector<16x16xf32>
    %1166 = tpu.concatenate %1123, %1137, %1151, %1165 in 0 : vector<16x16xf32>, vector<16x16xf32>, vector<16x16xf32>, vector<16x16xf32> -> vector<64x16xf32>
    %1167 = vector.extract_strided_slice %1013 {offsets = [16, 0], sizes = [16, 256], strides = [1, 1]} : vector<64x256xf32> to vector<16x256xf32>
    %cst_309 = arith.constant dense<0.000000e+00> : vector<64x256xf32>
    %1168 = tpu.matmul %1166, %1167, %cst_309 {dimension_numbers = #tpu.dot_dimension_numbers<[1], [0], [0], [1], [0, 0, 1, 1], [], []>} : vector<64x16xf32>, vector<16x256xf32>, vector<64x256xf32> -> vector<64x256xf32>
    %1169 = vector.extract_strided_slice %1168 {offsets = [0, 0], sizes = [16, 256], strides = [1, 1]} : vector<64x256xf32> to vector<16x256xf32>
    %1170 = vector.extract_strided_slice %1168 {offsets = [16, 0], sizes = [16, 256], strides = [1, 1]} : vector<64x256xf32> to vector<16x256xf32>
    %1171 = arith.maximumf %1169, %1170 : vector<16x256xf32>
    %1172 = vector.extract_strided_slice %1168 {offsets = [32, 0], sizes = [16, 256], strides = [1, 1]} : vector<64x256xf32> to vector<16x256xf32>
    %1173 = arith.maximumf %1171, %1172 : vector<16x256xf32>
    %1174 = vector.extract_strided_slice %1168 {offsets = [48, 0], sizes = [16, 256], strides = [1, 1]} : vector<64x256xf32> to vector<16x256xf32>
    %1175 = arith.maximumf %1173, %1174 : vector<16x256xf32>
    %1176 = vector.extract_strided_slice %1015 {offsets = [16, 0], sizes = [16, 256], strides = [1, 1]} : vector<64x256xf32> to vector<16x256xf32>
    %1177 = arith.addf %1175, %1176 : vector<16x256xf32>
    %cst_310 = arith.constant 0.000000e+00 : f32
    %1178 = vector.broadcast %cst_310 : f32 to vector<16x256xf32>
    %1179 = arith.maximumf %1177, %1178 : vector<16x256xf32>
    %1180 = vector.extract_strided_slice %1010 {offsets = [32, 0], sizes = [16, 128], strides = [1, 1]} : vector<64x128xf32> to vector<16x128xf32>
    %cst_311 = arith.constant dense<0.000000e+00> : vector<16x16xf32>
    %1181 = tpu.matmul %1180, %1180, %cst_311 {dimension_numbers = #tpu.dot_dimension_numbers<[1], [1], [0], [0], [0, 0, 1, 0], [], []>} : vector<16x128xf32>, vector<16x128xf32>, vector<16x16xf32> -> vector<16x16xf32>
    %1182 = arith.mulf %1180, %1180 : vector<16x128xf32>
    %cst_312 = arith.constant dense<0.000000e+00> : vector<16xf32>
    %1183 = vector.multi_reduction <add>, %1182, %cst_312 [1] : vector<16x128xf32> to vector<16xf32>
    %1184 = vector.shape_cast %1183 : vector<16xf32> to vector<16x1xf32>
    %cst_313 = arith.constant 2.000000e+00 : f32
    %1185 = vector.broadcast %cst_313 : f32 to vector<16x16xf32>
    %1186 = arith.mulf %1185, %1181 : vector<16x16xf32>
    %1187 = vector.broadcast %1184 : vector<16x1xf32> to vector<16x16xf32>
    %1188 = arith.subf %1186, %1187 : vector<16x16xf32>
    %1189 = tpu.transpose %1184, [1, 0] : vector<16x1xf32> -> vector<1x16xf32>
    %1190 = vector.broadcast %1189 : vector<1x16xf32> to vector<16x16xf32>
    %1191 = arith.subf %1188, %1190 : vector<16x16xf32>
    %1192 = tpu.iota {dimensions = array<i32: 1>} : vector<16x16xi32>
    %1193 = arith.sitofp %1192 : vector<16x16xi32> to vector<16x16xf32>
    %cst_314 = arith.constant dense<0xFF800000> : vector<16xf32>
    %1194 = vector.multi_reduction <maximumf>, %1191, %cst_314 [1] : vector<16x16xf32> to vector<16xf32>
    %1195 = vector.shape_cast %1194 : vector<16xf32> to vector<16x1xf32>
    %1196 = vector.broadcast %1195 : vector<16x1xf32> to vector<16x16xf32>
    %1197 = arith.cmpf oeq, %1191, %1196 : vector<16x16xf32>
    %cst_315 = arith.constant 1.600000e+01 : f32
    %1198 = vector.broadcast %cst_315 : f32 to vector<16x16xf32>
    %1199 = arith.select %1197, %1193, %1198 : vector<16x16xi1>, vector<16x16xf32>
    %cst_316 = arith.constant dense<0x7F800000> : vector<16xf32>
    %1200 = vector.multi_reduction <minimumf>, %1199, %cst_316 [1] : vector<16x16xf32> to vector<16xf32>
    %1201 = vector.shape_cast %1200 : vector<16xf32> to vector<16x1xf32>
    %1202 = vector.broadcast %1201 : vector<16x1xf32> to vector<16x16xf32>
    %1203 = arith.cmpf oeq, %1193, %1202 : vector<16x16xf32>
    %1204 = arith.extui %1203 : vector<16x16xi1> to vector<16x16xi32>
    %1205 = arith.sitofp %1204 : vector<16x16xi32> to vector<16x16xf32>
    %cst_317 = arith.constant 0xFF800000 : f32
    %1206 = vector.broadcast %cst_317 : f32 to vector<16x16xf32>
    %1207 = arith.select %1203, %1206, %1191 : vector<16x16xi1>, vector<16x16xf32>
    %cst_318 = arith.constant dense<0xFF800000> : vector<16xf32>
    %1208 = vector.multi_reduction <maximumf>, %1207, %cst_318 [1] : vector<16x16xf32> to vector<16xf32>
    %1209 = vector.shape_cast %1208 : vector<16xf32> to vector<16x1xf32>
    %1210 = vector.broadcast %1209 : vector<16x1xf32> to vector<16x16xf32>
    %1211 = arith.cmpf oeq, %1207, %1210 : vector<16x16xf32>
    %cst_319 = arith.constant 1.600000e+01 : f32
    %1212 = vector.broadcast %cst_319 : f32 to vector<16x16xf32>
    %1213 = arith.select %1211, %1193, %1212 : vector<16x16xi1>, vector<16x16xf32>
    %cst_320 = arith.constant dense<0x7F800000> : vector<16xf32>
    %1214 = vector.multi_reduction <minimumf>, %1213, %cst_320 [1] : vector<16x16xf32> to vector<16xf32>
    %1215 = vector.shape_cast %1214 : vector<16xf32> to vector<16x1xf32>
    %1216 = vector.broadcast %1215 : vector<16x1xf32> to vector<16x16xf32>
    %1217 = arith.cmpf oeq, %1193, %1216 : vector<16x16xf32>
    %1218 = arith.extui %1217 : vector<16x16xi1> to vector<16x16xi32>
    %1219 = arith.sitofp %1218 : vector<16x16xi32> to vector<16x16xf32>
    %cst_321 = arith.constant 0xFF800000 : f32
    %1220 = vector.broadcast %cst_321 : f32 to vector<16x16xf32>
    %1221 = arith.select %1217, %1220, %1207 : vector<16x16xi1>, vector<16x16xf32>
    %cst_322 = arith.constant dense<0xFF800000> : vector<16xf32>
    %1222 = vector.multi_reduction <maximumf>, %1221, %cst_322 [1] : vector<16x16xf32> to vector<16xf32>
    %1223 = vector.shape_cast %1222 : vector<16xf32> to vector<16x1xf32>
    %1224 = vector.broadcast %1223 : vector<16x1xf32> to vector<16x16xf32>
    %1225 = arith.cmpf oeq, %1221, %1224 : vector<16x16xf32>
    %cst_323 = arith.constant 1.600000e+01 : f32
    %1226 = vector.broadcast %cst_323 : f32 to vector<16x16xf32>
    %1227 = arith.select %1225, %1193, %1226 : vector<16x16xi1>, vector<16x16xf32>
    %cst_324 = arith.constant dense<0x7F800000> : vector<16xf32>
    %1228 = vector.multi_reduction <minimumf>, %1227, %cst_324 [1] : vector<16x16xf32> to vector<16xf32>
    %1229 = vector.shape_cast %1228 : vector<16xf32> to vector<16x1xf32>
    %1230 = vector.broadcast %1229 : vector<16x1xf32> to vector<16x16xf32>
    %1231 = arith.cmpf oeq, %1193, %1230 : vector<16x16xf32>
    %1232 = arith.extui %1231 : vector<16x16xi1> to vector<16x16xi32>
    %1233 = arith.sitofp %1232 : vector<16x16xi32> to vector<16x16xf32>
    %cst_325 = arith.constant 0xFF800000 : f32
    %1234 = vector.broadcast %cst_325 : f32 to vector<16x16xf32>
    %1235 = arith.select %1231, %1234, %1221 : vector<16x16xi1>, vector<16x16xf32>
    %cst_326 = arith.constant dense<0xFF800000> : vector<16xf32>
    %1236 = vector.multi_reduction <maximumf>, %1235, %cst_326 [1] : vector<16x16xf32> to vector<16xf32>
    %1237 = vector.shape_cast %1236 : vector<16xf32> to vector<16x1xf32>
    %1238 = vector.broadcast %1237 : vector<16x1xf32> to vector<16x16xf32>
    %1239 = arith.cmpf oeq, %1235, %1238 : vector<16x16xf32>
    %cst_327 = arith.constant 1.600000e+01 : f32
    %1240 = vector.broadcast %cst_327 : f32 to vector<16x16xf32>
    %1241 = arith.select %1239, %1193, %1240 : vector<16x16xi1>, vector<16x16xf32>
    %cst_328 = arith.constant dense<0x7F800000> : vector<16xf32>
    %1242 = vector.multi_reduction <minimumf>, %1241, %cst_328 [1] : vector<16x16xf32> to vector<16xf32>
    %1243 = vector.shape_cast %1242 : vector<16xf32> to vector<16x1xf32>
    %1244 = vector.broadcast %1243 : vector<16x1xf32> to vector<16x16xf32>
    %1245 = arith.cmpf oeq, %1193, %1244 : vector<16x16xf32>
    %1246 = arith.extui %1245 : vector<16x16xi1> to vector<16x16xi32>
    %1247 = arith.sitofp %1246 : vector<16x16xi32> to vector<16x16xf32>
    %1248 = tpu.concatenate %1205, %1219, %1233, %1247 in 0 : vector<16x16xf32>, vector<16x16xf32>, vector<16x16xf32>, vector<16x16xf32> -> vector<64x16xf32>
    %1249 = vector.extract_strided_slice %1013 {offsets = [32, 0], sizes = [16, 256], strides = [1, 1]} : vector<64x256xf32> to vector<16x256xf32>
    %cst_329 = arith.constant dense<0.000000e+00> : vector<64x256xf32>
    %1250 = tpu.matmul %1248, %1249, %cst_329 {dimension_numbers = #tpu.dot_dimension_numbers<[1], [0], [0], [1], [0, 0, 1, 1], [], []>} : vector<64x16xf32>, vector<16x256xf32>, vector<64x256xf32> -> vector<64x256xf32>
    %1251 = vector.extract_strided_slice %1250 {offsets = [0, 0], sizes = [16, 256], strides = [1, 1]} : vector<64x256xf32> to vector<16x256xf32>
    %1252 = vector.extract_strided_slice %1250 {offsets = [16, 0], sizes = [16, 256], strides = [1, 1]} : vector<64x256xf32> to vector<16x256xf32>
    %1253 = arith.maximumf %1251, %1252 : vector<16x256xf32>
    %1254 = vector.extract_strided_slice %1250 {offsets = [32, 0], sizes = [16, 256], strides = [1, 1]} : vector<64x256xf32> to vector<16x256xf32>
    %1255 = arith.maximumf %1253, %1254 : vector<16x256xf32>
    %1256 = vector.extract_strided_slice %1250 {offsets = [48, 0], sizes = [16, 256], strides = [1, 1]} : vector<64x256xf32> to vector<16x256xf32>
    %1257 = arith.maximumf %1255, %1256 : vector<16x256xf32>
    %1258 = vector.extract_strided_slice %1015 {offsets = [32, 0], sizes = [16, 256], strides = [1, 1]} : vector<64x256xf32> to vector<16x256xf32>
    %1259 = arith.addf %1257, %1258 : vector<16x256xf32>
    %cst_330 = arith.constant 0.000000e+00 : f32
    %1260 = vector.broadcast %cst_330 : f32 to vector<16x256xf32>
    %1261 = arith.maximumf %1259, %1260 : vector<16x256xf32>
    %1262 = vector.extract_strided_slice %1010 {offsets = [48, 0], sizes = [16, 128], strides = [1, 1]} : vector<64x128xf32> to vector<16x128xf32>
    %cst_331 = arith.constant dense<0.000000e+00> : vector<16x16xf32>
    %1263 = tpu.matmul %1262, %1262, %cst_331 {dimension_numbers = #tpu.dot_dimension_numbers<[1], [1], [0], [0], [0, 0, 1, 0], [], []>} : vector<16x128xf32>, vector<16x128xf32>, vector<16x16xf32> -> vector<16x16xf32>
    %1264 = arith.mulf %1262, %1262 : vector<16x128xf32>
    %cst_332 = arith.constant dense<0.000000e+00> : vector<16xf32>
    %1265 = vector.multi_reduction <add>, %1264, %cst_332 [1] : vector<16x128xf32> to vector<16xf32>
    %1266 = vector.shape_cast %1265 : vector<16xf32> to vector<16x1xf32>
    %cst_333 = arith.constant 2.000000e+00 : f32
    %1267 = vector.broadcast %cst_333 : f32 to vector<16x16xf32>
    %1268 = arith.mulf %1267, %1263 : vector<16x16xf32>
    %1269 = vector.broadcast %1266 : vector<16x1xf32> to vector<16x16xf32>
    %1270 = arith.subf %1268, %1269 : vector<16x16xf32>
    %1271 = tpu.transpose %1266, [1, 0] : vector<16x1xf32> -> vector<1x16xf32>
    %1272 = vector.broadcast %1271 : vector<1x16xf32> to vector<16x16xf32>
    %1273 = arith.subf %1270, %1272 : vector<16x16xf32>
    %1274 = tpu.iota {dimensions = array<i32: 1>} : vector<16x16xi32>
    %1275 = arith.sitofp %1274 : vector<16x16xi32> to vector<16x16xf32>
    %cst_334 = arith.constant dense<0xFF800000> : vector<16xf32>
    %1276 = vector.multi_reduction <maximumf>, %1273, %cst_334 [1] : vector<16x16xf32> to vector<16xf32>
    %1277 = vector.shape_cast %1276 : vector<16xf32> to vector<16x1xf32>
    %1278 = vector.broadcast %1277 : vector<16x1xf32> to vector<16x16xf32>
    %1279 = arith.cmpf oeq, %1273, %1278 : vector<16x16xf32>
    %cst_335 = arith.constant 1.600000e+01 : f32
    %1280 = vector.broadcast %cst_335 : f32 to vector<16x16xf32>
    %1281 = arith.select %1279, %1275, %1280 : vector<16x16xi1>, vector<16x16xf32>
    %cst_336 = arith.constant dense<0x7F800000> : vector<16xf32>
    %1282 = vector.multi_reduction <minimumf>, %1281, %cst_336 [1] : vector<16x16xf32> to vector<16xf32>
    %1283 = vector.shape_cast %1282 : vector<16xf32> to vector<16x1xf32>
    %1284 = vector.broadcast %1283 : vector<16x1xf32> to vector<16x16xf32>
    %1285 = arith.cmpf oeq, %1275, %1284 : vector<16x16xf32>
    %1286 = arith.extui %1285 : vector<16x16xi1> to vector<16x16xi32>
    %1287 = arith.sitofp %1286 : vector<16x16xi32> to vector<16x16xf32>
    %cst_337 = arith.constant 0xFF800000 : f32
    %1288 = vector.broadcast %cst_337 : f32 to vector<16x16xf32>
    %1289 = arith.select %1285, %1288, %1273 : vector<16x16xi1>, vector<16x16xf32>
    %cst_338 = arith.constant dense<0xFF800000> : vector<16xf32>
    %1290 = vector.multi_reduction <maximumf>, %1289, %cst_338 [1] : vector<16x16xf32> to vector<16xf32>
    %1291 = vector.shape_cast %1290 : vector<16xf32> to vector<16x1xf32>
    %1292 = vector.broadcast %1291 : vector<16x1xf32> to vector<16x16xf32>
    %1293 = arith.cmpf oeq, %1289, %1292 : vector<16x16xf32>
    %cst_339 = arith.constant 1.600000e+01 : f32
    %1294 = vector.broadcast %cst_339 : f32 to vector<16x16xf32>
    %1295 = arith.select %1293, %1275, %1294 : vector<16x16xi1>, vector<16x16xf32>
    %cst_340 = arith.constant dense<0x7F800000> : vector<16xf32>
    %1296 = vector.multi_reduction <minimumf>, %1295, %cst_340 [1] : vector<16x16xf32> to vector<16xf32>
    %1297 = vector.shape_cast %1296 : vector<16xf32> to vector<16x1xf32>
    %1298 = vector.broadcast %1297 : vector<16x1xf32> to vector<16x16xf32>
    %1299 = arith.cmpf oeq, %1275, %1298 : vector<16x16xf32>
    %1300 = arith.extui %1299 : vector<16x16xi1> to vector<16x16xi32>
    %1301 = arith.sitofp %1300 : vector<16x16xi32> to vector<16x16xf32>
    %cst_341 = arith.constant 0xFF800000 : f32
    %1302 = vector.broadcast %cst_341 : f32 to vector<16x16xf32>
    %1303 = arith.select %1299, %1302, %1289 : vector<16x16xi1>, vector<16x16xf32>
    %cst_342 = arith.constant dense<0xFF800000> : vector<16xf32>
    %1304 = vector.multi_reduction <maximumf>, %1303, %cst_342 [1] : vector<16x16xf32> to vector<16xf32>
    %1305 = vector.shape_cast %1304 : vector<16xf32> to vector<16x1xf32>
    %1306 = vector.broadcast %1305 : vector<16x1xf32> to vector<16x16xf32>
    %1307 = arith.cmpf oeq, %1303, %1306 : vector<16x16xf32>
    %cst_343 = arith.constant 1.600000e+01 : f32
    %1308 = vector.broadcast %cst_343 : f32 to vector<16x16xf32>
    %1309 = arith.select %1307, %1275, %1308 : vector<16x16xi1>, vector<16x16xf32>
    %cst_344 = arith.constant dense<0x7F800000> : vector<16xf32>
    %1310 = vector.multi_reduction <minimumf>, %1309, %cst_344 [1] : vector<16x16xf32> to vector<16xf32>
    %1311 = vector.shape_cast %1310 : vector<16xf32> to vector<16x1xf32>
    %1312 = vector.broadcast %1311 : vector<16x1xf32> to vector<16x16xf32>
    %1313 = arith.cmpf oeq, %1275, %1312 : vector<16x16xf32>
    %1314 = arith.extui %1313 : vector<16x16xi1> to vector<16x16xi32>
    %1315 = arith.sitofp %1314 : vector<16x16xi32> to vector<16x16xf32>
    %cst_345 = arith.constant 0xFF800000 : f32
    %1316 = vector.broadcast %cst_345 : f32 to vector<16x16xf32>
    %1317 = arith.select %1313, %1316, %1303 : vector<16x16xi1>, vector<16x16xf32>
    %cst_346 = arith.constant dense<0xFF800000> : vector<16xf32>
    %1318 = vector.multi_reduction <maximumf>, %1317, %cst_346 [1] : vector<16x16xf32> to vector<16xf32>
    %1319 = vector.shape_cast %1318 : vector<16xf32> to vector<16x1xf32>
    %1320 = vector.broadcast %1319 : vector<16x1xf32> to vector<16x16xf32>
    %1321 = arith.cmpf oeq, %1317, %1320 : vector<16x16xf32>
    %cst_347 = arith.constant 1.600000e+01 : f32
    %1322 = vector.broadcast %cst_347 : f32 to vector<16x16xf32>
    %1323 = arith.select %1321, %1275, %1322 : vector<16x16xi1>, vector<16x16xf32>
    %cst_348 = arith.constant dense<0x7F800000> : vector<16xf32>
    %1324 = vector.multi_reduction <minimumf>, %1323, %cst_348 [1] : vector<16x16xf32> to vector<16xf32>
    %1325 = vector.shape_cast %1324 : vector<16xf32> to vector<16x1xf32>
    %1326 = vector.broadcast %1325 : vector<16x1xf32> to vector<16x16xf32>
    %1327 = arith.cmpf oeq, %1275, %1326 : vector<16x16xf32>
    %1328 = arith.extui %1327 : vector<16x16xi1> to vector<16x16xi32>
    %1329 = arith.sitofp %1328 : vector<16x16xi32> to vector<16x16xf32>
    %1330 = tpu.concatenate %1287, %1301, %1315, %1329 in 0 : vector<16x16xf32>, vector<16x16xf32>, vector<16x16xf32>, vector<16x16xf32> -> vector<64x16xf32>
    %1331 = vector.extract_strided_slice %1013 {offsets = [48, 0], sizes = [16, 256], strides = [1, 1]} : vector<64x256xf32> to vector<16x256xf32>
    %cst_349 = arith.constant dense<0.000000e+00> : vector<64x256xf32>
    %1332 = tpu.matmul %1330, %1331, %cst_349 {dimension_numbers = #tpu.dot_dimension_numbers<[1], [0], [0], [1], [0, 0, 1, 1], [], []>} : vector<64x16xf32>, vector<16x256xf32>, vector<64x256xf32> -> vector<64x256xf32>
    %1333 = vector.extract_strided_slice %1332 {offsets = [0, 0], sizes = [16, 256], strides = [1, 1]} : vector<64x256xf32> to vector<16x256xf32>
    %1334 = vector.extract_strided_slice %1332 {offsets = [16, 0], sizes = [16, 256], strides = [1, 1]} : vector<64x256xf32> to vector<16x256xf32>
    %1335 = arith.maximumf %1333, %1334 : vector<16x256xf32>
    %1336 = vector.extract_strided_slice %1332 {offsets = [32, 0], sizes = [16, 256], strides = [1, 1]} : vector<64x256xf32> to vector<16x256xf32>
    %1337 = arith.maximumf %1335, %1336 : vector<16x256xf32>
    %1338 = vector.extract_strided_slice %1332 {offsets = [48, 0], sizes = [16, 256], strides = [1, 1]} : vector<64x256xf32> to vector<16x256xf32>
    %1339 = arith.maximumf %1337, %1338 : vector<16x256xf32>
    %1340 = vector.extract_strided_slice %1015 {offsets = [48, 0], sizes = [16, 256], strides = [1, 1]} : vector<64x256xf32> to vector<16x256xf32>
    %1341 = arith.addf %1339, %1340 : vector<16x256xf32>
    %cst_350 = arith.constant 0.000000e+00 : f32
    %1342 = vector.broadcast %cst_350 : f32 to vector<16x256xf32>
    %1343 = arith.maximumf %1341, %1342 : vector<16x256xf32>
    %1344 = tpu.concatenate %1097, %1179, %1261, %1343 in 0 : vector<16x256xf32>, vector<16x256xf32>, vector<16x256xf32>, vector<16x256xf32> -> vector<64x256xf32>
    %1345 = arith.truncf %342 : vector<64x64xf32> to vector<64x64xbf16>
    %c0_351 = arith.constant 0 : index
    %c0_352 = arith.constant 0 : index
    %1346 = vector.load %arg10[%c0_351, %c0_352] : memref<64x512xbf16, #tpu.memory_space<vmem>>, vector<64x512xbf16>
    %cst_353 = arith.constant dense<0.000000e+00> : vector<64x512xf32>
    %1347 = tpu.matmul %1345, %1346, %cst_353 {dimension_numbers = #tpu.dot_dimension_numbers<[1], [0], [0], [1], [0, 0, 1, 1], [], []>} : vector<64x64xbf16>, vector<64x512xbf16>, vector<64x512xf32> -> vector<64x512xf32>
    %1348 = arith.truncf %676 : vector<64x64xf32> to vector<64x64xbf16>
    %c0_354 = arith.constant 0 : index
    %c0_355 = arith.constant 0 : index
    %1349 = vector.load %arg11[%c0_354, %c0_355] : memref<64x512xbf16, #tpu.memory_space<vmem>>, vector<64x512xbf16>
    %cst_356 = arith.constant dense<0.000000e+00> : vector<64x512xf32>
    %1350 = tpu.matmul %1348, %1349, %cst_356 {dimension_numbers = #tpu.dot_dimension_numbers<[1], [0], [0], [1], [0, 0, 1, 1], [], []>} : vector<64x64xbf16>, vector<64x512xbf16>, vector<64x512xf32> -> vector<64x512xf32>
    %1351 = arith.addf %1347, %1350 : vector<64x512xf32>
    %1352 = arith.truncf %1010 : vector<64x128xf32> to vector<64x128xbf16>
    %c0_357 = arith.constant 0 : index
    %c0_358 = arith.constant 0 : index
    %1353 = vector.load %arg12[%c0_357, %c0_358] : memref<128x512xbf16, #tpu.memory_space<vmem>>, vector<128x512xbf16>
    %cst_359 = arith.constant dense<0.000000e+00> : vector<64x512xf32>
    %1354 = tpu.matmul %1352, %1353, %cst_359 {dimension_numbers = #tpu.dot_dimension_numbers<[1], [0], [0], [1], [0, 0, 1, 1], [], []>} : vector<64x128xbf16>, vector<128x512xbf16>, vector<64x512xf32> -> vector<64x512xf32>
    %1355 = arith.addf %1351, %1354 : vector<64x512xf32>
    %1356 = arith.truncf %1344 : vector<64x256xf32> to vector<64x256xbf16>
    %c0_360 = arith.constant 0 : index
    %c0_361 = arith.constant 0 : index
    %1357 = vector.load %arg13[%c0_360, %c0_361] : memref<256x512xbf16, #tpu.memory_space<vmem>>, vector<256x512xbf16>
    %cst_362 = arith.constant dense<0.000000e+00> : vector<64x512xf32>
    %1358 = tpu.matmul %1356, %1357, %cst_362 {dimension_numbers = #tpu.dot_dimension_numbers<[1], [0], [0], [1], [0, 0, 1, 1], [], []>} : vector<64x256xbf16>, vector<256x512xbf16>, vector<64x512xf32> -> vector<64x512xf32>
    %1359 = arith.addf %1355, %1358 : vector<64x512xf32>
    %1360 = math.tanh %1359 : vector<64x512xf32>
    %1361 = vector.extract_strided_slice %1360 {offsets = [0, 0], sizes = [16, 512], strides = [1, 1]} : vector<64x512xf32> to vector<16x512xf32>
    %c0_363 = arith.constant 0 : index
    %c0_364 = arith.constant 0 : index
    %c0_365 = arith.constant 0 : index
    %1362 = vector.load %arg14[%c0_363, %c0_364, %c0_365] : memref<4x16x512xf32, #tpu.memory_space<vmem>>, vector<1x16x512xf32>
    %1363 = vector.shape_cast %1362 : vector<1x16x512xf32> to vector<16x512xf32>
    %1364 = vector.shape_cast %1361 : vector<16x512xf32> to vector<1x16x512xf32>
    tpu.vector_store %arg14[%c0_363, %c0_364, %c0_365], %1364 {strides = array<i32>} : memref<4x16x512xf32, #tpu.memory_space<vmem>>, vector<1x16x512xf32>,
    %1365 = vector.extract_strided_slice %1360 {offsets = [16, 0], sizes = [16, 512], strides = [1, 1]} : vector<64x512xf32> to vector<16x512xf32>
    %c1_366 = arith.constant 1 : index
    %c0_367 = arith.constant 0 : index
    %c0_368 = arith.constant 0 : index
    %1366 = vector.load %arg14[%c1_366, %c0_367, %c0_368] : memref<4x16x512xf32, #tpu.memory_space<vmem>>, vector<1x16x512xf32>
    %1367 = vector.shape_cast %1366 : vector<1x16x512xf32> to vector<16x512xf32>
    %1368 = vector.shape_cast %1365 : vector<16x512xf32> to vector<1x16x512xf32>
    tpu.vector_store %arg14[%c1_366, %c0_367, %c0_368], %1368 {strides = array<i32>} : memref<4x16x512xf32, #tpu.memory_space<vmem>>, vector<1x16x512xf32>,
    %1369 = vector.extract_strided_slice %1360 {offsets = [32, 0], sizes = [16, 512], strides = [1, 1]} : vector<64x512xf32> to vector<16x512xf32>
    %c2_369 = arith.constant 2 : index
    %c0_370 = arith.constant 0 : index
    %c0_371 = arith.constant 0 : index
    %1370 = vector.load %arg14[%c2_369, %c0_370, %c0_371] : memref<4x16x512xf32, #tpu.memory_space<vmem>>, vector<1x16x512xf32>
    %1371 = vector.shape_cast %1370 : vector<1x16x512xf32> to vector<16x512xf32>
    %1372 = vector.shape_cast %1369 : vector<16x512xf32> to vector<1x16x512xf32>
    tpu.vector_store %arg14[%c2_369, %c0_370, %c0_371], %1372 {strides = array<i32>} : memref<4x16x512xf32, #tpu.memory_space<vmem>>, vector<1x16x512xf32>,
    %1373 = vector.extract_strided_slice %1360 {offsets = [48, 0], sizes = [16, 512], strides = [1, 1]} : vector<64x512xf32> to vector<16x512xf32>
    %c3_372 = arith.constant 3 : index
    %c0_373 = arith.constant 0 : index
    %c0_374 = arith.constant 0 : index
    %1374 = vector.load %arg14[%c3_372, %c0_373, %c0_374] : memref<4x16x512xf32, #tpu.memory_space<vmem>>, vector<1x16x512xf32>
    %1375 = vector.shape_cast %1374 : vector<1x16x512xf32> to vector<16x512xf32>
    %1376 = vector.shape_cast %1373 : vector<16x512xf32> to vector<1x16x512xf32>
    tpu.vector_store %arg14[%c3_372, %c0_373, %c0_374], %1376 {strides = array<i32>} : memref<4x16x512xf32, #tpu.memory_space<vmem>>, vector<1x16x512xf32>,
    return
  }
  func.func @transform_0(%arg0: i32) -> (i32, i32, i32) {
    %c0_i32 = arith.constant 0 : i32
    %c0_i32_0 = arith.constant 0 : i32
    %c0_i32_1 = arith.constant 0 : i32
    return %arg0, %c0_i32, %c0_i32_0 : i32, i32, i32
  }
  func.func @transform_1(%arg0: i32) -> (i32, i32) {
    %c0_i32 = arith.constant 0 : i32
    %c0_i32_0 = arith.constant 0 : i32
    %c0_i32_1 = arith.constant 0 : i32
    return %c0_i32, %c0_i32_0 : i32, i32
  }
  func.func @transform_2(%arg0: i32) -> (i32, i32) {
    %c0_i32 = arith.constant 0 : i32
    %c0_i32_0 = arith.constant 0 : i32
    %c0_i32_1 = arith.constant 0 : i32
    return %c0_i32, %c0_i32_0 : i32, i32
  }
  func.func @transform_3(%arg0: i32) -> (i32, i32) {
    %c0_i32 = arith.constant 0 : i32
    %c0_i32_0 = arith.constant 0 : i32
    %c0_i32_1 = arith.constant 0 : i32
    return %c0_i32, %c0_i32_0 : i32, i32
  }
  func.func @transform_4(%arg0: i32) -> (i32, i32) {
    %c0_i32 = arith.constant 0 : i32
    %c0_i32_0 = arith.constant 0 : i32
    %c0_i32_1 = arith.constant 0 : i32
    return %c0_i32, %c0_i32_0 : i32, i32
  }
  func.func @transform_5(%arg0: i32) -> (i32, i32) {
    %c0_i32 = arith.constant 0 : i32
    %c0_i32_0 = arith.constant 0 : i32
    %c0_i32_1 = arith.constant 0 : i32
    return %c0_i32, %c0_i32_0 : i32, i32
  }
  func.func @transform_6(%arg0: i32) -> (i32, i32) {
    %c0_i32 = arith.constant 0 : i32
    %c0_i32_0 = arith.constant 0 : i32
    %c0_i32_1 = arith.constant 0 : i32
    return %c0_i32, %c0_i32_0 : i32, i32
  }
  func.func @transform_7(%arg0: i32) -> (i32, i32) {
    %c0_i32 = arith.constant 0 : i32
    %c0_i32_0 = arith.constant 0 : i32
    %c0_i32_1 = arith.constant 0 : i32
    return %c0_i32, %c0_i32_0 : i32, i32
  }
  func.func @transform_8(%arg0: i32) -> (i32, i32) {
    %c0_i32 = arith.constant 0 : i32
    %c0_i32_0 = arith.constant 0 : i32
    %c0_i32_1 = arith.constant 0 : i32
    return %c0_i32, %c0_i32_0 : i32, i32
  }
  func.func @transform_9(%arg0: i32) -> (i32, i32) {
    %c0_i32 = arith.constant 0 : i32
    %c0_i32_0 = arith.constant 0 : i32
    %c0_i32_1 = arith.constant 0 : i32
    return %c0_i32, %c0_i32_0 : i32, i32
  }
  func.func @transform_10(%arg0: i32) -> (i32, i32) {
    %c0_i32 = arith.constant 0 : i32
    %c0_i32_0 = arith.constant 0 : i32
    %c0_i32_1 = arith.constant 0 : i32
    return %c0_i32, %c0_i32_0 : i32, i32
  }
  func.func @transform_11(%arg0: i32) -> (i32, i32) {
    %c0_i32 = arith.constant 0 : i32
    %c0_i32_0 = arith.constant 0 : i32
    %c0_i32_1 = arith.constant 0 : i32
    return %c0_i32, %c0_i32_0 : i32, i32
  }
  func.func @transform_12(%arg0: i32) -> (i32, i32) {
    %c0_i32 = arith.constant 0 : i32
    %c0_i32_0 = arith.constant 0 : i32
    %c0_i32_1 = arith.constant 0 : i32
    return %c0_i32, %c0_i32_0 : i32, i32
  }
  func.func @transform_13(%arg0: i32) -> (i32, i32, i32) {
    %c0_i32 = arith.constant 0 : i32
    %c0_i32_0 = arith.constant 0 : i32
    %c0_i32_1 = arith.constant 0 : i32
    return %arg0, %c0_i32, %c0_i32_0 : i32, i32, i32
  }
}

</mosaic_0001>

<bundles_post_ra>
// kernel: dgcnn_forward.1
= control target key start
LH: loop header
LB: loop body
LE: loop exit
PB: predicated region body
PF: predicated region fallthrough
CT: control target
= control target key end

     0   :  { %s13382_s0 = inlined_call_operand.vmem [shape: f32[8,16,3], index: 0, kind: input, shape index: {}]   ;;  %s13383_s1 = inlined_call_operand.vmem [shape: bf16[3,64], index: 1, kind: input, shape index: {}]   ;;  %s13384_s2 = inlined_call_operand.vmem [shape: bf16[3,64], index: 2, kind: input, shape index: {}]   ;;  %s13385_s3 = inlined_call_operand.hbm [shape: bf16[64,64], index: 3, kind: input, shape index: {}]   ;;  %s13386_s4 = inlined_call_operand.hbm [shape: bf16[64,64], index: 4, kind: input, shape index: {}]   ;;  %s13387_s5 = inlined_call_operand.hbm [shape: bf16[64,128], index: 5, kind: input, shape index: {}]   ;;  %s13388_s6 = inlined_call_operand.vmem [shape: bf16[64,128], index: 6, kind: input, shape index: {}]   ;;  %s13389_s7 = inlined_call_operand.hbm [shape: bf16[128,256], index: 7, kind: input, shape index: {}]   ;;  %s13390_s8 = inlined_call_operand.hbm [shape: bf16[128,256], index: 8, kind: input, shape index: {}]   ;;  %s13391_s9 = inlined_call_operand.hbm [shape: bf16[64,512], index: 9, kind: input, shape index: {}]   ;;  %s13392_s10 = inlined_call_operand.vmem [shape: bf16[64,512], index: 10, kind: input, shape index: {}]   ;;  %s13393_s11 = inlined_call_operand.hbm [shape: bf16[128,512], index: 11, kind: input, shape index: {}]   ;;  %s13394_s12 = inlined_call_operand.hbm [shape: bf16[256,512], index: 12, kind: input, shape index: {}]   ;;  %s13395_s13 = inlined_call_operand.hbm [shape: f32[8,16,512], index: 13, kind: output, shape index: {}]  }
   0x1   :  { %13415 = sst [smem:[#allocation41_spill]] %s13386_s4 }
   0x2   :  { %13416 = sst [smem:[#allocation42_spill]] %s13389_s7 }
   0x3   :  { %18 = vsyncpa [#allocation3], 0 }
   0x4   :  { %19 = vsyncpa [#allocation6], 0 }
   0x5   :  { %20 = vsyncpa [#allocation9], 0 }
   0x6   :  { %21 = vsyncpa [#allocation12], 0 }
   0x7   :  { %22 = vsyncpa [#allocation15], 0 }
   0x8   :  { %23 = vsyncpa [#allocation4], 0 }
   0x9   :  { %25 = vsyncpa [#allocation4 + $0x1], 0  ;;  %s11040_s25 = smov 0   ;;  %s11042_s26 = smov 0  }
   0xa   :  { %s11044_s27 = smov 0   ;;  %s11046_s28 = smov 0  }
   0xb LB: > { %13417 = sst [smem:[#allocation23_spill]] %s10944_s27  ;;  %s11061_s29 = sadd.s32 4294967295, %s10948_s28   ;;  %s10948_s28 = sphi %s11046_s28, %s13489_s28   ;;  %s10944_s27 = sphi %s11044_s27, %s13491_s27   ;;  %s10940_s26 = sphi %s11042_s26, %s13493_s26   ;;  %s10936_s25 = sphi %s11040_s25, %s13492_s25  }
   0xc   : > { %s9011_s30 = sadd.s32 4294967294, %s10948_s28   ;;  %s11065_s14 = sadd.s32 1, %s10948_s28  }
   0xd   : > { %13418 = sst [smem:[#allocation24_spill]] %s11065_s14  ;;  %s316_s15 = sadd.s32 1, %s10944_s27 }
   0xe   : > { %s313_s16 = ssub.s32 %s10948_s28, %s11065_s14  ;;  %p326_p0 = scmp.ne.s32.totalorder %s10944_s27, %s10940_s26 }
   0xf   : > { %p314_p1 = scmp.eq.s32.totalorder %s313_s16, 0  ;;  %p327_p2 = scmp.eq.s32.totalorder %s11061_s29, 1 }
  0x10   : > { %p332_p3 = scmp.ne.s32.totalorder %s10940_s26, %s10936_s25  ;;  %p333_p4 = scmp.eq.s32.totalorder %s9011_s30, 1 }
  0x11   : > { %s11076_s17 = scalar_select %p314_p1, %s10944_s27, %s316_s15  }
  0x12   : > { %p11078_p5 = por %p327_p2, %p326_p0  ;;  %p11082_p6 = por %p333_p4, %p332_p3 }
  0x13   : > { %13419 = sst [smem:[#allocation25_spill]] %s11076_s17  ;;  %p9012_p7 = scmp.ge.s32.totalorder %s10948_s28, 1 }
  0x14   : > { %s13421_s19 = scalar_select %p11082_p6, 1, 0 }
  0x15   : > { %p340_p8 = scmp.lt.s32.totalorder %s10948_s28, 3  ;;  %p13406_p9 = scmp.eq.s32.totalorder %s11061_s29, 0 }
  0x16   : > { %13422 = sst [smem:[#allocation26_spill]] %s13421_s19  ;;  %s10950_s21 = smov [#allocation5]  }
  0x17   : > { %p11089_p10 = pnand %p9012_p7, %p340_p8  ;;  %s371_s22 = sshll.u32 %s10950_s21, 4  ;;  %s372_s22 = int_to_ptr.vmem [resolvable:$true] %s371_s22 }
  0x18   : > { %s10951_s24 = smov [#allocation8]   ;;  %s10671_s16 = scalar_lea.vmem %s372_s22, 512 }
  0x19   : > { %p10242_p11 = pneg %p11089_p10  ;;  %s400_s30 = sshll.u32 %s10951_s24, 4  ;;  %s401_s30 = int_to_ptr.vmem [resolvable:$true] %s400_s30 }
  0x1a   : > { %p10672_p0 = scmp.ne.s32.totalorder %s372_s22, %s10671_s16  ;;  %p10679_p3 = scmp.lt.s32.totalorder %s372_s22, %s372_s22 }
  0x1b   : > { %p11097_p12 = pnand %p13406_p9, %p10242_p11  ;;  %p10680_p4 = scmp.lt.s32.totalorder %s10671_s16, %s10671_s16 }
  0x1d   : > { %p11103_p13 = pneg %p11097_p12  ;;  %p10681_p7 = por %p10680_p4, %p10679_p3 }
  0x1f   : > { %p10674_p1 = pnand %p10672_p0, %p11103_p13 }
  0x21   : > { %p10675_p2 = pneg %p10674_p1 }
  0x23   : > { %p10682_p8 = pnand %p10681_p7, %p10675_p2 }
  0x25   : > { %10685 = shalt.err (!%p10682_p8)
}
  0x26   : > { %s13400_s21 = smov 64   ;;  %s13402_s24 = smov 4  }
  0x27   : > { %s13426_s4 = sld [smem:[#allocation41_spill]]  ;;  %s10697_s14 = scalar_lea.vmem %s401_s30, 2048 }
  0x28   : > { %p10698_p11 = scmp.ne.s32.totalorder %s401_s30, %s10697_s14  ;;  %p10705_p3 = scmp.lt.s32.totalorder %s401_s30, %s401_s30 }
  0x29   : > { %p10706_p2 = scmp.lt.s32.totalorder %s10697_s14, %s10697_s14 }
  0x2a   : > { %p10700_p0 = pnand %p10698_p11, %p11103_p13 }
  0x2b   : > { %p10707_p4 = por %p10706_p2, %p10705_p3 }
  0x2c   : > { %p10701_p1 = pneg %p10700_p0 }
  0x2d   : > { %10248 = dma.hbm_to_vmem [thread:$0]  (!%p11097_p12), %s13426_s4, 512, %s372_s22, [#allocation6], %s13400_s21, %s13400_s21, %s13402_s24  }
  0x2e   : > { %p10708_p7 = pnand %p10707_p4, %p10701_p1 }
  0x30   : > { %10711 = shalt.err (!%p10708_p7)
}
  0x31   : > { %s13404_s16 = smov 128   ;;  %s13405_s19 = smov 8  }
  0x32   : > { %s13427_s7 = sld [smem:[#allocation42_spill]]  ;;  %s10956_s22 = smov [#allocation11]  }
  0x33   : > { %s426_s21 = sshll.u32 %s10956_s22, 4  ;;  %s427_s21 = int_to_ptr.vmem [resolvable:$true] %s426_s21 }
  0x34   : > { %s10723_s24 = scalar_lea.vmem %s427_s21, 2048  ;;  %p10731_p1 = scmp.lt.s32.totalorder %s427_s21, %s427_s21 }
  0x35   : > { %p10724_p8 = scmp.ne.s32.totalorder %s427_s21, %s10723_s24  ;;  %p10732_p3 = scmp.lt.s32.totalorder %s10723_s24, %s10723_s24 }
  0x37   : > { %p10726_p11 = pnand %p10724_p8, %p11103_p13  ;;  %p10733_p2 = por %p10732_p3, %p10731_p1 }
  0x38   : > { %10254 = dma.hbm_to_vmem [thread:$0]  (!%p11097_p12), %s13427_s7, 2048, %s401_s30, [#allocation9], %s13404_s16, %s13404_s16, %s13405_s19  }
  0x39   : > { %p10727_p0 = pneg %p10726_p11 }
  0x3b   : > { %p10734_p4 = pnand %p10733_p2, %p10727_p0 }
  0x3d   : > { %10737 = shalt.err (!%p10734_p4)
}
  0x3e   : > { %s13407_s14 = smov 256   ;;  %s13409_s4 = smov 16  }
  0x3f   : > { %10260 = dma.hbm_to_vmem [thread:$0]  (!%p11097_p12), %s13391_s9, 2048, %s427_s21, [#allocation12], %s13407_s14, %s13407_s14, %s13409_s4  }
  0x40   : > { %s10959_s17 = smov [#allocation2]   ;;  %s10960_s16 = smov [#allocation7]  }
  0x41   : > { %s358_s22 = sshll.u32 %s10959_s17, 4  ;;  %s384_s24 = sshll.u32 %s10960_s16, 4  ;;  %s359_s22 = int_to_ptr.vmem [resolvable:$true] %s358_s22  ;;  %s385_s24 = int_to_ptr.vmem [resolvable:$true] %s384_s24 }
  0x42   : > { %s10749_s19 = scalar_lea.vmem %s359_s22, 512  ;;  %p10757_p0 = scmp.lt.s32.totalorder %s359_s22, %s359_s22 }
  0x43   : > { %p10750_p7 = scmp.ne.s32.totalorder %s359_s22, %s10749_s19  ;;  %p10758_p1 = scmp.lt.s32.totalorder %s10749_s19, %s10749_s19 }
  0x45   : > { %p10752_p8 = pnand %p10750_p7, %p11103_p13  ;;  %p10759_p3 = por %p10758_p1, %p10757_p0 }
  0x47   : > { %p10753_p11 = pneg %p10752_p8 }
  0x49   : > { %p10760_p2 = pnand %p10759_p3, %p10753_p11 }
  0x4b   : > { %10763 = shalt.err (!%p10760_p2)
}
  0x4c   : > { %s13428_s7 = smov 4   ;;  %s13429_s30 = smov 64  }
  0x4d   : > { %10245 = dma.hbm_to_vmem [thread:$0]  (!%p11097_p12), %s13385_s3, 512, %s359_s22, [#allocation3], %s13429_s30, %s13429_s30, %s13428_s7  }
  0x4e   : > { %s10775_s16 = scalar_lea.vmem %s385_s24, 512  ;;  %p10783_p9 = scmp.lt.s32.totalorder %s385_s24, %s385_s24 }
  0x4f   : > { %p10776_p4 = scmp.ne.s32.totalorder %s385_s24, %s10775_s16  ;;  %p10784_p0 = scmp.lt.s32.totalorder %s10775_s16, %s10775_s16 }
  0x51   : > { %p10778_p7 = pnand %p10776_p4, %p11103_p13  ;;  %p10785_p11 = por %p10784_p0, %p10783_p9 }
  0x53   : > { %p10779_p8 = pneg %p10778_p7 }
  0x55   : > { %p10786_p1 = pnand %p10785_p11, %p10779_p8 }
  0x57   : > { %10789 = shalt.err (!%p10786_p1)
}
  0x58   : > { %10251 = dma.hbm_to_vmem [thread:$0]  (!%p11097_p12), %s13387_s5, 512, %s385_s24, [#allocation6], %s13429_s30, %s13429_s30, %s13428_s7  }
  0x59   : > { %s10961_s22 = smov [#allocation10]   ;;  %s10962_s27 = smov [#allocation13]  }
  0x5a   : > { %s413_s21 = sshll.u32 %s10961_s22, 4  ;;  %s442_s14 = sshll.u32 %s10962_s27, 4  ;;  %s414_s21 = int_to_ptr.vmem [resolvable:$true] %s413_s21  ;;  %s443_s14 = int_to_ptr.vmem [resolvable:$true] %s442_s14 }
  0x5b   : > { %s10801_s4 = scalar_lea.vmem %s414_s21, 2048  ;;  %p10809_p4 = scmp.lt.s32.totalorder %s414_s21, %s414_s21 }
  0x5c   : > { %p10802_p3 = scmp.ne.s32.totalorder %s414_s21, %s10801_s4  ;;  %p10810_p7 = scmp.lt.s32.totalorder %s10801_s4, %s10801_s4 }
  0x5e   : > { %p10804_p9 = pnand %p10802_p3, %p11103_p13  ;;  %p10811_p8 = por %p10810_p7, %p10809_p4 }
  0x60   : > { %p10805_p2 = pneg %p10804_p9 }
  0x62   : > { %p10812_p0 = pnand %p10811_p8, %p10805_p2 }
  0x64   : > { %10815 = shalt.err (!%p10812_p0)
}
  0x65   : > { %s13430_s16 = smov 8   ;;  %s13431_s19 = smov 128  }
  0x66   : > { %10257 = dma.hbm_to_vmem [thread:$0]  (!%p11097_p12), %s13390_s8, 2048, %s414_s21, [#allocation9], %s13431_s19, %s13431_s19, %s13430_s16  }
  0x67   : > { %s10827_s30 = scalar_lea.vmem %s443_s14, 4096  ;;  %p10835_p9 = scmp.lt.s32.totalorder %s443_s14, %s443_s14 }
  0x68   : > { %p10828_p11 = scmp.ne.s32.totalorder %s443_s14, %s10827_s30  ;;  %p10836_p4 = scmp.lt.s32.totalorder %s10827_s30, %s10827_s30 }
  0x6a   : > { %p10830_p1 = pnand %p10828_p11, %p11103_p13  ;;  %p10837_p2 = por %p10836_p4, %p10835_p9 }
  0x6c   : > { %p10831_p3 = pneg %p10830_p1 }
  0x6e   : > { %p10838_p7 = pnand %p10837_p2, %p10831_p3 }
  0x70   : > { %10841 = shalt.err (!%p10838_p7)
}
  0x71   : > { %s13432_s4 = smov 16   ;;  %s13433_s17 = smov 256  }
  0x72   : > { %10263 = dma.hbm_to_vmem [thread:$0]  (!%p11097_p12), %s13393_s11, 4096, %s443_s14, [#allocation12], %s13433_s17, %s13433_s17, %s13432_s4  }
  0x73   : > { %s10963_s21 = smov [#allocation14]  }
  0x74   : > { %s455_s16 = sshll.u32 %s10963_s21, 4  ;;  %s456_s16 = int_to_ptr.vmem [resolvable:$true] %s455_s16 }
  0x75   : > { %s10853_s19 = scalar_lea.vmem %s456_s16, 8192  ;;  %p10861_p1 = scmp.lt.s32.totalorder %s456_s16, %s456_s16 }
  0x76   : > { %p10854_p8 = scmp.ne.s32.totalorder %s456_s16, %s10853_s19  ;;  %p10862_p3 = scmp.lt.s32.totalorder %s10853_s19, %s10853_s19 }
  0x78   : > { %p10856_p0 = pnand %p10854_p8, %p11103_p13  ;;  %p10863_p9 = por %p10862_p3, %p10861_p1 }
  0x7a   : > { %p10857_p11 = pneg %p10856_p0 }
  0x7c   : > { %p10864_p4 = pnand %p10863_p9, %p10857_p11 }
  0x7e   : > { %10867 = shalt.err (!%p10864_p4)
}
  0x7f   : > { %10266 = dma.hbm_to_vmem [thread:$0]  (!%p11097_p12), %s13394_s12, 8192, %s456_s16, [#allocation15], %s13433_s17, %s13433_s17, %s13432_s4  }
  0x80   : > { %481 = sbr.rel (%p11089_p10) target bundleno = 11978 (0x2eca), region = 72 }
  0x85   : > { %p13434_p13 = scmp.eq.s32.totalorder %s11061_s29, 0 }
  0x87   : > { %10911 = dma.done.wait (%p13434_p13), [#allocation3], 512   ;;  %p13435_p2 = pmov %p13434_p13 }
  0x89   : > { %10913 = vsyncadd (%p13435_p2), [#allocation3], 4294966784  ;;  %p13436_p7 = pmov %p13435_p2 }
  0x8a   : > { %p13437_p8 = pmov %p13435_p2 }
  0x8b   : > { %10915 = dma.done.wait (%p13436_p7), [#allocation6], 1024  }
  0x8c   : > { %10917 = vsyncadd (%p13437_p8), [#allocation6], 4294966272  ;;  %p13438_p0 = pmov %p13435_p2 }
  0x8e   : > { %10919 = dma.done.wait (%p13438_p0), [#allocation9], 4096   ;;  %p13439_p12 = pmov %p13438_p0 }
  0x8f   : > { %p13440_p10 = pmov %p13438_p0 }
  0x90   : > { %10921 = vsyncadd (%p13439_p12), [#allocation9], 4294963200 }
  0x91   : > { %10923 = dma.done.wait (%p13440_p10), [#allocation12], 6144   ;;  %p13441_p11 = pmov %p13438_p0 }
  0x92   : > { %p13442_p1 = pmov %p13438_p0 }
  0x93   : > { %10925 = vsyncadd (%p13441_p11), [#allocation12], 4294961152 }
  0x94   : > { %10927 = dma.done.wait (%p13442_p1), [#allocation15], 8192   ;;  %p13443_p3 = pmov %p13438_p0 }
  0x95   : > { %vm592_vm0 = vcmask 1040384   ;;  %s9032_s20 = sshll.u32 %s11061_s29, 2  ;;  %vm593_vm1 = vcmask 1041408   ;;  %v10964_v0 = vmov 65535   ;;  %v578_v3 = vld [vmem:[%s13383_s1] sm:$0x3]  ;;  %v858_v46 = vlaneseq }
  0x96   : > { %10929 = vsyncadd (%p13443_p3), [#allocation15], 4294959104  ;;  %p555_p9 = scmp.lt.s32.totalorder %s9032_s20, 7  ;;  %v594_v1 = vsel %vm592_vm0, 4294967295, %v10964_v0  ;;  %v664_v4 = vld [vmem:[%s13384_s2] sm:$0x3] }
  0x97   : > { %v595_v2 = vsel %vm593_vm1, %v594_v1, 0  ;;  %vm579_vm2 = vcmask 23552   ;;  %v859_v49 = vshrl.u32 %v858_v46, 7  ;;  %vm867_vm3 = vcmask 130048   ;;  %s551_s22 = sand.u32 1, %s10940_s26   ;;  %s9593_s16 = sshll.u32 %s11061_s29, 12 }
  0x98   : > { %s13495_s20 = smov (!%p555_p9, %s9032_s20), 7  ;;  %v597_v6 = vand.u32 %v595_v2, %v578_v3  ;;  %v666_v7 = vand.u32 %v664_v4, %v595_v2  ;;  %s9031_s27 = sshll.u32 %s551_s22, 8 }
  0x99   : > { %s9591_s23 = sshll.u32 %s13495_s20, 4  ;;  %v11293_v54 = vsub.s32 0, %v859_v49  ;;  %s13280_s21 = scalar_lea.vmem [#allocation16], %s9031_s27 }
  0x9a   : > { %s11213_s30 = scalar_lea.vmem %s13382_s0, %s9591_s23  ;;  %9820 = vmatprep.subr.bf16.mxu0 %v597_v6  ;;  %9830 = vmatprep.subr.bf16.mxu1 %v666_v7  ;;  %s8870_s19 = sshll.u32 %s13280_s21, 4  ;;  %s13335_s19 = int_to_ptr.vmem [resolvable:$true] %s8870_s19 }
  0x9b   : > { %v563_v5 = vld [vmem:[%s11213_s30] sm:$0xff]  ;;  %v564_v9 = vld [vmem:[%s11213_s30 + $0x8] sm:$0xff]  ;;  %v9035_v10 = vld [vmem:[%s11213_s30 + $0x10] sm:$0xff]  ;;  %9821 = vmatpush3.bf16.msra.mxu0 %v597_v6  ;;  %9831 = vmatpush3.bf16.msra.mxu1 %v666_v7  ;;  %s13333_s20 = scalar_lea.hbm %s13395_s13, %s9593_s16  ;;  %s13342_s29 = scalar_lea.sflag [#allocation4], %s551_s22 }
  0x9c   : > { %v814_v8 = vmul.f32 %v563_v5, %v563_v5  ;;  %v9036_v11 = vld [vmem:[%s11213_s30 + $0x18] sm:$0xff]  ;;  %v574_v12 = vpack.c.bf16 %v564_v9, %v563_v5  ;;  %v815_v13 = vmul.f32 %v564_v9, %v564_v9  ;;  %v1182_v14 = vmul.f32 %v9035_v10, %v9035_v10  ;;  %v11226_v15 = vld [vmem:[%s11213_s30 + $0x20] sm:$0xff]  ;;  %v11229_v16 = vld [vmem:[%s11213_s30 + $0x28] sm:$0xff]  ;;  %9840 = vmatprep.subr.msk.mxu1 %vm579_vm2, %v564_v9  ;;  %s10868_s23 = scalar_lea.vmem %s13335_s19, 4096  ;;  %s10967_s15 = smov [#allocation16]  }
  0x9d   : > { %v575_v18 = vpack.c.bf16 %v9036_v11, %v9035_v10  ;;  %v1183_v19 = vmul.f32 %v9036_v11, %v9036_v11  ;;  %v576_v22 = vpack.c.bf16 %v11229_v16, %v11226_v15  ;;  %v11240_v24 = vld [vmem:[%s11213_s30 + $0x30] sm:$0xff]  ;;  %v11243_v25 = vld [vmem:[%s11213_s30 + $0x38] sm:$0xff]  ;;  %9863 = vmatprep.subr.msk.mxu0 %vm579_vm2, %v9036_v11  ;;  %p10869_p4 = scmp.ne.s32.totalorder %s13335_s19, %s10868_s23  ;;  %s10872_s24 = sshll.u32 %s10967_s15, 4  ;;  %s10873_s24 = int_to_ptr.vmem [resolvable:$false] %s10872_s24 }
  0x9e   : > { %v816_v17 = vsel %vm579_vm2, %v814_v8, 0.0  ;;  %v819_v20 = vsel %vm579_vm2, %v815_v13, 0.0  ;;  %v1184_v21 = vsel %vm579_vm2, %v1182_v14, 0.0  ;;  %9822 = vmatprep.mubr.msk.bf16.mxu0 %vm579_vm2, %v574_v12  ;;  %9832 = vmatprep.mubr.msk.bf16.mxu1 %vm579_vm2, %v574_v12  ;;  %v577_v26 = vpack.c.bf16 %v11243_v25, %v11240_v24  ;;  %p10875_p7 = scmp.lt.s32.totalorder %s13335_s19, %s10873_s24 }
  0x9f   : > { %817 = vadd.xlane.f32.xlu0 %v816_v17  ;;  %v1187_v23 = vsel %vm579_vm2, %v1183_v19, 0.0  ;;  %820 = vadd.xlane.f32.xlu1 %v819_v20  ;;  %p10870_p13 = pnand %p10869_p4, %p11078_p5 }
  0xa0   : > { %9823 = vmatmul.mubr.msk.bf16.vlgmr.msra.gmra.mxu0 %vm579_vm2, %v575_v18  ;;  %9833 = vmatmul.mubr.msk.bf16.vlgmr.msra.gmra.mxu1 %vm579_vm2, %v575_v18 }
  0xa1   : > { %9826 = vmatprep.mubr.msk.bf16.mxu0 %vm579_vm2, %v576_v22  ;;  %9836 = vmatprep.mubr.msk.bf16.mxu1 %vm579_vm2, %v576_v22  ;;  %p10871_p2 = pneg %p10870_p13 }
  0xa2   : > { %9841 = vmatpush3.xpose.msk.msra.mxu1 %vm579_vm2, %v564_v9  ;;  %9864 = vmatpush3.xpose.msk.msra.mxu0 %vm579_vm2, %v9036_v11 }
  0xa3   : > { %1185 = vadd.xlane.f32.xlu0 %v1184_v21  ;;  %1188 = vadd.xlane.f32.xlu1 %v1187_v23 }
  0xa4   : > { %9842 = vmatprep.subr.msk.mxu1 %vm579_vm2, %v563_v5  ;;  %9865 = vmatprep.subr.msk.mxu0 %vm579_vm2, %v9035_v10 }
  0xa6   : > { %9843 = vmatpush3.xpose.msk.msra.mxu1 %vm579_vm2, %v563_v5  ;;  %9866 = vmatpush3.xpose.msk.msra.mxu0 %vm579_vm2, %v9035_v10 }
  0xa8   : > { %9827 = vmatmul.mubr.msk.bf16.gmra.mxu0 %vm579_vm2, %v577_v26  ;;  %9837 = vmatmul.mubr.msk.bf16.gmra.mxu1 %vm579_vm2, %v577_v26 }
  0xa9   : > { %9844 = vmatprep.mubr.msk.f32.mxu1 %vm579_vm2, %v563_v5  ;;  %9867 = vmatprep.mubr.msk.f32.mxu0 %vm579_vm2, %v9035_v10  ;;  %v865_v10 = vand.u32 127, %v858_v46 }
  0xb0   : > { %9845 = vmatmul.mubr.msk.f32.vlgmr.msra.gmra.mxu1 %vm579_vm2, %v564_v9  ;;  %9868 = vmatmul.mubr.msk.f32.vlgmr.msra.gmra.mxu0 %vm579_vm2, %v9036_v11  ;;  %v11301_v11 = vcvt.s32.f32 %v865_v10 }
 0x128   : > { %v818_v27 = vpop.xlane.xlu0 %817  ;;  %v821_v28 = vpop.xlane.xlu1 %820 }
 0x129   : > { %826 = vxpose.xlu0.b32.start [1/2] (short) (narrow) %v818_v27, 8 }
 0x12c   : > { %v1186_v29 = vpop.xlane.xlu0 %1185  ;;  %v1189_v30 = vpop.xlane.xlu1 %1188 }
 0x12d   : > { %827 = vxpose.xlu0.b32.end [2/2] (short) (narrow) %v821_v28, 8  ;;  %1194 = vxpose.xlu1.b32.start [1/2] (short) (narrow) %v1186_v29, 8 }
 0x131   : > { %1195 = vxpose.xlu1.b32.end [2/2] (short) (narrow) %v1189_v30, 8 }
 0x160   : > { %v9824_v31 = vpop.f32.mrf.mxu0  ;;  %v11269_v35 = vpop.f32.mrf.mxu1 }
 0x162   : > { %v633_v32 = vpop.f32.mrf.mxu0  ;;  %v11271_v36 = vpop.f32.mrf.mxu1 }
 0x164   : > { %v9825_v33 = vpop.f32.mrf.mxu0  ;;  %v11273_v37 = vpop.f32.mrf.mxu1 }
 0x165   : > { %9870 = vmatprep.subr.mxu0 %v9825_v33 }
 0x166   : > { %v636_v34 = vpop.f32.mrf.mxu0  ;;  %9871 = vmatpush3.msra.mxu0 %v9825_v33  ;;  %v11275_v38 = vpop.f32.mrf.mxu1 }
 0x167   : > { %9847 = vmatprep.subr.mxu1 %v636_v34  ;;  %9872 = vmatprep.subr.mxu0 %v9824_v31 }
 0x168   : > { %9848 = vmatpush3.msra.mxu1 %v636_v34  ;;  %9873 = vmatpush3.msra.mxu0 %v9824_v31  ;;  %v11277_v39 = vpop.f32.mrf.mxu1  ;;  %v11279_v40 = vpop.f32.mrf.mxu0 }
 0x169   : > { %9849 = vmatprep.subr.mxu1 %v633_v32  ;;  %9909 = vmatprep.subr.msk.mxu0 %vm579_vm2, %v11243_v25 }
 0x16a   : > { %9850 = vmatpush3.msra.mxu1 %v633_v32  ;;  %v11281_v41 = vpop.f32.mrf.mxu1  ;;  %v11283_v42 = vpop.f32.mrf.mxu0 }
 0x16b   : > { %9886 = vmatprep.subr.msk.mxu1 %vm579_vm2, %v11229_v16 }
 0x16c   : > { %v11285_v43 = vpop.f32.mrf.mxu1  ;;  %v11287_v44 = vpop.f32.mrf.mxu0 }
 0x16e   : > { %v11289_v45 = vpop.f32.mrf.mxu1  ;;  %v11291_v47 = vpop.f32.mrf.mxu0 }
 0x170   : > { %v9846_v48 = vpop.f32.mrf.mxu1  ;;  %v9869_v50 = vpop.f32.mrf.mxu0 }
 0x171   : > { %v823_v52 = vmul.f32 2.0, %v9846_v48  ;;  %v1191_v56 = vmul.f32 2.0, %v9869_v50 }
 0x172   : > { %v805_v51 = vpop.f32.mrf.mxu1  ;;  %v1173_v55 = vpop.f32.mrf.mxu0 }
 0x173   : > { %v822_v53 = vmul.f32 2.0, %v805_v51  ;;  %v825_v58 = vsub.f32 %v823_v52, %v821_v28  ;;  %v1190_v60 = vmul.f32 2.0, %v1173_v55  ;;  %v1193_v0 = vsub.f32 %v1191_v56, %v1189_v30 }
 0x174   : > { %v13413_v30 = vmov 0.0  }
 0x175   : > { %v824_v59 = vsub.f32 %v822_v53, %v818_v27  ;;  %v1192_v2 = vsub.f32 %v1190_v60, %v1186_v29 }
 0x1a5   : > { %v842_v57 = vpop.trf.xlu0 }
 0x1a6   : > { %v861_v61 = vrot.slane %v842_v57, %v11293_v54 }
 0x1a8   : > { %v862_v62 = vsub.f32 %v824_v59, %v861_v61  ;;  %v863_v63 = vsub.f32 %v825_v58, %v861_v61 }
 0x1a9   : > { %v1210_v1 = vpop.trf.xlu1 }
 0x1aa   : > { %v1229_v3 = vrot.slane %v1210_v1, %v11293_v54  ;;  %v871_v4 = vsel %vm867_vm3, %v863_v63, -inf  ;;  %v868_v5 = vsel %vm867_vm3, %v862_v62, -inf }
 0x1ab   : > { %872 = vmax.xlane.f32.xlu1 %v871_v4  ;;  %869 = vmax.xlane.f32.xlu0 %v868_v5 }
 0x1ac   : > { %v1230_v6 = vsub.f32 %v1192_v2, %v1229_v3  ;;  %v1231_v7 = vsub.f32 %v1193_v0, %v1229_v3 }
 0x1ae   : > { %v1235_v8 = vsel %vm867_vm3, %v1231_v7, -inf  ;;  %v1232_v9 = vsel %vm867_vm3, %v1230_v6, -inf }
 0x1af   : > { %1236 = vmax.xlane.f32.xlu1 %v1235_v8  ;;  %1233 = vmax.xlane.f32.xlu0 %v1232_v9 }
 0x234   : > { %v873_v12 = vpop.xlane.xlu1 %872  ;;  %v870_v13 = vpop.xlane.xlu0 %869 }
 0x235   : > { %vm875_vm4 = vcmp.eq.f32.partialorder %v863_v63, %v873_v12  ;;  %vm874_vm5 = vcmp.eq.f32.partialorder %v862_v62, %v870_v13 }
 0x236   : > { %v877_v14 = vsel %vm875_vm4, %v11301_v11, 16.0  ;;  %v876_v17 = vsel %vm874_vm5, %v11301_v11, 16.0 }
 0x237   : > { %v881_v18 = vsel %vm867_vm3, %v877_v14, inf  ;;  %v878_v19 = vsel %vm867_vm3, %v876_v17, inf }
 0x238   : > { %882 = vmin.xlane.f32.xlu1 %v881_v18  ;;  %v1237_v20 = vpop.xlane.xlu1 %1236  ;;  %879 = vmin.xlane.f32.xlu0 %v878_v19  ;;  %v1234_v21 = vpop.xlane.xlu0 %1233 }
 0x239   : > { %vm1239_vm6 = vcmp.eq.f32.partialorder %v1231_v7, %v1237_v20  ;;  %vm1238_vm7 = vcmp.eq.f32.partialorder %v1230_v6, %v1234_v21 }
 0x23a   : > { %v1241_v22 = vsel %vm1239_vm6, %v11301_v11, 16.0  ;;  %v1240_v23 = vsel %vm1238_vm7, %v11301_v11, 16.0 }
 0x23b   : > { %v1245_v26 = vsel %vm867_vm3, %v1241_v22, inf  ;;  %v1242_v27 = vsel %vm867_vm3, %v1240_v23, inf }
 0x23c   : > { %1246 = vmin.xlane.f32.xlu1 %v1245_v26  ;;  %1243 = vmin.xlane.f32.xlu0 %v1242_v27 }
 0x2c1   : > { %v883_v28 = vpop.xlane.xlu1 %882  ;;  %v880_v29 = vpop.xlane.xlu0 %879 }
 0x2c2   : > { %vm885_vm8 = vcmp.eq.f32.partialorder %v11301_v11, %v883_v28  ;;  %vm884_vm9 = vcmp.eq.f32.partialorder %v11301_v11, %v880_v29 }
 0x2c3   : > { %v9054_v31 = vsel %vm885_vm8, 1.0, %v13413_v30  ;;  %v9053_v32 = vsel %vm884_vm9, 1.0, %v13413_v30  ;;  %v891_v33 = vsel %vm885_vm8, -inf, %v863_v63  ;;  %v890_v34 = vsel %vm884_vm9, -inf, %v862_v62 }
 0x2c4   : > { %9851 = vmatprep.mubr.msk.f32.mxu1 %vm867_vm3, %v9053_v32  ;;  %v895_v46 = vsel %vm867_vm3, %v891_v33, -inf  ;;  %v892_v48 = vsel %vm867_vm3, %v890_v34, -inf }
 0x2c5   : > { %896 = vmax.xlane.f32.xlu1 %v895_v46  ;;  %v1247_v49 = vpop.xlane.xlu1 %1246  ;;  %893 = vmax.xlane.f32.xlu0 %v892_v48  ;;  %v1244_v50 = vpop.xlane.xlu0 %1243 }
 0x2c6   : > { %vm1249_vm10 = vcmp.eq.f32.partialorder %v11301_v11, %v1247_v49  ;;  %9852 = vmatmul.mubr.msk.f32.vlgmr.msra.gmra.mxu1 %vm867_vm3, %v9054_v31  ;;  %vm1248_vm11 = vcmp.eq.f32.partialorder %v11301_v11, %v1244_v50 }
 0x2c7   : > { %v9074_v51 = vsel %vm1249_vm10, 1.0, %v13413_v30  ;;  %9887 = vmatpush3.xpose.msk.msra.mxu1 %vm579_vm2, %v11229_v16  ;;  %v9073_v52 = vsel %vm1248_vm11, 1.0, %v13413_v30  ;;  %v1255_v53 = vsel %vm1249_vm10, -inf, %v1231_v7  ;;  %v1254_v55 = vsel %vm1248_vm11, -inf, %v1230_v6 }
 0x2c8   : > { %9874 = vmatprep.mubr.msk.f32.mxu0 %vm867_vm3, %v9073_v52  ;;  %9888 = vmatprep.subr.msk.mxu1 %vm579_vm2, %v11226_v15  ;;  %v1259_v56 = vsel %vm867_vm3, %v1255_v53, -inf  ;;  %v1256_v57 = vsel %vm867_vm3, %v1254_v55, -inf }
 0x2c9   : > { %1260 = vmax.xlane.f32.xlu1 %v1259_v56  ;;  %1257 = vmax.xlane.f32.xlu0 %v1256_v57 }
 0x2ca   : > { %9875 = vmatmul.mubr.msk.f32.vlgmr.msra.gmra.mxu0 %vm867_vm3, %v9074_v51 }
 0x2cb   : > { %9889 = vmatpush3.xpose.msk.msra.mxu1 %vm579_vm2, %v11226_v15  ;;  %9910 = vmatpush3.xpose.msk.msra.mxu0 %vm579_vm2, %v11243_v25 }
 0x2cc   : > { %9893 = vmatprep.subr.mxu1 %v11291_v47  ;;  %9911 = vmatprep.subr.msk.mxu0 %vm579_vm2, %v11240_v24 }
 0x2cf   : > { %9912 = vmatpush3.xpose.msk.msra.mxu0 %vm579_vm2, %v11240_v24 }
 0x2d0   : > { %9916 = vmatprep.subr.mxu0 %v11287_v44 }
 0x34e   : > { %v897_v58 = vpop.xlane.xlu1 %896  ;;  %v894_v59 = vpop.xlane.xlu0 %893 }
 0x34f   : > { %vm899_vm12 = vcmp.eq.f32.partialorder %v891_v33, %v897_v58  ;;  %vm898_vm13 = vcmp.eq.f32.partialorder %v890_v34, %v894_v59 }
 0x350   : > { %v901_v60 = vsel %vm899_vm12, %v11301_v11, 16.0  ;;  %v900_v61 = vsel %vm898_vm13, %v11301_v11, 16.0 }
 0x351   : > { %v905_v62 = vsel %vm867_vm3, %v901_v60, inf  ;;  %v902_v63 = vsel %vm867_vm3, %v900_v61, inf }
 0x352   : > { %906 = vmin.xlane.f32.xlu1 %v905_v62  ;;  %v1261_v0 = vpop.xlane.xlu1 %1260  ;;  %903 = vmin.xlane.f32.xlu0 %v902_v63  ;;  %v1258_v1 = vpop.xlane.xlu0 %1257 }
 0x353   : > { %vm1263_vm14 = vcmp.eq.f32.partialorder %v1255_v53, %v1261_v0  ;;  %vm1262_vm15 = vcmp.eq.f32.partialorder %v1254_v55, %v1258_v1 }
 0x354   : > { %v1265_v2 = vsel %vm1263_vm14, %v11301_v11, 16.0  ;;  %v1264_v3 = vsel %vm1262_vm15, %v11301_v11, 16.0 }
 0x355   : > { %v1269_v4 = vsel %vm867_vm3, %v1265_v2, inf  ;;  %v1266_v5 = vsel %vm867_vm3, %v1264_v3, inf }
 0x356   : > { %1270 = vmin.xlane.f32.xlu1 %v1269_v4  ;;  %1267 = vmin.xlane.f32.xlu0 %v1266_v5 }
 0x3db   : > { %v907_v6 = vpop.xlane.xlu1 %906  ;;  %v904_v7 = vpop.xlane.xlu0 %903 }
 0x3dc   : > { %vm909_vm0 = vcmp.eq.f32.partialorder %v11301_v11, %v907_v6  ;;  %vm908_vm1 = vcmp.eq.f32.partialorder %v11301_v11, %v904_v7 }
 0x3dd   : > { %v9056_v8 = vsel %vm909_vm0, 1.0, %v13413_v30  ;;  %v9055_v9 = vsel %vm908_vm1, 1.0, %v13413_v30  ;;  %v915_v10 = vsel %vm909_vm0, -inf, %v891_v33  ;;  %v914_v12 = vsel %vm908_vm1, -inf, %v890_v34 }
 0x3de   : > { %9854 = vmatprep.mubr.msk.f32.mxu1 %vm867_vm3, %v9055_v9  ;;  %v919_v13 = vsel %vm867_vm3, %v915_v10, -inf  ;;  %v916_v14 = vsel %vm867_vm3, %v914_v12, -inf }
 0x3df   : > { %920 = vmax.xlane.f32.xlu1 %v919_v13  ;;  %v1271_v17 = vpop.xlane.xlu1 %1270  ;;  %917 = vmax.xlane.f32.xlu0 %v916_v14  ;;  %v1268_v18 = vpop.xlane.xlu0 %1267  ;;  %v1546_v14 = vmul.f32 %v11226_v15, %v11226_v15 }
 0x3e0   : > { %vm1273_vm4 = vcmp.eq.f32.partialorder %v11301_v11, %v1271_v17  ;;  %9855 = vmatmul.mubr.msk.f32.gmra.mxu1 %vm867_vm3, %v9056_v8  ;;  %vm1272_vm5 = vcmp.eq.f32.partialorder %v11301_v11, %v1268_v18  ;;  %v1910_v17 = vmul.f32 %v11240_v24, %v11240_v24 }
 0x3e1   : > { %v9076_v19 = vsel %vm1273_vm4, 1.0, %v13413_v30  ;;  %v9075_v20 = vsel %vm1272_vm5, 1.0, %v13413_v30  ;;  %v1279_v21 = vsel %vm1273_vm4, -inf, %v1255_v53  ;;  %v1278_v22 = vsel %vm1272_vm5, -inf, %v1254_v55 }
 0x3e2   : > { %9877 = vmatprep.mubr.msk.f32.mxu0 %vm867_vm3, %v9075_v20  ;;  %v1283_v23 = vsel %vm867_vm3, %v1279_v21, -inf  ;;  %v1280_v26 = vsel %vm867_vm3, %v1278_v22, -inf }
 0x3e3   : > { %1284 = vmax.xlane.f32.xlu1 %v1283_v23  ;;  %1281 = vmax.xlane.f32.xlu0 %v1280_v26  ;;  %v1912_v23 = vsel %vm579_vm2, %v1910_v17, 0.0  ;;  %v1547_v26 = vmul.f32 %v11229_v16, %v11229_v16 }
 0x3e4   : > { %9878 = vmatmul.mubr.msk.f32.gmra.mxu0 %vm867_vm3, %v9076_v19 }
 0x468   : > { %v921_v27 = vpop.xlane.xlu1 %920  ;;  %v918_v28 = vpop.xlane.xlu0 %917 }
 0x469   : > { %vm923_vm6 = vcmp.eq.f32.partialorder %v915_v10, %v921_v27  ;;  %vm922_vm7 = vcmp.eq.f32.partialorder %v914_v12, %v918_v28  ;;  %v1911_v27 = vmul.f32 %v11243_v25, %v11243_v25  ;;  %v1551_v28 = vsel %vm579_vm2, %v1547_v26, 0.0 }
 0x46a   : > { %v925_v29 = vsel %vm923_vm6, %v11301_v11, 16.0  ;;  %v924_v31 = vsel %vm922_vm7, %v11301_v11, 16.0 }
 0x46b   : > { %v929_v32 = vsel %vm867_vm3, %v925_v29, inf  ;;  %v926_v33 = vsel %vm867_vm3, %v924_v31, inf  ;;  %v1915_v29 = vsel %vm579_vm2, %v1911_v27, 0.0  ;;  %v9853_v31 = vpop.f32.mrf.mxu1 }
 0x46c   : > { %930 = vmin.xlane.f32.xlu1 %v929_v32  ;;  %v1285_v34 = vpop.xlane.xlu1 %1284  ;;  %927 = vmin.xlane.f32.xlu0 %v926_v33  ;;  %v1282_v46 = vpop.xlane.xlu0 %1281 }
 0x46d   : > { %vm1287_vm8 = vcmp.eq.f32.partialorder %v1279_v21, %v1285_v34  ;;  %vm1286_vm9 = vcmp.eq.f32.partialorder %v1278_v22, %v1282_v46  ;;  %v11409_v32 = vpop.f32.mrf.mxu1  ;;  %v9876_v33 = vpop.f32.mrf.mxu0 }
 0x46e   : > { %v1289_v48 = vsel %vm1287_vm8, %v11301_v11, 16.0  ;;  %v1288_v49 = vsel %vm1286_vm9, %v11301_v11, 16.0 }
 0x46f   : > { %v1293_v50 = vsel %vm867_vm3, %v1289_v48, inf  ;;  %v1290_v51 = vsel %vm867_vm3, %v1288_v49, inf  ;;  %v11411_v46 = vpop.f32.mrf.mxu0 }
 0x470   : > { %1294 = vmin.xlane.f32.xlu1 %v1293_v50  ;;  %1291 = vmin.xlane.f32.xlu0 %v1290_v51 }
 0x4a0   : > { %v9856_v34 = vpop.f32.mrf.mxu1 }
 0x4a1   : > { %v1092_v49 = vmax.f32 %v9853_v31, %v9856_v34 }
 0x4a2   : > { %v11413_v48 = vpop.f32.mrf.mxu1 }
 0x4a4   : > { %v9879_v16 = vpop.f32.mrf.mxu0 }
 0x4f5   : > { %v931_v52 = vpop.xlane.xlu1 %930  ;;  %v928_v53 = vpop.xlane.xlu0 %927 }
 0x4f6   : > { %vm933_vm10 = vcmp.eq.f32.partialorder %v11301_v11, %v931_v52  ;;  %vm932_vm11 = vcmp.eq.f32.partialorder %v11301_v11, %v928_v53  ;;  %v11417_v52 = vpop.f32.mrf.mxu0  ;;  %v1456_v53 = vmax.f32 %v9876_v33, %v9879_v16 }
 0x4f7   : > { %v9058_v55 = vsel %vm933_vm10, 1.0, %v13413_v30  ;;  %v9057_v56 = vsel %vm932_vm11, 1.0, %v13413_v30  ;;  %v939_v57 = vsel %vm933_vm10, -inf, %v915_v10  ;;  %v938_v58 = vsel %vm932_vm11, -inf, %v914_v12 }
 0x4f8   : > { %9857 = vmatprep.mubr.msk.f32.mxu1 %vm867_vm3, %v9057_v56  ;;  %v943_v59 = vsel %vm867_vm3, %v939_v57, -inf  ;;  %v940_v60 = vsel %vm867_vm3, %v938_v58, -inf }
 0x4f9   : > { %944 = vmax.xlane.f32.xlu1 %v943_v59  ;;  %v1295_v61 = vpop.xlane.xlu1 %1294  ;;  %941 = vmax.xlane.f32.xlu0 %v940_v60  ;;  %v1292_v62 = vpop.xlane.xlu0 %1291 }
 0x4fa   : > { %vm1297_vm12 = vcmp.eq.f32.partialorder %v11301_v11, %v1295_v61  ;;  %9858 = vmatmul.mubr.msk.f32.gmra.mxu1 %vm867_vm3, %v9058_v55  ;;  %vm1296_vm13 = vcmp.eq.f32.partialorder %v11301_v11, %v1292_v62 }
 0x4fb   : > { %v9078_v63 = vsel %vm1297_vm12, 1.0, %v13413_v30  ;;  %v9077_v0 = vsel %vm1296_vm13, 1.0, %v13413_v30  ;;  %v1303_v1 = vsel %vm1297_vm12, -inf, %v1279_v21  ;;  %v1302_v2 = vsel %vm1296_vm13, -inf, %v1278_v22 }
 0x4fc   : > { %9880 = vmatprep.mubr.msk.f32.mxu0 %vm867_vm3, %v9077_v0  ;;  %v1307_v3 = vsel %vm867_vm3, %v1303_v1, -inf  ;;  %v1304_v4 = vsel %vm867_vm3, %v1302_v2, -inf  ;;  %v1548_v22 = vsel %vm579_vm2, %v1546_v14, 0.0 }
 0x4fd   : > { %1308 = vmax.xlane.f32.xlu1 %v1307_v3  ;;  %1305 = vmax.xlane.f32.xlu0 %v1304_v4 }
 0x4fe   : > { %9881 = vmatmul.mubr.msk.f32.gmra.mxu0 %vm867_vm3, %v9078_v63 }
 0x582   : > { %v945_v5 = vpop.xlane.xlu1 %944  ;;  %v942_v6 = vpop.xlane.xlu0 %941 }
 0x583   : > { %vm947_vm14 = vcmp.eq.f32.partialorder %v939_v57, %v945_v5  ;;  %vm946_vm15 = vcmp.eq.f32.partialorder %v938_v58, %v942_v6 }
 0x584   : > { %v949_v7 = vsel %vm947_vm14, %v11301_v11, 16.0  ;;  %v948_v8 = vsel %vm946_vm15, %v11301_v11, 16.0  ;;  %vm2229_vm15 = vcmask 523264  }
 0x585   : > { %v953_v9 = vsel %vm867_vm3, %v949_v7, inf  ;;  %v950_v10 = vsel %vm867_vm3, %v948_v8, inf }
 0x586   : > { %954 = vmin.xlane.f32.xlu1 %v953_v9  ;;  %v1309_v12 = vpop.xlane.xlu1 %1308  ;;  %951 = vmin.xlane.f32.xlu0 %v950_v10  ;;  %v1306_v13 = vpop.xlane.xlu0 %1305 }
 0x587   : > { %vm1311_vm0 = vcmp.eq.f32.partialorder %v1303_v1, %v1309_v12  ;;  %vm1310_vm1 = vcmp.eq.f32.partialorder %v1302_v2, %v1306_v13  ;;  %v10659_v1 = vld [vmem:[%s11213_s30 + $0x28] sm:$0xff]  ;;  %s10874_s30 = scalar_lea.vmem %s10873_s24, 8192 }
 0x588   : > { %v1313_v18 = vsel %vm1311_vm0, %v11301_v11, 16.0  ;;  %v1312_v19 = vsel %vm1310_vm1, %v11301_v11, 16.0  ;;  %p10876_p8 = scmp.lt.s32.totalorder %s10874_s30, %s10868_s23 }
 0x589   : > { %v1317_v20 = vsel %vm867_vm3, %v1313_v18, inf  ;;  %v1314_v21 = vsel %vm867_vm3, %v1312_v19, inf }
 0x58a   : > { %1318 = vmin.xlane.f32.xlu1 %v1317_v20  ;;  %1315 = vmin.xlane.f32.xlu0 %v1314_v21  ;;  %p10877_p0 = por %p10876_p8, %p10875_p7 }
 0x58c   : > { %p10878_p12 = pnand %p10877_p0, %p10871_p2 }
 0x58e   : > { %1549 = vadd.xlane.f32.xlu0 %v1548_v22  ;;  %1913 = vadd.xlane.f32.xlu1 %v1912_v23 }
 0x592   : > { %1552 = vadd.xlane.f32.xlu0 %v1551_v28  ;;  %1916 = vadd.xlane.f32.xlu1 %v1915_v29 }
 0x5ba   : > { %v9859_v50 = vpop.f32.mrf.mxu1 }
 0x5bb   : > { %v11415_v51 = vmax.f32 %v1092_v49, %v9859_v50 }
 0x5be   : > { %v9882_v55 = vpop.f32.mrf.mxu0 }
 0x5bf   : > { %v11419_v56 = vmax.f32 %v1456_v53, %v9882_v55 }
 0x5c0   : > { %v11451_v5 = vpop.f32.mrf.mxu0 }
 0x60f   : > { %v955_v57 = vpop.xlane.xlu1 %954  ;;  %v952_v58 = vpop.xlane.xlu0 %951 }
 0x610   : > { %vm957_vm4 = vcmp.eq.f32.partialorder %v11301_v11, %v955_v57  ;;  %vm956_vm5 = vcmp.eq.f32.partialorder %v11301_v11, %v952_v58 }
 0x611   : > { %v9060_v59 = vsel %vm957_vm4, 1.0, %v13413_v30  ;;  %v9059_v60 = vsel %vm956_vm5, 1.0, %v13413_v30 }
 0x612   : > { %9860 = vmatprep.mubr.msk.f32.mxu1 %vm867_vm3, %v9059_v60 }
 0x613   : > { %v1319_v61 = vpop.xlane.xlu1 %1318  ;;  %9861 = vmatmul.mubr.msk.f32.gmra.mxu1 %vm867_vm3, %v9060_v59  ;;  %v1316_v62 = vpop.xlane.xlu0 %1315 }
 0x614   : > { %vm1321_vm6 = vcmp.eq.f32.partialorder %v11301_v11, %v1319_v61  ;;  %vm1320_vm7 = vcmp.eq.f32.partialorder %v11301_v11, %v1316_v62  ;;  %9890 = vmatprep.mubr.msk.f32.mxu1 %vm579_vm2, %v11226_v15 }
 0x615   : > { %v9080_v63 = vsel %vm1321_vm6, 1.0, %v13413_v30  ;;  %v9079_v0 = vsel %vm1320_vm7, 1.0, %v13413_v30 }
 0x616   : > { %9883 = vmatprep.mubr.msk.f32.mxu0 %vm867_vm3, %v9079_v0 }
 0x617   : > { %9884 = vmatmul.mubr.msk.f32.gmra.mxu0 %vm867_vm3, %v9080_v63  ;;  %9891 = vmatmul.mubr.msk.f32.vlgmr.msra.gmra.mxu1 %vm579_vm2, %v10659_v1  ;;  %v1550_v2 = vpop.xlane.xlu0 %1549  ;;  %v1914_v3 = vpop.xlane.xlu1 %1913 }
 0x618   : > { %9894 = vmatpush3.msra.mxu1 %v11291_v47  ;;  %9913 = vmatprep.mubr.msk.f32.mxu0 %vm579_vm2, %v11240_v24  ;;  %v11447_v24 = vpop.f32.mrf.mxu1 }
 0x619   : > { %9895 = vmatprep.subr.mxu1 %v11283_v42  ;;  %1558 = vxpose.xlu0.b32.start [1/2] (short) (narrow) %v1550_v2, 8 }
 0x61a   : > { %9896 = vmatpush3.msra.mxu1 %v11283_v42  ;;  %1922 = vxpose.xlu1.b32.start [1/2] (short) (narrow) %v1914_v3, 8 }
 0x61b   : > { %9914 = vmatmul.mubr.msk.f32.vlgmr.msra.gmra.mxu0 %vm579_vm2, %v11243_v25  ;;  %v1553_v15 = vpop.xlane.xlu0 %1552  ;;  %v1917_v4 = vpop.xlane.xlu1 %1916 }
 0x61c   : > { %9917 = vmatpush3.msra.mxu0 %v11287_v44 }
 0x61d   : > { %9918 = vmatprep.subr.mxu0 %v11279_v40  ;;  %1559 = vxpose.xlu0.b32.end [2/2] (short) (narrow) %v1553_v15, 8 }
 0x61e   : > { %9919 = vmatpush3.msra.mxu0 %v11279_v40  ;;  %1923 = vxpose.xlu1.b32.end [2/2] (short) (narrow) %v1917_v4, 8 }
 0x695   : > { %v1574_v6 = vpop.trf.xlu0 }
 0x696   : > { %v1593_v9 = vrot.slane %v1574_v6, %v11293_v54  ;;  %v1938_v10 = vpop.trf.xlu1 }
 0x697   : > { %v1957_v21 = vrot.slane %v1938_v10, %v11293_v54 }
 0x6d3   : > { %v11449_v47 = vpop.f32.mrf.mxu1 }
 0x6d4   : > { %v1096_v42 = vmax.f32 %v11415_v51, %v11449_v47 }
 0x6d5   : > { %v11455_v25 = vpop.f32.mrf.mxu1 }
 0x6d7   : > { %v11457_v7 = vpop.f32.mrf.mxu0  ;;  %v9892_v44 = vpop.f32.mrf.mxu1 }
 0x6d8   : > { %v1460_v8 = vmax.f32 %v11419_v56, %v11457_v7  ;;  %v1555_v40 = vmul.f32 2.0, %v9892_v44 }
 0x6d9   : > { %v11462_v12 = vpop.f32.mrf.mxu0  ;;  %v1537_v13 = vpop.f32.mrf.mxu1 }
 0x6da   : > { %v1557_v14 = vsub.f32 %v1555_v40, %v1553_v15  ;;  %v1554_v17 = vmul.f32 2.0, %v1537_v13  ;;  %v10341_v15 = vld [vmem:[#allocation5 + $0x18] sm:$0xff]  }
 0x6db   : > { %v9915_v18 = vpop.f32.mrf.mxu0  ;;  %9948 = vmatprep.subr.bf16.mxu0 %v10341_v15 }
 0x6dc   : > { %v1595_v19 = vsub.f32 %v1557_v14, %v1593_v9  ;;  %v1919_v20 = vmul.f32 2.0, %v9915_v18  ;;  %v1556_v22 = vsub.f32 %v1554_v17, %v1550_v2  ;;  %v10340_v14 = vld [vmem:[#allocation2 + $0x10] sm:$0xff]  }
 0x6dd   : > { %v1901_v23 = vpop.f32.mrf.mxu0 }
 0x6de   : > { %v1921_v26 = vsub.f32 %v1919_v20, %v1917_v4  ;;  %v1918_v27 = vmul.f32 2.0, %v1901_v23  ;;  %v1599_v28 = vsel %vm867_vm3, %v1595_v19, -inf  ;;  %v1594_v29 = vsub.f32 %v1556_v22, %v1593_v9 }
 0x6df   : > { %1600 = vmax.xlane.f32.xlu1 %v1599_v28 }
 0x6e0   : > { %v1959_v31 = vsub.f32 %v1921_v26, %v1957_v21  ;;  %v1920_v33 = vsub.f32 %v1918_v27, %v1914_v3  ;;  %v1596_v34 = vsel %vm867_vm3, %v1594_v29, -inf  ;;  %v10339_v3 = vld [vmem:[#allocation2 + $0x18] sm:$0xff]   ;;  %v10342_v26 = vld [vmem:[#allocation2 + $0x8] sm:$0xff]   ;;  %v10343_v27 = vld [vmem:[#allocation5 + $0x10] sm:$0xff]  }
 0x6e1   : > { %1597 = vmax.xlane.f32.xlu0 %v1596_v34  ;;  %9932 = vmatprep.subr.bf16.mxu1 %v10339_v3  ;;  %v1098_v34 = vadd.f32 %v1096_v42, %v11275_v38 }
 0x6e2   : > { %v1963_v16 = vsel %vm867_vm3, %v1959_v31, -inf  ;;  %v1958_v49 = vsub.f32 %v1920_v33, %v1957_v21  ;;  %v10345_v33 = vld [vmem:[#allocation5 + $0x8] sm:$0xff]  }
 0x6e3   : > { %1964 = vmax.xlane.f32.xlu1 %v1963_v16  ;;  %v10346_v16 = vld [vmem:[#allocation5] sm:$0xff]  }
 0x6e4   : > { %v1960_v50 = vsel %vm867_vm3, %v1958_v49, -inf }
 0x6e5   : > { %1961 = vmax.xlane.f32.xlu0 %v1960_v50  ;;  %v1462_v50 = vadd.f32 %v11273_v37, %v1460_v8 }
 0x6e7   : > { %v11521_v38 = vmax.f32 %v1462_v50, 0.0 }
 0x768   : > { %v1601_v53 = vpop.xlane.xlu1 %1600 }
 0x769   : > { %vm1603_vm2 = vcmp.eq.f32.partialorder %v1595_v19, %v1601_v53 }
 0x76a   : > { %v1605_v55 = vsel %vm1603_vm2, %v11301_v11, 16.0  ;;  %v1598_v57 = vpop.xlane.xlu0 %1597 }
 0x76b   : > { %v1609_v58 = vsel %vm867_vm3, %v1605_v55, inf  ;;  %vm1602_vm8 = vcmp.eq.f32.partialorder %v1594_v29, %v1598_v57 }
 0x76c   : > { %1610 = vmin.xlane.f32.xlu1 %v1609_v58  ;;  %v1965_v59 = vpop.xlane.xlu1 %1964  ;;  %v1604_v60 = vsel %vm1602_vm8, %v11301_v11, 16.0 }
 0x76d   : > { %vm1967_vm9 = vcmp.eq.f32.partialorder %v1959_v31, %v1965_v59  ;;  %v1606_v61 = vsel %vm867_vm3, %v1604_v60, inf }
 0x76e   : > { %v1969_v62 = vsel %vm1967_vm9, %v11301_v11, 16.0  ;;  %1607 = vmin.xlane.f32.xlu0 %v1606_v61  ;;  %v1962_v63 = vpop.xlane.xlu0 %1961 }
 0x76f   : > { %v1973_v0 = vsel %vm867_vm3, %v1969_v62, inf  ;;  %vm1966_vm10 = vcmp.eq.f32.partialorder %v1958_v49, %v1962_v63 }
 0x770   : > { %1974 = vmin.xlane.f32.xlu1 %v1973_v0  ;;  %v1968_v1 = vsel %vm1966_vm10, %v11301_v11, 16.0 }
 0x771   : > { %v1970_v2 = vsel %vm867_vm3, %v1968_v1, inf }
 0x772   : > { %1971 = vmin.xlane.f32.xlu0 %v1970_v2 }
 0x7f5   : > { %v1611_v4 = vpop.xlane.xlu1 %1610 }
 0x7f6   : > { %vm1613_vm11 = vcmp.eq.f32.partialorder %v11301_v11, %v1611_v4 }
 0x7f7   : > { %v11478_v6 = vsel %vm1613_vm11, -inf, %v1595_v19  ;;  %v1608_v44 = vpop.xlane.xlu0 %1607  ;;  %v9094_v17 = vsel %vm1613_vm11, 1.0, %v13413_v30 }
 0x7f8   : > { %v1623_v40 = vsel %vm867_vm3, %v11478_v6, -inf  ;;  %vm1612_vm12 = vcmp.eq.f32.partialorder %v11301_v11, %v1608_v44 }
 0x7f9   : > { %1624 = vmax.xlane.f32.xlu1 %v1623_v40  ;;  %v1975_v9 = vpop.xlane.xlu1 %1974  ;;  %v9093_v10 = vsel %vm1612_vm12, 1.0, %v13413_v30  ;;  %v11485_v13 = vsel %vm1612_vm12, -inf, %v1594_v29 }
 0x7fa   : > { %vm1977_vm13 = vcmp.eq.f32.partialorder %v11301_v11, %v1975_v9  ;;  %9897 = vmatprep.mubr.msk.f32.mxu1 %vm867_vm3, %v9093_v10  ;;  %v1620_v18 = vsel %vm867_vm3, %v11485_v13, -inf }
 0x7fb   : > { %v11493_v19 = vsel %vm1977_vm13, -inf, %v1959_v31  ;;  %1621 = vmax.xlane.f32.xlu0 %v1620_v18  ;;  %9898 = vmatmul.mubr.msk.f32.vlgmr.msra.gmra.mxu1 %vm867_vm3, %v9094_v17  ;;  %v1972_v20 = vpop.xlane.xlu0 %1971  ;;  %v9114_v28 = vsel %vm1977_vm13, 1.0, %v13413_v30  ;;  %v10344_v31 = vld [vmem:[#allocation2] sm:$0xff]  }
 0x7fc   : > { %v1987_v21 = vsel %vm867_vm3, %v11493_v19, -inf  ;;  %9933 = vmatpush3.bf16.msra.mxu1 %v10339_v3  ;;  %vm1976_vm14 = vcmp.eq.f32.partialorder %v11301_v11, %v1972_v20 }
 0x7fd   : > { %1988 = vmax.xlane.f32.xlu1 %v1987_v21  ;;  %v9113_v22 = vsel %vm1976_vm14, 1.0, %v13413_v30  ;;  %9934 = vmatprep.subr.bf16.mxu1 %v10340_v14  ;;  %v11500_v23 = vsel %vm1976_vm14, -inf, %v1958_v49  ;;  %v11513_v49 = vmax.f32 %v1098_v34, 0.0 }
 0x7fe   : > { %9920 = vmatprep.mubr.msk.f32.mxu0 %vm867_vm3, %v9113_v22  ;;  %v1984_v29 = vsel %vm867_vm3, %v11500_v23, -inf }
 0x7ff   : > { %1985 = vmax.xlane.f32.xlu0 %v1984_v29  ;;  %9921 = vmatmul.mubr.msk.f32.vlgmr.msra.gmra.mxu0 %vm867_vm3, %v9114_v28 }
 0x800   : > { %9935 = vmatpush3.bf16.msra.mxu1 %v10340_v14  ;;  %9949 = vmatpush3.bf16.msra.mxu0 %v10341_v15 }
 0x801   : > { %9936 = vmatprep.subr.bf16.mxu1 %v10342_v26  ;;  %9950 = vmatprep.subr.bf16.mxu0 %v10343_v27 }
 0x804   : > { %9937 = vmatpush3.bf16.msra.mxu1 %v10342_v26  ;;  %9951 = vmatpush3.bf16.msra.mxu0 %v10343_v27 }
 0x805   : > { %9938 = vmatprep.subr.bf16.mxu1 %v10344_v31  ;;  %9952 = vmatprep.subr.bf16.mxu0 %v10345_v33 }
 0x808   : > { %9939 = vmatpush3.bf16.msra.mxu1 %v10344_v31  ;;  %9953 = vmatpush3.bf16.msra.mxu0 %v10345_v33 }
 0x809   : > { %9964 = vmatprep.subr.msk.mxu1 %vm2229_vm15, %v11513_v49  ;;  %9954 = vmatprep.subr.bf16.mxu0 %v10346_v16 }
 0x80c   : > { %9955 = vmatpush3.bf16.msra.mxu0 %v10346_v16 }
 0x80d   : > { %9987 = vmatprep.subr.msk.mxu0 %vm2229_vm15, %v11521_v38 }
 0x882   : > { %v1625_v51 = vpop.xlane.xlu1 %1624 }
 0x883   : > { %vm1627_vm0 = vcmp.eq.f32.partialorder %v11478_v6, %v1625_v51 }
 0x884   : > { %v1629_v56 = vsel %vm1627_vm0, %v11301_v11, 16.0  ;;  %v1622_v47 = vpop.xlane.xlu0 %1621 }
 0x885   : > { %v1633_v37 = vsel %vm867_vm3, %v1629_v56, inf  ;;  %vm1626_vm1 = vcmp.eq.f32.partialorder %v11485_v13, %v1622_v47 }
 0x886   : > { %1634 = vmin.xlane.f32.xlu1 %v1633_v37  ;;  %v1989_v42 = vpop.xlane.xlu1 %1988  ;;  %v1628_v7 = vsel %vm1626_vm1, %v11301_v11, 16.0 }
 0x887   : > { %vm1991_vm4 = vcmp.eq.f32.partialorder %v11493_v19, %v1989_v42  ;;  %v1630_v8 = vsel %vm867_vm3, %v1628_v7, inf }
 0x888   : > { %v1993_v53 = vsel %vm1991_vm4, %v11301_v11, 16.0  ;;  %1631 = vmin.xlane.f32.xlu0 %v1630_v8  ;;  %v1986_v55 = vpop.xlane.xlu0 %1985 }
 0x889   : > { %v1997_v57 = vsel %vm867_vm3, %v1993_v53, inf  ;;  %vm1990_vm5 = vcmp.eq.f32.partialorder %v11500_v23, %v1986_v55 }
 0x88a   : > { %1998 = vmin.xlane.f32.xlu1 %v1997_v57  ;;  %v1992_v58 = vsel %vm1990_vm5, %v11301_v11, 16.0 }
 0x88b   : > { %v1994_v59 = vsel %vm867_vm3, %v1992_v58, inf }
 0x88c   : > { %1995 = vmin.xlane.f32.xlu0 %v1994_v59  ;;  %v1455_v59 = vmax.f32 %v11411_v46, %v11417_v52 }
 0x90f   : > { %v1635_v60 = vpop.xlane.xlu1 %1634 }
 0x910   : > { %vm1637_vm6 = vcmp.eq.f32.partialorder %v11301_v11, %v1635_v60  ;;  %v1457_v60 = vmax.f32 %v1455_v59, %v11451_v5 }
 0x911   : > { %v1643_v61 = vsel %vm1637_vm6, -inf, %v11478_v6  ;;  %v1632_v62 = vpop.xlane.xlu0 %1631  ;;  %v9096_v3 = vsel %vm1637_vm6, 1.0, %v13413_v30 }
 0x912   : > { %v1647_v63 = vsel %vm867_vm3, %v1643_v61, -inf  ;;  %vm1636_vm7 = vcmp.eq.f32.partialorder %v11301_v11, %v1632_v62  ;;  %v1459_v62 = vmax.f32 %v1457_v60, %v11462_v12 }
 0x913   : > { %1648 = vmax.xlane.f32.xlu1 %v1647_v63  ;;  %v1999_v0 = vpop.xlane.xlu1 %1998  ;;  %v9095_v1 = vsel %vm1636_vm7, 1.0, %v13413_v30  ;;  %v1642_v2 = vsel %vm1636_vm7, -inf, %v11485_v13 }
 0x914   : > { %vm2001_vm2 = vcmp.eq.f32.partialorder %v11301_v11, %v1999_v0  ;;  %9900 = vmatprep.mubr.msk.f32.mxu1 %vm867_vm3, %v9095_v1  ;;  %v1644_v15 = vsel %vm867_vm3, %v1642_v2, -inf  ;;  %v1461_v1 = vadd.f32 %v11269_v35, %v1459_v62 }
 0x915   : > { %v2007_v4 = vsel %vm2001_vm2, -inf, %v11493_v19  ;;  %1645 = vmax.xlane.f32.xlu0 %v1644_v15  ;;  %9901 = vmatmul.mubr.msk.f32.gmra.mxu1 %vm867_vm3, %v9096_v3  ;;  %v1996_v6 = vpop.xlane.xlu0 %1995  ;;  %v9116_v10 = vsel %vm2001_vm2, 1.0, %v13413_v30 }
 0x916   : > { %v2011_v44 = vsel %vm867_vm3, %v2007_v4, -inf  ;;  %vm2000_vm8 = vcmp.eq.f32.partialorder %v11301_v11, %v1996_v6  ;;  %v11592_v46 = vmax.f32 %v1461_v1, 0.0 }
 0x917   : > { %2012 = vmax.xlane.f32.xlu1 %v2011_v44  ;;  %v9115_v40 = vsel %vm2000_vm8, 1.0, %v13413_v30  ;;  %v2006_v9 = vsel %vm2000_vm8, -inf, %v11500_v23 }
 0x918   : > { %9923 = vmatprep.mubr.msk.f32.mxu0 %vm867_vm3, %v9115_v40  ;;  %v2008_v13 = vsel %vm867_vm3, %v2006_v9, -inf }
 0x919   : > { %2009 = vmax.xlane.f32.xlu0 %v2008_v13  ;;  %9924 = vmatmul.mubr.msk.f32.gmra.mxu0 %vm867_vm3, %v9116_v10  ;;  %v2850_v10 = vmul.f32 %v11521_v38, %v11521_v38 }
 0x99c   : > { %v1649_v14 = vpop.xlane.xlu1 %1648 }
 0x99d   : > { %vm1651_vm9 = vcmp.eq.f32.partialorder %v1643_v61, %v1649_v14  ;;  %v2486_v14 = vmul.f32 %v11513_v49, %v11513_v49 }
 0x99e   : > { %v1653_v17 = vsel %vm1651_vm9, %v11301_v11, 16.0  ;;  %v1646_v18 = vpop.xlane.xlu0 %1645 }
 0x99f   : > { %v1657_v19 = vsel %vm867_vm3, %v1653_v17, inf  ;;  %vm1650_vm10 = vcmp.eq.f32.partialorder %v1642_v2, %v1646_v18  ;;  %v2854_v17 = vsel %vm2229_vm15, %v2850_v10, 0.0  ;;  %v2490_v18 = vsel %vm2229_vm15, %v2486_v14, 0.0 }
 0x9a0   : > { %1658 = vmin.xlane.f32.xlu1 %v1657_v19  ;;  %v2013_v20 = vpop.xlane.xlu1 %2012  ;;  %v1652_v21 = vsel %vm1650_vm10, %v11301_v11, 16.0 }
 0x9a1   : > { %vm2015_vm11 = vcmp.eq.f32.partialorder %v2007_v4, %v2013_v20  ;;  %v1654_v22 = vsel %vm867_vm3, %v1652_v21, inf }
 0x9a2   : > { %v2017_v23 = vsel %vm2015_vm11, %v11301_v11, 16.0  ;;  %1655 = vmin.xlane.f32.xlu0 %v1654_v22  ;;  %v2010_v26 = vpop.xlane.xlu0 %2009 }
 0x9a3   : > { %v2021_v27 = vsel %vm867_vm3, %v2017_v23, inf  ;;  %vm2014_vm12 = vcmp.eq.f32.partialorder %v2006_v9, %v2010_v26 }
 0x9a4   : > { %2022 = vmin.xlane.f32.xlu1 %v2021_v27  ;;  %v2016_v28 = vsel %vm2014_vm12, %v11301_v11, 16.0 }
 0x9a5   : > { %v2018_v29 = vsel %vm867_vm3, %v2016_v28, inf }
 0x9a6   : > { %2019 = vmin.xlane.f32.xlu0 %v2018_v29  ;;  %v11633_v29 = vpack.c.bf16 %v11521_v38, %v11592_v46 }
 0xa29   : > { %v1659_v31 = vpop.xlane.xlu1 %1658 }
 0xa2a   : > { %vm1661_vm13 = vcmp.eq.f32.partialorder %v11301_v11, %v1659_v31 }
 0xa2b   : > { %v1667_v33 = vsel %vm1661_vm13, -inf, %v1643_v61  ;;  %v1656_v34 = vpop.xlane.xlu0 %1655  ;;  %v9098_v47 = vsel %vm1661_vm13, 1.0, %v13413_v30  ;;  %v1091_v61 = vmax.f32 %v11409_v32, %v11413_v48 }
 0xa2c   : > { %v1671_v16 = vsel %vm867_vm3, %v1667_v33, -inf  ;;  %vm1660_vm14 = vcmp.eq.f32.partialorder %v11301_v11, %v1656_v34 }
 0xa2d   : > { %1672 = vmax.xlane.f32.xlu1 %v1671_v16  ;;  %v2023_v50 = vpop.xlane.xlu1 %2022  ;;  %v9097_v51 = vsel %vm1660_vm14, 1.0, %v13413_v30  ;;  %v1666_v56 = vsel %vm1660_vm14, -inf, %v1642_v2  ;;  %v1093_v63 = vmax.f32 %v1091_v61, %v11447_v24 }
 0xa2e   : > { %vm2025_vm0 = vcmp.eq.f32.partialorder %v11301_v11, %v2023_v50  ;;  %9903 = vmatprep.mubr.msk.f32.mxu1 %vm867_vm3, %v9097_v51  ;;  %v1668_v37 = vsel %vm867_vm3, %v1666_v56, -inf  ;;  %v9899_v51 = vpop.f32.mrf.mxu1 }
 0xa2f   : > { %v2031_v42 = vsel %vm2025_vm0, -inf, %v2007_v4  ;;  %1669 = vmax.xlane.f32.xlu0 %v1668_v37  ;;  %9904 = vmatmul.mubr.msk.f32.gmra.mxu1 %vm867_vm3, %v9098_v47  ;;  %v2020_v7 = vpop.xlane.xlu0 %2019  ;;  %v9118_v57 = vsel %vm2025_vm0, 1.0, %v13413_v30  ;;  %v1095_v0 = vmax.f32 %v1093_v63, %v11455_v25  ;;  %v2849_v4 = vmul.f32 %v11592_v46, %v11592_v46  ;;  %v9922_v47 = vpop.f32.mrf.mxu0 }
 0xa30   : > { %v2035_v8 = vsel %vm867_vm3, %v2031_v42, -inf  ;;  %vm2024_vm1 = vcmp.eq.f32.partialorder %v11301_v11, %v2020_v7 }
 0xa31   : > { %2036 = vmax.xlane.f32.xlu1 %v2035_v8  ;;  %v9117_v53 = vsel %vm2024_vm1, 1.0, %v13413_v30  ;;  %v2030_v55 = vsel %vm2024_vm1, -inf, %v2006_v9  ;;  %v1097_v3 = vadd.f32 %v1095_v0, %v11271_v36  ;;  %v2851_v9 = vsel %vm2229_vm15, %v2849_v4, 0.0 }
 0xa32   : > { %9926 = vmatprep.mubr.msk.f32.mxu0 %vm867_vm3, %v9117_v53  ;;  %v2032_v58 = vsel %vm867_vm3, %v2030_v55, -inf }
 0xa33   : > { %2033 = vmax.xlane.f32.xlu0 %v2032_v58  ;;  %9927 = vmatmul.mubr.msk.f32.gmra.mxu0 %vm867_vm3, %v9118_v57  ;;  %v11596_v24 = vmax.f32 %v1097_v3, 0.0 }
 0xa35   : > { %v2485_v40 = vmul.f32 %v11596_v24, %v11596_v24  ;;  %v11622_v26 = vpack.c.bf16 %v11513_v49, %v11596_v24 }
 0xa37   : > { %v2487_v13 = vsel %vm2229_vm15, %v2485_v40, 0.0 }
 0xab6   : > { %v1673_v2 = vpop.xlane.xlu1 %1672 }
 0xab7   : > { %vm1675_vm4 = vcmp.eq.f32.partialorder %v1667_v33, %v1673_v2 }
 0xab8   : > { %v1677_v15 = vsel %vm1675_vm4, %v11301_v11, 16.0  ;;  %v1670_v52 = vpop.xlane.xlu0 %1669 }
 0xab9   : > { %v1681_v5 = vsel %vm867_vm3, %v1677_v15, inf  ;;  %vm1674_vm5 = vcmp.eq.f32.partialorder %v1666_v56, %v1670_v52  ;;  %v1780_v56 = vpop.f32.mrf.mxu1 }
 0xaba   : > { %1682 = vmin.xlane.f32.xlu1 %v1681_v5  ;;  %v2037_v32 = vpop.xlane.xlu1 %2036  ;;  %v1676_v48 = vsel %vm1674_vm5, %v11301_v11, 16.0 }
 0xabb   : > { %vm2039_vm6 = vcmp.eq.f32.partialorder %v2031_v42, %v2037_v32  ;;  %v1678_v35 = vsel %vm867_vm3, %v1676_v48, inf  ;;  %v9902_v37 = vpop.f32.mrf.mxu1  ;;  %v2144_v42 = vpop.f32.mrf.mxu0 }
 0xabc   : > { %v2041_v25 = vsel %vm2039_vm6, %v11301_v11, 16.0  ;;  %1679 = vmin.xlane.f32.xlu0 %v1678_v35  ;;  %v2034_v36 = vpop.xlane.xlu0 %2033  ;;  %v1820_v57 = vmax.f32 %v9899_v51, %v9902_v37 }
 0xabd   : > { %v2045_v12 = vsel %vm867_vm3, %v2041_v25, inf  ;;  %vm2038_vm7 = vcmp.eq.f32.partialorder %v2030_v55, %v2034_v36  ;;  %v1790_v7 = vpop.f32.mrf.mxu1  ;;  %v9925_v8 = vpop.f32.mrf.mxu0 }
 0xabe   : > { %2046 = vmin.xlane.f32.xlu1 %v2045_v12  ;;  %v2040_v6 = vsel %vm2038_vm7, %v11301_v11, 16.0  ;;  %v1819_v60 = vmax.f32 %v1780_v56, %v1790_v7  ;;  %v2184_v63 = vmax.f32 %v9922_v47, %v9925_v8 }
 0xabf   : > { %v2042_v44 = vsel %vm867_vm3, %v2040_v6, inf  ;;  %v2154_v55 = vpop.f32.mrf.mxu0 }
 0xac0   : > { %2043 = vmin.xlane.f32.xlu0 %v2042_v44  ;;  %v2183_v15 = vmax.f32 %v2144_v42, %v2154_v55 }
 0xac2   : > { %2852 = vadd.xlane.f32.xlu1 %v2851_v9 }
 0xac4   : > { %2488 = vadd.xlane.f32.xlu0 %v2487_v13 }
 0xac6   : > { %2855 = vadd.xlane.f32.xlu1 %v2854_v17 }
 0xac8   : > { %2491 = vadd.xlane.f32.xlu0 %v2490_v18 }
 0xaef   : > { %v9905_v53 = vpop.f32.mrf.mxu1 }
 0xaf0   : > { %v1822_v61 = vmax.f32 %v1820_v57, %v9905_v53 }
 0xaf1   : > { %v1800_v58 = vpop.f32.mrf.mxu1 }
 0xaf2   : > { %v1821_v0 = vmax.f32 %v1819_v60, %v1800_v58 }
 0xaf3   : > { %v9928_v59 = vpop.f32.mrf.mxu0 }
 0xaf4   : > { %v2186_v52 = vmax.f32 %v2184_v63, %v9928_v59 }
 0xaf5   : > { %v2164_v2 = vpop.f32.mrf.mxu0 }
 0xaf6   : > { %v2185_v25 = vmax.f32 %v2183_v15, %v2164_v2 }
 0xb43   : > { %v1683_v19 = vpop.xlane.xlu1 %1682 }
 0xb44   : > { %vm1685_vm2 = vcmp.eq.f32.partialorder %v11301_v11, %v1683_v19 }
 0xb45   : > { %v1680_v20 = vpop.xlane.xlu0 %1679  ;;  %v9100_v23 = vsel %vm1685_vm2, 1.0, %v13413_v30 }
 0xb46   : > { %vm1684_vm8 = vcmp.eq.f32.partialorder %v11301_v11, %v1680_v20 }
 0xb47   : > { %v2047_v21 = vpop.xlane.xlu1 %2046  ;;  %v9099_v22 = vsel %vm1684_vm8, 1.0, %v13413_v30 }
 0xb48   : > { %9906 = vmatprep.mubr.msk.f32.mxu1 %vm867_vm3, %v9099_v22  ;;  %vm2049_vm9 = vcmp.eq.f32.partialorder %v11301_v11, %v2047_v21 }
 0xb49   : > { %9907 = vmatmul.mubr.msk.f32.gmra.mxu1 %vm867_vm3, %v9100_v23  ;;  %v2044_v27 = vpop.xlane.xlu0 %2043  ;;  %v9120_v33 = vsel %vm2049_vm9, 1.0, %v13413_v30 }
 0xb4a   : > { %vm2048_vm10 = vcmp.eq.f32.partialorder %v11301_v11, %v2044_v27  ;;  %9940 = vmatprep.mubr.msk.bf16.mxu1 %vm2229_vm15, %v11622_v26 }
 0xb4b   : > { %v11629_v28 = vpop.xlane.xlu1 %2852  ;;  %v9119_v31 = vsel %vm2048_vm10, 1.0, %v13413_v30 }
 0xb4c   : > { %2861 = vxpose.xlu1.b32.start [1/2] (short) (narrow) %v11629_v28, 8  ;;  %9929 = vmatprep.mubr.msk.f32.mxu0 %vm867_vm3, %v9119_v31 }
 0xb4d   : > { %9930 = vmatmul.mubr.msk.f32.gmra.mxu0 %vm867_vm3, %v9120_v33  ;;  %9941 = vmatmul.mubr.msk.bf16.vlgmr.msra.gmra.mxu1 %vm2229_vm15, %v11633_v29  ;;  %v11642_v34 = vpop.xlane.xlu0 %2488 }
 0xb4e   : > { %9965 = vmatpush3.xpose.msk.msra.mxu1 %vm2229_vm15, %v11513_v49  ;;  %9956 = vmatprep.mubr.msk.bf16.mxu0 %vm2229_vm15, %v11622_v26 }
 0xb4f   : > { %v11648_v16 = vpop.xlane.xlu1 %2855  ;;  %9966 = vmatprep.subr.msk.mxu1 %vm2229_vm15, %v11596_v24  ;;  %2497 = vxpose.xlu0.b32.start [1/2] (short) (narrow) %v11642_v34, 8 }
 0xb50   : > { %2862 = vxpose.xlu1.b32.end [2/2] (short) (narrow) %v11648_v16, 8 }
 0xb51   : > { %9957 = vmatmul.mubr.msk.bf16.vlgmr.msra.gmra.mxu0 %vm2229_vm15, %v11633_v29  ;;  %v11656_v50 = vpop.xlane.xlu0 %2491 }
 0xb52   : > { %9967 = vmatpush3.xpose.msk.msra.mxu1 %vm2229_vm15, %v11596_v24  ;;  %9988 = vmatpush3.xpose.msk.msra.mxu0 %vm2229_vm15, %v11521_v38 }
 0xb53   : > { %9989 = vmatprep.subr.msk.mxu0 %vm2229_vm15, %v11592_v46  ;;  %2498 = vxpose.xlu0.b32.end [2/2] (short) (narrow) %v11656_v50, 8 }
 0xb56   : > { %9990 = vmatpush3.xpose.msk.msra.mxu0 %vm2229_vm15, %v11592_v46 }
 0xbc8   : > { %v2877_v51 = vpop.trf.xlu1 }
 0xbc9   : > { %v2896_v8 = vrot.slane %v2877_v51, %v11293_v54 }
 0xbcb   : > { %v2513_v27 = vpop.trf.xlu0 }
 0xbcc   : > { %v2532_v7 = vrot.slane %v2513_v27, %v11293_v54 }
 0xc09   : > { %v9908_v62 = vpop.f32.mrf.mxu1 }
 0xc0a   : > { %v1824_v1 = vmax.f32 %v1822_v61, %v9908_v62 }
 0xc0b   : > { %v1810_v3 = vpop.f32.mrf.mxu1 }
 0xc0c   : > { %v1826_v5 = vadd.f32 %v1824_v1, %v11289_v45  ;;  %v1823_v32 = vmax.f32 %v1821_v0, %v1810_v3 }
 0xc0d   : > { %v9931_v48 = vpop.f32.mrf.mxu0  ;;  %v9942_v35 = vpop.f32.mrf.mxu1 }
 0xc0e   : > { %v1825_v36 = vadd.f32 %v1823_v32, %v11281_v41  ;;  %v2188_v12 = vmax.f32 %v2186_v52, %v9931_v48  ;;  %v11669_v44 = vmax.f32 %v1826_v5, 0.0 }
 0xc0f   : > { %v2174_v4 = vpop.f32.mrf.mxu0  ;;  %v2276_v6 = vpop.f32.mrf.mxu1 }
 0xc10   : > { %v11671_v40 = vmax.f32 %v1825_v36, 0.0  ;;  %v2190_v9 = vadd.f32 %v11285_v43, %v2188_v12  ;;  %v2187_v10 = vmax.f32 %v2185_v25, %v2174_v4 }
 0xc11   : > { %v9943_v13 = vpop.f32.mrf.mxu1  ;;  %v11707_v43 = vpop.f32.mrf.mxu0 }
 0xc12   : > { %v2189_v14 = vadd.f32 %v11277_v39, %v2187_v10  ;;  %9994 = vmatprep.subr.mxu0 %v9943_v13  ;;  %v11677_v45 = vpack.c.bf16 %v11669_v44, %v11671_v40  ;;  %v11679_v41 = vmax.f32 %v2190_v9, 0.0 }
 0xc13   : > { %v2279_v17 = vpop.f32.mrf.mxu1 }
 0xc14   : > { %v11681_v18 = vmax.f32 %v2189_v14, 0.0  ;;  %9944 = vmatprep.mubr.msk.bf16.mxu1 %vm2229_vm15, %v11677_v45  ;;  %9960 = vmatprep.mubr.msk.bf16.mxu0 %vm2229_vm15, %v11677_v45 }
 0xc15   : > { %9971 = vmatprep.subr.mxu1 %v2279_v17 }
 0xc16   : > { %v11689_v39 = vpack.c.bf16 %v11679_v41, %v11681_v18 }
 0xc18   : > { %9945 = vmatmul.mubr.msk.bf16.gmra.mxu1 %vm2229_vm15, %v11689_v39  ;;  %9961 = vmatmul.mubr.msk.bf16.gmra.mxu0 %vm2229_vm15, %v11689_v39 }
 0xc19   : > { %9968 = vmatprep.mubr.msk.f32.mxu1 %vm2229_vm15, %v11596_v24  ;;  %9991 = vmatprep.mubr.msk.f32.mxu0 %vm2229_vm15, %v11592_v46  ;;  %v11709_v46 = vpop.f32.mrf.mxu0 }
 0xc20   : > { %9969 = vmatmul.mubr.msk.f32.vlgmr.msra.gmra.mxu1 %vm2229_vm15, %v11513_v49  ;;  %9992 = vmatmul.mubr.msk.f32.vlgmr.msra.gmra.mxu0 %vm2229_vm15, %v11521_v38  ;;  %v11711_v49 = vpop.f32.mrf.mxu0 }
 0xc21   : > { %9972 = vmatpush3.msra.mxu1 %v2279_v17  ;;  %9995 = vmatpush3.msra.mxu0 %v9943_v13 }
 0xc22   : > { %9973 = vmatprep.subr.mxu1 %v2276_v6  ;;  %9996 = vmatprep.subr.mxu0 %v9942_v35  ;;  %v11713_v24 = vpop.f32.mrf.mxu0 }
 0xc23   : > { %9974 = vmatpush3.msra.mxu1 %v2276_v6  ;;  %9997 = vmatpush3.msra.mxu0 %v9942_v35 }
 0xc24   : > { %10010 = vmatprep.subr.msk.mxu1 %vm2229_vm15, %v11669_v44  ;;  %10033 = vmatprep.subr.msk.mxu0 %vm2229_vm15, %v11679_v41 }
 0xcd8   : > { %v11715_v38 = vpop.f32.mrf.mxu1  ;;  %v11717_v19 = vpop.f32.mrf.mxu0 }
 0xcda   : > { %v11719_v20 = vpop.f32.mrf.mxu1  ;;  %v11721_v21 = vpop.f32.mrf.mxu0 }
 0xcdc   : > { %v11723_v22 = vpop.f32.mrf.mxu1  ;;  %v11725_v23 = vpop.f32.mrf.mxu0 }
 0xcde   : > { %v11727_v31 = vpop.f32.mrf.mxu1  ;;  %v11729_v33 = vpop.f32.mrf.mxu0 }
 0xce0   : > { %v9970_v56 = vpop.f32.mrf.mxu1  ;;  %v9993_v47 = vpop.f32.mrf.mxu0 }
 0xce1   : > { %v2494_v37 = vmul.f32 2.0, %v9970_v56  ;;  %v2858_v42 = vmul.f32 2.0, %v9993_v47 }
 0xce2   : > { %v2476_v53 = vpop.f32.mrf.mxu1  ;;  %v2840_v55 = vpop.f32.mrf.mxu0 }
 0xce3   : > { %v2496_v57 = vsub.f32 %v2494_v37, %v11656_v50  ;;  %v2860_v58 = vsub.f32 %v2858_v42, %v11648_v16  ;;  %v2493_v59 = vmul.f32 2.0, %v2476_v53  ;;  %v2857_v60 = vmul.f32 2.0, %v2840_v55 }
 0xce5   : > { %v2495_v61 = vsub.f32 %v2493_v59, %v11642_v34  ;;  %v2859_v62 = vsub.f32 %v2857_v60, %v11629_v28  ;;  %v2534_v63 = vsub.f32 %v2496_v57, %v2532_v7  ;;  %v2898_v0 = vsub.f32 %v2860_v58, %v2896_v8 }
 0xce7   : > { %v2533_v1 = vsub.f32 %v2495_v61, %v2532_v7  ;;  %v2538_v2 = vsel %vm867_vm3, %v2534_v63, -inf  ;;  %v2897_v3 = vsub.f32 %v2859_v62, %v2896_v8  ;;  %v2902_v50 = vsel %vm867_vm3, %v2898_v0, -inf }
 0xce8   : > { %2539 = vmax.xlane.f32.xlu1 %v2538_v2 }
 0xce9   : > { %v2535_v15 = vsel %vm867_vm3, %v2533_v1, -inf  ;;  %v2899_v16 = vsel %vm867_vm3, %v2897_v3, -inf }
 0xcea   : > { %2536 = vmax.xlane.f32.xlu0 %v2535_v15 }
 0xcec   : > { %2903 = vmax.xlane.f32.xlu1 %v2902_v50 }
 0xcee   : > { %2900 = vmax.xlane.f32.xlu0 %v2899_v16 }
 0xd71   : > { %v2540_v52 = vpop.xlane.xlu1 %2539 }
 0xd72   : > { %vm2542_vm11 = vcmp.eq.f32.partialorder %v2534_v63, %v2540_v52 }
 0xd73   : > { %v2537_v34 = vpop.xlane.xlu0 %2536  ;;  %v2544_v28 = vsel %vm2542_vm11, %v11301_v11, 16.0 }
 0xd74   : > { %vm2541_vm12 = vcmp.eq.f32.partialorder %v2533_v1, %v2537_v34  ;;  %v2548_v5 = vsel %vm867_vm3, %v2544_v28, inf }
 0xd75   : > { %2549 = vmin.xlane.f32.xlu1 %v2548_v5  ;;  %v2904_v32 = vpop.xlane.xlu1 %2903  ;;  %v2543_v48 = vsel %vm2541_vm12, %v11301_v11, 16.0 }
 0xd76   : > { %vm2906_vm13 = vcmp.eq.f32.partialorder %v2898_v0, %v2904_v32  ;;  %v2545_v35 = vsel %vm867_vm3, %v2543_v48, inf }
 0xd77   : > { %2546 = vmin.xlane.f32.xlu0 %v2545_v35  ;;  %v2901_v25 = vpop.xlane.xlu0 %2900  ;;  %v2908_v36 = vsel %vm2906_vm13, %v11301_v11, 16.0 }
 0xd78   : > { %vm2905_vm14 = vcmp.eq.f32.partialorder %v2897_v3, %v2901_v25  ;;  %v2912_v12 = vsel %vm867_vm3, %v2908_v36, inf }
 0xd79   : > { %2913 = vmin.xlane.f32.xlu1 %v2912_v12  ;;  %v2907_v4 = vsel %vm2905_vm14, %v11301_v11, 16.0 }
 0xd7a   : > { %v2909_v6 = vsel %vm867_vm3, %v2907_v4, inf }
 0xd7b   : > { %2910 = vmin.xlane.f32.xlu0 %v2909_v6 }
 0xdfe   : > { %v2550_v9 = vpop.xlane.xlu1 %2549 }
 0xdff   : > { %vm2552_vm0 = vcmp.eq.f32.partialorder %v11301_v11, %v2550_v9 }
 0xe00   : > { %v2547_v10 = vpop.xlane.xlu0 %2546  ;;  %v2558_v13 = vsel %vm2552_vm0, -inf, %v2534_v63  ;;  %v9150_v56 = vsel %vm2552_vm0, 1.0, %v13413_v30 }
 0xe01   : > { %vm2551_vm1 = vcmp.eq.f32.partialorder %v11301_v11, %v2547_v10  ;;  %v2562_v14 = vsel %vm867_vm3, %v2558_v13, -inf }
 0xe02   : > { %v9149_v17 = vsel %vm2551_vm1, 1.0, %v13413_v30  ;;  %2563 = vmax.xlane.f32.xlu1 %v2562_v14  ;;  %v2914_v27 = vpop.xlane.xlu1 %2913  ;;  %v2557_v51 = vsel %vm2551_vm1, -inf, %v2533_v1 }
 0xe03   : > { %vm2916_vm4 = vcmp.eq.f32.partialorder %v11301_v11, %v2914_v27  ;;  %9975 = vmatprep.mubr.msk.f32.mxu1 %vm867_vm3, %v9149_v17  ;;  %v2559_v47 = vsel %vm867_vm3, %v2557_v51, -inf }
 0xe04   : > { %2560 = vmax.xlane.f32.xlu0 %v2559_v47  ;;  %9976 = vmatmul.mubr.msk.f32.vlgmr.msra.gmra.mxu1 %vm867_vm3, %v9150_v56  ;;  %v2911_v37 = vpop.xlane.xlu0 %2910  ;;  %v2922_v42 = vsel %vm2916_vm4, -inf, %v2898_v0  ;;  %v9170_v55 = vsel %vm2916_vm4, 1.0, %v13413_v30 }
 0xe05   : > { %10011 = vmatpush3.xpose.msk.msra.mxu1 %vm2229_vm15, %v11669_v44  ;;  %vm2915_vm5 = vcmp.eq.f32.partialorder %v11301_v11, %v2911_v37  ;;  %v2926_v7 = vsel %vm867_vm3, %v2922_v42, -inf }
 0xe06   : > { %v9169_v8 = vsel %vm2915_vm5, 1.0, %v13413_v30  ;;  %10012 = vmatprep.subr.msk.mxu1 %vm2229_vm15, %v11671_v40  ;;  %2927 = vmax.xlane.f32.xlu1 %v2926_v7  ;;  %v2921_v53 = vsel %vm2915_vm5, -inf, %v2897_v3 }
 0xe07   : > { %9998 = vmatprep.mubr.msk.f32.mxu0 %vm867_vm3, %v9169_v8  ;;  %v2923_v57 = vsel %vm867_vm3, %v2921_v53, -inf }
 0xe08   : > { %2924 = vmax.xlane.f32.xlu0 %v2923_v57  ;;  %9999 = vmatmul.mubr.msk.f32.vlgmr.msra.gmra.mxu0 %vm867_vm3, %v9170_v55 }
 0xe09   : > { %10013 = vmatpush3.xpose.msk.msra.mxu1 %vm2229_vm15, %v11671_v40  ;;  %10034 = vmatpush3.xpose.msk.msra.mxu0 %vm2229_vm15, %v11679_v41 }
 0xe0a   : > { %10017 = vmatprep.subr.mxu1 %v11727_v31  ;;  %10035 = vmatprep.subr.msk.mxu0 %vm2229_vm15, %v11681_v18 }
 0xe0d   : > { %10036 = vmatpush3.xpose.msk.msra.mxu0 %vm2229_vm15, %v11681_v18 }
 0xe0e   : > { %10040 = vmatprep.subr.mxu0 %v11723_v22 }
 0xe8b   : > { %v2564_v58 = vpop.xlane.xlu1 %2563 }
 0xe8c   : > { %vm2566_vm6 = vcmp.eq.f32.partialorder %v2558_v13, %v2564_v58 }
 0xe8d   : > { %v2561_v59 = vpop.xlane.xlu0 %2560  ;;  %v2568_v60 = vsel %vm2566_vm6, %v11301_v11, 16.0 }
 0xe8e   : > { %vm2565_vm7 = vcmp.eq.f32.partialorder %v2557_v51, %v2561_v59  ;;  %v2572_v61 = vsel %vm867_vm3, %v2568_v60, inf }
 0xe8f   : > { %2573 = vmin.xlane.f32.xlu1 %v2572_v61  ;;  %v2928_v62 = vpop.xlane.xlu1 %2927  ;;  %v2567_v63 = vsel %vm2565_vm7, %v11301_v11, 16.0 }
 0xe90   : > { %vm2930_vm2 = vcmp.eq.f32.partialorder %v2922_v42, %v2928_v62  ;;  %v2569_v0 = vsel %vm867_vm3, %v2567_v63, inf }
 0xe91   : > { %2570 = vmin.xlane.f32.xlu0 %v2569_v0  ;;  %v2925_v1 = vpop.xlane.xlu0 %2924  ;;  %v2932_v2 = vsel %vm2930_vm2, %v11301_v11, 16.0 }
 0xe92   : > { %vm2929_vm8 = vcmp.eq.f32.partialorder %v2921_v53, %v2925_v1  ;;  %v2936_v3 = vsel %vm867_vm3, %v2932_v2, inf }
 0xe93   : > { %2937 = vmin.xlane.f32.xlu1 %v2936_v3  ;;  %v2931_v15 = vsel %vm2929_vm8, %v11301_v11, 16.0 }
 0xe94   : > { %v2933_v50 = vsel %vm867_vm3, %v2931_v15, inf }
 0xe95   : > { %2934 = vmin.xlane.f32.xlu0 %v2933_v50 }
 0xf18   : > { %v2574_v16 = vpop.xlane.xlu1 %2573 }
 0xf19   : > { %vm2576_vm9 = vcmp.eq.f32.partialorder %v11301_v11, %v2574_v16 }
 0xf1a   : > { %v2582_v52 = vsel %vm2576_vm9, -inf, %v2558_v13  ;;  %v2571_v34 = vpop.xlane.xlu0 %2570  ;;  %v9152_v35 = vsel %vm2576_vm9, 1.0, %v13413_v30 }
 0xf1b   : > { %vm2575_vm10 = vcmp.eq.f32.partialorder %v11301_v11, %v2571_v34  ;;  %v2586_v28 = vsel %vm867_vm3, %v2582_v52, -inf }
 0xf1c   : > { %v9151_v5 = vsel %vm2575_vm10, 1.0, %v13413_v30  ;;  %v2581_v32 = vsel %vm2575_vm10, -inf, %v2557_v51  ;;  %2587 = vmax.xlane.f32.xlu1 %v2586_v28  ;;  %v2938_v48 = vpop.xlane.xlu1 %2937 }
 0xf1d   : > { %vm2940_vm11 = vcmp.eq.f32.partialorder %v11301_v11, %v2938_v48  ;;  %9978 = vmatprep.mubr.msk.f32.mxu1 %vm867_vm3, %v9151_v5  ;;  %v2583_v25 = vsel %vm867_vm3, %v2581_v32, -inf }
 0xf1e   : > { %v2946_v36 = vsel %vm2940_vm11, -inf, %v2922_v42  ;;  %2584 = vmax.xlane.f32.xlu0 %v2583_v25  ;;  %9979 = vmatmul.mubr.msk.f32.gmra.mxu1 %vm867_vm3, %v9152_v35  ;;  %v2935_v12 = vpop.xlane.xlu0 %2934  ;;  %v9172_v10 = vsel %vm2940_vm11, 1.0, %v13413_v30 }
 0xf1f   : > { %vm2939_vm12 = vcmp.eq.f32.partialorder %v11301_v11, %v2935_v12  ;;  %v2950_v4 = vsel %vm867_vm3, %v2946_v36, -inf }
 0xf20   : > { %v9171_v6 = vsel %vm2939_vm12, 1.0, %v13413_v30  ;;  %v2945_v9 = vsel %vm2939_vm12, -inf, %v2921_v53  ;;  %2951 = vmax.xlane.f32.xlu1 %v2950_v4 }
 0xf21   : > { %10001 = vmatprep.mubr.msk.f32.mxu0 %vm867_vm3, %v9171_v6  ;;  %v2947_v13 = vsel %vm867_vm3, %v2945_v9, -inf }
 0xf22   : > { %2948 = vmax.xlane.f32.xlu0 %v2947_v13  ;;  %10002 = vmatmul.mubr.msk.f32.gmra.mxu0 %vm867_vm3, %v9172_v10 }
 0xfa5   : > { %v2588_v14 = vpop.xlane.xlu1 %2587 }
 0xfa6   : > { %vm2590_vm13 = vcmp.eq.f32.partialorder %v2582_v52, %v2588_v14  ;;  %v3213_v14 = vmul.f32 %v11671_v40, %v11671_v40 }
 0xfa7   : > { %v2585_v17 = vpop.xlane.xlu0 %2584  ;;  %v2592_v27 = vsel %vm2590_vm13, %v11301_v11, 16.0 }
 0xfa8   : > { %vm2589_vm14 = vcmp.eq.f32.partialorder %v2581_v32, %v2585_v17  ;;  %v2596_v51 = vsel %vm867_vm3, %v2592_v27, inf  ;;  %v3578_v27 = vmul.f32 %v11679_v41, %v11679_v41 }
 0xfa9   : > { %2597 = vmin.xlane.f32.xlu1 %v2596_v51  ;;  %v2952_v56 = vpop.xlane.xlu1 %2951  ;;  %v2591_v47 = vsel %vm2589_vm14, %v11301_v11, 16.0  ;;  %v3215_v51 = vsel %vm2229_vm15, %v3213_v14, 0.0 }
 0xfaa   : > { %vm2954_vm0 = vcmp.eq.f32.partialorder %v2946_v36, %v2952_v56  ;;  %v2593_v37 = vsel %vm867_vm3, %v2591_v47, inf  ;;  %v3214_v56 = vmul.f32 %v11669_v44, %v11669_v44  ;;  %v3582_v47 = vsel %vm2229_vm15, %v3578_v27, 0.0 }
 0xfab   : > { %2594 = vmin.xlane.f32.xlu0 %v2593_v37  ;;  %v2949_v42 = vpop.xlane.xlu0 %2948  ;;  %v2956_v7 = vsel %vm2954_vm0, %v11301_v11, 16.0 }
 0xfac   : > { %vm2953_vm1 = vcmp.eq.f32.partialorder %v2945_v9, %v2949_v42  ;;  %v2960_v8 = vsel %vm867_vm3, %v2956_v7, inf  ;;  %v3218_v37 = vsel %vm2229_vm15, %v3214_v56, 0.0  ;;  %v9977_v42 = vpop.f32.mrf.mxu1 }
 0xfad   : > { %2961 = vmin.xlane.f32.xlu1 %v2960_v8  ;;  %v2955_v53 = vsel %vm2953_vm1, %v11301_v11, 16.0  ;;  %v10000_v8 = vpop.f32.mrf.mxu0 }
 0xfae   : > { %v2957_v55 = vsel %vm867_vm3, %v2955_v53, inf  ;;  %v11847_v7 = vpop.f32.mrf.mxu1 }
 0xfaf   : > { %2958 = vmin.xlane.f32.xlu0 %v2957_v55  ;;  %v11849_v55 = vpop.f32.mrf.mxu0 }
 0xfde   : > { %v9980_v53 = vpop.f32.mrf.mxu1 }
0x1032   : > { %v2598_v57 = vpop.xlane.xlu1 %2597 }
0x1033   : > { %vm2600_vm4 = vcmp.eq.f32.partialorder %v11301_v11, %v2598_v57  ;;  %v11851_v57 = vpop.f32.mrf.mxu1 }
0x1034   : > { %v2595_v58 = vpop.xlane.xlu0 %2594  ;;  %v2606_v59 = vsel %vm2600_vm4, -inf, %v2582_v52  ;;  %v9154_v0 = vsel %vm2600_vm4, 1.0, %v13413_v30 }
0x1035   : > { %vm2599_vm5 = vcmp.eq.f32.partialorder %v11301_v11, %v2595_v58  ;;  %v2610_v60 = vsel %vm867_vm3, %v2606_v59, -inf  ;;  %v10003_v58 = vpop.f32.mrf.mxu0 }
0x1036   : > { %v9153_v61 = vsel %vm2599_vm5, 1.0, %v13413_v30  ;;  %2611 = vmax.xlane.f32.xlu1 %v2610_v60  ;;  %v2962_v62 = vpop.xlane.xlu1 %2961  ;;  %v2605_v63 = vsel %vm2599_vm5, -inf, %v2581_v32 }
0x1037   : > { %vm2964_vm6 = vcmp.eq.f32.partialorder %v11301_v11, %v2962_v62  ;;  %9981 = vmatprep.mubr.msk.f32.mxu1 %vm867_vm3, %v9153_v61  ;;  %v2607_v1 = vsel %vm867_vm3, %v2605_v63, -inf  ;;  %v11855_v62 = vpop.f32.mrf.mxu0 }
0x1038   : > { %2608 = vmax.xlane.f32.xlu0 %v2607_v1  ;;  %9982 = vmatmul.mubr.msk.f32.gmra.mxu1 %vm867_vm3, %v9154_v0  ;;  %v2959_v2 = vpop.xlane.xlu0 %2958  ;;  %v2970_v3 = vsel %vm2964_vm6, -inf, %v2946_v36  ;;  %v9174_v52 = vsel %vm2964_vm6, 1.0, %v13413_v30 }
0x1039   : > { %vm2963_vm7 = vcmp.eq.f32.partialorder %v11301_v11, %v2959_v2  ;;  %v2974_v15 = vsel %vm867_vm3, %v2970_v3, -inf }
0x103a   : > { %v9173_v50 = vsel %vm2963_vm7, 1.0, %v13413_v30  ;;  %2975 = vmax.xlane.f32.xlu1 %v2974_v15  ;;  %v2969_v16 = vsel %vm2963_vm7, -inf, %v2945_v9  ;;  %v3577_v9 = vmul.f32 %v11681_v18, %v11681_v18 }
0x103b   : > { %10004 = vmatprep.mubr.msk.f32.mxu0 %vm867_vm3, %v9173_v50  ;;  %v2971_v34 = vsel %vm867_vm3, %v2969_v16, -inf }
0x103c   : > { %2972 = vmax.xlane.f32.xlu0 %v2971_v34  ;;  %10005 = vmatmul.mubr.msk.f32.gmra.mxu0 %vm867_vm3, %v9174_v52  ;;  %v3579_v17 = vsel %vm2229_vm15, %v3577_v9, 0.0 }
0x10bf   : > { %v2612_v28 = vpop.xlane.xlu1 %2611 }
0x10c0   : > { %vm2614_vm2 = vcmp.eq.f32.partialorder %v2606_v59, %v2612_v28  ;;  %v2759_v59 = vmax.f32 %v9977_v42, %v9980_v53 }
0x10c1   : > { %v2609_v5 = vpop.xlane.xlu0 %2608  ;;  %v2616_v32 = vsel %vm2614_vm2, %v11301_v11, 16.0 }
0x10c2   : > { %vm2613_vm8 = vcmp.eq.f32.partialorder %v2605_v63, %v2609_v5  ;;  %v2620_v48 = vsel %vm867_vm3, %v2616_v32, inf  ;;  %v3123_v63 = vmax.f32 %v10000_v8, %v10003_v58 }
0x10c3   : > { %2621 = vmin.xlane.f32.xlu1 %v2620_v48  ;;  %v2976_v35 = vpop.xlane.xlu1 %2975  ;;  %v2615_v25 = vsel %vm2613_vm8, %v11301_v11, 16.0 }
0x10c4   : > { %vm2978_vm9 = vcmp.eq.f32.partialorder %v2970_v3, %v2976_v35  ;;  %v2617_v36 = vsel %vm867_vm3, %v2615_v25, inf }
0x10c5   : > { %2618 = vmin.xlane.f32.xlu0 %v2617_v36  ;;  %v2973_v12 = vpop.xlane.xlu0 %2972  ;;  %v2980_v4 = vsel %vm2978_vm9, %v11301_v11, 16.0 }
0x10c6   : > { %vm2977_vm10 = vcmp.eq.f32.partialorder %v2969_v16, %v2973_v12  ;;  %v2984_v6 = vsel %vm867_vm3, %v2980_v4, inf }
0x10c7   : > { %2985 = vmin.xlane.f32.xlu1 %v2984_v6  ;;  %v2979_v10 = vsel %vm2977_vm10, %v11301_v11, 16.0 }
0x10c8   : > { %v2981_v13 = vsel %vm867_vm3, %v2979_v10, inf }
0x10c9   : > { %2982 = vmin.xlane.f32.xlu0 %v2981_v13 }
0x10cb   : > { %3580 = vadd.xlane.f32.xlu1 %v3579_v17 }
0x10cd   : > { %3216 = vadd.xlane.f32.xlu0 %v3215_v51 }
0x10cf   : > { %3583 = vadd.xlane.f32.xlu1 %v3582_v47 }
0x10d1   : > { %3219 = vadd.xlane.f32.xlu0 %v3218_v37 }
0x10f8   : > { %v9983_v60 = vpop.f32.mrf.mxu1 }
0x10f9   : > { %v11853_v61 = vmax.f32 %v2759_v59, %v9983_v60 }
0x10fc   : > { %v10006_v0 = vpop.f32.mrf.mxu0 }
0x10fd   : > { %v11857_v1 = vmax.f32 %v3123_v63, %v10006_v0 }
0x114c   : > { %v2622_v2 = vpop.xlane.xlu1 %2621 }
0x114d   : > { %vm2624_vm11 = vcmp.eq.f32.partialorder %v11301_v11, %v2622_v2 }
0x114e   : > { %v2619_v3 = vpop.xlane.xlu0 %2618  ;;  %v9156_v16 = vsel %vm2624_vm11, 1.0, %v13413_v30 }
0x114f   : > { %vm2623_vm12 = vcmp.eq.f32.partialorder %v11301_v11, %v2619_v3 }
0x1150   : > { %v9155_v15 = vsel %vm2623_vm12, 1.0, %v13413_v30  ;;  %v2986_v50 = vpop.xlane.xlu1 %2985 }
0x1151   : > { %9984 = vmatprep.mubr.msk.f32.mxu1 %vm867_vm3, %v9155_v15  ;;  %vm2988_vm13 = vcmp.eq.f32.partialorder %v11301_v11, %v2986_v50 }
0x1152   : > { %9985 = vmatmul.mubr.msk.f32.gmra.mxu1 %vm867_vm3, %v9156_v16  ;;  %v2983_v52 = vpop.xlane.xlu0 %2982  ;;  %v9176_v5 = vsel %vm2988_vm13, 1.0, %v13413_v30 }
0x1153   : > { %vm2987_vm14 = vcmp.eq.f32.partialorder %v11301_v11, %v2983_v52  ;;  %10014 = vmatprep.mubr.msk.f32.mxu1 %vm2229_vm15, %v11671_v40 }
0x1154   : > { %v9175_v34 = vsel %vm2987_vm14, 1.0, %v13413_v30  ;;  %v3581_v28 = vpop.xlane.xlu1 %3580 }
0x1155   : > { %3589 = vxpose.xlu1.b32.start [1/2] (short) (narrow) %v3581_v28, 8  ;;  %10007 = vmatprep.mubr.msk.f32.mxu0 %vm867_vm3, %v9175_v34 }
0x1156   : > { %10008 = vmatmul.mubr.msk.f32.gmra.mxu0 %vm867_vm3, %v9176_v5  ;;  %10015 = vmatmul.mubr.msk.f32.vlgmr.msra.gmra.mxu1 %vm2229_vm15, %v11669_v44  ;;  %v3217_v32 = vpop.xlane.xlu0 %3216  ;;  %v11885_v44 = vpop.f32.mrf.mxu1 }
0x1157   : > { %10018 = vmatpush3.msra.mxu1 %v11727_v31  ;;  %10037 = vmatprep.mubr.msk.f32.mxu0 %vm2229_vm15, %v11681_v18  ;;  %v11889_v31 = vpop.f32.mrf.mxu0 }
0x1158   : > { %10019 = vmatprep.subr.mxu1 %v11719_v20  ;;  %3225 = vxpose.xlu0.b32.start [1/2] (short) (narrow) %v3217_v32, 8  ;;  %v3584_v40 = vpop.xlane.xlu1 %3583 }
0x1159   : > { %10020 = vmatpush3.msra.mxu1 %v11719_v20  ;;  %3590 = vxpose.xlu1.b32.end [2/2] (short) (narrow) %v3584_v40, 8 }
0x115a   : > { %10038 = vmatmul.mubr.msk.f32.vlgmr.msra.gmra.mxu0 %vm2229_vm15, %v11679_v41  ;;  %v3220_v48 = vpop.xlane.xlu0 %3219 }
0x115b   : > { %10041 = vmatpush3.msra.mxu0 %v11723_v22 }
0x115c   : > { %10042 = vmatprep.subr.mxu0 %v11715_v38  ;;  %3226 = vxpose.xlu0.b32.end [2/2] (short) (narrow) %v3220_v48, 8 }
0x115d   : > { %10043 = vmatpush3.msra.mxu0 %v11715_v38 }
0x11d1   : > { %v3605_v4 = vpop.trf.xlu1 }
0x11d2   : > { %v3624_v51 = vrot.slane %v3605_v4, %v11293_v54 }
0x11d4   : > { %v3241_v41 = vpop.trf.xlu0 }
0x11d5   : > { %v3260_v38 = vrot.slane %v3241_v41, %v11293_v54 }
0x1212   : > { %v11887_v18 = vpop.f32.mrf.mxu1 }
0x1213   : > { %v2763_v20 = vmax.f32 %v11853_v61, %v11887_v18 }
0x1214   : > { %v11893_v35 = vpop.f32.mrf.mxu1 }
0x1216   : > { %v11895_v25 = vpop.f32.mrf.mxu0  ;;  %v10016_v22 = vpop.f32.mrf.mxu1 }
0x1217   : > { %v3127_v36 = vmax.f32 %v11857_v1, %v11895_v25  ;;  %v3222_v12 = vmul.f32 2.0, %v10016_v22  ;;  %v10347_v22 = vld [vmem:[#allocation7 + $0x18] sm:$0xff]  }
0x1218   : > { %v11900_v6 = vpop.f32.mrf.mxu0  ;;  %v3204_v9 = vpop.f32.mrf.mxu1  ;;  %10056 = vmatprep.subr.bf16.mxu1 %v10347_v22 }
0x1219   : > { %v3224_v10 = vsub.f32 %v3222_v12, %v3220_v48  ;;  %v3221_v13 = vmul.f32 2.0, %v3204_v9  ;;  %v10349_v12 = vld [vmem:[%s13388_s6 + $0x18] sm:$0xff]  }
0x121a   : > { %v10039_v14 = vpop.f32.mrf.mxu0  ;;  %10072 = vmatprep.subr.bf16.mxu0 %v10349_v12 }
0x121b   : > { %v3262_v17 = vsub.f32 %v3224_v10, %v3260_v38  ;;  %v3586_v27 = vmul.f32 2.0, %v10039_v14  ;;  %v3223_v56 = vsub.f32 %v3221_v13, %v3217_v32 }
0x121c   : > { %v3568_v47 = vpop.f32.mrf.mxu0 }
0x121d   : > { %v3588_v37 = vsub.f32 %v3586_v27, %v3584_v40  ;;  %v3585_v42 = vmul.f32 2.0, %v3568_v47  ;;  %v3266_v8 = vsel %vm867_vm3, %v3262_v17, -inf  ;;  %v3261_v53 = vsub.f32 %v3223_v56, %v3260_v38 }
0x121e   : > { %3267 = vmax.xlane.f32.xlu1 %v3266_v8 }
0x121f   : > { %v3626_v58 = vsub.f32 %v3588_v37, %v3624_v51  ;;  %v3587_v59 = vsub.f32 %v3585_v42, %v3581_v28  ;;  %v3263_v60 = vsel %vm867_vm3, %v3261_v53, -inf }
0x1220   : > { %3264 = vmax.xlane.f32.xlu0 %v3263_v60 }
0x1221   : > { %v3625_v63 = vsub.f32 %v3587_v59, %v3624_v51  ;;  %v3630_v0 = vsel %vm867_vm3, %v3626_v58, -inf  ;;  %v10348_v51 = vld [vmem:[#allocation7 + $0x10] sm:$0xff]  }
0x1222   : > { %3631 = vmax.xlane.f32.xlu1 %v3630_v0  ;;  %v10351_v59 = vld [vmem:[%s13388_s6 + $0x10] sm:$0xff]  }
0x1223   : > { %v3627_v2 = vsel %vm867_vm3, %v3625_v63, -inf }
0x1224   : > { %3628 = vmax.xlane.f32.xlu0 %v3627_v2  ;;  %v10353_v2 = vld [vmem:[%s13388_s6 + $0x8] sm:$0xff]  }
0x12a7   : > { %v3268_v3 = vpop.xlane.xlu1 %3267 }
0x12a8   : > { %vm3270_vm0 = vcmp.eq.f32.partialorder %v3262_v17, %v3268_v3  ;;  %v2765_v3 = vadd.f32 %v2763_v20, %v11713_v24 }
0x12a9   : > { %v3272_v15 = vsel %vm3270_vm0, %v11301_v11, 16.0  ;;  %v3265_v50 = vpop.xlane.xlu0 %3264 }
0x12aa   : > { %v3276_v16 = vsel %vm867_vm3, %v3272_v15, inf  ;;  %vm3269_vm1 = vcmp.eq.f32.partialorder %v3261_v53, %v3265_v50  ;;  %v10354_v15 = vld [vmem:[%s13388_s6] sm:$0xff]   ;;  %v11963_v50 = vmax.f32 %v2765_v3, 0.0 }
0x12ab   : > { %3277 = vmin.xlane.f32.xlu1 %v3276_v16  ;;  %v3632_v52 = vpop.xlane.xlu1 %3631  ;;  %v3271_v34 = vsel %vm3269_vm1, %v11301_v11, 16.0  ;;  %v3129_v16 = vadd.f32 %v11711_v49, %v3127_v36 }
0x12ac   : > { %vm3634_vm4 = vcmp.eq.f32.partialorder %v3626_v58, %v3632_v52  ;;  %v3273_v28 = vsel %vm867_vm3, %v3271_v34, inf }
0x12ad   : > { %v3636_v5 = vsel %vm3634_vm4, %v11301_v11, 16.0  ;;  %3274 = vmin.xlane.f32.xlu0 %v3273_v28  ;;  %v3629_v32 = vpop.xlane.xlu0 %3628  ;;  %v11971_v24 = vmax.f32 %v3129_v16, 0.0 }
0x12ae   : > { %v3640_v40 = vsel %vm867_vm3, %v3636_v5, inf  ;;  %vm3633_vm5 = vcmp.eq.f32.partialorder %v3625_v63, %v3629_v32 }
0x12af   : > { %3641 = vmin.xlane.f32.xlu1 %v3640_v40  ;;  %v3635_v48 = vsel %vm3633_vm5, %v11301_v11, 16.0 }
0x12b0   : > { %v3637_v41 = vsel %vm867_vm3, %v3635_v48, inf }
0x12b1   : > { %3638 = vmin.xlane.f32.xlu0 %v3637_v41 }
0x1334   : > { %v3278_v38 = vpop.xlane.xlu1 %3277 }
0x1335   : > { %vm3280_vm6 = vcmp.eq.f32.partialorder %v11301_v11, %v3278_v38 }
0x1336   : > { %v11919_v4 = vsel %vm3280_vm6, -inf, %v3262_v17  ;;  %v3275_v9 = vpop.xlane.xlu0 %3274  ;;  %v9190_v56 = vsel %vm3280_vm6, 1.0, %v13413_v30 }
0x1337   : > { %v3290_v10 = vsel %vm867_vm3, %v11919_v4, -inf  ;;  %vm3279_vm7 = vcmp.eq.f32.partialorder %v11301_v11, %v3275_v9 }
0x1338   : > { %3291 = vmax.xlane.f32.xlu1 %v3290_v10  ;;  %v3642_v13 = vpop.xlane.xlu1 %3641  ;;  %v9189_v14 = vsel %vm3279_vm7, 1.0, %v13413_v30  ;;  %v11925_v27 = vsel %vm3279_vm7, -inf, %v3261_v53 }
0x1339   : > { %vm3644_vm2 = vcmp.eq.f32.partialorder %v11301_v11, %v3642_v13  ;;  %10021 = vmatprep.mubr.msk.f32.mxu1 %vm867_vm3, %v9189_v14  ;;  %v3287_v47 = vsel %vm867_vm3, %v11925_v27, -inf }
0x133a   : > { %v11931_v17 = vsel %vm3644_vm2, -inf, %v3626_v58  ;;  %3288 = vmax.xlane.f32.xlu0 %v3287_v47  ;;  %10022 = vmatmul.mubr.msk.f32.vlgmr.msra.gmra.mxu1 %vm867_vm3, %v9190_v56  ;;  %v3639_v37 = vpop.xlane.xlu0 %3638  ;;  %v10350_v58 = vld [vmem:[#allocation7 + $0x8] sm:$0xff]   ;;  %v9210_v60 = vsel %vm3644_vm2, 1.0, %v13413_v30 }
0x133b   : > { %v3654_v42 = vsel %vm867_vm3, %v11931_v17, -inf  ;;  %10057 = vmatpush3.bf16.msra.mxu1 %v10347_v22  ;;  %vm3643_vm8 = vcmp.eq.f32.partialorder %v11301_v11, %v3639_v37 }
0x133c   : > { %3655 = vmax.xlane.f32.xlu1 %v3654_v42  ;;  %v9209_v8 = vsel %vm3643_vm8, 1.0, %v13413_v30  ;;  %v11941_v53 = vsel %vm3643_vm8, -inf, %v3625_v63  ;;  %10058 = vmatprep.subr.bf16.mxu1 %v10348_v51  ;;  %v10352_v63 = vld [vmem:[#allocation7] sm:$0xff]  }
0x133d   : > { %10044 = vmatprep.mubr.msk.f32.mxu0 %vm867_vm3, %v9209_v8  ;;  %v3651_v0 = vsel %vm867_vm3, %v11941_v53, -inf }
0x133e   : > { %3652 = vmax.xlane.f32.xlu0 %v3651_v0  ;;  %10045 = vmatmul.mubr.msk.f32.vlgmr.msra.gmra.mxu0 %vm867_vm3, %v9210_v60 }
0x133f   : > { %10059 = vmatpush3.bf16.msra.mxu1 %v10348_v51  ;;  %10073 = vmatpush3.bf16.msra.mxu0 %v10349_v12 }
0x1340   : > { %10060 = vmatprep.subr.bf16.mxu1 %v10350_v58  ;;  %10074 = vmatprep.subr.bf16.mxu0 %v10351_v59 }
0x1343   : > { %10061 = vmatpush3.bf16.msra.mxu1 %v10350_v58  ;;  %10075 = vmatpush3.bf16.msra.mxu0 %v10351_v59 }
0x1344   : > { %10062 = vmatprep.subr.bf16.mxu1 %v10352_v63  ;;  %10076 = vmatprep.subr.bf16.mxu0 %v10353_v2 }
0x1347   : > { %10063 = vmatpush3.bf16.msra.mxu1 %v10352_v63  ;;  %10077 = vmatpush3.bf16.msra.mxu0 %v10353_v2 }
0x1348   : > { %10088 = vmatprep.subr.msk.mxu1 %vm2229_vm15, %v11963_v50  ;;  %10078 = vmatprep.subr.bf16.mxu0 %v10354_v15 }
0x134b   : > { %10079 = vmatpush3.bf16.msra.mxu0 %v10354_v15 }
0x134c   : > { %10111 = vmatprep.subr.msk.mxu0 %vm2229_vm15, %v11971_v24 }
0x13c1   : > { %v3292_v61 = vpop.xlane.xlu1 %3291 }
0x13c2   : > { %vm3294_vm9 = vcmp.eq.f32.partialorder %v11919_v4, %v3292_v61 }
0x13c3   : > { %v3296_v18 = vsel %vm3294_vm9, %v11301_v11, 16.0  ;;  %v3289_v1 = vpop.xlane.xlu0 %3288 }
0x13c4   : > { %v3300_v49 = vsel %vm867_vm3, %v3296_v18, inf  ;;  %vm3293_vm10 = vcmp.eq.f32.partialorder %v11925_v27, %v3289_v1 }
0x13c5   : > { %3301 = vmin.xlane.f32.xlu1 %v3300_v49  ;;  %v3656_v20 = vpop.xlane.xlu1 %3655  ;;  %v3295_v25 = vsel %vm3293_vm10, %v11301_v11, 16.0 }
0x13c6   : > { %vm3658_vm11 = vcmp.eq.f32.partialorder %v11931_v17, %v3656_v20  ;;  %v3297_v36 = vsel %vm867_vm3, %v3295_v25, inf }
0x13c7   : > { %v3660_v52 = vsel %vm3658_vm11, %v11301_v11, 16.0  ;;  %3298 = vmin.xlane.f32.xlu0 %v3297_v36  ;;  %v3653_v34 = vpop.xlane.xlu0 %3652 }
0x13c8   : > { %v3664_v28 = vsel %vm867_vm3, %v3660_v52, inf  ;;  %vm3657_vm12 = vcmp.eq.f32.partialorder %v11941_v53, %v3653_v34 }
0x13c9   : > { %3665 = vmin.xlane.f32.xlu1 %v3664_v28  ;;  %v3659_v5 = vsel %vm3657_vm12, %v11301_v11, 16.0 }
0x13ca   : > { %v3661_v32 = vsel %vm867_vm3, %v3659_v5, inf }
0x13cb   : > { %3662 = vmin.xlane.f32.xlu0 %v3661_v32 }
0x144e   : > { %v3302_v40 = vpop.xlane.xlu1 %3301 }
0x144f   : > { %vm3304_vm13 = vcmp.eq.f32.partialorder %v11301_v11, %v3302_v40 }
0x1450   : > { %v3310_v48 = vsel %vm3304_vm13, -inf, %v11919_v4  ;;  %v3299_v41 = vpop.xlane.xlu0 %3298  ;;  %v9192_v10 = vsel %vm3304_vm13, 1.0, %v13413_v30 }
0x1451   : > { %v3314_v22 = vsel %vm867_vm3, %v3310_v48, -inf  ;;  %vm3303_vm14 = vcmp.eq.f32.partialorder %v11301_v11, %v3299_v41 }
0x1452   : > { %3315 = vmax.xlane.f32.xlu1 %v3314_v22  ;;  %v3666_v12 = vpop.xlane.xlu1 %3665  ;;  %v9191_v38 = vsel %vm3303_vm14, 1.0, %v13413_v30  ;;  %v3309_v9 = vsel %vm3303_vm14, -inf, %v11925_v27  ;;  %v2758_v22 = vmax.f32 %v11847_v7, %v11851_v57 }
0x1453   : > { %vm3668_vm0 = vcmp.eq.f32.partialorder %v11301_v11, %v3666_v12  ;;  %10024 = vmatprep.mubr.msk.f32.mxu1 %vm867_vm3, %v9191_v38  ;;  %v3311_v4 = vsel %vm867_vm3, %v3309_v9, -inf  ;;  %v3122_v38 = vmax.f32 %v11849_v55, %v11855_v62 }
0x1454   : > { %v3674_v13 = vsel %vm3668_vm0, -inf, %v11931_v17  ;;  %3312 = vmax.xlane.f32.xlu0 %v3311_v4  ;;  %10025 = vmatmul.mubr.msk.f32.gmra.mxu1 %vm867_vm3, %v9192_v10  ;;  %v3663_v14 = vpop.xlane.xlu0 %3662  ;;  %v9212_v47 = vsel %vm3668_vm0, 1.0, %v13413_v30  ;;  %v2760_v12 = vmax.f32 %v2758_v22, %v11885_v44 }
0x1455   : > { %v3678_v51 = vsel %vm867_vm3, %v3674_v13, -inf  ;;  %vm3667_vm1 = vcmp.eq.f32.partialorder %v11301_v11, %v3663_v14  ;;  %v3124_v10 = vmax.f32 %v3122_v38, %v11889_v31 }
0x1456   : > { %3679 = vmax.xlane.f32.xlu1 %v3678_v51  ;;  %v9211_v27 = vsel %vm3667_vm1, 1.0, %v13413_v30  ;;  %v3673_v56 = vsel %vm3667_vm1, -inf, %v11941_v53 }
0x1457   : > { %10047 = vmatprep.mubr.msk.f32.mxu0 %vm867_vm3, %v9211_v27  ;;  %v3675_v17 = vsel %vm867_vm3, %v3673_v56, -inf  ;;  %v3126_v14 = vmax.f32 %v3124_v10, %v11900_v6 }
0x1458   : > { %3676 = vmax.xlane.f32.xlu0 %v3675_v17  ;;  %10048 = vmatmul.mubr.msk.f32.gmra.mxu0 %vm867_vm3, %v9212_v47 }
0x1459   : > { %v3128_v44 = vadd.f32 %v11707_v43, %v3126_v14 }
0x145b   : > { %v12052_v17 = vmax.f32 %v3128_v44, 0.0 }
0x14db   : > { %v3316_v37 = vpop.xlane.xlu1 %3315 }
0x14dc   : > { %vm3318_vm4 = vcmp.eq.f32.partialorder %v3310_v48, %v3316_v37 }
0x14dd   : > { %v3320_v42 = vsel %vm3318_vm4, %v11301_v11, 16.0  ;;  %v3313_v8 = vpop.xlane.xlu0 %3312 }
0x14de   : > { %v3324_v58 = vsel %vm867_vm3, %v3320_v42, inf  ;;  %vm3317_vm5 = vcmp.eq.f32.partialorder %v3309_v9, %v3313_v8  ;;  %v4516_v8 = vmul.f32 %v11971_v24, %v11971_v24 }
0x14df   : > { %3325 = vmin.xlane.f32.xlu1 %v3324_v58  ;;  %v3680_v59 = vpop.xlane.xlu1 %3679  ;;  %v3319_v53 = vsel %vm3317_vm5, %v11301_v11, 16.0 }
0x14e0   : > { %vm3682_vm6 = vcmp.eq.f32.partialorder %v3674_v13, %v3680_v59  ;;  %v3321_v60 = vsel %vm867_vm3, %v3319_v53, inf  ;;  %v4515_v59 = vmul.f32 %v12052_v17, %v12052_v17  ;;  %v4520_v53 = vsel %vm2229_vm15, %v4516_v8, 0.0 }
0x14e1   : > { %v3684_v0 = vsel %vm3682_vm6, %v11301_v11, 16.0  ;;  %3322 = vmin.xlane.f32.xlu0 %v3321_v60  ;;  %v3677_v63 = vpop.xlane.xlu0 %3676 }
0x14e2   : > { %v3688_v2 = vsel %vm867_vm3, %v3684_v0, inf  ;;  %vm3681_vm7 = vcmp.eq.f32.partialorder %v3673_v56, %v3677_v63  ;;  %v4517_v60 = vsel %vm2229_vm15, %v4515_v59, 0.0 }
0x14e3   : > { %3689 = vmin.xlane.f32.xlu1 %v3688_v2  ;;  %v3683_v3 = vsel %vm3681_vm7, %v11301_v11, 16.0 }
0x14e4   : > { %v3685_v15 = vsel %vm867_vm3, %v3683_v3, inf }
0x14e5   : > { %3686 = vmin.xlane.f32.xlu0 %v3685_v15 }
0x1568   : > { %v3326_v16 = vpop.xlane.xlu1 %3325 }
0x1569   : > { %vm3328_vm2 = vcmp.eq.f32.partialorder %v11301_v11, %v3326_v16 }
0x156a   : > { %v3334_v61 = vsel %vm3328_vm2, -inf, %v3310_v48  ;;  %v3323_v18 = vpop.xlane.xlu0 %3322  ;;  %v9194_v36 = vsel %vm3328_vm2, 1.0, %v13413_v30 }
0x156b   : > { %v3338_v1 = vsel %vm867_vm3, %v3334_v61, -inf  ;;  %vm3327_vm8 = vcmp.eq.f32.partialorder %v11301_v11, %v3323_v18  ;;  %v12081_v18 = vpack.c.bf16 %v11971_v24, %v12052_v17 }
0x156c   : > { %3339 = vmax.xlane.f32.xlu1 %v3338_v1  ;;  %v3690_v49 = vpop.xlane.xlu1 %3689  ;;  %v9193_v20 = vsel %vm3327_vm8, 1.0, %v13413_v30  ;;  %v3333_v25 = vsel %vm3327_vm8, -inf, %v3309_v9  ;;  %v2762_v9 = vmax.f32 %v2760_v12, %v11893_v35 }
0x156d   : > { %vm3692_vm9 = vcmp.eq.f32.partialorder %v11301_v11, %v3690_v49  ;;  %10027 = vmatprep.mubr.msk.f32.mxu1 %vm867_vm3, %v9193_v20  ;;  %v3335_v52 = vsel %vm867_vm3, %v3333_v25, -inf }
0x156e   : > { %v3698_v34 = vsel %vm3692_vm9, -inf, %v3674_v13  ;;  %3336 = vmax.xlane.f32.xlu0 %v3335_v52  ;;  %10028 = vmatmul.mubr.msk.f32.gmra.mxu1 %vm867_vm3, %v9194_v36  ;;  %v3687_v28 = vpop.xlane.xlu0 %3686  ;;  %v9214_v48 = vsel %vm3692_vm9, 1.0, %v13413_v30  ;;  %v2764_v4 = vadd.f32 %v2762_v9, %v11709_v46 }
0x156f   : > { %v3702_v5 = vsel %vm867_vm3, %v3698_v34, -inf  ;;  %vm3691_vm10 = vcmp.eq.f32.partialorder %v11301_v11, %v3687_v28 }
0x1570   : > { %3703 = vmax.xlane.f32.xlu1 %v3702_v5  ;;  %v9213_v32 = vsel %vm3691_vm10, 1.0, %v13413_v30  ;;  %v3697_v40 = vsel %vm3691_vm10, -inf, %v3673_v56  ;;  %v12043_v62 = vmax.f32 %v2764_v4, 0.0  ;;  %v4152_v56 = vmul.f32 %v11963_v50, %v11963_v50  ;;  %v10046_v5 = vpop.f32.mrf.mxu0 }
0x1571   : > { %10050 = vmatprep.mubr.msk.f32.mxu0 %vm867_vm3, %v9213_v32  ;;  %v3699_v41 = vsel %vm867_vm3, %v3697_v40, -inf }
0x1572   : > { %3700 = vmax.xlane.f32.xlu0 %v3699_v41  ;;  %10051 = vmatmul.mubr.msk.f32.gmra.mxu0 %vm867_vm3, %v9214_v48  ;;  %v4151_v43 = vmul.f32 %v12043_v62, %v12043_v62  ;;  %v4156_v42 = vsel %vm2229_vm15, %v4152_v56, 0.0  ;;  %v12072_v16 = vpack.c.bf16 %v11963_v50, %v12043_v62 }
0x1574   : > { %v4153_v58 = vsel %vm2229_vm15, %v4151_v43, 0.0 }
0x15f5   : > { %v3340_v13 = vpop.xlane.xlu1 %3339 }
0x15f6   : > { %vm3342_vm11 = vcmp.eq.f32.partialorder %v3334_v61, %v3340_v13 }
0x15f7   : > { %v3344_v51 = vsel %vm3342_vm11, %v11301_v11, 16.0  ;;  %v3337_v27 = vpop.xlane.xlu0 %3336 }
0x15f8   : > { %v3348_v7 = vsel %vm867_vm3, %v3344_v51, inf  ;;  %vm3341_vm12 = vcmp.eq.f32.partialorder %v3333_v25, %v3337_v27 }
0x15f9   : > { %3349 = vmin.xlane.f32.xlu1 %v3348_v7  ;;  %v3704_v57 = vpop.xlane.xlu1 %3703  ;;  %v3343_v55 = vsel %vm3341_vm12, %v11301_v11, 16.0 }
0x15fa   : > { %vm3706_vm13 = vcmp.eq.f32.partialorder %v3698_v34, %v3704_v57  ;;  %v3345_v31 = vsel %vm867_vm3, %v3343_v55, inf  ;;  %v10023_v34 = vpop.f32.mrf.mxu1 }
0x15fb   : > { %v3708_v46 = vsel %vm3706_vm13, %v11301_v11, 16.0  ;;  %3346 = vmin.xlane.f32.xlu0 %v3345_v31  ;;  %v3701_v35 = vpop.xlane.xlu0 %3700 }
0x15fc   : > { %v3712_v6 = vsel %vm867_vm3, %v3708_v46, inf  ;;  %vm3705_vm14 = vcmp.eq.f32.partialorder %v3697_v40, %v3701_v35  ;;  %v3447_v28 = vpop.f32.mrf.mxu1  ;;  %v3811_v40 = vpop.f32.mrf.mxu0 }
0x15fd   : > { %3713 = vmin.xlane.f32.xlu1 %v3712_v6  ;;  %v3707_v47 = vsel %vm3705_vm14, %v11301_v11, 16.0 }
0x15fe   : > { %v3709_v37 = vsel %vm867_vm3, %v3707_v47, inf  ;;  %v10026_v32 = vpop.f32.mrf.mxu1  ;;  %v10049_v41 = vpop.f32.mrf.mxu0 }
0x15ff   : > { %3710 = vmin.xlane.f32.xlu0 %v3709_v37  ;;  %v3487_v38 = vmax.f32 %v10023_v34, %v10026_v32  ;;  %v3851_v51 = vmax.f32 %v10046_v5, %v10049_v41 }
0x1600   : > { %v3457_v48 = vpop.f32.mrf.mxu1  ;;  %v3821_v12 = vpop.f32.mrf.mxu0 }
0x1601   : > { %4157 = vadd.xlane.f32.xlu1 %v4156_v42  ;;  %v3486_v13 = vmax.f32 %v3447_v28, %v3457_v48  ;;  %v3850_v44 = vmax.f32 %v3811_v40, %v3821_v12 }
0x1603   : > { %4154 = vadd.xlane.f32.xlu0 %v4153_v58 }
0x1605   : > { %4521 = vadd.xlane.f32.xlu1 %v4520_v53 }
0x1607   : > { %4518 = vadd.xlane.f32.xlu0 %v4517_v60 }
0x162e   : > { %v10029_v22 = vpop.f32.mrf.mxu1 }
0x162f   : > { %v3489_v4 = vmax.f32 %v3487_v38, %v10029_v22 }
0x1630   : > { %v3467_v9 = vpop.f32.mrf.mxu1 }
0x1631   : > { %v3488_v27 = vmax.f32 %v3486_v13, %v3467_v9 }
0x1632   : > { %v10052_v10 = vpop.f32.mrf.mxu0 }
0x1633   : > { %v3853_v31 = vmax.f32 %v3851_v51, %v10052_v10 }
0x1634   : > { %v3831_v57 = vpop.f32.mrf.mxu0 }
0x1635   : > { %v3852_v47 = vmax.f32 %v3850_v44, %v3831_v57 }
0x1682   : > { %v3350_v0 = vpop.xlane.xlu1 %3349 }
0x1683   : > { %vm3352_vm0 = vcmp.eq.f32.partialorder %v11301_v11, %v3350_v0 }
0x1684   : > { %v3347_v63 = vpop.xlane.xlu0 %3346  ;;  %v9196_v15 = vsel %vm3352_vm0, 1.0, %v13413_v30 }
0x1685   : > { %vm3351_vm1 = vcmp.eq.f32.partialorder %v11301_v11, %v3347_v63 }
0x1686   : > { %v3714_v2 = vpop.xlane.xlu1 %3713  ;;  %v9195_v3 = vsel %vm3351_vm1, 1.0, %v13413_v30 }
0x1687   : > { %10030 = vmatprep.mubr.msk.f32.mxu1 %vm867_vm3, %v9195_v3  ;;  %vm3716_vm4 = vcmp.eq.f32.partialorder %v11301_v11, %v3714_v2 }
0x1688   : > { %10031 = vmatmul.mubr.msk.f32.gmra.mxu1 %vm867_vm3, %v9196_v15  ;;  %v3711_v61 = vpop.xlane.xlu0 %3710  ;;  %v9216_v49 = vsel %vm3716_vm4, 1.0, %v13413_v30 }
0x1689   : > { %vm3715_vm5 = vcmp.eq.f32.partialorder %v11301_v11, %v3711_v61  ;;  %10064 = vmatprep.mubr.msk.bf16.mxu1 %vm2229_vm15, %v12072_v16 }
0x168a   : > { %v9215_v1 = vsel %vm3715_vm5, 1.0, %v13413_v30  ;;  %v12098_v25 = vpop.xlane.xlu1 %4157 }
0x168b   : > { %10053 = vmatprep.mubr.msk.f32.mxu0 %vm867_vm3, %v9215_v1 }
0x168c   : > { %10054 = vmatmul.mubr.msk.f32.gmra.mxu0 %vm867_vm3, %v9216_v49  ;;  %10065 = vmatmul.mubr.msk.bf16.vlgmr.msra.gmra.mxu1 %vm2229_vm15, %v12081_v18  ;;  %v12089_v20 = vpop.xlane.xlu0 %4154 }
0x168d   : > { %10089 = vmatpush3.xpose.msk.msra.mxu1 %vm2229_vm15, %v11963_v50  ;;  %10080 = vmatprep.mubr.msk.bf16.mxu0 %vm2229_vm15, %v12072_v16 }
0x168e   : > { %10090 = vmatprep.subr.msk.mxu1 %vm2229_vm15, %v12043_v62  ;;  %4163 = vxpose.xlu0.b32.start [1/2] (short) (narrow) %v12089_v20, 8  ;;  %v12114_v52 = vpop.xlane.xlu1 %4521 }
0x1690   : > { %10081 = vmatmul.mubr.msk.bf16.vlgmr.msra.gmra.mxu0 %vm2229_vm15, %v12081_v18  ;;  %v12102_v36 = vpop.xlane.xlu0 %4518 }
0x1691   : > { %10091 = vmatpush3.xpose.msk.msra.mxu1 %vm2229_vm15, %v12043_v62  ;;  %10112 = vmatpush3.xpose.msk.msra.mxu0 %vm2229_vm15, %v11971_v24 }
0x1692   : > { %10113 = vmatprep.subr.msk.mxu0 %vm2229_vm15, %v12052_v17  ;;  %4164 = vxpose.xlu0.b32.end [2/2] (short) (narrow) %v12098_v25, 8 }
0x1693   : > { %4527 = vxpose.xlu1.b32.start [1/2] (short) (narrow) %v12102_v36, 8 }
0x1695   : > { %10114 = vmatpush3.xpose.msk.msra.mxu0 %vm2229_vm15, %v12052_v17 }
0x1697   : > { %4528 = vxpose.xlu1.b32.end [2/2] (short) (narrow) %v12114_v52, 8 }
0x170a   : > { %v4179_v28 = vpop.trf.xlu0 }
0x170b   : > { %v4198_v38 = vrot.slane %v4179_v28, %v11293_v54 }
0x170f   : > { %v4543_v40 = vpop.trf.xlu1 }
0x1710   : > { %v4562_v13 = vrot.slane %v4543_v40, %v11293_v54 }
0x1748   : > { %v10032_v14 = vpop.f32.mrf.mxu1 }
0x1749   : > { %v3491_v7 = vmax.f32 %v3489_v4, %v10032_v14 }
0x174a   : > { %v3477_v55 = vpop.f32.mrf.mxu1 }
0x174b   : > { %v3493_v46 = vadd.f32 %v3491_v7, %v11729_v33  ;;  %v3490_v35 = vmax.f32 %v3488_v27, %v3477_v55 }
0x174c   : > { %v10055_v6 = vpop.f32.mrf.mxu0  ;;  %v10066_v56 = vpop.f32.mrf.mxu1 }
0x174d   : > { %v3492_v37 = vadd.f32 %v3490_v35, %v11721_v21  ;;  %v3855_v43 = vmax.f32 %v3853_v31, %v10055_v6  ;;  %v12119_v58 = vmax.f32 %v3493_v46, 0.0 }
0x174e   : > { %v3841_v42 = vpop.f32.mrf.mxu0  ;;  %v3942_v8 = vpop.f32.mrf.mxu1 }
0x174f   : > { %v12121_v59 = vmax.f32 %v3492_v37, 0.0  ;;  %v3857_v53 = vadd.f32 %v11725_v23, %v3855_v43  ;;  %v3854_v60 = vmax.f32 %v3852_v47, %v3841_v42 }
0x1750   : > { %v10067_v0 = vpop.f32.mrf.mxu1  ;;  %v12157_v23 = vpop.f32.mrf.mxu0 }
0x1751   : > { %v3856_v63 = vadd.f32 %v11717_v19, %v3854_v60  ;;  %10118 = vmatprep.subr.mxu0 %v10067_v0  ;;  %v12127_v33 = vpack.c.bf16 %v12119_v58, %v12121_v59  ;;  %v12129_v21 = vmax.f32 %v3857_v53, 0.0 }
0x1752   : > { %v3945_v2 = vpop.f32.mrf.mxu1 }
0x1753   : > { %v12131_v3 = vmax.f32 %v3856_v63, 0.0  ;;  %10068 = vmatprep.mubr.msk.bf16.mxu1 %vm2229_vm15, %v12127_v33  ;;  %10084 = vmatprep.mubr.msk.bf16.mxu0 %vm2229_vm15, %v12127_v33 }
0x1754   : > { %10095 = vmatprep.subr.mxu1 %v3945_v2 }
0x1755   : > { %v12139_v19 = vpack.c.bf16 %v12129_v21, %v12131_v3 }
0x1757   : > { %10069 = vmatmul.mubr.msk.bf16.gmra.mxu1 %vm2229_vm15, %v12139_v19  ;;  %10085 = vmatmul.mubr.msk.bf16.gmra.mxu0 %vm2229_vm15, %v12139_v19 }
0x1758   : > { %10092 = vmatprep.mubr.msk.f32.mxu1 %vm2229_vm15, %v12043_v62  ;;  %10115 = vmatprep.mubr.msk.f32.mxu0 %vm2229_vm15, %v12052_v17  ;;  %v12159_v62 = vpop.f32.mrf.mxu0 }
0x175f   : > { %10093 = vmatmul.mubr.msk.f32.vlgmr.msra.gmra.mxu1 %vm2229_vm15, %v11963_v50  ;;  %10116 = vmatmul.mubr.msk.f32.vlgmr.msra.gmra.mxu0 %vm2229_vm15, %v11971_v24  ;;  %v12161_v50 = vpop.f32.mrf.mxu0 }
0x1760   : > { %10096 = vmatpush3.msra.mxu1 %v3945_v2  ;;  %10119 = vmatpush3.msra.mxu0 %v10067_v0 }
0x1761   : > { %10097 = vmatprep.subr.mxu1 %v3942_v8  ;;  %10120 = vmatprep.subr.mxu0 %v10066_v56  ;;  %v12163_v17 = vpop.f32.mrf.mxu0 }
0x1762   : > { %10098 = vmatpush3.msra.mxu1 %v3942_v8  ;;  %10121 = vmatpush3.msra.mxu0 %v10066_v56 }
0x1763   : > { %10134 = vmatprep.subr.msk.mxu1 %vm2229_vm15, %v12119_v58  ;;  %10157 = vmatprep.subr.msk.mxu0 %vm2229_vm15, %v12129_v21 }
0x1817   : > { %v12165_v24 = vpop.f32.mrf.mxu1  ;;  %v12167_v15 = vpop.f32.mrf.mxu0 }
0x1819   : > { %v12169_v61 = vpop.f32.mrf.mxu1  ;;  %v12171_v1 = vpop.f32.mrf.mxu0 }
0x181b   : > { %v12173_v49 = vpop.f32.mrf.mxu1  ;;  %v12175_v34 = vpop.f32.mrf.mxu0 }
0x181d   : > { %v12177_v5 = vpop.f32.mrf.mxu1  ;;  %v12179_v32 = vpop.f32.mrf.mxu0 }
0x181f   : > { %v10094_v48 = vpop.f32.mrf.mxu1  ;;  %v10117_v41 = vpop.f32.mrf.mxu0 }
0x1820   : > { %v4160_v22 = vmul.f32 2.0, %v10094_v48  ;;  %v4524_v12 = vmul.f32 2.0, %v10117_v41 }
0x1821   : > { %v4142_v9 = vpop.f32.mrf.mxu1  ;;  %v4506_v10 = vpop.f32.mrf.mxu0 }
0x1822   : > { %v4162_v4 = vsub.f32 %v4160_v22, %v12098_v25  ;;  %v4526_v14 = vsub.f32 %v4524_v12, %v12114_v52  ;;  %v4159_v51 = vmul.f32 2.0, %v4142_v9  ;;  %v4523_v27 = vmul.f32 2.0, %v4506_v10 }
0x1824   : > { %v4161_v7 = vsub.f32 %v4159_v51, %v12089_v20  ;;  %v4525_v57 = vsub.f32 %v4523_v27, %v12102_v36  ;;  %v4200_v55 = vsub.f32 %v4162_v4, %v4198_v38  ;;  %v4564_v44 = vsub.f32 %v4526_v14, %v4562_v13 }
0x1826   : > { %v4199_v31 = vsub.f32 %v4161_v7, %v4198_v38  ;;  %v4204_v46 = vsel %vm867_vm3, %v4200_v55, -inf  ;;  %v4563_v35 = vsub.f32 %v4525_v57, %v4562_v13  ;;  %v4568_v25 = vsel %vm867_vm3, %v4564_v44, -inf }
0x1827   : > { %4205 = vmax.xlane.f32.xlu1 %v4204_v46 }
0x1828   : > { %v4201_v6 = vsel %vm867_vm3, %v4199_v31, -inf  ;;  %v4565_v52 = vsel %vm867_vm3, %v4563_v35, -inf }
0x1829   : > { %4202 = vmax.xlane.f32.xlu0 %v4201_v6 }
0x182b   : > { %4569 = vmax.xlane.f32.xlu1 %v4568_v25 }
0x182d   : > { %4566 = vmax.xlane.f32.xlu0 %v4565_v52 }
0x18b0   : > { %v4206_v56 = vpop.xlane.xlu1 %4205 }
0x18b1   : > { %vm4208_vm6 = vcmp.eq.f32.partialorder %v4200_v55, %v4206_v56 }
0x18b2   : > { %v4203_v20 = vpop.xlane.xlu0 %4202  ;;  %v4210_v36 = vsel %vm4208_vm6, %v11301_v11, 16.0 }
0x18b3   : > { %vm4207_vm7 = vcmp.eq.f32.partialorder %v4199_v31, %v4203_v20  ;;  %v4214_v47 = vsel %vm867_vm3, %v4210_v36, inf }
0x18b4   : > { %4215 = vmin.xlane.f32.xlu1 %v4214_v47  ;;  %v4570_v37 = vpop.xlane.xlu1 %4569  ;;  %v4209_v43 = vsel %vm4207_vm7, %v11301_v11, 16.0 }
0x18b5   : > { %vm4572_vm2 = vcmp.eq.f32.partialorder %v4564_v44, %v4570_v37  ;;  %v4211_v42 = vsel %vm867_vm3, %v4209_v43, inf }
0x18b6   : > { %4212 = vmin.xlane.f32.xlu0 %v4211_v42  ;;  %v4567_v8 = vpop.xlane.xlu0 %4566  ;;  %v4574_v53 = vsel %vm4572_vm2, %v11301_v11, 16.0 }
0x18b7   : > { %vm4571_vm8 = vcmp.eq.f32.partialorder %v4563_v35, %v4567_v8  ;;  %v4578_v60 = vsel %vm867_vm3, %v4574_v53, inf }
0x18b8   : > { %4579 = vmin.xlane.f32.xlu1 %v4578_v60  ;;  %v4573_v0 = vsel %vm4571_vm8, %v11301_v11, 16.0 }
0x18b9   : > { %v4575_v63 = vsel %vm867_vm3, %v4573_v0, inf }
0x18ba   : > { %4576 = vmin.xlane.f32.xlu0 %v4575_v63 }
0x193d   : > { %v4216_v2 = vpop.xlane.xlu1 %4215 }
0x193e   : > { %vm4218_vm9 = vcmp.eq.f32.partialorder %v11301_v11, %v4216_v2 }
0x193f   : > { %v4224_v28 = vsel %vm4218_vm9, -inf, %v4200_v55  ;;  %v4213_v40 = vpop.xlane.xlu0 %4212  ;;  %v9246_v38 = vsel %vm4218_vm9, 1.0, %v13413_v30 }
0x1940   : > { %vm4217_vm10 = vcmp.eq.f32.partialorder %v11301_v11, %v4213_v40  ;;  %v4228_v48 = vsel %vm867_vm3, %v4224_v28, -inf }
0x1941   : > { %v9245_v41 = vsel %vm4217_vm10, 1.0, %v13413_v30  ;;  %v4223_v22 = vsel %vm4217_vm10, -inf, %v4199_v31  ;;  %4229 = vmax.xlane.f32.xlu1 %v4228_v48  ;;  %v4580_v12 = vpop.xlane.xlu1 %4579 }
0x1942   : > { %vm4582_vm11 = vcmp.eq.f32.partialorder %v11301_v11, %v4580_v12  ;;  %10099 = vmatprep.mubr.msk.f32.mxu1 %vm867_vm3, %v9245_v41  ;;  %v4225_v9 = vsel %vm867_vm3, %v4223_v22, -inf }
0x1943   : > { %v4588_v10 = vsel %vm4582_vm11, -inf, %v4564_v44  ;;  %4226 = vmax.xlane.f32.xlu0 %v4225_v9  ;;  %10100 = vmatmul.mubr.msk.f32.vlgmr.msra.gmra.mxu1 %vm867_vm3, %v9246_v38  ;;  %v4577_v13 = vpop.xlane.xlu0 %4576  ;;  %v9266_v27 = vsel %vm4582_vm11, 1.0, %v13413_v30 }
0x1944   : > { %10135 = vmatpush3.xpose.msk.msra.mxu1 %vm2229_vm15, %v12119_v58  ;;  %vm4581_vm12 = vcmp.eq.f32.partialorder %v11301_v11, %v4577_v13  ;;  %v4592_v4 = vsel %vm867_vm3, %v4588_v10, -inf }
0x1945   : > { %v9265_v14 = vsel %vm4581_vm12, 1.0, %v13413_v30  ;;  %v4587_v51 = vsel %vm4581_vm12, -inf, %v4563_v35  ;;  %10136 = vmatprep.subr.msk.mxu1 %vm2229_vm15, %v12121_v59  ;;  %4593 = vmax.xlane.f32.xlu1 %v4592_v4 }
0x1946   : > { %10122 = vmatprep.mubr.msk.f32.mxu0 %vm867_vm3, %v9265_v14  ;;  %v4589_v7 = vsel %vm867_vm3, %v4587_v51, -inf }
0x1947   : > { %4590 = vmax.xlane.f32.xlu0 %v4589_v7  ;;  %10123 = vmatmul.mubr.msk.f32.vlgmr.msra.gmra.mxu0 %vm867_vm3, %v9266_v27 }
0x1948   : > { %10137 = vmatpush3.xpose.msk.msra.mxu1 %vm2229_vm15, %v12121_v59  ;;  %10158 = vmatpush3.xpose.msk.msra.mxu0 %vm2229_vm15, %v12129_v21 }
0x1949   : > { %10141 = vmatprep.subr.mxu1 %v12177_v5  ;;  %10159 = vmatprep.subr.msk.mxu0 %vm2229_vm15, %v12131_v3 }
0x194c   : > { %10160 = vmatpush3.xpose.msk.msra.mxu0 %vm2229_vm15, %v12131_v3 }
0x194d   : > { %10164 = vmatprep.subr.mxu0 %v12173_v49 }
0x19ca   : > { %v4230_v57 = vpop.xlane.xlu1 %4229 }
0x19cb   : > { %vm4232_vm13 = vcmp.eq.f32.partialorder %v4224_v28, %v4230_v57 }
0x19cc   : > { %v4227_v55 = vpop.xlane.xlu0 %4226  ;;  %v4234_v44 = vsel %vm4232_vm13, %v11301_v11, 16.0 }
0x19cd   : > { %vm4231_vm14 = vcmp.eq.f32.partialorder %v4223_v22, %v4227_v55  ;;  %v4238_v31 = vsel %vm867_vm3, %v4234_v44, inf }
0x19ce   : > { %4239 = vmin.xlane.f32.xlu1 %v4238_v31  ;;  %v4594_v46 = vpop.xlane.xlu1 %4593  ;;  %v4233_v35 = vsel %vm4231_vm14, %v11301_v11, 16.0 }
0x19cf   : > { %vm4596_vm0 = vcmp.eq.f32.partialorder %v4588_v10, %v4594_v46  ;;  %v4235_v6 = vsel %vm867_vm3, %v4233_v35, inf }
0x19d0   : > { %4236 = vmin.xlane.f32.xlu0 %v4235_v6  ;;  %v4591_v25 = vpop.xlane.xlu0 %4590  ;;  %v4598_v52 = vsel %vm4596_vm0, %v11301_v11, 16.0 }
0x19d1   : > { %vm4595_vm1 = vcmp.eq.f32.partialorder %v4587_v51, %v4591_v25  ;;  %v4602_v56 = vsel %vm867_vm3, %v4598_v52, inf }
0x19d2   : > { %4603 = vmin.xlane.f32.xlu1 %v4602_v56  ;;  %v4597_v20 = vsel %vm4595_vm1, %v11301_v11, 16.0 }
0x19d3   : > { %v4599_v36 = vsel %vm867_vm3, %v4597_v20, inf }
0x19d4   : > { %4600 = vmin.xlane.f32.xlu0 %v4599_v36 }
0x1a57   : > { %v4240_v47 = vpop.xlane.xlu1 %4239 }
0x1a58   : > { %vm4242_vm4 = vcmp.eq.f32.partialorder %v11301_v11, %v4240_v47 }
0x1a59   : > { %v4248_v37 = vsel %vm4242_vm4, -inf, %v4224_v28  ;;  %v4237_v43 = vpop.xlane.xlu0 %4236  ;;  %v9248_v0 = vsel %vm4242_vm4, 1.0, %v13413_v30 }
0x1a5a   : > { %vm4241_vm5 = vcmp.eq.f32.partialorder %v11301_v11, %v4237_v43  ;;  %v4252_v42 = vsel %vm867_vm3, %v4248_v37, -inf }
0x1a5b   : > { %v9247_v8 = vsel %vm4241_vm5, 1.0, %v13413_v30  ;;  %v4247_v53 = vsel %vm4241_vm5, -inf, %v4223_v22  ;;  %4253 = vmax.xlane.f32.xlu1 %v4252_v42  ;;  %v4604_v60 = vpop.xlane.xlu1 %4603 }
0x1a5c   : > { %vm4606_vm6 = vcmp.eq.f32.partialorder %v11301_v11, %v4604_v60  ;;  %10102 = vmatprep.mubr.msk.f32.mxu1 %vm867_vm3, %v9247_v8  ;;  %v4249_v63 = vsel %vm867_vm3, %v4247_v53, -inf }
0x1a5d   : > { %v4612_v2 = vsel %vm4606_vm6, -inf, %v4588_v10  ;;  %4250 = vmax.xlane.f32.xlu0 %v4249_v63  ;;  %10103 = vmatmul.mubr.msk.f32.gmra.mxu1 %vm867_vm3, %v9248_v0  ;;  %v4601_v28 = vpop.xlane.xlu0 %4600  ;;  %v9268_v22 = vsel %vm4606_vm6, 1.0, %v13413_v30 }
0x1a5e   : > { %vm4605_vm7 = vcmp.eq.f32.partialorder %v11301_v11, %v4601_v28  ;;  %v4616_v40 = vsel %vm867_vm3, %v4612_v2, -inf }
0x1a5f   : > { %v9267_v48 = vsel %vm4605_vm7, 1.0, %v13413_v30  ;;  %v4611_v41 = vsel %vm4605_vm7, -inf, %v4587_v51  ;;  %4617 = vmax.xlane.f32.xlu1 %v4616_v40 }
0x1a60   : > { %10125 = vmatprep.mubr.msk.f32.mxu0 %vm867_vm3, %v9267_v48  ;;  %v4613_v12 = vsel %vm867_vm3, %v4611_v41, -inf }
0x1a61   : > { %4614 = vmax.xlane.f32.xlu0 %v4613_v12  ;;  %10126 = vmatmul.mubr.msk.f32.gmra.mxu0 %vm867_vm3, %v9268_v22 }
0x1ae4   : > { %v4254_v38 = vpop.xlane.xlu1 %4253 }
0x1ae5   : > { %vm4256_vm2 = vcmp.eq.f32.partialorder %v4248_v37, %v4254_v38 }
0x1ae6   : > { %v4251_v9 = vpop.xlane.xlu0 %4250  ;;  %v4258_v10 = vsel %vm4256_vm2, %v11301_v11, 16.0 }
0x1ae7   : > { %vm4255_vm8 = vcmp.eq.f32.partialorder %v4247_v53, %v4251_v9  ;;  %v4262_v13 = vsel %vm867_vm3, %v4258_v10, inf  ;;  %v4880_v9 = vmul.f32 %v12119_v58, %v12119_v58 }
0x1ae8   : > { %4263 = vmin.xlane.f32.xlu1 %v4262_v13  ;;  %v4618_v4 = vpop.xlane.xlu1 %4617  ;;  %v4257_v14 = vsel %vm4255_vm8, %v11301_v11, 16.0 }
0x1ae9   : > { %vm4620_vm9 = vcmp.eq.f32.partialorder %v4612_v2, %v4618_v4  ;;  %v4259_v51 = vsel %vm867_vm3, %v4257_v14, inf  ;;  %v4879_v4 = vmul.f32 %v12121_v59, %v12121_v59  ;;  %v4884_v14 = vsel %vm2229_vm15, %v4880_v9, 0.0 }
0x1aea   : > { %4260 = vmin.xlane.f32.xlu0 %v4259_v51  ;;  %v4615_v27 = vpop.xlane.xlu0 %4614  ;;  %v4622_v7 = vsel %vm4620_vm9, %v11301_v11, 16.0  ;;  %v5244_v51 = vmul.f32 %v12129_v21, %v12129_v21 }
0x1aeb   : > { %vm4619_vm10 = vcmp.eq.f32.partialorder %v4611_v41, %v4615_v27  ;;  %v4626_v57 = vsel %vm867_vm3, %v4622_v7, inf  ;;  %v4881_v27 = vsel %vm2229_vm15, %v4879_v4, 0.0  ;;  %v5243_v7 = vmul.f32 %v12131_v3, %v12131_v3 }
0x1aec   : > { %4627 = vmin.xlane.f32.xlu1 %v4626_v57  ;;  %v4621_v55 = vsel %vm4619_vm10, %v11301_v11, 16.0  ;;  %v5248_v57 = vsel %vm2229_vm15, %v5244_v51, 0.0 }
0x1aed   : > { %v4623_v44 = vsel %vm867_vm3, %v4621_v55, inf  ;;  %v5245_v55 = vsel %vm2229_vm15, %v5243_v7, 0.0 }
0x1aee   : > { %4624 = vmin.xlane.f32.xlu0 %v4623_v44  ;;  %v10101_v44 = vpop.f32.mrf.mxu1 }
0x1b71   : > { %v4264_v31 = vpop.xlane.xlu1 %4263 }
0x1b72   : > { %vm4266_vm11 = vcmp.eq.f32.partialorder %v11301_v11, %v4264_v31  ;;  %v12297_v31 = vpop.f32.mrf.mxu1 }
0x1b73   : > { %v4261_v46 = vpop.xlane.xlu0 %4260  ;;  %v4272_v35 = vsel %vm4266_vm11, -inf, %v4248_v37  ;;  %v9250_v20 = vsel %vm4266_vm11, 1.0, %v13413_v30 }
0x1b74   : > { %vm4265_vm12 = vcmp.eq.f32.partialorder %v11301_v11, %v4261_v46  ;;  %v4276_v6 = vsel %vm867_vm3, %v4272_v35, -inf  ;;  %v10124_v46 = vpop.f32.mrf.mxu0 }
0x1b75   : > { %v9249_v25 = vsel %vm4265_vm12, 1.0, %v13413_v30  ;;  %4277 = vmax.xlane.f32.xlu1 %v4276_v6  ;;  %v4628_v52 = vpop.xlane.xlu1 %4627  ;;  %v4271_v56 = vsel %vm4265_vm12, -inf, %v4247_v53 }
0x1b76   : > { %vm4630_vm13 = vcmp.eq.f32.partialorder %v11301_v11, %v4628_v52  ;;  %10105 = vmatprep.mubr.msk.f32.mxu1 %vm867_vm3, %v9249_v25  ;;  %v4273_v36 = vsel %vm867_vm3, %v4271_v56, -inf  ;;  %v12299_v6 = vpop.f32.mrf.mxu0 }
0x1b77   : > { %4274 = vmax.xlane.f32.xlu0 %v4273_v36  ;;  %10106 = vmatmul.mubr.msk.f32.gmra.mxu1 %vm867_vm3, %v9250_v20  ;;  %v4625_v47 = vpop.xlane.xlu0 %4624  ;;  %v4636_v37 = vsel %vm4630_vm13, -inf, %v4612_v2  ;;  %v9270_v53 = vsel %vm4630_vm13, 1.0, %v13413_v30 }
0x1b78   : > { %vm4629_vm14 = vcmp.eq.f32.partialorder %v11301_v11, %v4625_v47  ;;  %v4640_v43 = vsel %vm867_vm3, %v4636_v37, -inf  ;;  %v10127_v52 = vpop.f32.mrf.mxu0 }
0x1b79   : > { %v9269_v42 = vsel %vm4629_vm14, 1.0, %v13413_v30  ;;  %4641 = vmax.xlane.f32.xlu1 %v4640_v43  ;;  %v4635_v8 = vsel %vm4629_vm14, -inf, %v4611_v41 }
0x1b7a   : > { %10128 = vmatprep.mubr.msk.f32.mxu0 %vm867_vm3, %v9269_v42  ;;  %v4637_v60 = vsel %vm867_vm3, %v4635_v8, -inf  ;;  %v12305_v47 = vpop.f32.mrf.mxu0 }
0x1b7b   : > { %4638 = vmax.xlane.f32.xlu0 %v4637_v60  ;;  %10129 = vmatmul.mubr.msk.f32.gmra.mxu0 %vm867_vm3, %v9270_v53 }
0x1bfe   : > { %v4278_v0 = vpop.xlane.xlu1 %4277 }
0x1bff   : > { %vm4280_vm0 = vcmp.eq.f32.partialorder %v4272_v35, %v4278_v0  ;;  %v10104_v35 = vpop.f32.mrf.mxu1 }
0x1c00   : > { %v4275_v63 = vpop.xlane.xlu0 %4274  ;;  %v4282_v2 = vsel %vm4280_vm0, %v11301_v11, 16.0 }
0x1c01   : > { %vm4279_vm1 = vcmp.eq.f32.partialorder %v4271_v56, %v4275_v63  ;;  %v4286_v28 = vsel %vm867_vm3, %v4282_v2, inf  ;;  %v12301_v25 = vpop.f32.mrf.mxu1  ;;  %v4425_v56 = vmax.f32 %v10101_v44, %v10104_v35 }
0x1c02   : > { %4287 = vmin.xlane.f32.xlu1 %v4286_v28  ;;  %v4642_v40 = vpop.xlane.xlu1 %4641  ;;  %v4281_v48 = vsel %vm4279_vm1, %v11301_v11, 16.0 }
0x1c03   : > { %vm4644_vm4 = vcmp.eq.f32.partialorder %v4636_v37, %v4642_v40  ;;  %v4283_v41 = vsel %vm867_vm3, %v4281_v48, inf  ;;  %v4789_v37 = vmax.f32 %v10124_v46, %v10127_v52 }
0x1c04   : > { %4284 = vmin.xlane.f32.xlu0 %v4283_v41  ;;  %v4639_v22 = vpop.xlane.xlu0 %4638  ;;  %v4646_v12 = vsel %vm4644_vm4, %v11301_v11, 16.0 }
0x1c05   : > { %vm4643_vm5 = vcmp.eq.f32.partialorder %v4635_v8, %v4639_v22  ;;  %v4650_v38 = vsel %vm867_vm3, %v4646_v12, inf }
0x1c06   : > { %4651 = vmin.xlane.f32.xlu1 %v4650_v38  ;;  %v4645_v10 = vsel %vm4643_vm5, %v11301_v11, 16.0 }
0x1c07   : > { %v4647_v13 = vsel %vm867_vm3, %v4645_v10, inf }
0x1c08   : > { %4648 = vmin.xlane.f32.xlu0 %v4647_v13 }
0x1c0a   : > { %4885 = vadd.xlane.f32.xlu1 %v4884_v14 }
0x1c0c   : > { %4882 = vadd.xlane.f32.xlu0 %v4881_v27 }
0x1c0e   : > { %5249 = vadd.xlane.f32.xlu1 %v5248_v57 }
0x1c10   : > { %5246 = vadd.xlane.f32.xlu0 %v5245_v55 }
0x1c37   : > { %v10107_v20 = vpop.f32.mrf.mxu1 }
0x1c38   : > { %v12303_v36 = vmax.f32 %v4425_v56, %v10107_v20 }
0x1c3b   : > { %v10130_v43 = vpop.f32.mrf.mxu0 }
0x1c3c   : > { %v12307_v42 = vmax.f32 %v4789_v37, %v10130_v43 }
0x1c3d   : > { %v12339_v22 = vpop.f32.mrf.mxu0 }
0x1c8b   : > { %v4288_v8 = vpop.xlane.xlu1 %4287 }
0x1c8c   : > { %vm4290_vm6 = vcmp.eq.f32.partialorder %v11301_v11, %v4288_v8 }
0x1c8d   : > { %v4285_v53 = vpop.xlane.xlu0 %4284  ;;  %v9252_v63 = vsel %vm4290_vm6, 1.0, %v13413_v30 }
0x1c8e   : > { %vm4289_vm7 = vcmp.eq.f32.partialorder %v11301_v11, %v4285_v53 }
0x1c8f   : > { %v9251_v60 = vsel %vm4289_vm7, 1.0, %v13413_v30  ;;  %v4652_v0 = vpop.xlane.xlu1 %4651 }
0x1c90   : > { %10108 = vmatprep.mubr.msk.f32.mxu1 %vm867_vm3, %v9251_v60  ;;  %vm4654_vm2 = vcmp.eq.f32.partialorder %v11301_v11, %v4652_v0 }
0x1c91   : > { %10109 = vmatmul.mubr.msk.f32.gmra.mxu1 %vm867_vm3, %v9252_v63  ;;  %v4649_v2 = vpop.xlane.xlu0 %4648  ;;  %v9272_v40 = vsel %vm4654_vm2, 1.0, %v13413_v30 }
0x1c92   : > { %vm4653_vm8 = vcmp.eq.f32.partialorder %v11301_v11, %v4649_v2  ;;  %10138 = vmatprep.mubr.msk.f32.mxu1 %vm2229_vm15, %v12121_v59 }
0x1c93   : > { %v9271_v28 = vsel %vm4653_vm8, 1.0, %v13413_v30  ;;  %v4886_v41 = vpop.xlane.xlu1 %4885 }
0x1c94   : > { %10131 = vmatprep.mubr.msk.f32.mxu0 %vm867_vm3, %v9271_v28 }
0x1c95   : > { %10132 = vmatmul.mubr.msk.f32.gmra.mxu0 %vm867_vm3, %v9272_v40  ;;  %10139 = vmatmul.mubr.msk.f32.vlgmr.msra.gmra.mxu1 %vm2229_vm15, %v12119_v58  ;;  %v4883_v48 = vpop.xlane.xlu0 %4882 }
0x1c96   : > { %10142 = vmatpush3.msra.mxu1 %v12177_v5  ;;  %10161 = vmatprep.mubr.msk.f32.mxu0 %vm2229_vm15, %v12131_v3  ;;  %v12335_v3 = vpop.f32.mrf.mxu1 }
0x1c97   : > { %10143 = vmatprep.subr.mxu1 %v12169_v61  ;;  %4891 = vxpose.xlu0.b32.start [1/2] (short) (narrow) %v4883_v48, 8  ;;  %v5250_v58 = vpop.xlane.xlu1 %5249 }
0x1c98   : > { %10144 = vmatpush3.msra.mxu1 %v12169_v61 }
0x1c99   : > { %10162 = vmatmul.mubr.msk.f32.vlgmr.msra.gmra.mxu0 %vm2229_vm15, %v12129_v21  ;;  %v5247_v59 = vpop.xlane.xlu0 %5246 }
0x1c9a   : > { %10165 = vmatpush3.msra.mxu0 %v12173_v49  ;;  %5255 = vxpose.xlu1.b32.start [1/2] (short) (narrow) %v5247_v59, 8 }
0x1c9b   : > { %10166 = vmatprep.subr.mxu0 %v12165_v24  ;;  %4892 = vxpose.xlu0.b32.end [2/2] (short) (narrow) %v4886_v41, 8 }
0x1c9c   : > { %10167 = vmatpush3.msra.mxu0 %v12165_v24 }
0x1c9e   : > { %5256 = vxpose.xlu1.b32.end [2/2] (short) (narrow) %v5250_v58, 8 }
0x1d13   : > { %v4907_v49 = vpop.trf.xlu0 }
0x1d14   : > { %v4926_v10 = vrot.slane %v4907_v49, %v11293_v54 }
0x1d16   : > { %v5271_v13 = vpop.trf.xlu1 }
0x1d17   : > { %v5290_v44 = vrot.slane %v5271_v13, %v11293_v54 }
0x1d51   : > { %v12337_v5 = vpop.f32.mrf.mxu1 }
0x1d52   : > { %v4429_v21 = vmax.f32 %v12303_v36, %v12337_v5 }
0x1d53   : > { %v12343_v61 = vpop.f32.mrf.mxu1 }
0x1d55   : > { %v12345_v12 = vpop.f32.mrf.mxu0  ;;  %v10140_v38 = vpop.f32.mrf.mxu1 }
0x1d56   : > { %v4793_v24 = vmax.f32 %v12307_v42, %v12345_v12  ;;  %v4888_v9 = vmul.f32 2.0, %v10140_v38 }
0x1d57   : > { %v12350_v4 = vpop.f32.mrf.mxu0  ;;  %v4870_v14 = vpop.f32.mrf.mxu1 }
0x1d58   : > { %v4890_v51 = vsub.f32 %v4888_v9, %v4886_v41  ;;  %v4887_v27 = vmul.f32 2.0, %v4870_v14  ;;  %v10357_v14 = vld [vmem:[#allocation8 + $0x74] ss:$8 sps:$4 sm:$0xff]  }
0x1d59   : > { %v10163_v7 = vpop.f32.mrf.mxu0  ;;  %5626 = vmatprep.subr.bf16.mxu1 %v10357_v14  ;;  %v10381_v14 = vld [vmem:[#allocation10 + $0x44] ss:$8 sps:$4 sm:$0xff]  }
0x1d5a   : > { %v4928_v57 = vsub.f32 %v4890_v51, %v4926_v10  ;;  %v5252_v55 = vmul.f32 2.0, %v10163_v7  ;;  %v4889_v46 = vsub.f32 %v4887_v27, %v4883_v48  ;;  %v10363_v51 = vld [vmem:[#allocation10 + $0x74] ss:$8 sps:$4 sm:$0xff]  }
0x1d5b   : > { %v5234_v35 = vpop.f32.mrf.mxu0  ;;  %5795 = vmatprep.subr.bf16.mxu0 %v10363_v51  ;;  %v10376_v51 = vld [vmem:[#allocation8 + $0x30] ss:$8 sps:$4 sm:$0xff]  }
0x1d5c   : > { %v5254_v52 = vsub.f32 %v5252_v55, %v5250_v58  ;;  %v5251_v56 = vmul.f32 2.0, %v5234_v35  ;;  %v4932_v20 = vsel %vm867_vm3, %v4928_v57, -inf  ;;  %v4927_v37 = vsub.f32 %v4889_v46, %v4926_v10  ;;  %v10355_v35 = vld [vmem:[#allocation8 + $0x70] ss:$8 sps:$4 sm:$0xff]  }
0x1d5d   : > { %4933 = vmax.xlane.f32.xlu1 %v4932_v20  ;;  %v10360_v20 = vld [vmem:[#allocation8 + $0x64] ss:$8 sps:$4 sm:$0xff]  }
0x1d5e   : > { %v5253_v43 = vsub.f32 %v5251_v56, %v5247_v59  ;;  %v5292_v8 = vsub.f32 %v5254_v52, %v5290_v44  ;;  %v4929_v53 = vsel %vm867_vm3, %v4927_v37, -inf }
0x1d5f   : > { %4930 = vmax.xlane.f32.xlu0 %v4929_v53 }
0x1d60   : > { %v5291_v60 = vsub.f32 %v5253_v43, %v5290_v44  ;;  %v5296_v0 = vsel %vm867_vm3, %v5292_v8, -inf }
0x1d61   : > { %5297 = vmax.xlane.f32.xlu1 %v5296_v0 }
0x1d62   : > { %v5293_v63 = vsel %vm867_vm3, %v5291_v60, -inf }
0x1d63   : > { %5294 = vmax.xlane.f32.xlu0 %v5293_v63  ;;  %v10358_v63 = vld [vmem:[#allocation8 + $0x60] ss:$8 sps:$4 sm:$0xff]  }
0x1de6   : > { %v4934_v2 = vpop.xlane.xlu1 %4933 }
0x1de7   : > { %vm4936_vm9 = vcmp.eq.f32.partialorder %v4928_v57, %v4934_v2  ;;  %v10361_v2 = vld [vmem:[#allocation10 + $0x70] ss:$8 sps:$4 sm:$0xff]  }
0x1de8   : > { %v4938_v28 = vsel %vm4936_vm9, %v11301_v11, 16.0  ;;  %v4931_v40 = vpop.xlane.xlu0 %4930 }
0x1de9   : > { %v4942_v48 = vsel %vm867_vm3, %v4938_v28, inf  ;;  %vm4935_vm10 = vcmp.eq.f32.partialorder %v4927_v37, %v4931_v40  ;;  %v10366_v40 = vld [vmem:[#allocation8 + $0x54] ss:$8 sps:$4 sm:$0xff]  }
0x1dea   : > { %4943 = vmin.xlane.f32.xlu1 %v4942_v48  ;;  %v5298_v41 = vpop.xlane.xlu1 %5297  ;;  %v4937_v59 = vsel %vm4935_vm10, %v11301_v11, 16.0  ;;  %v10369_v48 = vld [vmem:[#allocation10 + $0x64] ss:$8 sps:$4 sm:$0xff]  }
0x1deb   : > { %vm5300_vm11 = vcmp.eq.f32.partialorder %v5292_v8, %v5298_v41  ;;  %v4939_v58 = vsel %vm867_vm3, %v4937_v59, inf }
0x1dec   : > { %v5302_v49 = vsel %vm5300_vm11, %v11301_v11, 16.0  ;;  %4940 = vmin.xlane.f32.xlu0 %v4939_v58  ;;  %v5295_v38 = vpop.xlane.xlu0 %5294  ;;  %v10364_v58 = vld [vmem:[#allocation8 + $0x50] ss:$8 sps:$4 sm:$0xff]  }
0x1ded   : > { %v5306_v9 = vsel %vm867_vm3, %v5302_v49, inf  ;;  %vm5299_vm12 = vcmp.eq.f32.partialorder %v5291_v60, %v5295_v38  ;;  %v10372_v49 = vld [vmem:[#allocation8 + $0x44] ss:$8 sps:$4 sm:$0xff]   ;;  %v10375_v38 = vld [vmem:[#allocation10 + $0x54] ss:$8 sps:$4 sm:$0xff]  }
0x1dee   : > { %5307 = vmin.xlane.f32.xlu1 %v5306_v9  ;;  %v5301_v10 = vsel %vm5299_vm12, %v11301_v11, 16.0  ;;  %v10370_v9 = vld [vmem:[#allocation8 + $0x40] ss:$8 sps:$4 sm:$0xff]  }
0x1def   : > { %v5303_v13 = vsel %vm867_vm3, %v5301_v10, inf  ;;  %v10373_v10 = vld [vmem:[#allocation10 + $0x50] ss:$8 sps:$4 sm:$0xff]  }
0x1df0   : > { %5304 = vmin.xlane.f32.xlu0 %v5303_v13  ;;  %v10378_v13 = vld [vmem:[#allocation8 + $0x34] ss:$8 sps:$4 sm:$0xff]  }
0x1e73   : > { %v4944_v27 = vpop.xlane.xlu1 %4943 }
0x1e74   : > { %vm4946_vm13 = vcmp.eq.f32.partialorder %v11301_v11, %v4944_v27  ;;  %v10379_v27 = vld [vmem:[#allocation10 + $0x40] ss:$8 sps:$4 sm:$0xff]  }
0x1e75   : > { %v12366_v7 = vsel %vm4946_vm13, -inf, %v4928_v57  ;;  %v4941_v55 = vpop.xlane.xlu0 %4940  ;;  %v9286_v43 = vsel %vm4946_vm13, 1.0, %v13413_v30 }
0x1e76   : > { %v4956_v44 = vsel %vm867_vm3, %v12366_v7, -inf  ;;  %vm4945_vm14 = vcmp.eq.f32.partialorder %v11301_v11, %v4941_v55  ;;  %v10384_v55 = vld [vmem:[#allocation8 + $0x24] ss:$8 sps:$4 sm:$0xff]  }
0x1e77   : > { %4957 = vmax.xlane.f32.xlu1 %v4956_v44  ;;  %v5308_v46 = vpop.xlane.xlu1 %5307  ;;  %v9285_v52 = vsel %vm4945_vm14, 1.0, %v13413_v30  ;;  %v12372_v56 = vsel %vm4945_vm14, -inf, %v4927_v37  ;;  %v10387_v44 = vld [vmem:[#allocation10 + $0x34] ss:$8 sps:$4 sm:$0xff]  }
0x1e78   : > { %vm5310_vm0 = vcmp.eq.f32.partialorder %v11301_v11, %v5308_v46  ;;  %10145 = vmatprep.mubr.msk.f32.mxu1 %vm867_vm3, %v9285_v52  ;;  %v4953_v53 = vsel %vm867_vm3, %v12372_v56, -inf  ;;  %v10382_v46 = vld [vmem:[#allocation8 + $0x20] ss:$8 sps:$4 sm:$0xff]   ;;  %v10390_v52 = vld [vmem:[#allocation8 + $0x14] ss:$8 sps:$4 sm:$0xff]  }
0x1e79   : > { %v12378_v57 = vsel %vm5310_vm0, -inf, %v5292_v8  ;;  %4954 = vmax.xlane.f32.xlu0 %v4953_v53  ;;  %10146 = vmatmul.mubr.msk.f32.vlgmr.msra.gmra.mxu1 %vm867_vm3, %v9286_v43  ;;  %v5305_v0 = vpop.xlane.xlu0 %5304  ;;  %v9306_v41 = vsel %vm5310_vm0, 1.0, %v13413_v30  ;;  %v10388_v43 = vld [vmem:[#allocation8 + $0x10] ss:$8 sps:$4 sm:$0xff]   ;;  %v10391_v53 = vld [vmem:[#allocation10 + $0x20] ss:$8 sps:$4 sm:$0xff]  }
0x1e7a   : > { %v5320_v37 = vsel %vm867_vm3, %v12378_v57, -inf  ;;  %5627 = vmatpush1.bf16.msra.mxu1 %v10355_v35  ;;  %vm5309_vm1 = vcmp.eq.f32.partialorder %v11301_v11, %v5305_v0  ;;  %v10385_v35 = vld [vmem:[#allocation10 + $0x30] ss:$8 sps:$4 sm:$0xff]   ;;  %v10396_v0 = vld [vmem:[#allocation8 + $0x4] ss:$8 sps:$4 sm:$0xff]  }
0x1e7b   : > { %5321 = vmax.xlane.f32.xlu1 %v5320_v37  ;;  %v9305_v8 = vsel %vm5309_vm1, 1.0, %v13413_v30  ;;  %v12388_v28 = vsel %vm5309_vm1, -inf, %v5291_v60  ;;  %5628 = vmatprep.subr.bf16.mxu1 %v10360_v20  ;;  %v10367_v60 = vld [vmem:[#allocation10 + $0x60] ss:$8 sps:$4 sm:$0xff]   ;;  %v10393_v20 = vld [vmem:[#allocation10 + $0x24] ss:$8 sps:$4 sm:$0xff]  }
0x1e7c   : > { %10168 = vmatprep.mubr.msk.f32.mxu0 %vm867_vm3, %v9305_v8  ;;  %v5317_v59 = vsel %vm867_vm3, %v12388_v28, -inf  ;;  %v10399_v37 = vld [vmem:[#allocation10 + $0x14] ss:$8 sps:$4 sm:$0xff]   ;;  %v10397_v8 = vld [vmem:[#allocation10 + $0x10] ss:$8 sps:$4 sm:$0xff]  }
0x1e7d   : > { %5318 = vmax.xlane.f32.xlu0 %v5317_v59  ;;  %10169 = vmatmul.mubr.msk.f32.vlgmr.msra.gmra.mxu0 %vm867_vm3, %v9306_v41  ;;  %v4795_v41 = vadd.f32 %v12161_v50, %v4793_v24  ;;  %v10400_v59 = vld [vmem:[#allocation10] ss:$8 sps:$4 sm:$0xff]  }
0x1e7e   : > { %5629 = vmatpush1.bf16.msra.mxu1 %v10358_v63  ;;  %5796 = vmatpush1.bf16.msra.mxu0 %v10361_v2  ;;  %v4431_v63 = vadd.f32 %v4429_v21, %v12163_v17  ;;  %v10394_v2 = vld [vmem:[#allocation8] ss:$8 sps:$4 sm:$0xff]  }
0x1e7f   : > { %5630 = vmatprep.subr.bf16.mxu1 %v10366_v40  ;;  %5797 = vmatprep.subr.bf16.mxu0 %v10369_v48  ;;  %v10402_v40 = vld [vmem:[#allocation10 + $0x4] ss:$8 sps:$4 sm:$0xff]   ;;  %v12408_v17 = vmax.f32 %v4795_v41, 0.0 }
0x1e80   : > { %v12401_v48 = vmax.f32 %v4431_v63, 0.0 }
0x1e82   : > { %5631 = vmatpush1.bf16.msra.mxu1 %v10364_v58  ;;  %5798 = vmatpush1.bf16.msra.mxu0 %v10367_v60 }
0x1e83   : > { %5632 = vmatprep.subr.bf16.mxu1 %v10372_v49  ;;  %5799 = vmatprep.subr.bf16.mxu0 %v10375_v38 }
0x1e86   : > { %5633 = vmatpush1.bf16.msra.mxu1 %v10370_v9  ;;  %5800 = vmatpush1.bf16.msra.mxu0 %v10373_v10 }
0x1e87   : > { %5634 = vmatprep.subr.bf16.mxu1 %v10378_v13  ;;  %5801 = vmatprep.subr.bf16.mxu0 %v10381_v14 }
0x1e8a   : > { %5635 = vmatpush1.bf16.msra.mxu1 %v10376_v51  ;;  %5802 = vmatpush1.bf16.msra.mxu0 %v10379_v27 }
0x1e8b   : > { %5636 = vmatprep.subr.bf16.mxu1 %v10384_v55  ;;  %5803 = vmatprep.subr.bf16.mxu0 %v10387_v44 }
0x1e8e   : > { %5637 = vmatpush1.bf16.msra.mxu1 %v10382_v46  ;;  %5804 = vmatpush1.bf16.msra.mxu0 %v10385_v35 }
0x1e8f   : > { %5638 = vmatprep.subr.bf16.mxu1 %v10390_v52  ;;  %5805 = vmatprep.subr.bf16.mxu0 %v10393_v20 }
0x1e92   : > { %5639 = vmatpush1.bf16.msra.mxu1 %v10388_v43  ;;  %5806 = vmatpush1.bf16.msra.mxu0 %v10391_v53 }
0x1e93   : > { %5640 = vmatprep.subr.bf16.mxu1 %v10396_v0  ;;  %5807 = vmatprep.subr.bf16.mxu0 %v10399_v37 }
0x1e96   : > { %5641 = vmatpush1.bf16.msra.mxu1 %v10394_v2  ;;  %5808 = vmatpush1.bf16.msra.mxu0 %v10397_v8 }
0x1e97   : > { %10180 = vmatprep.subr.mxu1 %v12401_v48  ;;  %5809 = vmatprep.subr.bf16.mxu0 %v10402_v40 }
0x1e9a   : > { %5810 = vmatpush1.bf16.msra.mxu0 %v10400_v59 }
0x1e9b   : > { %10187 = vmatprep.subr.mxu0 %v12408_v17 }
0x1f00   : > { %v4958_v36 = vpop.xlane.xlu1 %4957 }
0x1f01   : > { %vm4960_vm4 = vcmp.eq.f32.partialorder %v12366_v7, %v4958_v36 }
0x1f02   : > { %v4962_v5 = vsel %vm4960_vm4, %v11301_v11, 16.0  ;;  %v4955_v21 = vpop.xlane.xlu0 %4954 }
0x1f03   : > { %v4966_v42 = vsel %vm867_vm3, %v4962_v5, inf  ;;  %vm4959_vm5 = vcmp.eq.f32.partialorder %v12372_v56, %v4955_v21 }
0x1f04   : > { %4967 = vmin.xlane.f32.xlu1 %v4966_v42  ;;  %v5322_v50 = vpop.xlane.xlu1 %5321  ;;  %v4961_v12 = vsel %vm4959_vm5, %v11301_v11, 16.0 }
0x1f05   : > { %vm5324_vm6 = vcmp.eq.f32.partialorder %v12378_v57, %v5322_v50  ;;  %v4963_v58 = vsel %vm867_vm3, %v4961_v12, inf }
0x1f06   : > { %v5326_v24 = vsel %vm5324_vm6, %v11301_v11, 16.0  ;;  %4964 = vmin.xlane.f32.xlu0 %v4963_v58  ;;  %v5319_v60 = vpop.xlane.xlu0 %5318 }
0x1f07   : > { %v5330_v49 = vsel %vm867_vm3, %v5326_v24, inf  ;;  %vm5323_vm7 = vcmp.eq.f32.partialorder %v12388_v28, %v5319_v60 }
0x1f08   : > { %5331 = vmin.xlane.f32.xlu1 %v5330_v49  ;;  %v5325_v38 = vsel %vm5323_vm7, %v11301_v11, 16.0 }
0x1f09   : > { %v5327_v9 = vsel %vm867_vm3, %v5325_v38, inf }
0x1f0a   : > { %5328 = vmin.xlane.f32.xlu0 %v5327_v9 }
0x1f8d   : > { %v4968_v10 = vpop.xlane.xlu1 %4967 }
0x1f8e   : > { %vm4970_vm2 = vcmp.eq.f32.partialorder %v11301_v11, %v4968_v10 }
0x1f8f   : > { %v4976_v13 = vsel %vm4970_vm2, -inf, %v12366_v7  ;;  %v4965_v14 = vpop.xlane.xlu0 %4964  ;;  %v9288_v46 = vsel %vm4970_vm2, 1.0, %v13413_v30 }
0x1f90   : > { %v4980_v51 = vsel %vm867_vm3, %v4976_v13, -inf  ;;  %vm4969_vm8 = vcmp.eq.f32.partialorder %v11301_v11, %v4965_v14 }
0x1f91   : > { %4981 = vmax.xlane.f32.xlu1 %v4980_v51  ;;  %v5332_v27 = vpop.xlane.xlu1 %5331  ;;  %v9287_v55 = vsel %vm4969_vm8, 1.0, %v13413_v30  ;;  %v4975_v44 = vsel %vm4969_vm8, -inf, %v12372_v56 }
0x1f92   : > { %vm5334_vm9 = vcmp.eq.f32.partialorder %v11301_v11, %v5332_v27  ;;  %10148 = vmatprep.mubr.msk.f32.mxu1 %vm867_vm3, %v9287_v55  ;;  %v4977_v7 = vsel %vm867_vm3, %v4975_v44, -inf }
0x1f93   : > { %v5340_v35 = vsel %vm5334_vm9, -inf, %v12378_v57  ;;  %4978 = vmax.xlane.f32.xlu0 %v4977_v7  ;;  %10149 = vmatmul.mubr.msk.f32.gmra.mxu1 %vm867_vm3, %v9288_v46  ;;  %v5329_v52 = vpop.xlane.xlu0 %5328  ;;  %v9308_v53 = vsel %vm5334_vm9, 1.0, %v13413_v30  ;;  %v4424_v46 = vmax.f32 %v12297_v31, %v12301_v25 }
0x1f94   : > { %v5344_v20 = vsel %vm867_vm3, %v5340_v35, -inf  ;;  %vm5333_vm10 = vcmp.eq.f32.partialorder %v11301_v11, %v5329_v52  ;;  %v4788_v52 = vmax.f32 %v12299_v6, %v12305_v47 }
0x1f95   : > { %5345 = vmax.xlane.f32.xlu1 %v5344_v20  ;;  %v9307_v56 = vsel %vm5333_vm10, 1.0, %v13413_v30  ;;  %v5339_v43 = vsel %vm5333_vm10, -inf, %v12388_v28 }
0x1f96   : > { %10171 = vmatprep.mubr.msk.f32.mxu0 %vm867_vm3, %v9307_v56  ;;  %v5341_v57 = vsel %vm867_vm3, %v5339_v43, -inf }
0x1f97   : > { %5342 = vmax.xlane.f32.xlu0 %v5341_v57  ;;  %10172 = vmatmul.mubr.msk.f32.gmra.mxu0 %vm867_vm3, %v9308_v53 }
0x201a   : > { %v4982_v0 = vpop.xlane.xlu1 %4981 }
0x201b   : > { %vm4984_vm11 = vcmp.eq.f32.partialorder %v4976_v13, %v4982_v0 }
0x201c   : > { %v4986_v37 = vsel %vm4984_vm11, %v11301_v11, 16.0  ;;  %v4979_v63 = vpop.xlane.xlu0 %4978 }
0x201d   : > { %v4990_v2 = vsel %vm867_vm3, %v4986_v37, inf  ;;  %vm4983_vm12 = vcmp.eq.f32.partialorder %v4975_v44, %v4979_v63 }
0x201e   : > { %4991 = vmin.xlane.f32.xlu1 %v4990_v2  ;;  %v5346_v8 = vpop.xlane.xlu1 %5345  ;;  %v4985_v28 = vsel %vm4983_vm12, %v11301_v11, 16.0  ;;  %v5944_v2 = vmul.f32 %v12401_v48, %v12401_v48 }
0x201f   : > { %vm5348_vm13 = vcmp.eq.f32.partialorder %v5340_v35, %v5346_v8  ;;  %v4987_v41 = vsel %vm867_vm3, %v4985_v28, inf }
0x2020   : > { %v5350_v40 = vsel %vm5348_vm13, %v11301_v11, 16.0  ;;  %4988 = vmin.xlane.f32.xlu0 %v4987_v41  ;;  %v5343_v59 = vpop.xlane.xlu0 %5342 }
0x2021   : > { %v5354_v36 = vsel %vm867_vm3, %v5350_v40, inf  ;;  %vm5347_vm14 = vcmp.eq.f32.partialorder %v5339_v43, %v5343_v59  ;;  %v6318_v40 = vmul.f32 %v12408_v17, %v12408_v17 }
0x2022   : > { %5355 = vmin.xlane.f32.xlu1 %v5354_v36  ;;  %v5349_v5 = vsel %vm5347_vm14, %v11301_v11, 16.0 }
0x2023   : > { %v5351_v21 = vsel %vm867_vm3, %v5349_v5, inf }
0x2024   : > { %5352 = vmin.xlane.f32.xlu0 %v5351_v21 }
0x20a7   : > { %v4992_v42 = vpop.xlane.xlu1 %4991 }
0x20a8   : > { %vm4994_vm0 = vcmp.eq.f32.partialorder %v11301_v11, %v4992_v42 }
0x20a9   : > { %v5000_v50 = vsel %vm4994_vm0, -inf, %v4976_v13  ;;  %v4989_v12 = vpop.xlane.xlu0 %4988  ;;  %v9290_v38 = vsel %vm4994_vm0, 1.0, %v13413_v30 }
0x20aa   : > { %v5004_v24 = vsel %vm867_vm3, %v5000_v50, -inf  ;;  %vm4993_vm1 = vcmp.eq.f32.partialorder %v11301_v11, %v4989_v12 }
0x20ab   : > { %5005 = vmax.xlane.f32.xlu1 %v5004_v24  ;;  %v5356_v58 = vpop.xlane.xlu1 %5355  ;;  %v9289_v60 = vsel %vm4993_vm1, 1.0, %v13413_v30  ;;  %v4999_v49 = vsel %vm4993_vm1, -inf, %v4975_v44 }
0x20ac   : > { %vm5358_vm4 = vcmp.eq.f32.partialorder %v11301_v11, %v5356_v58  ;;  %10151 = vmatprep.mubr.msk.f32.mxu1 %vm867_vm3, %v9289_v60  ;;  %v5001_v10 = vsel %vm867_vm3, %v4999_v49, -inf }
0x20ad   : > { %v5364_v9 = vsel %vm5358_vm4, -inf, %v5340_v35  ;;  %5002 = vmax.xlane.f32.xlu0 %v5001_v10  ;;  %10152 = vmatmul.mubr.msk.f32.gmra.mxu1 %vm867_vm3, %v9290_v38  ;;  %v5353_v13 = vpop.xlane.xlu0 %5352  ;;  %v9310_v55 = vsel %vm5358_vm4, 1.0, %v13413_v30  ;;  %v4426_v35 = vmax.f32 %v4424_v46, %v12335_v3 }
0x20ae   : > { %v5368_v14 = vsel %vm867_vm3, %v5364_v9, -inf  ;;  %vm5357_vm5 = vcmp.eq.f32.partialorder %v11301_v11, %v5353_v13  ;;  %v10147_v13 = vpop.f32.mrf.mxu1 }
0x20af   : > { %5369 = vmax.xlane.f32.xlu1 %v5368_v14  ;;  %v9309_v51 = vsel %vm5357_vm5, 1.0, %v13413_v30  ;;  %v5363_v27 = vsel %vm5357_vm5, -inf, %v5339_v43  ;;  %v4428_v20 = vmax.f32 %v4426_v35, %v12343_v61  ;;  %v4790_v43 = vmax.f32 %v4788_v52, %v12339_v22 }
0x20b0   : > { %10174 = vmatprep.mubr.msk.f32.mxu0 %vm867_vm3, %v9309_v51  ;;  %v5365_v44 = vsel %vm867_vm3, %v5363_v27, -inf  ;;  %v5113_v14 = vpop.f32.mrf.mxu1  ;;  %v10170_v51 = vpop.f32.mrf.mxu0 }
0x20b1   : > { %5366 = vmax.xlane.f32.xlu0 %v5365_v44  ;;  %10175 = vmatmul.mubr.msk.f32.gmra.mxu0 %vm867_vm3, %v9310_v55  ;;  %v4430_v31 = vadd.f32 %v4428_v20, %v12159_v62  ;;  %v4792_v25 = vmax.f32 %v4790_v43, %v12350_v4 }
0x20b2   : > { %v5477_v55 = vpop.f32.mrf.mxu0 }
0x20b3   : > { %v12482_v37 = vmax.f32 %v4430_v31, 0.0  ;;  %v4794_v63 = vadd.f32 %v12157_v23, %v4792_v25 }
0x20b4   : > { %v10173_v46 = vpop.f32.mrf.mxu0 }
0x20b5   : > { %v12489_v8 = vmax.f32 %v4794_v63, 0.0  ;;  %v5943_v28 = vmul.f32 %v12482_v37, %v12482_v37  ;;  %v12509_v24 = vpack.c.bf16 %v12401_v48, %v12482_v37 }
0x20b7   : > { %v6317_v23 = vmul.f32 %v12489_v8, %v12489_v8 }
0x2134   : > { %v5006_v7 = vpop.xlane.xlu1 %5005 }
0x2135   : > { %vm5008_vm6 = vcmp.eq.f32.partialorder %v5000_v50, %v5006_v7  ;;  %v13411_v50 = vmov 0   ;;  %v5487_v7 = vpop.f32.mrf.mxu0 }
0x2136   : > { %v5010_v56 = vsel %vm5008_vm6, %v11301_v11, 16.0  ;;  %v5003_v53 = vpop.xlane.xlu0 %5002 }
0x2137   : > { %v5014_v57 = vsel %vm867_vm3, %v5010_v56, inf  ;;  %vm5007_vm7 = vcmp.eq.f32.partialorder %v4999_v49, %v5003_v53 }
0x2138   : > { %5015 = vmin.xlane.f32.xlu1 %v5014_v57  ;;  %v5370_v0 = vpop.xlane.xlu1 %5369  ;;  %v5009_v3 = vsel %vm5007_vm7, %v11301_v11, 16.0 }
0x2139   : > { %vm5372_vm2 = vcmp.eq.f32.partialorder %v5364_v9, %v5370_v0  ;;  %v5011_v47 = vsel %vm867_vm3, %v5009_v3, inf  ;;  %v12533_v9 = vpack.c.bf16 %v12408_v17, %v12489_v8 }
0x213a   : > { %v5374_v6 = vsel %vm5372_vm2, %v11301_v11, 16.0  ;;  %5012 = vmin.xlane.f32.xlu0 %v5011_v47  ;;  %v5367_v61 = vpop.xlane.xlu0 %5366  ;;  %v5516_v47 = vmax.f32 %v5477_v55, %v5487_v7 }
0x213b   : > { %v5378_v22 = vsel %vm867_vm3, %v5374_v6, inf  ;;  %vm5371_vm8 = vcmp.eq.f32.partialorder %v5363_v27, %v5367_v61  ;;  %v10150_v27 = vpop.f32.mrf.mxu1  ;;  %v5517_v6 = vmax.f32 %v10170_v51, %v10173_v46 }
0x213c   : > { %5379 = vmin.xlane.f32.xlu1 %v5378_v22  ;;  %v5373_v62 = vsel %vm5371_vm8, %v11301_v11, 16.0  ;;  %v5153_v52 = vmax.f32 %v10147_v13, %v10150_v27 }
0x213d   : > { %v5375_v4 = vsel %vm867_vm3, %v5373_v62, inf  ;;  %v5123_v44 = vpop.f32.mrf.mxu1 }
0x213e   : > { %5376 = vmin.xlane.f32.xlu0 %v5375_v4  ;;  %v5152_v43 = vmax.f32 %v5113_v14, %v5123_v44 }
0x2140   : > { %5947 = vadd.xlane.f32.xlu1 %v5944_v2 }
0x2142   : > { %5945 = vadd.xlane.f32.xlu0 %v5943_v28 }
0x2144   : > { %6321 = vadd.xlane.f32.xlu1 %v6318_v40 }
0x2146   : > { %6319 = vadd.xlane.f32.xlu0 %v6317_v23 }
0x216d   : > { %v10153_v35 = vpop.f32.mrf.mxu1 }
0x216e   : > { %v5155_v53 = vmax.f32 %v5153_v52, %v10153_v35 }
0x216f   : > { %v5133_v20 = vpop.f32.mrf.mxu1 }
0x2170   : > { %v5154_v0 = vmax.f32 %v5152_v43, %v5133_v20 }
0x2171   : > { %v10176_v56 = vpop.f32.mrf.mxu0 }
0x2172   : > { %v5519_v4 = vmax.f32 %v5517_v6, %v10176_v56 }
0x2173   : > { %v5497_v25 = vpop.f32.mrf.mxu0 }
0x2174   : > { %v5518_v2 = vmax.f32 %v5516_v47, %v5497_v25 }
0x21c1   : > { %v5016_v41 = vpop.xlane.xlu1 %5015 }
0x21c2   : > { %vm5018_vm9 = vcmp.eq.f32.partialorder %v11301_v11, %v5016_v41 }
0x21c3   : > { %v5013_v59 = vpop.xlane.xlu0 %5012  ;;  %v9292_v21 = vsel %vm5018_vm9, 1.0, %v13413_v30 }
0x21c4   : > { %vm5017_vm10 = vcmp.eq.f32.partialorder %v11301_v11, %v5013_v59 }
0x21c5   : > { %v5380_v36 = vpop.xlane.xlu1 %5379  ;;  %v9291_v5 = vsel %vm5017_vm10, 1.0, %v13413_v30 }
0x21c6   : > { %10154 = vmatprep.mubr.msk.f32.mxu1 %vm867_vm3, %v9291_v5  ;;  %vm5382_vm11 = vcmp.eq.f32.partialorder %v11301_v11, %v5380_v36 }
0x21c7   : > { %10155 = vmatmul.mubr.msk.f32.gmra.mxu1 %vm867_vm3, %v9292_v21  ;;  %v5377_v42 = vpop.xlane.xlu0 %5376  ;;  %v9312_v58 = vsel %vm5382_vm11, 1.0, %v13413_v30 }
0x21c8   : > { %vm5381_vm12 = vcmp.eq.f32.partialorder %v11301_v11, %v5377_v42  ;;  %5658 = vmatprep.mubr.bf16.mxu1 %v13411_v50 }
0x21c9   : > { %v9311_v12 = vsel %vm5381_vm12, 1.0, %v13413_v30  ;;  %v12522_v49 = vpop.xlane.xlu1 %5947 }
0x21ca   : > { %10177 = vmatprep.mubr.msk.f32.mxu0 %vm867_vm3, %v9311_v12 }
0x21cb   : > { %10178 = vmatmul.mubr.msk.f32.gmra.mxu0 %vm867_vm3, %v9312_v58  ;;  %5659 = vmatmul.mubr.bf16.vlgmr.msra.gmra.mxu1 %v12509_v24  ;;  %v12515_v60 = vpop.xlane.xlu0 %5945 }
0x21cc   : > { %10181 = vmatpush3.xpose.msra.mxu1 %v12401_v48  ;;  %5953 = vxpose.xlu0.b32.start [1/2] (short) (narrow) %v12515_v60, 8 }
0x21cd   : > { %10182 = vmatprep.subr.mxu1 %v12482_v37  ;;  %5827 = vmatprep.mubr.bf16.mxu0 %v13411_v50  ;;  %v12540_v10 = vpop.xlane.xlu1 %6321 }
0x21ce   : > { %5668 = vmatprep.mubr.bf16.mxu1 %v13411_v50 }
0x21cf   : > { %5828 = vmatmul.mubr.bf16.vlgmr.msra.gmra.mxu0 %v12509_v24  ;;  %v12525_v38 = vpop.xlane.xlu0 %6319 }
0x21d0   : > { %10183 = vmatpush3.xpose.msra.mxu1 %v12482_v37  ;;  %10188 = vmatpush3.xpose.msra.mxu0 %v12408_v17 }
0x21d1   : > { %10189 = vmatprep.subr.mxu0 %v12489_v8  ;;  %5954 = vxpose.xlu0.b32.end [2/2] (short) (narrow) %v12522_v49, 8 }
0x21d2   : > { %6327 = vxpose.xlu1.b32.start [1/2] (short) (narrow) %v12525_v38, 8  ;;  %5837 = vmatprep.mubr.bf16.mxu0 %v13411_v50 }
0x21d3   : > { %5669 = vmatmul.mubr.bf16.gmra.mxu1 %v12533_v9 }
0x21d4   : > { %10190 = vmatpush3.xpose.msra.mxu0 %v12489_v8  ;;  %5678 = vmatprep.mubr.bf16.mxu1 %v13411_v50 }
0x21d6   : > { %6328 = vxpose.xlu1.b32.end [2/2] (short) (narrow) %v12540_v10, 8 }
0x21d7   : > { %5838 = vmatmul.mubr.bf16.gmra.mxu0 %v12533_v9 }
0x21d8   : > { %5847 = vmatprep.mubr.bf16.mxu0 %v13411_v50 }
0x2287   : > { %v10156_v57 = vpop.f32.mrf.mxu1 }
0x2288   : > { %v5157_v31 = vmax.f32 %v5155_v53, %v10156_v57 }
0x2289   : > { %v5143_v3 = vpop.f32.mrf.mxu1 }
0x228a   : > { %v5159_v61 = vadd.f32 %v5157_v31, %v12179_v32  ;;  %v5156_v22 = vmax.f32 %v5154_v0, %v5143_v3 }
0x228b   : > { %v10179_v63 = vpop.f32.mrf.mxu0  ;;  %v5660_v62 = vpop.f32.mrf.mxu1 }
0x228c   : > { %v5158_v28 = vadd.f32 %v5156_v22, %v12171_v1  ;;  %v12547_v41 = vmax.f32 %v5159_v61, 0.0  ;;  %v5521_v36 = vmax.f32 %v5519_v4, %v10179_v63  ;;  %v5969_v22 = vpop.trf.xlu0  ;;  %v6343_v4 = vpop.trf.xlu1 }
0x228d   : > { %v5507_v40 = vpop.f32.mrf.mxu0  ;;  %v5662_v23 = vpop.f32.mrf.mxu1 }
0x228e   : > { %v12549_v59 = vmax.f32 %v5158_v28, 0.0  ;;  %v5520_v5 = vmax.f32 %v5518_v2, %v5507_v40  ;;  %v5523_v58 = vadd.f32 %v12175_v34, %v5521_v36  ;;  %v5988_v36 = vrot.slane %v5969_v22, %v11293_v54 }
0x228f   : > { %v5664_v21 = vpop.f32.mrf.mxu1 }
0x2290   : > { %v5522_v42 = vadd.f32 %v12167_v15, %v5520_v5  ;;  %v12554_v32 = vpack.c.bf16 %v12547_v41, %v12549_v59  ;;  %v12563_v14 = vmax.f32 %v5523_v58, 0.0 }
0x2291   : > { %v5666_v12 = vpop.f32.mrf.mxu1 }
0x2292   : > { %5679 = vmatmul.mubr.bf16.gmra.mxu1 %v12554_v32  ;;  %5848 = vmatmul.mubr.bf16.gmra.mxu0 %v12554_v32  ;;  %v12560_v13 = vmax.f32 %v5522_v42, 0.0  ;;  %v6362_v42 = vrot.slane %v6343_v4, %v11293_v54 }
0x2293   : > { %6137 = vmatprep.subr.mxu1 %v5666_v12  ;;  %v5670_v1 = vpop.f32.mrf.mxu1  ;;  %5688 = vmatprep.mubr.bf16.mxu1 %v13411_v50 }
0x2294   : > { %5857 = vmatprep.mubr.bf16.mxu0 %v13411_v50  ;;  %v12567_v27 = vpack.c.bf16 %v12563_v14, %v12560_v13 }
0x2295   : > { %v5672_v15 = vpop.f32.mrf.mxu1 }
0x2297   : > { %v5674_v51 = vpop.f32.mrf.mxu1 }
0x2299   : > { %v5676_v34 = vpop.f32.mrf.mxu1 }
0x229a   : > { %5689 = vmatmul.mubr.bf16.gmra.mxu1 %v12567_v27  ;;  %5858 = vmatmul.mubr.bf16.gmra.mxu0 %v12567_v27 }
0x229b   : > { %6511 = vmatprep.subr.mxu0 %v5676_v34  ;;  %10184 = vmatprep.mubr.f32.mxu1 %v12482_v37  ;;  %v12579_v37 = vpop.f32.mrf.mxu0 }
0x229c   : > { %10191 = vmatprep.mubr.f32.mxu0 %v12489_v8 }
0x229d   : > { %v12581_v8 = vpop.f32.mrf.mxu0 }
0x22a2   : > { %10185 = vmatmul.mubr.f32.vlgmr.msra.gmra.mxu1 %v12401_v48  ;;  %10192 = vmatmul.mubr.f32.vlgmr.msra.gmra.mxu0 %v12408_v17  ;;  %v12583_v48 = vpop.f32.mrf.mxu0 }
0x22a3   : > { %6138 = vmatpush1.msra.mxu1 %v5664_v21  ;;  %6512 = vmatpush1.msra.mxu0 %v5674_v51 }
0x22a4   : > { %6139 = vmatprep.subr.mxu1 %v5662_v23  ;;  %6513 = vmatprep.subr.mxu0 %v5672_v15  ;;  %v12585_v17 = vpop.f32.mrf.mxu0 }
0x22a5   : > { %6140 = vmatpush1.msra.mxu1 %v5660_v62  ;;  %6514 = vmatpush1.msra.mxu0 %v5670_v1 }
0x22a6   : > { %10194 = vmatprep.subr.mxu1 %v12547_v41  ;;  %10201 = vmatprep.subr.mxu0 %v12563_v14  ;;  %v12587_v55 = vpop.f32.mrf.mxu0 }
0x22a7   : > { %6173 = vmatprep.mubr.f32.mxu1 %v13413_v30  ;;  %6547 = vmatprep.mubr.f32.mxu0 %v13413_v30 }
0x22a8   : > { %v12589_v44 = vpop.f32.mrf.mxu0 }
0x22aa   : > { %v12591_v46 = vpop.f32.mrf.mxu0 }
0x22ac   : > { %v12593_v35 = vpop.f32.mrf.mxu0 }
0x2352   : > { %v12595_v7 = vpop.f32.mrf.mxu1  ;;  %v12597_v52 = vpop.f32.mrf.mxu0 }
0x2353   : > { %13444 = vst [vmem:[#allocation27_spill] sm:$0xff] %v12597_v52 }
0x2354   : > { %v12599_v20 = vpop.f32.mrf.mxu1  ;;  %v12601_v56 = vpop.f32.mrf.mxu0 }
0x2356   : > { %v12603_v43 = vpop.f32.mrf.mxu1  ;;  %v12605_v53 = vpop.f32.mrf.mxu0 }
0x2357   : > { %13445 = vst [vmem:[#allocation28_spill] sm:$0xff] %v12605_v53 }
0x2358   : > { %v12607_v57 = vpop.f32.mrf.mxu1  ;;  %v12609_v0 = vpop.f32.mrf.mxu0 }
0x2359   : > { %13446 = vst [vmem:[#allocation29_spill] sm:$0xff] %v12609_v0 }
0x235a   : > { %v12611_v31 = vpop.f32.mrf.mxu1  ;;  %v12613_v25 = vpop.f32.mrf.mxu0 }
0x235b   : > { %13447 = vst [vmem:[#allocation30_spill] sm:$0xff] %v12613_v25 }
0x235c   : > { %v12615_v3 = vpop.f32.mrf.mxu1  ;;  %v12617_v6 = vpop.f32.mrf.mxu0 }
0x235d   : > { %13448 = vst [vmem:[#allocation31_spill] sm:$0xff] %v12617_v6 }
0x235e   : > { %v12619_v47 = vpop.f32.mrf.mxu1  ;;  %v12621_v61 = vpop.f32.mrf.mxu0 }
0x235f   : > { %13449 = vst [vmem:[#allocation32_spill] sm:$0xff] %v12621_v61 }
0x2360   : > { %v12623_v63 = vpop.f32.mrf.mxu1  ;;  %v12625_v62 = vpop.f32.mrf.mxu0 }
0x2361   : > { %13450 = vst [vmem:[#allocation33_spill] sm:$0xff] %v12625_v62 }
0x2362   : > { %v10186_v2 = vpop.f32.mrf.mxu1  ;;  %v10193_v28 = vpop.f32.mrf.mxu0 }
0x2363   : > { %v5950_v40 = vmul.f32 2.0, %v10186_v2  ;;  %v6324_v23 = vmul.f32 2.0, %v10193_v28 }
0x2364   : > { %v5934_v5 = vpop.f32.mrf.mxu1  ;;  %v6308_v21 = vpop.f32.mrf.mxu0 }
0x2365   : > { %v5952_v12 = vsub.f32 %v5950_v40, %v12522_v49  ;;  %v6326_v58 = vsub.f32 %v6324_v23, %v12540_v10  ;;  %v5949_v1 = vmul.f32 2.0, %v5934_v5  ;;  %v6323_v15 = vmul.f32 2.0, %v6308_v21 }
0x2367   : > { %v5951_v51 = vsub.f32 %v5949_v1, %v12515_v60  ;;  %v6325_v34 = vsub.f32 %v6323_v15, %v12525_v38  ;;  %v5990_v50 = vsub.f32 %v5952_v12, %v5988_v36  ;;  %v6364_v30 = vsub.f32 %v6326_v58, %v6362_v42 }
0x2369   : > { %v5989_v2 = vsub.f32 %v5951_v51, %v5988_v36  ;;  %v5994_v28 = vsel %vm867_vm3, %v5990_v50, -inf  ;;  %v6363_v22 = vsub.f32 %v6325_v34, %v6362_v42  ;;  %v6368_v49 = vsel %vm867_vm3, %v6364_v30, -inf }
0x236a   : > { %5995 = vmax.xlane.f32.xlu1 %v5994_v28  ;;  %v13451_v28 = vmov 0.0  }
0x236b   : > { %v5991_v25 = vsel %vm867_vm3, %v5989_v2, -inf  ;;  %v6365_v10 = vsel %vm867_vm3, %v6363_v22, -inf }
0x236c   : > { %5992 = vmax.xlane.f32.xlu0 %v5991_v25 }
0x236e   : > { %6369 = vmax.xlane.f32.xlu1 %v6368_v49 }
0x2370   : > { %6366 = vmax.xlane.f32.xlu0 %v6365_v10 }
0x23f3   : > { %v5996_v4 = vpop.xlane.xlu1 %5995 }
0x23f4   : > { %vm5998_vm13 = vcmp.eq.f32.partialorder %v5990_v50, %v5996_v4 }
0x23f5   : > { %v6000_v60 = vsel %vm5998_vm13, %v11301_v11, 16.0  ;;  %v5993_v38 = vpop.xlane.xlu0 %5992 }
0x23f6   : > { %vm5997_vm14 = vcmp.eq.f32.partialorder %v5989_v2, %v5993_v38  ;;  %v6004_v40 = vsel %vm867_vm3, %v6000_v60, inf }
0x23f7   : > { %v5999_v23 = vsel %vm5997_vm14, %v11301_v11, 16.0  ;;  %6005 = vmin.xlane.f32.xlu1 %v6004_v40  ;;  %v6370_v36 = vpop.xlane.xlu1 %6369 }
0x23f8   : > { %vm6372_vm0 = vcmp.eq.f32.partialorder %v6364_v30, %v6370_v36  ;;  %v6001_v25 = vsel %vm867_vm3, %v5999_v23, inf }
0x23f9   : > { %v6374_v5 = vsel %vm6372_vm0, %v11301_v11, 16.0  ;;  %6002 = vmin.xlane.f32.xlu0 %v6001_v25  ;;  %v6367_v21 = vpop.xlane.xlu0 %6366 }
0x23fa   : > { %vm6371_vm1 = vcmp.eq.f32.partialorder %v6363_v22, %v6367_v21  ;;  %v6378_v42 = vsel %vm867_vm3, %v6374_v5, inf }
0x23fb   : > { %v6373_v12 = vsel %vm6371_vm1, %v11301_v11, 16.0  ;;  %6379 = vmin.xlane.f32.xlu1 %v6378_v42 }
0x23fc   : > { %v6375_v58 = vsel %vm867_vm3, %v6373_v12, inf }
0x23fd   : > { %6376 = vmin.xlane.f32.xlu0 %v6375_v58 }
0x2480   : > { %v6006_v1 = vpop.xlane.xlu1 %6005 }
0x2481   : > { %vm6008_vm4 = vcmp.eq.f32.partialorder %v11301_v11, %v6006_v1 }
0x2482   : > { %v6014_v15 = vsel %vm6008_vm4, -inf, %v5990_v50  ;;  %v6003_v51 = vpop.xlane.xlu0 %6002  ;;  %v9354_v40 = vsel %vm6008_vm4, 1.0, %v13451_v28 }
0x2483   : > { %vm6007_vm5 = vcmp.eq.f32.partialorder %v11301_v11, %v6003_v51  ;;  %v6018_v34 = vsel %vm867_vm3, %v6014_v15, -inf }
0x2484   : > { %v9353_v49 = vsel %vm6007_vm5, 1.0, %v13451_v28  ;;  %v6013_v10 = vsel %vm6007_vm5, -inf, %v5989_v2  ;;  %6019 = vmax.xlane.f32.xlu1 %v6018_v34  ;;  %v6380_v4 = vpop.xlane.xlu1 %6379 }
0x2485   : > { %vm6382_vm6 = vcmp.eq.f32.partialorder %v11301_v11, %v6380_v4  ;;  %9361 = vmatmul.mubr.msk.f32.vlgmr.msra.gmra.mxu1 %vm867_vm3, %v9353_v49  ;;  %v6015_v60 = vsel %vm867_vm3, %v6013_v10, -inf }
0x2486   : > { %v6388_v38 = vsel %vm6382_vm6, -inf, %v6364_v30  ;;  %10195 = vmatpush3.xpose.msra.mxu1 %v12547_v41  ;;  %6016 = vmax.xlane.f32.xlu0 %v6015_v60  ;;  %v6377_v50 = vpop.xlane.xlu0 %6376  ;;  %v9370_v25 = vsel %vm6382_vm6, 1.0, %v13451_v28 }
0x2487   : > { %10196 = vmatprep.subr.mxu1 %v12549_v59  ;;  %vm6381_vm7 = vcmp.eq.f32.partialorder %v11301_v11, %v6377_v50  ;;  %v6392_v2 = vsel %vm867_vm3, %v6388_v38, -inf  ;;  %6179 = vmatprep.mubr.f32.mxu1 %v13451_v28 }
0x2488   : > { %v9369_v23 = vsel %vm6381_vm7, 1.0, %v13451_v28  ;;  %v6387_v36 = vsel %vm6381_vm7, -inf, %v6363_v22  ;;  %6393 = vmax.xlane.f32.xlu1 %v6392_v2 }
0x2489   : > { %9362 = vmatmul.mubr.msk.f32.gmra.mxu1 %vm867_vm3, %v9354_v40  ;;  %9377 = vmatmul.mubr.msk.f32.vlgmr.msra.gmra.mxu0 %vm867_vm3, %v9369_v23  ;;  %v6389_v30 = vsel %vm867_vm3, %v6387_v36, -inf }
0x248a   : > { %10197 = vmatpush3.xpose.msra.mxu1 %v12549_v59  ;;  %10202 = vmatpush3.xpose.msra.mxu0 %v12563_v14 }
0x248b   : > { %6885 = vmatprep.subr.mxu1 %v12607_v57  ;;  %6390 = vmax.xlane.f32.xlu0 %v6389_v30 }
0x248c   : > { %10203 = vmatprep.subr.mxu0 %v12560_v13  ;;  %6553 = vmatprep.mubr.f32.mxu0 %v13451_v28 }
0x248d   : > { %9378 = vmatmul.mubr.msk.f32.gmra.mxu0 %vm867_vm3, %v9370_v25  ;;  %6185 = vmatprep.mubr.f32.mxu1 %v13451_v28 }
0x248e   : > { %10204 = vmatpush3.xpose.msra.mxu0 %v12560_v13  ;;  %6559 = vmatprep.mubr.f32.mxu0 %v13451_v28 }
0x248f   : > { %7259 = vmatprep.subr.mxu0 %v12623_v63 }
0x250d   : > { %v6020_v57 = vpop.xlane.xlu1 %6019 }
0x250e   : > { %vm6022_vm2 = vcmp.eq.f32.partialorder %v6014_v15, %v6020_v57 }
0x250f   : > { %v6024_v22 = vsel %vm6022_vm2, %v11301_v11, 16.0  ;;  %v6017_v5 = vpop.xlane.xlu0 %6016 }
0x2510   : > { %vm6021_vm8 = vcmp.eq.f32.partialorder %v6013_v10, %v6017_v5  ;;  %v6028_v21 = vsel %vm867_vm3, %v6024_v22, inf }
0x2511   : > { %v6023_v42 = vsel %vm6021_vm8, %v11301_v11, 16.0  ;;  %6029 = vmin.xlane.f32.xlu1 %v6028_v21  ;;  %v6394_v12 = vpop.xlane.xlu1 %6393 }
0x2512   : > { %vm6396_vm9 = vcmp.eq.f32.partialorder %v6388_v38, %v6394_v12  ;;  %v6025_v58 = vsel %vm867_vm3, %v6023_v42, inf }
0x2513   : > { %v6398_v1 = vsel %vm6396_vm9, %v11301_v11, 16.0  ;;  %6026 = vmin.xlane.f32.xlu0 %v6025_v58 }
0x2514   : > { %v6391_v51 = vpop.xlane.xlu0 %6390  ;;  %v6402_v63 = vsel %vm867_vm3, %v6398_v1, inf }
0x2515   : > { %vm6395_vm10 = vcmp.eq.f32.partialorder %v6387_v36, %v6391_v51  ;;  %6403 = vmin.xlane.f32.xlu1 %v6402_v63 }
0x2516   : > { %v6397_v34 = vsel %vm6395_vm10, %v11301_v11, 16.0 }
0x2517   : > { %v6399_v49 = vsel %vm867_vm3, %v6397_v34, inf }
0x2518   : > { %6400 = vmin.xlane.f32.xlu0 %v6399_v49 }
0x259a   : > { %v6030_v4 = vpop.xlane.xlu1 %6029 }
0x259b   : > { %vm6032_vm11 = vcmp.eq.f32.partialorder %v11301_v11, %v6030_v4 }
0x259c   : > { %v6038_v60 = vsel %vm6032_vm11, -inf, %v6014_v15  ;;  %v6027_v50 = vpop.xlane.xlu0 %6026 }
0x259d   : > { %vm6031_vm12 = vcmp.eq.f32.partialorder %v11301_v11, %v6027_v50  ;;  %v6042_v2 = vsel %vm867_vm3, %v6038_v60, -inf }
0x259e   : > { %v9355_v40 = vsel %vm6031_vm12, 1.0, %v13451_v28  ;;  %v6037_v23 = vsel %vm6031_vm12, -inf, %v6013_v10  ;;  %6043 = vmax.xlane.f32.xlu1 %v6042_v2  ;;  %v6404_v30 = vpop.xlane.xlu1 %6403  ;;  %v9356_v10 = vsel %vm6032_vm11, 1.0, %v13451_v28 }
0x259f   : > { %vm6406_vm13 = vcmp.eq.f32.partialorder %v11301_v11, %v6404_v30  ;;  %9363 = vmatmul.mubr.msk.f32.gmra.mxu1 %vm867_vm3, %v9355_v40  ;;  %v6039_v25 = vsel %vm867_vm3, %v6037_v23, -inf }
0x25a0   : > { %v6412_v57 = vsel %vm6406_vm13, -inf, %v6388_v38  ;;  %6040 = vmax.xlane.f32.xlu0 %v6039_v25  ;;  %6191 = vmatprep.mubr.f32.mxu1 %v13451_v28  ;;  %v9372_v42 = vsel %vm6406_vm13, 1.0, %v13451_v28 }
0x25a1   : > { %v6401_v15 = vpop.xlane.xlu0 %6400  ;;  %v6416_v22 = vsel %vm867_vm3, %v6412_v57, -inf }
0x25a2   : > { %vm6405_vm14 = vcmp.eq.f32.partialorder %v11301_v11, %v6401_v15  ;;  %6417 = vmax.xlane.f32.xlu1 %v6416_v22 }
0x25a3   : > { %v9371_v5 = vsel %vm6405_vm14, 1.0, %v13451_v28  ;;  %v6411_v21 = vsel %vm6405_vm14, -inf, %v6387_v36  ;;  %9364 = vmatmul.mubr.msk.f32.gmra.mxu1 %vm867_vm3, %v9356_v10 }
0x25a4   : > { %9379 = vmatmul.mubr.msk.f32.gmra.mxu0 %vm867_vm3, %v9371_v5  ;;  %v6413_v38 = vsel %vm867_vm3, %v6411_v21, -inf  ;;  %6197 = vmatprep.mubr.f32.mxu1 %v13451_v28 }
0x25a5   : > { %6414 = vmax.xlane.f32.xlu0 %v6413_v38  ;;  %6565 = vmatprep.mubr.f32.mxu0 %v13451_v28 }
0x25a8   : > { %9380 = vmatmul.mubr.msk.f32.gmra.mxu0 %vm867_vm3, %v9372_v42 }
0x25a9   : > { %6571 = vmatprep.mubr.f32.mxu0 %v13451_v28 }
0x2627   : > { %v6044_v36 = vpop.xlane.xlu1 %6043 }
0x2628   : > { %vm6046_vm0 = vcmp.eq.f32.partialorder %v6038_v60, %v6044_v36 }
0x2629   : > { %v6048_v12 = vsel %vm6046_vm0, %v11301_v11, 16.0  ;;  %v6041_v58 = vpop.xlane.xlu0 %6040 }
0x262a   : > { %vm6045_vm1 = vcmp.eq.f32.partialorder %v6037_v23, %v6041_v58  ;;  %v6052_v1 = vsel %vm867_vm3, %v6048_v12, inf }
0x262b   : > { %v6047_v51 = vsel %vm6045_vm1, %v11301_v11, 16.0  ;;  %6053 = vmin.xlane.f32.xlu1 %v6052_v1  ;;  %v6418_v63 = vpop.xlane.xlu1 %6417 }
0x262c   : > { %vm6420_vm4 = vcmp.eq.f32.partialorder %v6412_v57, %v6418_v63  ;;  %v6049_v34 = vsel %vm867_vm3, %v6047_v51, inf }
0x262d   : > { %v6422_v49 = vsel %vm6420_vm4, %v11301_v11, 16.0  ;;  %6050 = vmin.xlane.f32.xlu0 %v6049_v34 }
0x262e   : > { %v6415_v4 = vpop.xlane.xlu0 %6414  ;;  %v6426_v50 = vsel %vm867_vm3, %v6422_v49, inf }
0x262f   : > { %vm6419_vm5 = vcmp.eq.f32.partialorder %v6411_v21, %v6415_v4  ;;  %6427 = vmin.xlane.f32.xlu1 %v6426_v50 }
0x2630   : > { %v6421_v2 = vsel %vm6419_vm5, %v11301_v11, 16.0 }
0x2631   : > { %v6423_v40 = vsel %vm867_vm3, %v6421_v2, inf }
0x2632   : > { %6424 = vmin.xlane.f32.xlu0 %v6423_v40 }
0x26b4   : > { %v6054_v30 = vpop.xlane.xlu1 %6053 }
0x26b5   : > { %vm6056_vm6 = vcmp.eq.f32.partialorder %v11301_v11, %v6054_v30 }
0x26b6   : > { %v6062_v25 = vsel %vm6056_vm6, -inf, %v6038_v60  ;;  %v6051_v15 = vpop.xlane.xlu0 %6050 }
0x26b7   : > { %vm6055_vm7 = vcmp.eq.f32.partialorder %v11301_v11, %v6051_v15  ;;  %v6066_v22 = vsel %vm867_vm3, %v6062_v25, -inf }
0x26b8   : > { %v9357_v10 = vsel %vm6055_vm7, 1.0, %v13451_v28  ;;  %v6061_v5 = vsel %vm6055_vm7, -inf, %v6037_v23  ;;  %6067 = vmax.xlane.f32.xlu1 %v6066_v22  ;;  %v6428_v38 = vpop.xlane.xlu1 %6427  ;;  %v9358_v23 = vsel %vm6056_vm6, 1.0, %v13451_v28 }
0x26b9   : > { %vm6430_vm2 = vcmp.eq.f32.partialorder %v11301_v11, %v6428_v38  ;;  %9365 = vmatmul.mubr.msk.f32.gmra.mxu1 %vm867_vm3, %v9357_v10  ;;  %v6063_v42 = vsel %vm867_vm3, %v6061_v5, -inf  ;;  %v6692_v10 = vmul.f32 %v12547_v41, %v12547_v41  ;;  %v7066_v38 = vmul.f32 %v12563_v14, %v12563_v14 }
0x26ba   : > { %v6436_v36 = vsel %vm6430_vm2, -inf, %v6412_v57  ;;  %6064 = vmax.xlane.f32.xlu0 %v6063_v42  ;;  %6203 = vmatprep.mubr.f32.mxu1 %v13451_v28  ;;  %v9374_v51 = vsel %vm6430_vm2, 1.0, %v13451_v28  ;;  %v7065_v42 = vmul.f32 %v12560_v13, %v12560_v13 }
0x26bb   : > { %v6425_v60 = vpop.xlane.xlu0 %6424  ;;  %v6440_v12 = vsel %vm867_vm3, %v6436_v36, -inf }
0x26bc   : > { %vm6429_vm8 = vcmp.eq.f32.partialorder %v11301_v11, %v6425_v60  ;;  %6441 = vmax.xlane.f32.xlu1 %v6440_v12  ;;  %v6549_v12 = vpop.f32.mrf.mxu0 }
0x26bd   : > { %v9373_v58 = vsel %vm6429_vm8, 1.0, %v13451_v28  ;;  %v6435_v1 = vsel %vm6429_vm8, -inf, %v6411_v21  ;;  %9366 = vmatmul.mubr.msk.f32.gmra.mxu1 %vm867_vm3, %v9358_v23 }
0x26be   : > { %9381 = vmatmul.mubr.msk.f32.gmra.mxu0 %vm867_vm3, %v9373_v58  ;;  %v6437_v57 = vsel %vm867_vm3, %v6435_v1, -inf  ;;  %6209 = vmatprep.mubr.f32.mxu1 %v13451_v28  ;;  %v6551_v58 = vpop.f32.mrf.mxu0 }
0x26bf   : > { %6438 = vmax.xlane.f32.xlu0 %v6437_v57  ;;  %6577 = vmatprep.mubr.f32.mxu0 %v13451_v28 }
0x26c0   : > { %v6555_v57 = vpop.f32.mrf.mxu0 }
0x26c2   : > { %9382 = vmatmul.mubr.msk.f32.gmra.mxu0 %vm867_vm3, %v9374_v51 }
0x26c3   : > { %6583 = vmatprep.mubr.f32.mxu0 %v13451_v28 }
0x2741   : > { %v6068_v21 = vpop.xlane.xlu1 %6067 }
0x2742   : > { %vm6070_vm9 = vcmp.eq.f32.partialorder %v6062_v25, %v6068_v21  ;;  %v12771_v21 = vpop.f32.mrf.mxu0 }
0x2743   : > { %v6072_v63 = vsel %vm6070_vm9, %v11301_v11, 16.0  ;;  %v6065_v34 = vpop.xlane.xlu0 %6064 }
0x2744   : > { %vm6069_vm10 = vcmp.eq.f32.partialorder %v6061_v5, %v6065_v34  ;;  %v6076_v49 = vsel %vm867_vm3, %v6072_v63, inf  ;;  %v6691_v5 = vmul.f32 %v12549_v59, %v12549_v59  ;;  %v6561_v34 = vpop.f32.mrf.mxu0 }
0x2745   : > { %v6071_v4 = vsel %vm6069_vm10, %v11301_v11, 16.0  ;;  %6077 = vmin.xlane.f32.xlu1 %v6076_v49  ;;  %v6442_v50 = vpop.xlane.xlu1 %6441 }
0x2746   : > { %vm6444_vm11 = vcmp.eq.f32.partialorder %v6436_v36, %v6442_v50  ;;  %v6073_v2 = vsel %vm867_vm3, %v6071_v4, inf  ;;  %v6175_v36 = vpop.f32.mrf.mxu1  ;;  %v6563_v4 = vpop.f32.mrf.mxu0 }
0x2747   : > { %v6446_v40 = vsel %vm6444_vm11, %v11301_v11, 16.0  ;;  %6074 = vmin.xlane.f32.xlu0 %v6073_v2  ;;  %v6597_v0 = vmax.f32 %v6551_v58, %v6563_v4 }
0x2748   : > { %v6439_v30 = vpop.xlane.xlu0 %6438  ;;  %v6450_v15 = vsel %vm867_vm3, %v6446_v40, inf  ;;  %v6177_v60 = vpop.f32.mrf.mxu1 }
0x2749   : > { %vm6443_vm12 = vcmp.eq.f32.partialorder %v6435_v1, %v6439_v30  ;;  %6451 = vmin.xlane.f32.xlu1 %v6450_v15  ;;  %v6567_v40 = vpop.f32.mrf.mxu0 }
0x274a   : > { %v6445_v25 = vsel %vm6443_vm12, %v11301_v11, 16.0  ;;  %v6181_v23 = vpop.f32.mrf.mxu1 }
0x274b   : > { %v6447_v22 = vsel %vm867_vm3, %v6445_v25, inf }
0x274c   : > { %6448 = vmin.xlane.f32.xlu0 %v6447_v22  ;;  %v12769_v1 = vpop.f32.mrf.mxu1 }
0x274d   : > { %6695 = vadd.xlane.f32.xlu1 %v6692_v10 }
0x274e   : > { %v6187_v51 = vpop.f32.mrf.mxu1 }
0x274f   : > { %v6222_v2 = vmax.f32 %v6175_v36, %v6187_v51  ;;  %v6598_v51 = vmax.f32 %v6555_v57, %v6567_v40 }
0x2750   : > { %6693 = vadd.xlane.f32.xlu0 %v6691_v5  ;;  %v6189_v63 = vpop.f32.mrf.mxu1  ;;  %v12777_v5 = vpop.f32.mrf.mxu0 }
0x2751   : > { %7069 = vadd.xlane.f32.xlu1 %v7066_v38  ;;  %v6223_v15 = vmax.f32 %v6177_v60, %v6189_v63 }
0x2752   : > { %v6193_v49 = vpop.f32.mrf.mxu1 }
0x2753   : > { %v6224_v10 = vmax.f32 %v6181_v23, %v6193_v49 }
0x2754   : > { %7067 = vadd.xlane.f32.xlu0 %v7065_v42  ;;  %v12773_v50 = vpop.f32.mrf.mxu1  ;;  %v6596_v42 = vmax.f32 %v6549_v12, %v6561_v34 }
0x2779   : > { %v6199_v30 = vpop.f32.mrf.mxu1 }
0x277a   : > { %v12775_v25 = vmax.f32 %v6222_v2, %v6199_v30 }
0x277b   : > { %v6201_v22 = vpop.f32.mrf.mxu1 }
0x277c   : > { %v12779_v38 = vmax.f32 %v6223_v15, %v6201_v22 }
0x277d   : > { %v6205_v62 = vpop.f32.mrf.mxu1 }
0x277e   : > { %v12781_v61 = vmax.f32 %v6224_v10, %v6205_v62  ;;  %v6573_v6 = vpop.f32.mrf.mxu0  ;;  %v6599_v10 = vmax.f32 %v12771_v21, %v12777_v5 }
0x277f   : > { %v12783_v52 = vmax.f32 %v6596_v42, %v6573_v6 }
0x2780   : > { %v6575_v36 = vpop.f32.mrf.mxu0 }
0x2781   : > { %v12785_v53 = vmax.f32 %v6597_v0, %v6575_v36 }
0x2782   : > { %v6579_v60 = vpop.f32.mrf.mxu0 }
0x2783   : > { %v12787_v63 = vmax.f32 %v6598_v51, %v6579_v60 }
0x2784   : > { %v6581_v2 = vpop.f32.mrf.mxu0 }
0x2785   : > { %v6603_v51 = vmax.f32 %v6599_v10, %v6581_v2 }
0x27ce   : > { %v6078_v23 = vpop.xlane.xlu1 %6077 }
0x27cf   : > { %vm6080_vm14 = vcmp.eq.f32.partialorder %v11301_v11, %v6078_v23 }
0x27d0   : > { %v6075_v49 = vpop.xlane.xlu0 %6074  ;;  %v9360_v0 = vsel %vm6080_vm14, 1.0, %v13451_v28 }
0x27d1   : > { %vm6079_vm13 = vcmp.eq.f32.partialorder %v11301_v11, %v6075_v49 }
0x27d2   : > { %v9359_v12 = vsel %vm6079_vm13, 1.0, %v13451_v28  ;;  %v6452_v6 = vpop.xlane.xlu1 %6451 }
0x27d3   : > { %9367 = vmatmul.mubr.msk.f32.gmra.mxu1 %vm867_vm3, %v9359_v12  ;;  %vm6454_vm1 = vcmp.eq.f32.partialorder %v11301_v11, %v6452_v6 }
0x27d4   : > { %6215 = vmatprep.mubr.f32.mxu1 %v13451_v28  ;;  %v9376_v34 = vsel %vm6454_vm1, 1.0, %v13451_v28 }
0x27d5   : > { %v6449_v62 = vpop.xlane.xlu0 %6448 }
0x27d6   : > { %vm6453_vm0 = vcmp.eq.f32.partialorder %v11301_v11, %v6449_v62  ;;  %v6696_v4 = vpop.xlane.xlu1 %6695 }
0x27d7   : > { %v9375_v58 = vsel %vm6453_vm0, 1.0, %v13451_v28  ;;  %9368 = vmatmul.mubr.msk.f32.gmra.mxu1 %vm867_vm3, %v9360_v0 }
0x27d8   : > { %9383 = vmatmul.mubr.msk.f32.gmra.mxu0 %vm867_vm3, %v9375_v58  ;;  %10198 = vmatprep.mubr.f32.mxu1 %v12549_v59 }
0x27d9   : > { %v12801_v57 = vpop.xlane.xlu0 %6693  ;;  %6589 = vmatprep.mubr.f32.mxu0 %v13451_v28 }
0x27da   : > { %6701 = vxpose.xlu0.b32.start [1/2] (short) (narrow) %v12801_v57, 8 }
0x27db   : > { %10199 = vmatmul.mubr.f32.vlgmr.msra.gmra.mxu1 %v12547_v41  ;;  %v12819_v41 = vpop.xlane.xlu1 %7069 }
0x27dc   : > { %9384 = vmatmul.mubr.msk.f32.gmra.mxu0 %vm867_vm3, %v9376_v34  ;;  %6886 = vmatpush1.msra.mxu1 %v12603_v43 }
0x27dd   : > { %6887 = vmatprep.subr.mxu1 %v12599_v20  ;;  %10205 = vmatprep.mubr.f32.mxu0 %v12560_v13  ;;  %v12811_v59 = vpop.xlane.xlu0 %7067  ;;  %v6207_v13 = vpop.f32.mrf.mxu1 }
0x27de   : > { %6888 = vmatpush1.msra.mxu1 %v12595_v7  ;;  %6702 = vxpose.xlu0.b32.end [2/2] (short) (narrow) %v6696_v4, 8 }
0x27df   : > { %7075 = vxpose.xlu1.b32.start [1/2] (short) (narrow) %v12811_v59, 8  ;;  %6921 = vmatprep.mubr.f32.mxu1 %v13451_v28 }
0x27e0   : > { %10206 = vmatmul.mubr.f32.vlgmr.msra.gmra.mxu0 %v12563_v14  ;;  %v6225_v14 = vmax.f32 %v12769_v1, %v12773_v50 }
0x27e1   : > { %7260 = vmatpush1.msra.mxu0 %v12619_v47  ;;  %7295 = vmatprep.mubr.f32.mxu0 %v13451_v28 }
0x27e2   : > { %7261 = vmatprep.subr.mxu0 %v12615_v3  ;;  %v6229_v30 = vmax.f32 %v6225_v14, %v6207_v13 }
0x27e3   : > { %7262 = vmatpush1.msra.mxu0 %v12611_v31  ;;  %7076 = vxpose.xlu1.b32.end [2/2] (short) (narrow) %v12819_v41, 8 }
0x2856   : > { %v6717_v22 = vpop.trf.xlu0 }
0x285b   : > { %v7091_v0 = vpop.trf.xlu1 }
0x2893   : > { %v6211_v7 = vpop.f32.mrf.mxu1 }
0x2894   : > { %v6230_v20 = vmax.f32 %v12775_v25, %v6211_v7 }
0x2895   : > { %v6213_v43 = vpop.f32.mrf.mxu1 }
0x2896   : > { %v6231_v47 = vmax.f32 %v12779_v38, %v6213_v43  ;;  %v6234_v15 = vadd.f32 %v6230_v20, %v12579_v37 }
0x2897   : > { %v6217_v40 = vpop.f32.mrf.mxu1 }
0x2898   : > { %v6232_v3 = vmax.f32 %v12781_v61, %v6217_v40  ;;  %v6585_v31 = vpop.f32.mrf.mxu0  ;;  %v6235_v25 = vadd.f32 %v6231_v47, %v12581_v8  ;;  %v6736_v61 = vrot.slane %v6717_v22, %v11293_v54  ;;  %v6238_v23 = vmax.f32 %v6234_v15, 0.0 }
0x2899   : > { %v6604_v42 = vmax.f32 %v12783_v52, %v6585_v31  ;;  %v6219_v36 = vpop.f32.mrf.mxu1 }
0x289a   : > { %v6236_v1 = vadd.f32 %v6232_v3, %v12583_v48  ;;  %v6233_v50 = vmax.f32 %v6229_v30, %v6219_v36  ;;  %v6587_v38 = vpop.f32.mrf.mxu0  ;;  %v6239_v8 = vmax.f32 %v6235_v25, 0.0 }
0x289b   : > { %v6605_v60 = vmax.f32 %v12785_v53, %v6587_v38  ;;  %v10200_v37 = vpop.f32.mrf.mxu1  ;;  %v6608_v52 = vadd.f32 %v6604_v42, %v12587_v55  ;;  %v7110_v55 = vrot.slane %v7091_v0, %v11293_v54 }
0x289c   : > { %v6240_v49 = vmax.f32 %v6236_v1, 0.0  ;;  %v6237_v12 = vadd.f32 %v6233_v50, %v12585_v17  ;;  %v6591_v21 = vpop.f32.mrf.mxu0  ;;  %v6698_v5 = vmul.f32 2.0, %v10200_v37 }
0x289d   : > { %v6609_v6 = vadd.f32 %v6605_v60, %v12589_v44  ;;  %v6606_v48 = vmax.f32 %v12787_v63, %v6591_v21  ;;  %v6682_v62 = vpop.f32.mrf.mxu1  ;;  %v6612_v63 = vmax.f32 %v6608_v52, 0.0 }
0x289e   : > { %v12841_v58 = vpack.c.bf16 %v6240_v49, %v6238_v23  ;;  %v6241_v53 = vmax.f32 %v6237_v12, 0.0  ;;  %v6700_v34 = vsub.f32 %v6698_v5, %v6696_v4  ;;  %v6593_v13 = vpop.f32.mrf.mxu0  ;;  %v6697_v7 = vmul.f32 2.0, %v6682_v62 }
0x289f   : > { %v6610_v20 = vadd.f32 %v6606_v48, %v12591_v46  ;;  %v6607_v17 = vmax.f32 %v6603_v51, %v6593_v13  ;;  %v6613_v15 = vmax.f32 %v6609_v6, 0.0 }
0x28a0   : > { %v6699_v43 = vsub.f32 %v6697_v7, %v12801_v57  ;;  %v6738_v14 = vsub.f32 %v6700_v34, %v6736_v61  ;;  %v10207_v2 = vpop.f32.mrf.mxu0  ;;  %v12846_v44 = vpack.c.bf16 %v6241_v53, %v6239_v8 }
0x28a1   : > { %v6614_v47 = vmax.f32 %v6610_v20, 0.0  ;;  %v6611_v40 = vadd.f32 %v6607_v17, %v12593_v35  ;;  %v7072_v30 = vmul.f32 2.0, %v10207_v2 }
0x28a2   : > { %v6737_v4 = vsub.f32 %v6699_v43, %v6736_v61  ;;  %v7056_v3 = vpop.f32.mrf.mxu0  ;;  %v6742_v31 = vsel %vm867_vm3, %v6738_v14, -inf }
0x28a3   : > { %v12850_v46 = vpack.c.bf16 %v6614_v47, %v6612_v63  ;;  %v6615_v22 = vmax.f32 %v6611_v40, 0.0  ;;  %v7074_v57 = vsub.f32 %v7072_v30, %v12819_v41  ;;  %v7071_v10 = vmul.f32 2.0, %v7056_v3  ;;  %6743 = vmax.xlane.f32.xlu1 %v6742_v31 }
0x28a4   : > { %v6739_v54 = vsel %vm867_vm3, %v6737_v4, -inf }
0x28a5   : > { %v7073_v25 = vsub.f32 %v7071_v10, %v12811_v59  ;;  %v7112_v42 = vsub.f32 %v7074_v57, %v7110_v55  ;;  %6740 = vmax.xlane.f32.xlu0 %v6739_v54  ;;  %v12855_v35 = vpack.c.bf16 %v6615_v22, %v6613_v15 }
0x28a7   : > { %v7111_v36 = vsub.f32 %v7073_v25, %v7110_v55  ;;  %v7116_v1 = vsel %vm867_vm3, %v7112_v42, -inf }
0x28a8   : > { %7117 = vmax.xlane.f32.xlu1 %v7116_v1 }
0x28a9   : > { %v7113_v50 = vsel %vm867_vm3, %v7111_v36, -inf }
0x28aa   : > { %7114 = vmax.xlane.f32.xlu0 %v7113_v50 }
0x292c   : > { %v6744_v38 = vpop.xlane.xlu1 %6743 }
0x292d   : > { %vm6746_vm4 = vcmp.eq.f32.partialorder %v6738_v14, %v6744_v38 }
0x292e   : > { %v6748_v41 = vsel %vm6746_vm4, %v11301_v11, 16.0  ;;  %v6741_v51 = vpop.xlane.xlu0 %6740 }
0x292f   : > { %vm6745_vm5 = vcmp.eq.f32.partialorder %v6737_v4, %v6741_v51  ;;  %v6752_v60 = vsel %vm867_vm3, %v6748_v41, inf }
0x2930   : > { %v6747_v59 = vsel %vm6745_vm5, %v11301_v11, 16.0  ;;  %6753 = vmin.xlane.f32.xlu1 %v6752_v60 }
0x2931   : > { %v7118_v37 = vpop.xlane.xlu1 %7117  ;;  %v6749_v61 = vsel %vm867_vm3, %v6747_v59, inf }
0x2932   : > { %vm7120_vm6 = vcmp.eq.f32.partialorder %v7112_v42, %v7118_v37  ;;  %6750 = vmin.xlane.f32.xlu0 %v6749_v61 }
0x2933   : > { %v7122_v23 = vsel %vm7120_vm6, %v11301_v11, 16.0  ;;  %v7115_v49 = vpop.xlane.xlu0 %7114 }
0x2934   : > { %vm7119_vm7 = vcmp.eq.f32.partialorder %v7111_v36, %v7115_v49  ;;  %v7126_v12 = vsel %vm867_vm3, %v7122_v23, inf }
0x2935   : > { %v7121_v21 = vsel %vm7119_vm7, %v11301_v11, 16.0  ;;  %7127 = vmin.xlane.f32.xlu1 %v7126_v12 }
0x2936   : > { %v7123_v5 = vsel %vm867_vm3, %v7121_v21, inf }
0x2937   : > { %7124 = vmin.xlane.f32.xlu0 %v7123_v5 }
0x29b9   : > { %v6754_v8 = vpop.xlane.xlu1 %6753 }
0x29ba   : > { %vm6756_vm2 = vcmp.eq.f32.partialorder %v11301_v11, %v6754_v8 }
0x29bb   : > { %v6762_v52 = vsel %vm6756_vm2, -inf, %v6738_v14  ;;  %v6751_v6 = vpop.xlane.xlu0 %6750  ;;  %v9386_v20 = vsel %vm6756_vm2, 1.0, %v13451_v28 }
0x29bc   : > { %vm6755_vm8 = vcmp.eq.f32.partialorder %v11301_v11, %v6751_v6  ;;  %v6766_v48 = vsel %vm867_vm3, %v6762_v52, -inf }
0x29bd   : > { %v9385_v62 = vsel %vm6755_vm8, 1.0, %v13451_v28  ;;  %v6761_v0 = vsel %vm6755_vm8, -inf, %v6737_v4  ;;  %6767 = vmax.xlane.f32.xlu1 %v6766_v48 }
0x29be   : > { %v7128_v53 = vpop.xlane.xlu1 %7127  ;;  %9393 = vmatmul.mubr.msk.f32.vlgmr.msra.gmra.mxu1 %vm867_vm3, %v9385_v62  ;;  %v6763_v34 = vsel %vm867_vm3, %v6761_v0, -inf }
0x29bf   : > { %vm7130_vm9 = vcmp.eq.f32.partialorder %v11301_v11, %v7128_v53  ;;  %6764 = vmax.xlane.f32.xlu0 %v6763_v34  ;;  %6927 = vmatprep.mubr.f32.mxu1 %v13451_v28 }
0x29c0   : > { %v7136_v13 = vsel %vm7130_vm9, -inf, %v7112_v42  ;;  %v7125_v7 = vpop.xlane.xlu0 %7124  ;;  %v9402_v55 = vsel %vm7130_vm9, 1.0, %v13451_v28 }
0x29c1   : > { %vm7129_vm10 = vcmp.eq.f32.partialorder %v11301_v11, %v7125_v7  ;;  %v7140_v17 = vsel %vm867_vm3, %v7136_v13, -inf }
0x29c2   : > { %v9401_v43 = vsel %vm7129_vm10, 1.0, %v13451_v28  ;;  %v7135_v14 = vsel %vm7129_vm10, -inf, %v7111_v36  ;;  %7141 = vmax.xlane.f32.xlu1 %v7140_v17  ;;  %9394 = vmatmul.mubr.msk.f32.gmra.mxu1 %vm867_vm3, %v9386_v20 }
0x29c3   : > { %9409 = vmatmul.mubr.msk.f32.vlgmr.msra.gmra.mxu0 %vm867_vm3, %v9401_v43  ;;  %v7137_v2 = vsel %vm867_vm3, %v7135_v14, -inf  ;;  %6933 = vmatprep.mubr.f32.mxu1 %v13451_v28 }
0x29c4   : > { %7138 = vmax.xlane.f32.xlu0 %v7137_v2  ;;  %7301 = vmatprep.mubr.f32.mxu0 %v13451_v28 }
0x29c7   : > { %9410 = vmatmul.mubr.msk.f32.gmra.mxu0 %vm867_vm3, %v9402_v55 }
0x29c8   : > { %7307 = vmatprep.mubr.f32.mxu0 %v13451_v28 }
0x2a46   : > { %v6768_v63 = vpop.xlane.xlu1 %6767 }
0x2a47   : > { %vm6770_vm11 = vcmp.eq.f32.partialorder %v6762_v52, %v6768_v63 }
0x2a48   : > { %v6772_v47 = vsel %vm6770_vm11, %v11301_v11, 16.0  ;;  %v6765_v40 = vpop.xlane.xlu0 %6764 }
0x2a49   : > { %vm6769_vm12 = vcmp.eq.f32.partialorder %v6761_v0, %v6765_v40  ;;  %v6776_v30 = vsel %vm867_vm3, %v6772_v47, inf }
0x2a4a   : > { %v6771_v15 = vsel %vm6769_vm12, %v11301_v11, 16.0  ;;  %6777 = vmin.xlane.f32.xlu1 %v6776_v30 }
0x2a4b   : > { %v7142_v4 = vpop.xlane.xlu1 %7141  ;;  %v6773_v3 = vsel %vm867_vm3, %v6771_v15, inf }
0x2a4c   : > { %vm7144_vm13 = vcmp.eq.f32.partialorder %v7136_v13, %v7142_v4  ;;  %6774 = vmin.xlane.f32.xlu0 %v6773_v3 }
0x2a4d   : > { %v7146_v31 = vsel %vm7144_vm13, %v11301_v11, 16.0  ;;  %v7139_v22 = vpop.xlane.xlu0 %7138 }
0x2a4e   : > { %vm7143_vm14 = vcmp.eq.f32.partialorder %v7135_v14, %v7139_v22  ;;  %v7150_v57 = vsel %vm867_vm3, %v7146_v31, inf }
0x2a4f   : > { %v7145_v10 = vsel %vm7143_vm14, %v11301_v11, 16.0  ;;  %7151 = vmin.xlane.f32.xlu1 %v7150_v57 }
0x2a50   : > { %v7147_v54 = vsel %vm867_vm3, %v7145_v10, inf }
0x2a51   : > { %7148 = vmin.xlane.f32.xlu0 %v7147_v54  ;;  %v10403_v54 = vld [vmem:[%s13392_s10 + $0x60] ss:$16 sps:$4 sm:$0xff]  }
0x2ad3   : > { %v6778_v25 = vpop.xlane.xlu1 %6777 }
0x2ad4   : > { %vm6780_vm0 = vcmp.eq.f32.partialorder %v11301_v11, %v6778_v25  ;;  %v10405_v25 = vld [vmem:[%s13392_s10 + $0x64] ss:$16 sps:$4 sm:$0xff]  }
0x2ad5   : > { %v6786_v42 = vsel %vm6780_vm0, -inf, %v6762_v52  ;;  %v6775_v36 = vpop.xlane.xlu0 %6774  ;;  %v9388_v37 = vsel %vm6780_vm0, 1.0, %v13451_v28  ;;  %7484 = vmatprep.subr.bf16.mxu1 %v10405_v25  ;;  %v10447_v25 = vld [vmem:[#allocation11 + $0x2c] ss:$16 sps:$4 sm:$0xff]  }
0x2ad6   : > { %vm6779_vm1 = vcmp.eq.f32.partialorder %v11301_v11, %v6775_v36  ;;  %v6790_v1 = vsel %vm867_vm3, %v6786_v42, -inf  ;;  %7485 = vmatpush1.bf16.msra.mxu1 %v10403_v54  ;;  %v10444_v54 = vld [vmem:[#allocation11 + $0x4] ss:$16 sps:$4 sm:$0xff]  }
0x2ad7   : > { %v9387_v50 = vsel %vm6779_vm1, 1.0, %v13451_v28  ;;  %v6785_v38 = vsel %vm6779_vm1, -inf, %v6761_v0  ;;  %6791 = vmax.xlane.f32.xlu1 %v6790_v1 }
0x2ad8   : > { %v7152_v41 = vpop.xlane.xlu1 %7151  ;;  %9395 = vmatmul.mubr.msk.f32.gmra.mxu1 %vm867_vm3, %v9387_v50  ;;  %v6787_v51 = vsel %vm867_vm3, %v6785_v38, -inf }
0x2ad9   : > { %vm7154_vm4 = vcmp.eq.f32.partialorder %v11301_v11, %v7152_v41  ;;  %6788 = vmax.xlane.f32.xlu0 %v6787_v51  ;;  %6939 = vmatprep.mubr.f32.mxu1 %v13451_v28 }
0x2ada   : > { %v7160_v60 = vsel %vm7154_vm4, -inf, %v7136_v13  ;;  %v7149_v59 = vpop.xlane.xlu0 %7148  ;;  %v9404_v21 = vsel %vm7154_vm4, 1.0, %v13451_v28 }
0x2adb   : > { %vm7153_vm5 = vcmp.eq.f32.partialorder %v11301_v11, %v7149_v59  ;;  %v7164_v61 = vsel %vm867_vm3, %v7160_v60, -inf }
0x2adc   : > { %v9403_v23 = vsel %vm7153_vm5, 1.0, %v13451_v28  ;;  %v7159_v49 = vsel %vm7153_vm5, -inf, %v7135_v14  ;;  %7165 = vmax.xlane.f32.xlu1 %v7164_v61  ;;  %9396 = vmatmul.mubr.msk.f32.gmra.mxu1 %vm867_vm3, %v9388_v37 }
0x2add   : > { %9411 = vmatmul.mubr.msk.f32.gmra.mxu0 %vm867_vm3, %v9403_v23  ;;  %v7161_v12 = vsel %vm867_vm3, %v7159_v49, -inf  ;;  %6945 = vmatprep.mubr.f32.mxu1 %v13451_v28 }
0x2ade   : > { %7162 = vmax.xlane.f32.xlu0 %v7161_v12  ;;  %7313 = vmatprep.mubr.f32.mxu0 %v13451_v28  ;;  %v10411_v12 = vld [vmem:[%s13392_s10 + $0x6c] ss:$16 sps:$4 sm:$0xff]  }
0x2adf   : > { %7557 = vmatprep.subr.bf16.mxu0 %v10411_v12  ;;  %v10474_v12 = vld [vmem:[#allocation13 + $0x64] ss:$16 sps:$4 sm:$0xff]  }
0x2ae1   : > { %9412 = vmatmul.mubr.msk.f32.gmra.mxu0 %vm867_vm3, %v9404_v21  ;;  %v10406_v21 = vld [vmem:[%s13392_s10 + $0x40] ss:$16 sps:$4 sm:$0xff]  }
0x2ae2   : > { %7319 = vmatprep.mubr.f32.mxu0 %v13451_v28 }
0x2b60   : > { %v6792_v5 = vpop.xlane.xlu1 %6791 }
0x2b61   : > { %vm6794_vm6 = vcmp.eq.f32.partialorder %v6786_v42, %v6792_v5  ;;  %v10409_v5 = vld [vmem:[%s13392_s10 + $0x68] ss:$16 sps:$4 sm:$0xff]  }
0x2b62   : > { %v6796_v8 = vsel %vm6794_vm6, %v11301_v11, 16.0  ;;  %v6789_v52 = vpop.xlane.xlu0 %6788  ;;  %7558 = vmatpush1.bf16.msra.mxu0 %v10409_v5  ;;  %v10472_v5 = vld [vmem:[#allocation13 + $0x60] ss:$16 sps:$4 sm:$0xff]  }
0x2b63   : > { %vm6793_vm7 = vcmp.eq.f32.partialorder %v6785_v38, %v6789_v52  ;;  %v6800_v6 = vsel %vm867_vm3, %v6796_v8, inf  ;;  %v10414_v8 = vld [vmem:[%s13392_s10 + $0x24] ss:$16 sps:$4 sm:$0xff]   ;;  %v10417_v52 = vld [vmem:[%s13392_s10 + $0x4c] ss:$16 sps:$4 sm:$0xff]  }
0x2b64   : > { %v6795_v48 = vsel %vm6793_vm7, %v11301_v11, 16.0  ;;  %6801 = vmin.xlane.f32.xlu1 %v6800_v6  ;;  %v10412_v6 = vld [vmem:[%s13392_s10 + $0x20] ss:$16 sps:$4 sm:$0xff]   ;;  %7559 = vmatprep.subr.bf16.mxu0 %v10417_v52  ;;  %v10480_v52 = vld [vmem:[#allocation13 + $0x44] ss:$16 sps:$4 sm:$0xff]  }
0x2b65   : > { %v7166_v62 = vpop.xlane.xlu1 %7165  ;;  %v6797_v0 = vsel %vm867_vm3, %v6795_v48, inf  ;;  %v10415_v48 = vld [vmem:[%s13392_s10 + $0x48] ss:$16 sps:$4 sm:$0xff]  }
0x2b66   : > { %vm7168_vm2 = vcmp.eq.f32.partialorder %v7160_v60, %v7166_v62  ;;  %6798 = vmin.xlane.f32.xlu0 %v6797_v0  ;;  %7560 = vmatpush1.bf16.msra.mxu0 %v10415_v48  ;;  %v10420_v62 = vld [vmem:[%s13392_s10 + $0x4] ss:$16 sps:$4 sm:$0xff]   ;;  %v10423_v0 = vld [vmem:[%s13392_s10 + $0x2c] ss:$16 sps:$4 sm:$0xff]   ;;  %v10478_v48 = vld [vmem:[#allocation13 + $0x40] ss:$16 sps:$4 sm:$0xff]  }
0x2b67   : > { %v7170_v53 = vsel %vm7168_vm2, %v11301_v11, 16.0  ;;  %v7163_v34 = vpop.xlane.xlu0 %7162  ;;  %7561 = vmatprep.subr.bf16.mxu0 %v10423_v0  ;;  %v10489_v0 = vld [vmem:[#allocation13 + $0x4c] ss:$16 sps:$4 sm:$0xff]  }
0x2b68   : > { %vm7167_vm8 = vcmp.eq.f32.partialorder %v7159_v49, %v7163_v34  ;;  %v7174_v13 = vsel %vm867_vm3, %v7170_v53, inf  ;;  %v10418_v53 = vld [vmem:[%s13392_s10] ss:$16 sps:$4 sm:$0xff]   ;;  %v10421_v34 = vld [vmem:[%s13392_s10 + $0x28] ss:$16 sps:$4 sm:$0xff]  }
0x2b69   : > { %v7169_v7 = vsel %vm7167_vm8, %v11301_v11, 16.0  ;;  %7175 = vmin.xlane.f32.xlu1 %v7174_v13  ;;  %v10426_v13 = vld [vmem:[%s13392_s10 + $0xc] ss:$16 sps:$4 sm:$0xff]  }
0x2b6a   : > { %v7171_v20 = vsel %vm867_vm3, %v7169_v7, inf  ;;  %7562 = vmatpush1.bf16.msra.mxu0 %v10421_v34  ;;  %v10424_v7 = vld [vmem:[%s13392_s10 + $0x8] ss:$16 sps:$4 sm:$0xff]  }
0x2b6b   : > { %7172 = vmin.xlane.f32.xlu0 %v7171_v20  ;;  %7563 = vmatprep.subr.bf16.mxu0 %v10426_v13  ;;  %v10429_v20 = vld [vmem:[#allocation11 + $0x64] ss:$16 sps:$4 sm:$0xff]   ;;  %v10487_v34 = vld [vmem:[#allocation13 + $0x48] ss:$16 sps:$4 sm:$0xff]  }
0x2b6c   : > { %v10492_v13 = vld [vmem:[#allocation13 + $0x4] ss:$16 sps:$4 sm:$0xff]  }
0x2b6e   : > { %7564 = vmatpush1.bf16.msra.mxu0 %v10424_v7  ;;  %v10495_v7 = vld [vmem:[#allocation13 + $0x2c] ss:$16 sps:$4 sm:$0xff]  }
0x2bed   : > { %v6802_v17 = vpop.xlane.xlu1 %6801 }
0x2bee   : > { %vm6804_vm9 = vcmp.eq.f32.partialorder %v11301_v11, %v6802_v17  ;;  %v10435_v17 = vld [vmem:[#allocation11 + $0x6c] ss:$16 sps:$4 sm:$0xff]  }
0x2bef   : > { %v6810_v43 = vsel %vm6804_vm9, -inf, %v6786_v42  ;;  %v6799_v14 = vpop.xlane.xlu0 %6798  ;;  %v9390_v4 = vsel %vm6804_vm9, 1.0, %v13451_v28  ;;  %7783 = vmatprep.subr.bf16.mxu0 %v10435_v17  ;;  %v10501_v17 = vld [vmem:[#allocation14 + $0xe4] ss:$16 sps:$4 sm:$0xff]  }
0x2bf0   : > { %vm6803_vm10 = vcmp.eq.f32.partialorder %v11301_v11, %v6799_v14  ;;  %v6814_v2 = vsel %vm867_vm3, %v6810_v43, -inf }
0x2bf1   : > { %v9389_v55 = vsel %vm6803_vm10, 1.0, %v13451_v28  ;;  %v6809_v63 = vsel %vm6803_vm10, -inf, %v6785_v38  ;;  %6815 = vmax.xlane.f32.xlu1 %v6814_v2 }
0x2bf2   : > { %v7176_v47 = vpop.xlane.xlu1 %7175  ;;  %9397 = vmatmul.mubr.msk.f32.gmra.mxu1 %vm867_vm3, %v9389_v55  ;;  %v6811_v40 = vsel %vm867_vm3, %v6809_v63, -inf }
0x2bf3   : > { %vm7178_vm11 = vcmp.eq.f32.partialorder %v11301_v11, %v7176_v47  ;;  %6812 = vmax.xlane.f32.xlu0 %v6811_v40  ;;  %6951 = vmatprep.mubr.f32.mxu1 %v13451_v28 }
0x2bf4   : > { %v7184_v30 = vsel %vm7178_vm11, -inf, %v7160_v60  ;;  %v7173_v15 = vpop.xlane.xlu0 %7172  ;;  %v9406_v10 = vsel %vm7178_vm11, 1.0, %v13451_v28 }
0x2bf5   : > { %vm7177_vm12 = vcmp.eq.f32.partialorder %v11301_v11, %v7173_v15  ;;  %v7188_v3 = vsel %vm867_vm3, %v7184_v30, -inf  ;;  %v10427_v15 = vld [vmem:[#allocation11 + $0x60] ss:$16 sps:$4 sm:$0xff]  }
0x2bf6   : > { %v9405_v31 = vsel %vm7177_vm12, 1.0, %v13451_v28  ;;  %v7183_v22 = vsel %vm7177_vm12, -inf, %v7159_v49  ;;  %7189 = vmax.xlane.f32.xlu1 %v7188_v3  ;;  %9398 = vmatmul.mubr.msk.f32.gmra.mxu1 %vm867_vm3, %v9390_v4  ;;  %v10408_v49 = vld [vmem:[%s13392_s10 + $0x44] ss:$16 sps:$4 sm:$0xff]  }
0x2bf7   : > { %9413 = vmatmul.mubr.msk.f32.gmra.mxu0 %vm867_vm3, %v9405_v31  ;;  %v7185_v57 = vsel %vm867_vm3, %v7183_v22, -inf  ;;  %6957 = vmatprep.mubr.f32.mxu1 %v13451_v28  ;;  %v10432_v4 = vld [vmem:[#allocation11 + $0x44] ss:$16 sps:$4 sm:$0xff]   ;;  %v10433_v31 = vld [vmem:[#allocation11 + $0x68] ss:$16 sps:$4 sm:$0xff]  }
0x2bf8   : > { %7186 = vmax.xlane.f32.xlu0 %v7185_v57  ;;  %7325 = vmatprep.mubr.f32.mxu0 %v13451_v28  ;;  %v10441_v57 = vld [vmem:[#allocation11 + $0x4c] ss:$16 sps:$4 sm:$0xff]  }
0x2bf9   : > { %7486 = vmatprep.subr.bf16.mxu1 %v10408_v49  ;;  %v10466_v49 = vld [vmem:[#allocation13 + $0x80] ss:$16 sps:$4 sm:$0xff]  }
0x2bfa   : > { %7487 = vmatpush1.bf16.msra.mxu1 %v10406_v21  ;;  %v10477_v21 = vld [vmem:[#allocation13 + $0x8c] ss:$16 sps:$4 sm:$0xff]  }
0x2bfb   : > { %9414 = vmatmul.mubr.msk.f32.gmra.mxu0 %vm867_vm3, %v9406_v10  ;;  %7488 = vmatprep.subr.bf16.mxu1 %v10414_v8  ;;  %v10439_v10 = vld [vmem:[#allocation11 + $0x48] ss:$16 sps:$4 sm:$0xff]  }
0x2bfc   : > { %7331 = vmatprep.mubr.f32.mxu0 %v13451_v28  ;;  %v10475_v8 = vld [vmem:[#allocation13 + $0x88] ss:$16 sps:$4 sm:$0xff]  }
0x2bfe   : > { %7489 = vmatpush1.bf16.msra.mxu1 %v10412_v6  ;;  %v10483_v6 = vld [vmem:[#allocation13 + $0x6c] ss:$16 sps:$4 sm:$0xff]  }
0x2bff   : > { %7490 = vmatprep.subr.bf16.mxu1 %v10420_v62  ;;  %v10486_v62 = vld [vmem:[#allocation13 + $0x24] ss:$16 sps:$4 sm:$0xff]  }
0x2c02   : > { %7491 = vmatpush1.bf16.msra.mxu1 %v10418_v53  ;;  %v10484_v53 = vld [vmem:[#allocation13 + $0x20] ss:$16 sps:$4 sm:$0xff]  }
0x2c03   : > { %7710 = vmatprep.subr.bf16.mxu1 %v10429_v20  ;;  %v10490_v20 = vld [vmem:[#allocation13] ss:$16 sps:$4 sm:$0xff]  }
0x2c7a   : > { %v6816_v42 = vpop.xlane.xlu1 %6815 }
0x2c7b   : > { %vm6818_vm13 = vcmp.eq.f32.partialorder %v6810_v43, %v6816_v42  ;;  %v10442_v42 = vld [vmem:[#allocation11] ss:$16 sps:$4 sm:$0xff]  }
0x2c7c   : > { %v6820_v36 = vsel %vm6818_vm13, %v11301_v11, 16.0  ;;  %v6813_v1 = vpop.xlane.xlu0 %6812 }
0x2c7d   : > { %vm6817_vm14 = vcmp.eq.f32.partialorder %v6809_v63, %v6813_v1  ;;  %v6824_v50 = vsel %vm867_vm3, %v6820_v36, inf  ;;  %v10453_v36 = vld [vmem:[#allocation13 + $0xe4] ss:$16 sps:$4 sm:$0xff]   ;;  %v10450_v1 = vld [vmem:[#allocation11 + $0xc] ss:$16 sps:$4 sm:$0xff]  }
0x2c7e   : > { %v6819_v38 = vsel %vm6817_vm14, %v11301_v11, 16.0  ;;  %6825 = vmin.xlane.f32.xlu1 %v6824_v50  ;;  %v10448_v50 = vld [vmem:[#allocation11 + $0x8] ss:$16 sps:$4 sm:$0xff]  }
0x2c7f   : > { %v7190_v41 = vpop.xlane.xlu1 %7189  ;;  %v6821_v51 = vsel %vm867_vm3, %v6819_v38, inf  ;;  %v10459_v38 = vld [vmem:[#allocation13 + $0xec] ss:$16 sps:$4 sm:$0xff]  }
0x2c80   : > { %vm7192_vm0 = vcmp.eq.f32.partialorder %v7184_v30, %v7190_v41  ;;  %6822 = vmin.xlane.f32.xlu0 %v6821_v51  ;;  %v13452_v30 = vmov 0   ;;  %v10456_v41 = vld [vmem:[#allocation13 + $0xc4] ss:$16 sps:$4 sm:$0xff]   ;;  %v10454_v51 = vld [vmem:[#allocation13 + $0xc0] ss:$16 sps:$4 sm:$0xff]  }
0x2c81   : > { %v7194_v60 = vsel %vm7192_vm0, %v11301_v11, 16.0  ;;  %v7187_v59 = vpop.xlane.xlu0 %7186 }
0x2c82   : > { %vm7191_vm1 = vcmp.eq.f32.partialorder %v7183_v22, %v7187_v59  ;;  %v7198_v37 = vsel %vm867_vm3, %v7194_v60, inf  ;;  %v10438_v22 = vld [vmem:[#allocation11 + $0x24] ss:$16 sps:$4 sm:$0xff]   ;;  %v10465_v59 = vld [vmem:[#allocation13 + $0xcc] ss:$16 sps:$4 sm:$0xff]  }
0x2c83   : > { %v7193_v61 = vsel %vm7191_vm1, %v11301_v11, 16.0  ;;  %7199 = vmin.xlane.f32.xlu1 %v7198_v37  ;;  %v10462_v60 = vld [vmem:[#allocation13 + $0xa4] ss:$16 sps:$4 sm:$0xff]   ;;  %v10463_v37 = vld [vmem:[#allocation13 + $0xc8] ss:$16 sps:$4 sm:$0xff]  }
0x2c84   : > { %v7195_v23 = vsel %vm867_vm3, %v7193_v61, inf  ;;  %v10468_v61 = vld [vmem:[#allocation13 + $0x84] ss:$16 sps:$4 sm:$0xff]  }
0x2c85   : > { %7196 = vmin.xlane.f32.xlu0 %v7195_v23  ;;  %v10471_v23 = vld [vmem:[#allocation13 + $0xac] ss:$16 sps:$4 sm:$0xff]  }
0x2d07   : > { %v6826_v43 = vpop.xlane.xlu1 %6825 }
0x2d08   : > { %vm6828_vm5 = vcmp.eq.f32.partialorder %v11301_v11, %v6826_v43  ;;  %v10498_v43 = vld [vmem:[#allocation13 + $0xc] ss:$16 sps:$4 sm:$0xff]  }
0x2d09   : > { %v6823_v14 = vpop.xlane.xlu0 %6822  ;;  %v9392_v47 = vsel %vm6828_vm5, 1.0, %v13451_v28 }
0x2d0a   : > { %vm6827_vm4 = vcmp.eq.f32.partialorder %v11301_v11, %v6823_v14  ;;  %v10499_v14 = vld [vmem:[#allocation14 + $0xe0] ss:$16 sps:$4 sm:$0xff]  }
0x2d0b   : > { %v9391_v2 = vsel %vm6827_vm4, 1.0, %v13451_v28 }
0x2d0c   : > { %9399 = vmatmul.mubr.msk.f32.gmra.mxu1 %vm867_vm3, %v9391_v2  ;;  %v7200_v55 = vpop.xlane.xlu1 %7199  ;;  %v10496_v2 = vld [vmem:[#allocation13 + $0x8] ss:$16 sps:$4 sm:$0xff]  }
0x2d0d   : > { %6963 = vmatprep.mubr.f32.mxu1 %v13451_v28  ;;  %vm7202_vm7 = vcmp.eq.f32.partialorder %v11301_v11, %v7200_v55  ;;  %v10504_v55 = vld [vmem:[#allocation14 + $0xc4] ss:$16 sps:$4 sm:$0xff]  }
0x2d0e   : > { %v7197_v63 = vpop.xlane.xlu0 %7196  ;;  %v9408_v3 = vsel %vm7202_vm7, 1.0, %v13451_v28 }
0x2d0f   : > { %vm7201_vm6 = vcmp.eq.f32.partialorder %v11301_v11, %v7197_v63  ;;  %v10430_v11 = vld [vmem:[#allocation11 + $0x40] ss:$16 sps:$4 sm:$0xff]   ;;  %v10507_v63 = vld [vmem:[#allocation14 + $0xec] ss:$16 sps:$4 sm:$0xff]  }
0x2d10   : > { %v9407_v40 = vsel %vm7201_vm6, 1.0, %v13451_v28  ;;  %9400 = vmatmul.mubr.msk.f32.gmra.mxu1 %vm867_vm3, %v9392_v47  ;;  %v10502_v47 = vld [vmem:[#allocation14 + $0xc0] ss:$16 sps:$4 sm:$0xff]  }
0x2d11   : > { %9415 = vmatmul.mubr.msk.f32.gmra.mxu0 %vm867_vm3, %v9407_v40  ;;  %7508 = vmatprep.mubr.bf16.mxu1 %v13452_v30  ;;  %v10505_v40 = vld [vmem:[#allocation14 + $0xe8] ss:$16 sps:$4 sm:$0xff]  }
0x2d12   : > { %7337 = vmatprep.mubr.f32.mxu0 %v13451_v28  ;;  %v10436_v28 = vld [vmem:[#allocation11 + $0x20] ss:$16 sps:$4 sm:$0xff]  }
0x2d14   : > { %9433 = vmatmul.mubr.msk.bf16.vlgmr.msra.gmra.mxu1 %vm2229_vm15, %v12072_v16 }
0x2d15   : > { %9416 = vmatmul.mubr.msk.f32.gmra.mxu0 %vm867_vm3, %v9408_v3  ;;  %7518 = vmatprep.mubr.bf16.mxu1 %v13452_v30  ;;  %v10511_v3 = vld [vmem:[#allocation14 + $0xc8] ss:$16 sps:$4 sm:$0xff]  }
0x2d16   : > { %7581 = vmatprep.mubr.bf16.mxu0 %v13452_v30  ;;  %7711 = vmatpush1.bf16.msra.mxu1 %v10427_v15  ;;  %v10513_v15 = vld [vmem:[#allocation14 + $0xcc] ss:$16 sps:$4 sm:$0xff]  }
0x2d17   : > { %7712 = vmatprep.subr.bf16.mxu1 %v10432_v4  ;;  %v10508_v4 = vld [vmem:[#allocation14 + $0xa0] ss:$16 sps:$4 sm:$0xff]  }
0x2d19   : > { %9437 = vmatmul.mubr.msk.bf16.vlgmr.msra.gmra.mxu0 %vm2229_vm15, %v12072_v16  ;;  %v10445_v16 = vld [vmem:[#allocation11 + $0x28] ss:$16 sps:$4 sm:$0xff]  }
0x2d1a   : > { %7591 = vmatprep.mubr.bf16.mxu0 %v13452_v30  ;;  %7713 = vmatpush1.bf16.msra.mxu1 %v10430_v11  ;;  %v10516_v11 = vld [vmem:[#allocation14 + $0x84] ss:$16 sps:$4 sm:$0xff]  }
0x2d1b   : > { %7784 = vmatpush1.bf16.msra.mxu0 %v10433_v31  ;;  %7714 = vmatprep.subr.bf16.mxu1 %v10438_v22  ;;  %v10519_v31 = vld [vmem:[#allocation14 + $0xac] ss:$16 sps:$4 sm:$0xff]   ;;  %v10514_v22 = vld [vmem:[#allocation14 + $0x80] ss:$16 sps:$4 sm:$0xff]  }
0x2d1c   : > { %9434 = vmatmul.mubr.msk.bf16.gmra.mxu1 %vm2229_vm15, %v12081_v18  ;;  %7785 = vmatprep.subr.bf16.mxu0 %v10441_v57  ;;  %v10517_v57 = vld [vmem:[#allocation14 + $0xa8] ss:$16 sps:$4 sm:$0xff]  }
0x2d1d   : > { %7528 = vmatprep.mubr.bf16.mxu1 %v13452_v30 }
0x2d1e   : > { %7715 = vmatpush1.bf16.msra.mxu1 %v10436_v28  ;;  %v10525_v28 = vld [vmem:[#allocation14 + $0x8c] ss:$16 sps:$4 sm:$0xff]  }
0x2d1f   : > { %7786 = vmatpush1.bf16.msra.mxu0 %v10439_v10  ;;  %7716 = vmatprep.subr.bf16.mxu1 %v10444_v54  ;;  %v10520_v10 = vld [vmem:[#allocation14 + $0x60] ss:$16 sps:$4 sm:$0xff]   ;;  %v10523_v54 = vld [vmem:[#allocation14 + $0x88] ss:$16 sps:$4 sm:$0xff]  }
0x2d20   : > { %7787 = vmatprep.subr.bf16.mxu0 %v10447_v25  ;;  %v10528_v25 = vld [vmem:[#allocation14 + $0x44] ss:$16 sps:$4 sm:$0xff]  }
0x2d21   : > { %9438 = vmatmul.mubr.msk.bf16.gmra.mxu0 %vm2229_vm15, %v12081_v18  ;;  %v10451_v18 = vld [vmem:[#allocation13 + $0xe0] ss:$16 sps:$4 sm:$0xff]  }
0x2d22   : > { %7601 = vmatprep.mubr.bf16.mxu0 %v13452_v30  ;;  %7717 = vmatpush1.bf16.msra.mxu1 %v10442_v42  ;;  %v10531_v42 = vld [vmem:[#allocation14 + $0x6c] ss:$16 sps:$4 sm:$0xff]  }
0x2d23   : > { %7788 = vmatpush1.bf16.msra.mxu0 %v10445_v16  ;;  %8040 = vmatprep.subr.bf16.mxu1 %v10453_v36  ;;  %v10526_v16 = vld [vmem:[#allocation14 + $0x40] ss:$16 sps:$4 sm:$0xff]   ;;  %v10529_v36 = vld [vmem:[#allocation14 + $0x68] ss:$16 sps:$4 sm:$0xff]  }
0x2d24   : > { %9435 = vmatmul.mubr.msk.bf16.gmra.mxu1 %vm2229_vm15, %v12127_v33  ;;  %7789 = vmatprep.subr.bf16.mxu0 %v10450_v1  ;;  %v10537_v1 = vld [vmem:[#allocation14 + $0x4c] ss:$16 sps:$4 sm:$0xff]  }
0x2d25   : > { %7538 = vmatprep.mubr.bf16.mxu1 %v13452_v30 }
0x2d27   : > { %7790 = vmatpush1.bf16.msra.mxu0 %v10448_v50  ;;  %v10532_v50 = vld [vmem:[#allocation14 + $0x20] ss:$16 sps:$4 sm:$0xff]  }
0x2d28   : > { %8113 = vmatprep.subr.bf16.mxu0 %v10459_v38  ;;  %v10535_v38 = vld [vmem:[#allocation14 + $0x48] ss:$16 sps:$4 sm:$0xff]  }
0x2d29   : > { %9439 = vmatmul.mubr.msk.bf16.gmra.mxu0 %vm2229_vm15, %v12127_v33  ;;  %v10457_v33 = vld [vmem:[#allocation13 + $0xe8] ss:$16 sps:$4 sm:$0xff]  }
0x2d2a   : > { %7611 = vmatprep.mubr.bf16.mxu0 %v13452_v30 }
0x2d2c   : > { %9436 = vmatmul.mubr.msk.bf16.gmra.mxu1 %vm2229_vm15, %v12139_v19 }
0x2d2d   : > { %7734 = vmatprep.mubr.bf16.mxu1 %v13452_v30 }
0x2d31   : > { %9440 = vmatmul.mubr.msk.bf16.gmra.mxu0 %vm2229_vm15, %v12139_v19  ;;  %v10460_v19 = vld [vmem:[#allocation13 + $0xa0] ss:$16 sps:$4 sm:$0xff]  }
0x2d32   : > { %7807 = vmatprep.mubr.bf16.mxu0 %v13452_v30 }
0x2d34   : > { %9457 = vmatmul.mubr.msk.bf16.vlgmr.msra.gmra.mxu1 %vm2229_vm15, %v11622_v26 }
0x2d35   : > { %8041 = vmatpush1.bf16.msra.mxu1 %v10451_v18  ;;  %7744 = vmatprep.mubr.bf16.mxu1 %v13452_v30  ;;  %v10540_v18 = vld [vmem:[#allocation14 + $0x4] ss:$16 sps:$4 sm:$0xff]  }
0x2d36   : > { %8042 = vmatprep.subr.bf16.mxu1 %v10456_v41  ;;  %v10543_v41 = vld [vmem:[#allocation14 + $0x2c] ss:$16 sps:$4 sm:$0xff]  }
0x2d39   : > { %9461 = vmatmul.mubr.msk.bf16.vlgmr.msra.gmra.mxu0 %vm2229_vm15, %v11622_v26  ;;  %8043 = vmatpush1.bf16.msra.mxu1 %v10454_v51  ;;  %v10469_v26 = vld [vmem:[#allocation13 + $0xa8] ss:$16 sps:$4 sm:$0xff]   ;;  %v10538_v51 = vld [vmem:[#allocation14] ss:$16 sps:$4 sm:$0xff]  }
0x2d3a   : > { %8114 = vmatpush1.bf16.msra.mxu0 %v10457_v33  ;;  %8044 = vmatprep.subr.bf16.mxu1 %v10462_v60  ;;  %v10541_v33 = vld [vmem:[#allocation14 + $0x28] ss:$16 sps:$4 sm:$0xff]   ;;  %v10549_v60 = vld [vmem:[#allocation14 + $0xc] ss:$16 sps:$4 sm:$0xff]  }
0x2d3b   : > { %8115 = vmatprep.subr.bf16.mxu0 %v10465_v59  ;;  %7817 = vmatprep.mubr.bf16.mxu0 %v13452_v30  ;;  %v10544_v59 = vld [vmem:[#allocation14 + $0x1e0] ss:$16 sps:$4 sm:$0xff]  }
0x2d3c   : > { %9458 = vmatmul.mubr.msk.bf16.gmra.mxu1 %vm2229_vm15, %v11633_v29 }
0x2d3d   : > { %8045 = vmatpush1.bf16.msra.mxu1 %v10460_v19  ;;  %7754 = vmatprep.mubr.bf16.mxu1 %v13452_v30  ;;  %v10552_v19 = vld [vmem:[#allocation14 + $0x1c4] ss:$16 sps:$4 sm:$0xff]  }
0x2d3e   : > { %8116 = vmatpush1.bf16.msra.mxu0 %v10463_v37  ;;  %8046 = vmatprep.subr.bf16.mxu1 %v10468_v61  ;;  %v10555_v37 = vld [vmem:[#allocation14 + $0x1ec] ss:$16 sps:$4 sm:$0xff]   ;;  %v10550_v61 = vld [vmem:[#allocation14 + $0x1c0] ss:$16 sps:$4 sm:$0xff]  }
0x2d3f   : > { %8117 = vmatprep.subr.bf16.mxu0 %v10471_v23  ;;  %v10553_v23 = vld [vmem:[#allocation14 + $0x1e8] ss:$16 sps:$4 sm:$0xff]  }
0x2d41   : > { %9462 = vmatmul.mubr.msk.bf16.gmra.mxu0 %vm2229_vm15, %v11633_v29  ;;  %8047 = vmatpush1.bf16.msra.mxu1 %v10466_v49  ;;  %v10481_v29 = vld [vmem:[#allocation13 + $0x68] ss:$16 sps:$4 sm:$0xff]   ;;  %v10558_v49 = vld [vmem:[#allocation14 + $0x1a4] ss:$16 sps:$4 sm:$0xff]  }
0x2d42   : > { %8118 = vmatpush1.bf16.msra.mxu0 %v10469_v26  ;;  %8048 = vmatprep.subr.bf16.mxu1 %v10474_v12  ;;  %v10561_v26 = vld [vmem:[#allocation14 + $0x1cc] ss:$16 sps:$4 sm:$0xff]   ;;  %v10559_v12 = vld [vmem:[#allocation14 + $0x1c8] ss:$16 sps:$4 sm:$0xff]  }
0x2d43   : > { %8119 = vmatprep.subr.bf16.mxu0 %v10477_v21  ;;  %7827 = vmatprep.mubr.bf16.mxu0 %v13452_v30  ;;  %v10564_v21 = vld [vmem:[#allocation14 + $0x184] ss:$16 sps:$4 sm:$0xff]  }
0x2d44   : > { %9459 = vmatmul.mubr.msk.bf16.gmra.mxu1 %vm2229_vm15, %v11677_v45 }
0x2d45   : > { %8049 = vmatpush1.bf16.msra.mxu1 %v10472_v5  ;;  %7764 = vmatprep.mubr.bf16.mxu1 %v13452_v30  ;;  %v10562_v5 = vld [vmem:[#allocation14 + $0x180] ss:$16 sps:$4 sm:$0xff]  }
0x2d46   : > { %8120 = vmatpush1.bf16.msra.mxu0 %v10475_v8  ;;  %8050 = vmatprep.subr.bf16.mxu1 %v10480_v52  ;;  %v10565_v8 = vld [vmem:[#allocation14 + $0x1a8] ss:$16 sps:$4 sm:$0xff]   ;;  %v10570_v52 = vld [vmem:[#allocation14 + $0x164] ss:$16 sps:$4 sm:$0xff]  }
0x2d47   : > { %8121 = vmatprep.subr.bf16.mxu0 %v10483_v6  ;;  %v10573_v6 = vld [vmem:[#allocation14 + $0x18c] ss:$16 sps:$4 sm:$0xff]  }
0x2d49   : > { %9463 = vmatmul.mubr.msk.bf16.gmra.mxu0 %vm2229_vm15, %v11677_v45  ;;  %8051 = vmatpush1.bf16.msra.mxu1 %v10478_v48  ;;  %v10493_v45 = vld [vmem:[#allocation13 + $0x28] ss:$16 sps:$4 sm:$0xff]   ;;  %v10568_v48 = vld [vmem:[#allocation14 + $0x160] ss:$16 sps:$4 sm:$0xff]  }
0x2d4a   : > { %8122 = vmatpush1.bf16.msra.mxu0 %v10481_v29  ;;  %8052 = vmatprep.subr.bf16.mxu1 %v10486_v62  ;;  %v10571_v29 = vld [vmem:[#allocation14 + $0x188] ss:$16 sps:$4 sm:$0xff]   ;;  %v10576_v62 = vld [vmem:[#allocation14 + $0x144] ss:$16 sps:$4 sm:$0xff]  }
0x2d4b   : > { %8123 = vmatprep.subr.bf16.mxu0 %v10489_v0  ;;  %7837 = vmatprep.mubr.bf16.mxu0 %v13452_v30  ;;  %v10579_v0 = vld [vmem:[#allocation14 + $0x16c] ss:$16 sps:$4 sm:$0xff]  }
0x2d4c   : > { %9460 = vmatmul.mubr.msk.bf16.gmra.mxu1 %vm2229_vm15, %v11689_v39 }
0x2d4d   : > { %8053 = vmatpush1.bf16.msra.mxu1 %v10484_v53  ;;  %8072 = vmatprep.mubr.bf16.mxu1 %v13452_v30  ;;  %v10574_v53 = vld [vmem:[#allocation14 + $0x140] ss:$16 sps:$4 sm:$0xff]  }
0x2d4e   : > { %8124 = vmatpush1.bf16.msra.mxu0 %v10487_v34  ;;  %8054 = vmatprep.subr.bf16.mxu1 %v10492_v13  ;;  %v10577_v34 = vld [vmem:[#allocation14 + $0x168] ss:$16 sps:$4 sm:$0xff]   ;;  %v10582_v13 = vld [vmem:[#allocation14 + $0x124] ss:$16 sps:$4 sm:$0xff]  }
0x2d4f   : > { %8125 = vmatprep.subr.bf16.mxu0 %v10495_v7  ;;  %v10585_v7 = vld [vmem:[#allocation14 + $0x14c] ss:$16 sps:$4 sm:$0xff]  }
0x2d51   : > { %9464 = vmatmul.mubr.msk.bf16.gmra.mxu0 %vm2229_vm15, %v11689_v39  ;;  %8055 = vmatpush1.bf16.msra.mxu1 %v10490_v20  ;;  %v10510_v39 = vld [vmem:[#allocation14 + $0xa4] ss:$16 sps:$4 sm:$0xff]   ;;  %v10580_v20 = vld [vmem:[#allocation14 + $0x120] ss:$16 sps:$4 sm:$0xff]  }
0x2d52   : > { %8126 = vmatpush1.bf16.msra.mxu0 %v10493_v45  ;;  %8610 = vmatprep.subr.bf16.mxu1 %v10501_v17  ;;  %v10583_v45 = vld [vmem:[#allocation14 + $0x148] ss:$16 sps:$4 sm:$0xff]   ;;  %v10588_v17 = vld [vmem:[#allocation14 + $0x104] ss:$16 sps:$4 sm:$0xff]  }
0x2d53   : > { %8127 = vmatprep.subr.bf16.mxu0 %v10498_v43  ;;  %8145 = vmatprep.mubr.bf16.mxu0 %v13452_v30  ;;  %v10591_v43 = vld [vmem:[#allocation14 + $0x12c] ss:$16 sps:$4 sm:$0xff]  }
0x2d54   : > { %8073 = vmatmul.mubr.bf16.vlgmr.msra.gmra.mxu1 %v12509_v24 }
0x2d55   : > { %8611 = vmatpush1.bf16.msra.mxu1 %v10499_v14  ;;  %8082 = vmatprep.mubr.bf16.mxu1 %v13452_v30  ;;  %v10586_v14 = vld [vmem:[#allocation14 + $0x100] ss:$16 sps:$4 sm:$0xff]  }
0x2d56   : > { %8128 = vmatpush1.bf16.msra.mxu0 %v10496_v2  ;;  %8612 = vmatprep.subr.bf16.mxu1 %v10504_v55  ;;  %v10589_v2 = vld [vmem:[#allocation14 + $0x128] ss:$16 sps:$4 sm:$0xff]   ;;  %v10594_v55 = vld [vmem:[#allocation14 + $0x10c] ss:$16 sps:$4 sm:$0xff]  }
0x2d57   : > { %8683 = vmatprep.subr.bf16.mxu0 %v10507_v63  ;;  %v10592_v63 = vld [vmem:[#allocation14 + $0x108] ss:$16 sps:$4 sm:$0xff]  }
0x2d59   : > { %8146 = vmatmul.mubr.bf16.vlgmr.msra.gmra.mxu0 %v12509_v24  ;;  %8613 = vmatpush1.bf16.msra.mxu1 %v10502_v47  ;;  %v10522_v24 = vld [vmem:[#allocation14 + $0x64] ss:$16 sps:$4 sm:$0xff]   ;;  %v6923_v47 = vpop.f32.mrf.mxu1 }
0x2d5a   : > { %8684 = vmatpush1.bf16.msra.mxu0 %v10505_v40  ;;  %8614 = vmatprep.subr.bf16.mxu1 %v10510_v39  ;;  %v7297_v39 = vpop.f32.mrf.mxu0 }
0x2d5b   : > { %8685 = vmatprep.subr.bf16.mxu0 %v10513_v15  ;;  %8155 = vmatprep.mubr.bf16.mxu0 %v13452_v30  ;;  %v6925_v40 = vpop.f32.mrf.mxu1 }
0x2d5c   : > { %8083 = vmatmul.mubr.bf16.gmra.mxu1 %v12533_v9 }
0x2d5d   : > { %8615 = vmatpush1.bf16.msra.mxu1 %v10508_v4  ;;  %8092 = vmatprep.mubr.bf16.mxu1 %v13452_v30  ;;  %v6929_v15 = vpop.f32.mrf.mxu1  ;;  %v7299_v4 = vpop.f32.mrf.mxu0 }
0x2d5e   : > { %8686 = vmatpush1.bf16.msra.mxu0 %v10511_v3  ;;  %8616 = vmatprep.subr.bf16.mxu1 %v10516_v11 }
0x2d5f   : > { %8687 = vmatprep.subr.bf16.mxu0 %v10519_v31  ;;  %v6931_v3 = vpop.f32.mrf.mxu1  ;;  %v7303_v11 = vpop.f32.mrf.mxu0 }
0x2d61   : > { %8156 = vmatmul.mubr.bf16.gmra.mxu0 %v12533_v9  ;;  %8617 = vmatpush1.bf16.msra.mxu1 %v10514_v22  ;;  %v10534_v9 = vld [vmem:[#allocation14 + $0x24] ss:$16 sps:$4 sm:$0xff]   ;;  %v6935_v31 = vpop.f32.mrf.mxu1  ;;  %v7305_v22 = vpop.f32.mrf.mxu0 }
0x2d62   : > { %8688 = vmatpush1.bf16.msra.mxu0 %v10517_v57  ;;  %8618 = vmatprep.subr.bf16.mxu1 %v10522_v24 }
0x2d63   : > { %8689 = vmatprep.subr.bf16.mxu0 %v10525_v28  ;;  %8165 = vmatprep.mubr.bf16.mxu0 %v13452_v30  ;;  %v6937_v57 = vpop.f32.mrf.mxu1  ;;  %v7309_v24 = vpop.f32.mrf.mxu0 }
0x2d64   : > { %8093 = vmatmul.mubr.bf16.gmra.mxu1 %v12554_v32 }
0x2d65   : > { %8619 = vmatpush1.bf16.msra.mxu1 %v10520_v10  ;;  %8102 = vmatprep.mubr.bf16.mxu1 %v13452_v30  ;;  %v6941_v28 = vpop.f32.mrf.mxu1  ;;  %v7311_v10 = vpop.f32.mrf.mxu0 }
0x2d66   : > { %8690 = vmatpush1.bf16.msra.mxu0 %v10523_v54  ;;  %8620 = vmatprep.subr.bf16.mxu1 %v10528_v25 }
0x2d67   : > { %8691 = vmatprep.subr.bf16.mxu0 %v10531_v42  ;;  %v7315_v54 = vpop.f32.mrf.mxu0 }
0x2d69   : > { %8166 = vmatmul.mubr.bf16.gmra.mxu0 %v12554_v32  ;;  %8621 = vmatpush1.bf16.msra.mxu1 %v10526_v16  ;;  %v10546_v32 = vld [vmem:[#allocation14 + $0x1e4] ss:$16 sps:$4 sm:$0xff]   ;;  %v7317_v25 = vpop.f32.mrf.mxu0 }
0x2d6a   : > { %8692 = vmatpush1.bf16.msra.mxu0 %v10529_v36  ;;  %8622 = vmatprep.subr.bf16.mxu1 %v10534_v9 }
0x2d6b   : > { %8693 = vmatprep.subr.bf16.mxu0 %v10537_v1  ;;  %8175 = vmatprep.mubr.bf16.mxu0 %v13452_v30  ;;  %v10547_v30 = vld [vmem:[#allocation14 + $0x8] ss:$16 sps:$4 sm:$0xff]   ;;  %v7321_v16 = vpop.f32.mrf.mxu0  ;;  %v6971_v1 = vmax.f32 %v6925_v40, %v6937_v57 }
0x2d6c   : > { %8103 = vmatmul.mubr.bf16.gmra.mxu1 %v12567_v27 }
0x2d6d   : > { %8623 = vmatpush1.bf16.msra.mxu1 %v10532_v50  ;;  %8642 = vmatprep.mubr.bf16.mxu1 %v12846_v44  ;;  %v7323_v36 = vpop.f32.mrf.mxu0 }
0x2d6e   : > { %8694 = vmatpush1.bf16.msra.mxu0 %v10535_v38  ;;  %8624 = vmatprep.subr.bf16.mxu1 %v10540_v18  ;;  %v6970_v38 = vmax.f32 %v6923_v47, %v6935_v31 }
0x2d6f   : > { %8695 = vmatprep.subr.bf16.mxu0 %v10543_v41  ;;  %v7327_v50 = vpop.f32.mrf.mxu0  ;;  %v6972_v41 = vmax.f32 %v6929_v15, %v6941_v28  ;;  %v13457_v28 = vld [vmem:[#allocation32_spill] sm:$0xff] }
0x2d71   : > { %8176 = vmatmul.mubr.bf16.gmra.mxu0 %v12567_v27  ;;  %8625 = vmatpush1.bf16.msra.mxu1 %v10538_v51  ;;  %v10556_v27 = vld [vmem:[#allocation14 + $0x1a0] ss:$16 sps:$4 sm:$0xff]  }
0x2d72   : > { %8696 = vmatpush1.bf16.msra.mxu0 %v10541_v33  ;;  %8715 = vmatprep.mubr.bf16.mxu0 %v12846_v44  ;;  %v10567_v44 = vld [vmem:[#allocation14 + $0x1ac] ss:$16 sps:$4 sm:$0xff]  }
0x2d73   : > { %8626 = vmatprep.subr.bf16.mxu1 %v10546_v32  ;;  %8697 = vmatprep.subr.bf16.mxu0 %v10549_v60 }
0x2d75   : > { %8627 = vmatpush2.bf16.msra.mxu1 %v10544_v59 }
0x2d76   : > { %8698 = vmatpush1.bf16.msra.mxu0 %v10547_v30  ;;  %8628 = vmatprep.subr.bf16.mxu1 %v10552_v19  ;;  %v7329_v30 = vpop.f32.mrf.mxu0 }
0x2d77   : > { %8699 = vmatprep.subr.bf16.mxu0 %v10555_v37  ;;  %v7345_v37 = vmax.f32 %v7299_v4, %v7311_v10  ;;  %v13456_v4 = vld [vmem:[#allocation31_spill] sm:$0xff] }
0x2d79   : > { %8629 = vmatpush2.bf16.msra.mxu1 %v10550_v61 }
0x2d7a   : > { %8700 = vmatpush2.bf16.msra.mxu0 %v10553_v23  ;;  %8630 = vmatprep.subr.bf16.mxu1 %v10558_v49 }
0x2d7b   : > { %8701 = vmatprep.subr.bf16.mxu0 %v10561_v26 }
0x2d7d   : > { %8631 = vmatpush2.bf16.msra.mxu1 %v10556_v27 }
0x2d7e   : > { %8702 = vmatpush2.bf16.msra.mxu0 %v10559_v12  ;;  %8632 = vmatprep.subr.bf16.mxu1 %v10564_v21  ;;  %v7346_v12 = vmax.f32 %v7303_v11, %v7315_v54  ;;  %v7349_v21 = vmax.f32 %v7345_v37, %v7323_v36 }
0x2d7f   : > { %8703 = vmatprep.subr.bf16.mxu0 %v10567_v44 }
0x2d81   : > { %8633 = vmatpush2.bf16.msra.mxu1 %v10562_v5  ;;  %v7344_v5 = vmax.f32 %v7297_v39, %v7309_v24 }
0x2d82   : > { %8704 = vmatpush2.bf16.msra.mxu0 %v10565_v8  ;;  %8634 = vmatprep.subr.bf16.mxu1 %v10570_v52  ;;  %v13453_v52 = vld [vmem:[#allocation28_spill] sm:$0xff] }
0x2d83   : > { %8705 = vmatprep.subr.bf16.mxu0 %v10573_v6 }
0x2d85   : > { %8635 = vmatpush2.bf16.msra.mxu1 %v10568_v48 }
0x2d86   : > { %8706 = vmatpush2.bf16.msra.mxu0 %v10571_v29  ;;  %8636 = vmatprep.subr.bf16.mxu1 %v10576_v62  ;;  %v7347_v62 = vmax.f32 %v7305_v22, %v7317_v25 }
0x2d87   : > { %8707 = vmatprep.subr.bf16.mxu0 %v10579_v0  ;;  %v7350_v0 = vmax.f32 %v7346_v12, %v7327_v50 }
0x2d89   : > { %8637 = vmatpush2.bf16.msra.mxu1 %v10574_v53  ;;  %v13454_v53 = vld [vmem:[#allocation27_spill] sm:$0xff] }
0x2d8a   : > { %8708 = vmatpush2.bf16.msra.mxu0 %v10577_v34  ;;  %8638 = vmatprep.subr.bf16.mxu1 %v10582_v13 }
0x2d8b   : > { %8709 = vmatprep.subr.bf16.mxu0 %v10585_v7 }
0x2d8d   : > { %8639 = vmatpush2.bf16.msra.mxu1 %v10580_v20  ;;  %v13455_v20 = vld [vmem:[#allocation29_spill] sm:$0xff] }
0x2d8e   : > { %8710 = vmatpush2.bf16.msra.mxu0 %v10583_v45  ;;  %8640 = vmatprep.subr.bf16.mxu1 %v10588_v17 }
0x2d8f   : > { %8711 = vmatprep.subr.bf16.mxu0 %v10591_v43  ;;  %v7348_v43 = vmax.f32 %v7344_v5, %v7321_v16 }
0x2d91   : > { %8641 = vmatpush2.bf16.msra.mxu1 %v10586_v14  ;;  %v7351_v14 = vmax.f32 %v7347_v62, %v7329_v30 }
0x2d92   : > { %8712 = vmatpush2.bf16.msra.mxu0 %v10589_v2 }
0x2d93   : > { %8713 = vmatprep.subr.bf16.mxu0 %v10594_v55 }
0x2d94   : > { %8643 = vmatmul.mubr.bf16.vlgmr.msra.gmra.mxu1 %v12841_v58 }
0x2d95   : > { %8652 = vmatprep.mubr.bf16.mxu1 %v12855_v35 }
0x2d96   : > { %8714 = vmatpush2.bf16.msra.mxu0 %v10592_v63 }
0x2d99   : > { %8716 = vmatmul.mubr.bf16.vlgmr.msra.gmra.mxu0 %v12841_v58  ;;  %v6943_v58 = vpop.f32.mrf.mxu1 }
0x2d9a   : > { %8725 = vmatprep.mubr.bf16.mxu0 %v12855_v35  ;;  %v6973_v60 = vmax.f32 %v6931_v3, %v6943_v58  ;;  %v13458_v58 = vld [vmem:[#allocation33_spill] sm:$0xff] }
0x2d9b   : > { %v6947_v35 = vpop.f32.mrf.mxu1 }
0x2d9c   : > { %8653 = vmatmul.mubr.bf16.gmra.mxu1 %v12850_v46  ;;  %v6974_v33 = vmax.f32 %v6970_v38, %v6947_v35 }
0x2d9d   : > { %v6949_v42 = vpop.f32.mrf.mxu1 }
0x2d9e   : > { %v6975_v51 = vmax.f32 %v6971_v1, %v6949_v42  ;;  %v13459_v42 = vld [vmem:[#allocation30_spill] sm:$0xff] }
0x2da1   : > { %8726 = vmatmul.mubr.bf16.gmra.mxu0 %v12850_v46  ;;  %v6953_v46 = vpop.f32.mrf.mxu1 }
0x2da2   : > { %v6976_v59 = vmax.f32 %v6972_v41, %v6953_v46 }
0x2da3   : > { %v6955_v9 = vpop.f32.mrf.mxu1 }
0x2da4   : > { %v6977_v49 = vmax.f32 %v6973_v60, %v6955_v9 }
0x2dcc   : > { %v6959_v18 = vpop.f32.mrf.mxu1 }
0x2dcd   : > { %v6978_v61 = vmax.f32 %v6974_v33, %v6959_v18 }
0x2dce   : > { %v6961_v32 = vpop.f32.mrf.mxu1 }
0x2dcf   : > { %v6979_v19 = vmax.f32 %v6975_v51, %v6961_v32  ;;  %v6982_v34 = vadd.f32 %v6978_v61, %v13454_v53 }
0x2dd0   : > { %v6965_v23 = vpop.f32.mrf.mxu1 }
0x2dd1   : > { %v6980_v26 = vmax.f32 %v6976_v59, %v6965_v23  ;;  %v7333_v27 = vpop.f32.mrf.mxu0  ;;  %v6983_v8 = vadd.f32 %v6979_v19, %v12601_v56  ;;  %v6986_v39 = vmax.f32 %v6982_v34, 0.0 }
0x2dd2   : > { %v6967_v44 = vpop.f32.mrf.mxu1  ;;  %v7352_v15 = vmax.f32 %v7348_v43, %v7333_v27 }
0x2dd3   : > { %v6984_v6 = vadd.f32 %v6980_v26, %v13453_v52  ;;  %v6981_v48 = vmax.f32 %v6977_v49, %v6967_v44  ;;  %v7335_v29 = vpop.f32.mrf.mxu0  ;;  %v6987_v56 = vmax.f32 %v6983_v8, 0.0 }
0x2dd4   : > { %v7353_v13 = vmax.f32 %v7349_v21, %v7335_v29  ;;  %v13112_v7 = vpop.f32.mrf.mxu1  ;;  %v7356_v16 = vadd.f32 %v7352_v15, %v13459_v42 }
0x2dd5   : > { %v6985_v45 = vadd.f32 %v6981_v48, %v13455_v20  ;;  %v7339_v17 = vpop.f32.mrf.mxu0  ;;  %v6988_v2 = vmax.f32 %v6984_v6, 0.0 }
0x2dd6   : > { %v7354_v55 = vmax.f32 %v7350_v0, %v7339_v17  ;;  %v13115_v63 = vpop.f32.mrf.mxu1  ;;  %v7357_v3 = vadd.f32 %v7353_v13, %v13456_v4  ;;  %v7360_v51 = vmax.f32 %v7356_v16, 0.0 }
0x2dd7   : > { %v6989_v47 = vmax.f32 %v6985_v45, 0.0  ;;  %v7341_v40 = vpop.f32.mrf.mxu0  ;;  %v8222_v24 = vpack.c.bf16 %v6988_v2, %v6986_v39 }
0x2dd8   : > { %v7355_v11 = vmax.f32 %v7351_v14, %v7341_v40  ;;  %v13118_v31 = vpop.f32.mrf.mxu1  ;;  %v7358_v10 = vadd.f32 %v7354_v55, %v13457_v28  ;;  %v7361_v46 = vmax.f32 %v7357_v3, 0.0 }
0x2dd9   : > { %v13120_v22 = vpop.f32.mrf.mxu0  ;;  %v8223_v57 = vpack.c.bf16 %v6989_v47, %v6987_v56 }
0x2dda   : > { %v7359_v54 = vadd.f32 %v7355_v11, %v13458_v58  ;;  %v13124_v35 = vpop.f32.mrf.mxu1  ;;  %v7362_v50 = vmax.f32 %v7358_v10, 0.0 }
0x2ddb   : > { %v13126_v25 = vpop.f32.mrf.mxu0  ;;  %8662 = vmatprep.mubr.bf16.mxu1 %v8223_v57  ;;  %8735 = vmatprep.mubr.bf16.mxu0 %v8223_v57 }
0x2ddc   : > { %v7363_v36 = vmax.f32 %v7359_v54, 0.0  ;;  %v13129_v9 = vpop.f32.mrf.mxu1  ;;  %8663 = vmatmul.mubr.bf16.gmra.mxu1 %v8222_v24  ;;  %8736 = vmatmul.mubr.bf16.gmra.mxu0 %v8222_v24  ;;  %v8224_v60 = vpack.c.bf16 %v7362_v50, %v7360_v51 }
0x2ddd   : > { %v13131_v1 = vpop.f32.mrf.mxu0 }
0x2dde   : > { %v13133_v38 = vpop.f32.mrf.mxu1  ;;  %v8225_v18 = vpack.c.bf16 %v7363_v36, %v7361_v46 }
0x2ddf   : > { %v13135_v41 = vpop.f32.mrf.mxu0 }
0x2de0   : > { %8672 = vmatprep.mubr.bf16.mxu1 %v8225_v18  ;;  %8745 = vmatprep.mubr.bf16.mxu0 %v8225_v18  ;;  %v13137_v33 = vpop.f32.mrf.mxu1 }
0x2de1   : > { %v13139_v32 = vpop.f32.mrf.mxu0 }
0x2de2   : > { %v13141_v59 = vpop.f32.mrf.mxu1 }
0x2de3   : > { %13460 = vst [vmem:[#allocation28_spill] sm:$0xff] %v13141_v59  ;;  %v13143_v30 = vpop.f32.mrf.mxu0 }
0x2de4   : > { %13461 = vst [vmem:[#allocation27_spill] sm:$0xff] %v13143_v30  ;;  %v7530_v19 = vpop.f32.mrf.mxu1  ;;  %8673 = vmatmul.mubr.bf16.gmra.mxu1 %v8224_v60  ;;  %8746 = vmatmul.mubr.bf16.gmra.mxu0 %v8224_v60 }
0x2de5   : > { %v13145_v37 = vpop.f32.mrf.mxu0 }
0x2de6   : > { %13462 = vst [vmem:[#allocation29_spill] sm:$0xff] %v13145_v37  ;;  %v7532_v61 = vpop.f32.mrf.mxu1 }
0x2de7   : > { %v13147_v23 = vpop.f32.mrf.mxu0 }
0x2de8   : > { %13463 = vst [vmem:[#allocation31_spill] sm:$0xff] %v13147_v23  ;;  %v7534_v49 = vpop.f32.mrf.mxu1 }
0x2de9   : > { %v7603_v26 = vpop.f32.mrf.mxu0 }
0x2dea   : > { %v7536_v27 = vpop.f32.mrf.mxu1 }
0x2deb   : > { %v7605_v12 = vpop.f32.mrf.mxu0 }
0x2dec   : > { %v7540_v21 = vpop.f32.mrf.mxu1 }
0x2ded   : > { %v7607_v44 = vpop.f32.mrf.mxu0 }
0x2dee   : > { %v7542_v5 = vpop.f32.mrf.mxu1 }
0x2def   : > { %v7609_v8 = vpop.f32.mrf.mxu0 }
0x2df0   : > { %v7544_v52 = vpop.f32.mrf.mxu1 }
0x2df1   : > { %v7613_v6 = vpop.f32.mrf.mxu0 }
0x2df2   : > { %v7546_v48 = vpop.f32.mrf.mxu1 }
0x2df3   : > { %v7615_v29 = vpop.f32.mrf.mxu0 }
0x2df4   : > { %v13149_v62 = vpop.f32.mrf.mxu1 }
0x2df5   : > { %v7617_v0 = vpop.f32.mrf.mxu0 }
0x2df6   : > { %v13151_v53 = vpop.f32.mrf.mxu1 }
0x2df7   : > { %v7619_v34 = vpop.f32.mrf.mxu0 }
0x2df8   : > { %v13153_v13 = vpop.f32.mrf.mxu1 }
0x2df9   : > { %v13155_v20 = vpop.f32.mrf.mxu0 }
0x2dfa   : > { %v13157_v45 = vpop.f32.mrf.mxu1 }
0x2dfb   : > { %v13159_v17 = vpop.f32.mrf.mxu0 }
0x2dfc   : > { %v13161_v43 = vpop.f32.mrf.mxu1 }
0x2dfd   : > { %v13163_v14 = vpop.f32.mrf.mxu0 }
0x2dfe   : > { %v13165_v2 = vpop.f32.mrf.mxu1 }
0x2dff   : > { %v13167_v55 = vpop.f32.mrf.mxu0 }
0x2e00   : > { %v13169_v56 = vpop.f32.mrf.mxu1 }
0x2e01   : > { %v13171_v47 = vpop.f32.mrf.mxu0 }
0x2e02   : > { %v13173_v40 = vpop.f32.mrf.mxu1 }
0x2e03   : > { %13464 = vst [vmem:[#allocation32_spill] sm:$0xff] %v13173_v40  ;;  %v13175_v39 = vpop.f32.mrf.mxu0 }
0x2e04   : > { %13465 = vst [vmem:[#allocation33_spill] sm:$0xff] %v13175_v39  ;;  %v7756_v15 = vpop.f32.mrf.mxu1 }
0x2e05   : > { %v7757_v4 = vadd.f32 %v7756_v15, %v7530_v19  ;;  %v13177_v3 = vpop.f32.mrf.mxu0 }
0x2e06   : > { %13466 = vst [vmem:[#allocation30_spill] sm:$0xff] %v13177_v3  ;;  %v7758_v11 = vpop.f32.mrf.mxu1 }
0x2e07   : > { %v7759_v57 = vadd.f32 %v7758_v11, %v7532_v61  ;;  %v13179_v24 = vpop.f32.mrf.mxu0 }
0x2e08   : > { %13467 = vst [vmem:[#allocation34_spill] sm:$0xff] %v13179_v24  ;;  %v7760_v28 = vpop.f32.mrf.mxu1 }
0x2e09   : > { %v7761_v10 = vadd.f32 %v7760_v28, %v7534_v49  ;;  %v7829_v58 = vpop.f32.mrf.mxu0 }
0x2e0a   : > { %v7830_v54 = vadd.f32 %v7829_v58, %v7603_v26  ;;  %v7762_v42 = vpop.f32.mrf.mxu1 }
0x2e0b   : > { %v7763_v16 = vadd.f32 %v7762_v42, %v7536_v27  ;;  %v7831_v46 = vpop.f32.mrf.mxu0 }
0x2e0c   : > { %v7832_v36 = vadd.f32 %v7831_v46, %v7605_v12  ;;  %v7766_v50 = vpop.f32.mrf.mxu1 }
0x2e0d   : > { %v7767_v18 = vadd.f32 %v7766_v50, %v7540_v21  ;;  %v7833_v51 = vpop.f32.mrf.mxu0 }
0x2e0e   : > { %v7834_v60 = vadd.f32 %v7833_v51, %v7607_v44  ;;  %v7768_v23 = vpop.f32.mrf.mxu1 }
0x2e0f   : > { %v7769_v19 = vadd.f32 %v7768_v23, %v7542_v5  ;;  %v7835_v15 = vpop.f32.mrf.mxu0 }
0x2e10   : > { %v7836_v3 = vadd.f32 %v7835_v15, %v7609_v8  ;;  %v7770_v37 = vpop.f32.mrf.mxu1 }
0x2e11   : > { %v7771_v61 = vadd.f32 %v7770_v37, %v7544_v52  ;;  %v7839_v11 = vpop.f32.mrf.mxu0 }
0x2e12   : > { %v7840_v24 = vadd.f32 %v7839_v11, %v7613_v6  ;;  %v7772_v39 = vpop.f32.mrf.mxu1 }
0x2e13   : > { %v7773_v49 = vadd.f32 %v7772_v39, %v7546_v48  ;;  %v7841_v28 = vpop.f32.mrf.mxu0 }
0x2e14   : > { %v7842_v26 = vadd.f32 %v7841_v28, %v7615_v29  ;;  %v8074_v58 = vpop.f32.mrf.mxu1 }
0x2e15   : > { %v7843_v27 = vpop.f32.mrf.mxu0 }
0x2e16   : > { %v7844_v42 = vadd.f32 %v7843_v27, %v7617_v0  ;;  %v8076_v12 = vpop.f32.mrf.mxu1 }
0x2e17   : > { %v7845_v46 = vpop.f32.mrf.mxu0 }
0x2e18   : > { %v7846_v21 = vadd.f32 %v7845_v46, %v7619_v34  ;;  %v8078_v50 = vpop.f32.mrf.mxu1 }
0x2e19   : > { %v8147_v44 = vpop.f32.mrf.mxu0 }
0x2e1a   : > { %v8080_v51 = vpop.f32.mrf.mxu1 }
0x2e1b   : > { %v13181_v23 = vpop.f32.mrf.mxu0 }
0x2e1c   : > { %v13183_v5 = vpop.f32.mrf.mxu1 }
0x2e1d   : > { %v13185_v37 = vpop.f32.mrf.mxu0 }
0x2e1e   : > { %v13187_v8 = vpop.f32.mrf.mxu1 }
0x2e1f   : > { %v13189_v52 = vpop.f32.mrf.mxu0 }
0x2e20   : > { %v13191_v6 = vpop.f32.mrf.mxu1 }
0x2e21   : > { %13468 = vst [vmem:[#allocation35_spill] sm:$0xff] %v13191_v6  ;;  %v13193_v48 = vpop.f32.mrf.mxu0 }
0x2e22   : > { %13469 = vst [vmem:[#allocation36_spill] sm:$0xff] %v13193_v48  ;;  %v13195_v29 = vpop.f32.mrf.mxu1 }
0x2e23   : > { %13470 = vst [vmem:[#allocation37_spill] sm:$0xff] %v13195_v29  ;;  %v13197_v0 = vpop.f32.mrf.mxu0 }
0x2e24   : > { %13471 = vst [vmem:[#allocation38_spill] sm:$0xff] %v13197_v0  ;;  %v8094_v34 = vpop.f32.mrf.mxu1 }
0x2e25   : > { %v13199_v39 = vadd.f32 %v8094_v34, %v7757_v4  ;;  %v13201_v15 = vpop.f32.mrf.mxu0 }
0x2e26   : > { %v8096_v11 = vpop.f32.mrf.mxu1 }
0x2e27   : > { %13472 = vst [vmem:[#allocation39_spill] sm:$0xff] %v13199_v39  ;;  %v13203_v28 = vadd.f32 %v8096_v11, %v7759_v57  ;;  %v13205_v27 = vpop.f32.mrf.mxu0 }
0x2e28   : > { %v8098_v46 = vpop.f32.mrf.mxu1 }
0x2e29   : > { %13473 = vst [vmem:[#allocation40_spill] sm:$0xff] %v13203_v28  ;;  %v13207_v30 = vadd.f32 %v8098_v46, %v7761_v10  ;;  %v8167_v6 = vpop.f32.mrf.mxu0 }
0x2e2a   : > { %v13209_v40 = vadd.f32 %v8167_v6, %v7830_v54  ;;  %v8100_v48 = vpop.f32.mrf.mxu1 }
0x2e2b   : > { %v13211_v29 = vadd.f32 %v8100_v48, %v7763_v16  ;;  %v8169_v0 = vpop.f32.mrf.mxu0 }
0x2e2c   : > { %v13213_v59 = vadd.f32 %v8169_v0, %v7832_v36  ;;  %v8104_v4 = vpop.f32.mrf.mxu1 }
0x2e2d   : > { %v13215_v34 = vadd.f32 %v8104_v4, %v7767_v18  ;;  %v8171_v39 = vpop.f32.mrf.mxu0 }
0x2e2e   : > { %v13217_v57 = vadd.f32 %v8171_v39, %v7834_v60  ;;  %v8106_v11 = vpop.f32.mrf.mxu1 }
0x2e2f   : > { %v13219_v28 = vadd.f32 %v8106_v11, %v7769_v19  ;;  %v8173_v10 = vpop.f32.mrf.mxu0 }
0x2e30   : > { %v13221_v46 = vadd.f32 %v8173_v10, %v7836_v3  ;;  %v8108_v54 = vpop.f32.mrf.mxu1  ;;  %v7737_v3 = vadd.f32 %v13149_v62, %v13112_v7 }
0x2e31   : > { %v13223_v6 = vadd.f32 %v8108_v54, %v7771_v61  ;;  %v8177_v16 = vpop.f32.mrf.mxu0  ;;  %v7739_v61 = vadd.f32 %v13151_v53, %v13115_v63  ;;  %v7812_v63 = vadd.f32 %v13159_v17, %v13126_v25  ;;  %v7749_v25 = vadd.f32 %v13165_v2, %v13133_v38 }
0x2e32   : > { %v13225_v48 = vadd.f32 %v8177_v16, %v7840_v24  ;;  %v8110_v36 = vpop.f32.mrf.mxu1  ;;  %v8186_v24 = vadd.f32 %v8074_v58, %v7737_v3  ;;  %v13476_v3 = vld [vmem:[#allocation35_spill] sm:$0xff] }
0x2e33   : > { %v13227_v0 = vadd.f32 %v8110_v36, %v7773_v49  ;;  %v8179_v18 = vpop.f32.mrf.mxu0  ;;  %v7741_v49 = vadd.f32 %v13153_v13, %v13118_v31  ;;  %v8187_v54 = vadd.f32 %v8076_v12, %v7739_v61  ;;  %v7747_v31 = vadd.f32 %v13161_v43, %v13129_v9 }
0x2e34   : > { %v13229_v4 = vadd.f32 %v8179_v18, %v7842_v26  ;;  %v7816_v43 = vadd.f32 %v13167_v55, %v13135_v41  ;;  %v8195_v38 = vadd.f32 %v13187_v8, %v7749_v25  ;;  %v13474_v18 = vld [vmem:[#allocation28_spill] sm:$0xff]  ;;  %v13477_v8 = vld [vmem:[#allocation27_spill] sm:$0xff] }
0x2e35   : > { %v8181_v60 = vpop.f32.mrf.mxu0  ;;  %v8190_v36 = vadd.f32 %v8078_v50, %v7741_v49  ;;  %v8194_v17 = vadd.f32 %v13183_v5, %v7747_v31  ;;  %v7820_v5 = vadd.f32 %v13171_v47, %v13139_v32  ;;  %v13479_v49 = vld [vmem:[#allocation36_spill] sm:$0xff] }
0x2e36   : > { %v13231_v39 = vadd.f32 %v8181_v60, %v7844_v42  ;;  %v7810_v42 = vadd.f32 %v13155_v20, %v13120_v22  ;;  %v7814_v20 = vadd.f32 %v13163_v14, %v13131_v1  ;;  %v8193_v41 = vadd.f32 %v13189_v52, %v7816_v43  ;;  %v13475_v60 = vld [vmem:[#allocation32_spill] sm:$0xff] }
0x2e37   : > { %v8183_v19 = vpop.f32.mrf.mxu0  ;;  %v8196_v32 = vadd.f32 %v13479_v49, %v7820_v5  ;;  %v13487_v49 = vld [vmem:[#allocation40_spill] sm:$0xff] }
0x2e38   : > { %v13233_v11 = vadd.f32 %v8183_v19, %v7846_v21  ;;  %v7743_v21 = vadd.f32 %v13157_v45, %v13124_v35  ;;  %v8188_v62 = vadd.f32 %v8147_v44, %v7810_v42  ;;  %v8189_v35 = vadd.f32 %v13181_v23, %v7812_v63  ;;  %v13483_v63 = vld [vmem:[#allocation38_spill] sm:$0xff] }
0x2e39   : > { %v8192_v44 = vadd.f32 %v13185_v37, %v7814_v20  ;;  %v7753_v19 = vadd.f32 %v13475_v60, %v13474_v18  ;;  %v13484_v20 = vld [vmem:[#allocation31_spill] sm:$0xff] }
0x2e3a   : > { %v8191_v13 = vadd.f32 %v8080_v51, %v7743_v21  ;;  %v7751_v51 = vadd.f32 %v13169_v56, %v13137_v33  ;;  %v13481_v21 = vld [vmem:[#allocation29_spill] sm:$0xff] }
0x2e3c   : > { %v8198_v61 = vadd.f32 %v13476_v3, %v7751_v51 }
0x2e54   : > { %v8644_v10 = vpop.f32.mrf.mxu1 }
0x2e55   : > { %v8756_v26 = vadd.f32 %v8644_v10, %v8186_v24  ;;  %v13478_v24 = vld [vmem:[#allocation33_spill] sm:$0xff] }
0x2e56   : > { %v8646_v16 = vpop.f32.mrf.mxu1  ;;  %v7822_v10 = vadd.f32 %v13478_v24, %v13477_v8 }
0x2e57   : > { %10595 = vtanh.f32 %v8756_v26  ;;  %v8757_v7 = vadd.f32 %v8646_v16, %v8187_v54  ;;  %v13480_v54 = vld [vmem:[#allocation37_spill] sm:$0xff] }
0x2e58   : > { %v8648_v53 = vpop.f32.mrf.mxu1  ;;  %v8199_v26 = vadd.f32 %v13480_v54, %v7753_v19 }
0x2e59   : > { %10597 = vtanh.f32 %v8757_v7  ;;  %v8760_v58 = vadd.f32 %v8648_v53, %v8190_v36  ;;  %v8717_v22 = vpop.f32.mrf.mxu0  ;;  %v13482_v36 = vld [vmem:[#allocation30_spill] sm:$0xff] }
0x2e5a   : > { %v8758_v45 = vadd.f32 %v8717_v22, %v8188_v62  ;;  %v8650_v12 = vpop.f32.mrf.mxu1  ;;  %v7824_v7 = vadd.f32 %v13482_v36, %v13481_v21  ;;  %v8197_v62 = vadd.f32 %v13483_v63, %v7822_v10 }
0x2e5b   : > { %10599 = vtanh.f32 %v8760_v58  ;;  %v8761_v50 = vadd.f32 %v8650_v12, %v8191_v13  ;;  %v8719_v9 = vpop.f32.mrf.mxu0 }
0x2e5c   : > { %10601 = vtanh.f32 %v8758_v45  ;;  %v8759_v1 = vadd.f32 %v8719_v9, %v8189_v35  ;;  %v8654_v14 = vpop.f32.mrf.mxu1  ;;  %v13485_v35 = vld [vmem:[#allocation34_spill] sm:$0xff]  ;;  %v8200_v12 = vadd.f32 %v13201_v15, %v7824_v7 }
0x2e5d   : > { %10603 = vtanh.f32 %v8761_v50  ;;  %v8764_v2 = vadd.f32 %v8654_v14, %v8194_v17  ;;  %v8721_v23 = vpop.f32.mrf.mxu0  ;;  %v7826_v45 = vadd.f32 %v13485_v35, %v13484_v20 }
0x2e5e   : > { %10605 = vtanh.f32 %v8759_v1  ;;  %v8762_v55 = vadd.f32 %v8721_v23, %v8192_v44  ;;  %v8656_v37 = vpop.f32.mrf.mxu1 }
0x2e5f   : > { %10607 = vtanh.f32 %v8764_v2  ;;  %v8765_v33 = vadd.f32 %v8656_v37, %v8195_v38  ;;  %v8723_v56 = vpop.f32.mrf.mxu0  ;;  %v8201_v9 = vadd.f32 %v13205_v27, %v7826_v45 }
0x2e60   : > { %10609 = vtanh.f32 %v8762_v55  ;;  %v8763_v47 = vadd.f32 %v8723_v56, %v8193_v41  ;;  %v8658_v52 = vpop.f32.mrf.mxu1 }
0x2e61   : > { %10611 = vtanh.f32 %v8765_v33  ;;  %v8768_v42 = vadd.f32 %v8658_v52, %v8198_v61  ;;  %v8727_v16 = vpop.f32.mrf.mxu0  ;;  %v13486_v33 = vld [vmem:[#allocation39_spill] sm:$0xff] }
0x2e62   : > { %10613 = vtanh.f32 %v8763_v47  ;;  %v8766_v53 = vadd.f32 %v8727_v16, %v8196_v32  ;;  %v8660_v31 = vpop.f32.mrf.mxu1 }
0x2e63   : > { %10615 = vtanh.f32 %v8768_v42  ;;  %v8769_v13 = vadd.f32 %v8660_v31, %v8199_v26  ;;  %v8729_v58 = vpop.f32.mrf.mxu0 }
0x2e64   : > { %v10596_v22 = vpop.eup %10595  ;;  %10617 = vtanh.f32 %v8766_v53  ;;  %v8767_v25 = vadd.f32 %v8729_v58, %v8197_v62 }
0x2e65   : > { %8820 = vst [vmem:[%s13280_s21] sm:$0xff] %v10596_v22  ;;  %10619 = vtanh.f32 %v8769_v13  ;;  %v8731_v17 = vpop.f32.mrf.mxu0 }
0x2e66   : > { %v10598_v50 = vpop.eup %10597  ;;  %10621 = vtanh.f32 %v8767_v25  ;;  %v8770_v43 = vadd.f32 %v8731_v17, %v8200_v12 }
0x2e67   : > { %8821 = vst [vmem:[%s13280_s21 + $0x8] sm:$0xff] %v10598_v50  ;;  %v8733_v15 = vpop.f32.mrf.mxu0 }
0x2e68   : > { %v10600_v44 = vpop.eup %10599  ;;  %10623 = vtanh.f32 %v8770_v43  ;;  %v8771_v1 = vadd.f32 %v8733_v15, %v8201_v9 }
0x2e69   : > { %v10602_v14 = vpop.eup %10601  ;;  %8824 = vst [vmem:[%s13280_s21 + $0x20] sm:$0xff] %v10600_v44 }
0x2e6a   : > { %v10604_v51 = vpop.eup %10603  ;;  %8822 = vst [vmem:[%s13280_s21 + $0x10] sm:$0xff] %v10602_v14  ;;  %10625 = vtanh.f32 %v8771_v1 }
0x2e6b   : > { %v10606_v27 = vpop.eup %10605  ;;  %8825 = vst [vmem:[%s13280_s21 + $0x28] sm:$0xff] %v10604_v51 }
0x2e6c   : > { %v10608_v38 = vpop.eup %10607  ;;  %8823 = vst [vmem:[%s13280_s21 + $0x18] sm:$0xff] %v10606_v27 }
0x2e6d   : > { %v10610_v2 = vpop.eup %10609  ;;  %9561 = vst [vmem:[%s13280_s21 + $0x40] sm:$0xff] %v10608_v38 }
0x2e6e   : > { %v10612_v23 = vpop.eup %10611  ;;  %8826 = vst [vmem:[%s13280_s21 + $0x30] sm:$0xff] %v10610_v2 }
0x2e6f   : > { %v10614_v5 = vpop.eup %10613  ;;  %9562 = vst [vmem:[%s13280_s21 + $0x48] sm:$0xff] %v10612_v23 }
0x2e70   : > { %v10616_v41 = vpop.eup %10615  ;;  %8827 = vst [vmem:[%s13280_s21 + $0x38] sm:$0xff] %v10614_v5 }
0x2e71   : > { %v10618_v55 = vpop.eup %10617  ;;  %9565 = vst [vmem:[%s13280_s21 + $0x60] sm:$0xff] %v10616_v41 }
0x2e72   : > { %v10620_v37 = vpop.eup %10619  ;;  %9563 = vst [vmem:[%s13280_s21 + $0x50] sm:$0xff] %v10618_v55 }
0x2e73   : > { %v10622_v18 = vpop.eup %10621  ;;  %9566 = vst [vmem:[%s13280_s21 + $0x68] sm:$0xff] %v10620_v37 }
0x2e74   : > { %9564 = vst [vmem:[%s13280_s21 + $0x58] sm:$0xff] %v10622_v18 }
0x2e75   : > { %v10624_v60 = vpop.eup %10623 }
0x2e76   : > { %9567 = vst [vmem:[%s13280_s21 + $0x70] sm:$0xff] %v10624_v60 }
0x2e77   : > { %v10626_v19 = vpop.eup %10625 }
0x2e78   : > { %9568 = vst [vmem:[%s13280_s21 + $0x78] sm:$0xff] %v10626_v19 }
0x2e9c   : > { %v8664_v3 = vpop.f32.mrf.mxu1  ;;  %v8737_v61 = vpop.f32.mrf.mxu0 }
0x2e9d   : > { %v8772_v56 = vadd.f32 %v8664_v3, %v13486_v33  ;;  %v8774_v8 = vadd.f32 %v8737_v61, %v13209_v40 }
0x2e9e   : > { %v8666_v24 = vpop.f32.mrf.mxu1  ;;  %v8739_v10 = vpop.f32.mrf.mxu0 }
0x2e9f   : > { %10627 = vtanh.f32 %v8772_v56  ;;  %v8773_v32 = vadd.f32 %v8666_v24, %v13487_v49  ;;  %v8775_v47 = vadd.f32 %v8739_v10, %v13213_v59 }
0x2ea0   : > { %10629 = vtanh.f32 %v8774_v8  ;;  %v8668_v52 = vpop.f32.mrf.mxu1  ;;  %v8741_v54 = vpop.f32.mrf.mxu0 }
0x2ea1   : > { %10631 = vtanh.f32 %v8773_v32  ;;  %v8776_v26 = vadd.f32 %v8668_v52, %v13207_v30  ;;  %v8778_v42 = vadd.f32 %v8741_v54, %v13217_v57 }
0x2ea2   : > { %10633 = vtanh.f32 %v8775_v47  ;;  %v8670_v16 = vpop.f32.mrf.mxu1  ;;  %v8743_v21 = vpop.f32.mrf.mxu0 }
0x2ea3   : > { %10635 = vtanh.f32 %v8776_v26  ;;  %v8777_v40 = vadd.f32 %v8670_v16, %v13211_v29  ;;  %v8779_v36 = vadd.f32 %v8743_v21, %v13221_v46 }
0x2ea4   : > { %10637 = vtanh.f32 %v8778_v42  ;;  %v8674_v7 = vpop.f32.mrf.mxu1  ;;  %v8747_v63 = vpop.f32.mrf.mxu0 }
0x2ea5   : > { %10639 = vtanh.f32 %v8777_v40  ;;  %v8780_v59 = vadd.f32 %v8674_v7, %v13215_v34  ;;  %v8782_v62 = vadd.f32 %v8747_v63, %v13225_v48 }
0x2ea6   : > { %10641 = vtanh.f32 %v8779_v36  ;;  %v8676_v30 = vpop.f32.mrf.mxu1  ;;  %v8749_v53 = vpop.f32.mrf.mxu0 }
0x2ea7   : > { %10643 = vtanh.f32 %v8780_v59  ;;  %v8781_v57 = vadd.f32 %v8676_v30, %v13219_v28  ;;  %v8783_v31 = vadd.f32 %v8749_v53, %v13229_v4 }
0x2ea8   : > { %10645 = vtanh.f32 %v8782_v62  ;;  %v8678_v29 = vpop.f32.mrf.mxu1  ;;  %v8751_v46 = vpop.f32.mrf.mxu0 }
0x2ea9   : > { %10647 = vtanh.f32 %v8781_v57  ;;  %v8784_v13 = vadd.f32 %v8678_v29, %v13223_v6  ;;  %v8786_v34 = vadd.f32 %v8751_v46, %v13231_v39 }
0x2eaa   : > { %10649 = vtanh.f32 %v8783_v31  ;;  %v8680_v48 = vpop.f32.mrf.mxu1  ;;  %v8753_v58 = vpop.f32.mrf.mxu0 }
0x2eab   : > { %10651 = vtanh.f32 %v8784_v13  ;;  %v8785_v28 = vadd.f32 %v8680_v48, %v13227_v0  ;;  %v8787_v4 = vadd.f32 %v8753_v58, %v13233_v11 }
0x2eac   : > { %v10628_v22 = vpop.eup %10627  ;;  %10653 = vtanh.f32 %v8786_v34 }
0x2ead   : > { %v10630_v20 = vpop.eup %10629  ;;  %9569 = vst [vmem:[%s13280_s21 + $0x80] sm:$0xff] %v10628_v22  ;;  %10655 = vtanh.f32 %v8785_v28 }
0x2eae   : > { %v10632_v6 = vpop.eup %10631  ;;  %9571 = vst [vmem:[%s13280_s21 + $0x90] sm:$0xff] %v10630_v20  ;;  %10657 = vtanh.f32 %v8787_v4 }
0x2eaf   : > { %v10634_v39 = vpop.eup %10633  ;;  %9570 = vst [vmem:[%s13280_s21 + $0x88] sm:$0xff] %v10632_v6 }
0x2eb0   : > { %v10636_v0 = vpop.eup %10635  ;;  %9572 = vst [vmem:[%s13280_s21 + $0x98] sm:$0xff] %v10634_v39 }
0x2eb1   : > { %v10638_v11 = vpop.eup %10637  ;;  %9573 = vst [vmem:[%s13280_s21 + $0xa0] sm:$0xff] %v10636_v0 }
0x2eb2   : > { %v10640_v35 = vpop.eup %10639  ;;  %9575 = vst [vmem:[%s13280_s21 + $0xb0] sm:$0xff] %v10638_v11 }
0x2eb3   : > { %v10642_v45 = vpop.eup %10641  ;;  %9574 = vst [vmem:[%s13280_s21 + $0xa8] sm:$0xff] %v10640_v35 }
0x2eb4   : > { %v10644_v12 = vpop.eup %10643  ;;  %9576 = vst [vmem:[%s13280_s21 + $0xb8] sm:$0xff] %v10642_v45 }
0x2eb5   : > { %v10646_v25 = vpop.eup %10645  ;;  %9577 = vst [vmem:[%s13280_s21 + $0xc0] sm:$0xff] %v10644_v12 }
0x2eb6   : > { %v10648_v17 = vpop.eup %10647  ;;  %9579 = vst [vmem:[%s13280_s21 + $0xd0] sm:$0xff] %v10646_v25 }
0x2eb7   : > { %v10650_v50 = vpop.eup %10649  ;;  %9578 = vst [vmem:[%s13280_s21 + $0xc8] sm:$0xff] %v10648_v17 }
0x2eb8   : > { %v10652_v9 = vpop.eup %10651  ;;  %9580 = vst [vmem:[%s13280_s21 + $0xd8] sm:$0xff] %v10650_v50 }
0x2eb9   : > { %v10654_v43 = vpop.eup %10653  ;;  %9581 = vst [vmem:[%s13280_s21 + $0xe0] sm:$0xff] %v10652_v9 }
0x2eba   : > { %v10656_v15 = vpop.eup %10655  ;;  %9583 = vst [vmem:[%s13280_s21 + $0xf0] sm:$0xff] %v10654_v43 }
0x2ebb   : > { %v10658_v44 = vpop.eup %10657  ;;  %9582 = vst [vmem:[%s13280_s21 + $0xe8] sm:$0xff] %v10656_v15 }
0x2ebc   : > { %9584 = vst [vmem:[%s13280_s21 + $0xf8] sm:$0xff] %v10658_v44 }
0x2ebd   : > { %10881 = shalt.err (!%p10878_p12)
}
0x2ebe   : > { %s10882_s4 = scalar_lea.hbm %s13333_s20, 4096  ;;  %s10886_s27 = scalar_lea.hbm %s13395_s13, 8192 }
0x2ebf   : > { %p10883_p10 = scmp.ne.s32.totalorder %s13333_s20, %s10882_s4  ;;  %p10887_p3 = scmp.lt.s32.totalorder %s13333_s20, %s13395_s13 }
0x2ec0   : > { %p10888_p9 = scmp.lt.s32.totalorder %s10886_s27, %s10882_s4 }
0x2ec1   : > { %p10884_p11 = pnand %p10883_p10, %p11078_p5 }
0x2ec2   : > { %p10889_p4 = por %p10888_p9, %p10887_p3 }
0x2ec3   : > { %p10885_p1 = pneg %p10884_p11 }
0x2ec5   : > { %p10890_p13 = pnand %p10889_p4, %p10885_p1 }
0x2ec7   : > { %10893 = shalt.err (!%p10890_p13)
}
0x2ec8   : > { %s10968_s7 = smov 512   ;;  %s10969_s14 = smov 32  }
0x2ec9   : > { %10240 = dma.vmem_to_hbm [thread:$0]  (%p11078_p5), %s13335_s19, 4096, %s13333_s20, %s13342_s29, %s10968_s7, %s10968_s7, %s10969_s14  }
0x2eca PF: > { %p10287_p2 = scmp.ge.s32.totalorder %s10948_s28, 2  ;;  %s8885_s15 = sand.u32 1, %s10936_s25  }
0x2ecb   : > { %s8886_s24 = scalar_lea.sflag [#allocation4], %s8885_s15 }
0x2ecc   : > { %p10268_p7 = pnand %p10287_p2, %p11082_p6 }
0x2ece   : > { %p10269_p8 = pneg %p10268_p7 }
0x2ed0   : > { %10931 = dma.done.wait (%p10269_p8), %s8886_s24, 4096  }
0x2ed1   : > { %10933 = vsyncadd (%p10269_p8), %s8886_s24, 4294963200  ;;  %s13489_s28 = sld [smem:[#allocation24_spill]]  ;;  %s13492_s25 = smov %s10940_s26 }
0x2ed2   : > { %s13490_s30 = sld [smem:[#allocation23_spill]] }
0x2ed3   : > { %s13491_s27 = sld [smem:[#allocation25_spill]] }
0x2ed7   : > { %p28_p0 = scmp.ge.s32.totalorder %s13489_s28, 4  }
0x2ed8   : > { %s13493_s26 = smov %s13490_s30 }
0x2ed9   :  { %30 = sbr.rel (!%p28_p0) target bundleno = 11 (0xb), region = 146 }
0x2ede   :  { %8891 = vsyncpa [#allocation3], 1 }
0x2edf   :  { %8893 = vsyncpa [#allocation3 + $0x1], 1 }
0x2ee0   :  { %8894 = vsyncpa [#allocation6], 1 }
0x2ee1   :  { %8895 = vsyncpa [#allocation9], 1 }
0x2ee2   :  { %8896 = vsyncpa [#allocation12], 1 }
0x2ee3   :  { %8897 = vsyncpa [#allocation15], 1 }
0x2ee4   :  { %8898 = vsyncpa [#allocation4], 1 }
0x2ee5   :  { %8900 = vsyncpa [#allocation4 + $0x1], 1 }

</bundles_post_ra>
